<compile_context>
chip_gen: v6e
topology: v6e:2x2x1
jax: 0.10.0
libtpu: 0.0.40
codegen_flags: <defaults>
</compile_context>

<pallas_src>
import functools

import jax
import jax.numpy as jnp
from jax.experimental import pallas as pl
from jax.experimental.pallas import tpu as pltpu


# Left/right zero halo (pixels) along the W (sublane) axis of the padded VMEM
# scratch.  8 keeps the interior store sublane-aligned and covers dilation<=4.
_LPAD = 8


# ----------------------------------------------------------------------------
# In-kernel helpers
# ----------------------------------------------------------------------------
def _pad_into(xpad_ref, x, H, W, ph):
    """Zero-pad x (H, W, C) into the VMEM scratch xpad_ref (H+2*ph, W+2*_LPAD, C)."""
    xpad_ref[...] = jnp.zeros_like(xpad_ref)
    xpad_ref[ph:ph + H, _LPAD:_LPAD + W, :] = x


def _im2col_matmul(xpad_ref, w_ref, lhs_ref, H, W, C, dilations, ph):
    """3x3 (multi-)dilated conv as ONE MXU matmul.

    Builds the im2col LHS (H*W, 9*len(dilations)*C) in a VMEM scratch from
    shifted views of the padded input, then does a single (H*W, K) @ (K, Cout)
    dot instead of 9 (or 27) tiny MXU pushes.
    """
    t = 0
    for d in dilations:
        for dy in range(3):
            for dx in range(3):
                r0 = (ph - d) + dy * d
                c0 = (_LPAD - d) + dx * d
                tap = xpad_ref[r0:r0 + H, c0:c0 + W, :].reshape(H * W, C)
                lhs_ref[:, t * C:(t + 1) * C] = tap
                t += 1
    return jnp.dot(lhs_ref[...], w_ref[...], preferred_element_type=jnp.float32)


# ----------------------------------------------------------------------------
# Pallas kernels
# ----------------------------------------------------------------------------
def _conv1x1_kernel(x_ref, w_ref, b_ref, o_ref):
    # x_ref: (tm, Cin), w_ref: (Cin, Cout), b_ref: (1, Cout), o_ref: (tm, Cout)
    o_ref[...] = (jnp.dot(x_ref[...], w_ref[...],
                          preferred_element_type=jnp.float32) + b_ref[0])


def _conv3x3_kernel(x_ref, w_ref, b_ref, o_ref, xpad_ref, lhs_ref,
                    *, H, W, Cin, Cout):
    # Plain 3x3 conv (padding=1).  w_ref: (9*Cin, Cout).
    _pad_into(xpad_ref, x_ref[0], H, W, 1)
    acc = _im2col_matmul(xpad_ref, w_ref, lhs_ref, H, W, Cin, (1,), 1) + b_ref[0]
    o_ref[0] = acc.reshape(H, W, Cout)


def _conv3x3_res_kernel(x_ref, res_ref, w_ref, b_ref, o_ref, xpad_ref, lhs_ref,
                        *, H, W, Cin, Cout):
    # 3x3 conv (padding=1) with the skip connection fused into the store.
    _pad_into(xpad_ref, x_ref[0], H, W, 1)
    acc = _im2col_matmul(xpad_ref, w_ref, lhs_ref, H, W, Cin, (1,), 1) + b_ref[0]
    o_ref[0] = acc.reshape(H, W, Cout) + res_ref[0]


def _resblock_kernel(x_ref, w1_ref, b1_ref, w2_ref, b2_ref, o_ref,
                     xpad_ref, lhs_ref, *, H, W, C):
    # Fused residual block: relu(conv3x3(x)), conv3x3(.), + x.
    # The intermediate activation stays in VMEM/vregs.
    _pad_into(xpad_ref, x_ref[0], H, W, 1)
    r = _im2col_matmul(xpad_ref, w1_ref, lhs_ref, H, W, C, (1,), 1) + b1_ref[0]
    r = jnp.maximum(r, 0.0)
    _pad_into(xpad_ref, r.reshape(H, W, C), H, W, 1)
    out = _im2col_matmul(xpad_ref, w2_ref, lhs_ref, H, W, C, (1,), 1) + b2_ref[0]
    o_ref[0] = out.reshape(H, W, C) + x_ref[0]


def _atrous_head_kernel(x_ref, w_ref, b_ref, wp_ref, bp_ref, o_ref, p_ref,
                        xpad_ref, lhs_ref, *, H, W, C, Cp):
    # Fused AtrousConv(d=1,2,4) + channel concat + 1x1 projection + param head.
    # w_ref: (27*C, C) = dilated 3x3 weights with the 1x1 projection folded in.
    # b_ref: (1, C) effective bias.  wp_ref/bp_ref: s1f1_param 1x1 weights.
    _pad_into(xpad_ref, x_ref[0], H, W, 4)
    out = _im2col_matmul(xpad_ref, w_ref, lhs_ref, H, W, C, (1, 2, 4), 4) + b_ref[0]
    o_ref[0] = out.reshape(H, W, C)
    par = jnp.dot(out, wp_ref[...], preferred_element_type=jnp.float32) + bp_ref[0]
    p_ref[0] = par.reshape(H, W, Cp)


# ----------------------------------------------------------------------------
# Wrappers
# ----------------------------------------------------------------------------
def conv1x1_pallas(xf, w, b):
    """xf: (M, Cin), w: (Cin, Cout), b: (1, Cout) -> (M, Cout). Tiled over M."""
    M, Cin = xf.shape
    Cout = w.shape[-1]
    tm = min(M, 1024)
    return pl.pallas_call(
        _conv1x1_kernel,
        out_shape=jax.ShapeDtypeStruct((M, Cout), jnp.float32),
        grid=(pl.cdiv(M, tm),),
        in_specs=[
            pl.BlockSpec((tm, Cin), lambda i: (i, 0)),
            pl.BlockSpec((Cin, Cout), lambda i: (0, 0)),
            pl.BlockSpec((1, Cout), lambda i: (0, 0)),
        ],
        out_specs=pl.BlockSpec((tm, Cout), lambda i: (i, 0)),
        compiler_params=pltpu.CompilerParams(
            dimension_semantics=("parallel",)),
    )(xf, w, b)


def conv3x3_pallas(x, w, b, residual=None):
    """x: (N,H,W,Cin), w: (3,3,Cin,Cout), b: (1,Cout); optional fused skip add."""
    N, H, W, Cin = x.shape
    Cout = w.shape[-1]
    wf = w.reshape(9 * Cin, Cout)
    x_spec = pl.BlockSpec((1, H, W, Cin), lambda n: (n, 0, 0, 0))
    w_spec = pl.BlockSpec((9 * Cin, Cout), lambda n: (0, 0))
    b_spec = pl.BlockSpec((1, Cout), lambda n: (0, 0))
    o_spec = pl.BlockSpec((1, H, W, Cout), lambda n: (n, 0, 0, 0))
    scratch = [pltpu.VMEM((H + 2, W + 2 * _LPAD, Cin), jnp.float32),
               pltpu.VMEM((H * W, 9 * Cin), jnp.float32)]
    if residual is None:
        kernel = functools.partial(_conv3x3_kernel, H=H, W=W, Cin=Cin, Cout=Cout)
        in_specs = [x_spec, w_spec, b_spec]
        args = (x, wf, b)
    else:
        kernel = functools.partial(_conv3x3_res_kernel, H=H, W=W, Cin=Cin, Cout=Cout)
        r_spec = pl.BlockSpec((1, H, W, Cout), lambda n: (n, 0, 0, 0))
        in_specs = [x_spec, r_spec, w_spec, b_spec]
        args = (x, residual, wf, b)
    return pl.pallas_call(
        kernel,
        out_shape=jax.ShapeDtypeStruct((N, H, W, Cout), jnp.float32),
        grid=(N,),
        in_specs=in_specs,
        out_specs=o_spec,
        scratch_shapes=scratch,
        compiler_params=pltpu.CompilerParams(
            dimension_semantics=("parallel",)),
    )(*args)


def resblock_pallas(x, w1, b1, w2, b2):
    """Fused residual block: relu(conv3x3(x; w1,b1)) -> conv3x3(.; w2,b2) + x."""
    N, H, W, C = x.shape
    wf1 = w1.reshape(9 * C, C)
    wf2 = w2.reshape(9 * C, C)
    kernel = functools.partial(_resblock_kernel, H=H, W=W, C=C)
    return pl.pallas_call(
        kernel,
        out_shape=jax.ShapeDtypeStruct((N, H, W, C), jnp.float32),
        grid=(N,),
        in_specs=[
            pl.BlockSpec((1, H, W, C), lambda n: (n, 0, 0, 0)),
            pl.BlockSpec((9 * C, C), lambda n: (0, 0)),
            pl.BlockSpec((1, C), lambda n: (0, 0)),
            pl.BlockSpec((9 * C, C), lambda n: (0, 0)),
            pl.BlockSpec((1, C), lambda n: (0, 0)),
        ],
        out_specs=pl.BlockSpec((1, H, W, C), lambda n: (n, 0, 0, 0)),
        scratch_shapes=[pltpu.VMEM((H + 2, W + 2 * _LPAD, C), jnp.float32),
                        pltpu.VMEM((H * W, 9 * C), jnp.float32)],
        compiler_params=pltpu.CompilerParams(
            dimension_semantics=("parallel",)),
    )(x, wf1, b1, wf2, b2)


def atrous_head_pallas(x, p):
    """Fused AtrousConv + concat + 1x1 + s1f1_param.  x: (N,H,W,C)."""
    N, H, W, C = x.shape
    Cp = p["s1f1_param_w"].shape[-1]
    W1 = p["at_s1f1_w"]                       # (3C, C)
    # Fold the 1x1 projection through each dilated branch's 3x3 weights.
    w_parts = []
    b_eff = p["at_s1f1_b"]
    for i, name in enumerate(("at1", "at2", "at3")):
        chunk = W1[i * C:(i + 1) * C]         # (C, C)
        w_parts.append(
            jnp.einsum("yxcd,de->yxce", p[name + "_w"], chunk).reshape(9 * C, C))
        b_eff = b_eff + p[name + "_b"] @ chunk
    wf = jnp.concatenate(w_parts, axis=0)     # (27C, C), branch-major
    kernel = functools.partial(_atrous_head_kernel, H=H, W=W, C=C, Cp=Cp)
    out, params = pl.pallas_call(
        kernel,
        out_shape=(jax.ShapeDtypeStruct((N, H, W, C), jnp.float32),
                   jax.ShapeDtypeStruct((N, H, W, Cp), jnp.float32)),
        grid=(N,),
        in_specs=[
            pl.BlockSpec((1, H, W, C), lambda n: (n, 0, 0, 0)),
            pl.BlockSpec((27 * C, C), lambda n: (0, 0)),
            pl.BlockSpec((1, C), lambda n: (0, 0)),
            pl.BlockSpec((C, Cp), lambda n: (0, 0)),
            pl.BlockSpec((1, Cp), lambda n: (0, 0)),
        ],
        out_specs=(pl.BlockSpec((1, H, W, C), lambda n: (n, 0, 0, 0)),
                   pl.BlockSpec((1, H, W, Cp), lambda n: (n, 0, 0, 0))),
        scratch_shapes=[pltpu.VMEM((H + 8, W + 2 * _LPAD, C), jnp.float32),
                        pltpu.VMEM((H * W, 27 * C), jnp.float32)],
        compiler_params=pltpu.CompilerParams(
            dimension_semantics=("parallel",)),
    )(x, wf, b_eff, p["s1f1_param_w"], p["s1f1_param_b"])
    return out, params


def pixel_shuffle_nhwc(x, r):
    """NHWC equivalent of torch.nn.PixelShuffle(r) (pure data movement)."""
    N, H, W, C = x.shape
    c = C // (r * r)
    x = x.reshape(N, H, W, c, r, r)
    x = x.transpose(0, 1, 4, 2, 5, 3)
    return x.reshape(N, H * r, W * r, c)


# ----------------------------------------------------------------------------
# DecUnitFirst forward (NHWC)
# ----------------------------------------------------------------------------
def dec_unit_first(x, p):
    N, H, W, C_Q = x.shape
    C = p["s1f1_w"].shape[-1]
    # s1f1: 1x1 conv, tiled matmul over pixels.
    out1 = conv1x1_pallas(x.reshape(N * H * W, C_Q), p["s1f1_w"], p["s1f1_b"])
    out1 = out1.reshape(N, H, W, C)
    # Residual blocks (each fully fused in one kernel).
    out = out1
    for (w1, b1, w2, b2) in p["res_blocks"]:
        out = resblock_pallas(out, w1, b1, w2, b2)
    # conv1 with the out1 skip fused in-kernel.
    out = conv3x3_pallas(out, p["conv1_w"], p["conv1_b"], residual=out1)
    # conv2: C -> 4C.
    out = conv3x3_pallas(out, p["conv2_w"], p["conv2_b"])
    # PixelShuffle(2): pure reshape/transpose glue.
    out = pixel_shuffle_nhwc(out, 2)
    # Fused atrous + concat + 1x1 + param head.
    out, params_out = atrous_head_pallas(out, p)
    return out, params_out


# ----------------------------------------------------------------------------
# Pure-JAX reference (lax.conv) for correctness check
# ----------------------------------------------------------------------------
def _ref_conv(x, w, b, dilation=1):
    k = w.shape[0]
    pad = dilation * (k - 1) // 2
    out = jax.lax.conv_general_dilated(
        x, w, window_strides=(1, 1),
        padding=((pad, pad), (pad, pad)),
        rhs_dilation=(dilation, dilation),
        dimension_numbers=("NHWC", "HWIO", "NHWC"))
    return out + b.reshape(1, 1, 1, -1)


def dec_unit_first_ref(x, p):
    out1 = _ref_conv(x, p["s1f1_w"][None, None], p["s1f1_b"])
    out = out1
    for (w1, b1, w2, b2) in p["res_blocks"]:
        r = jnp.maximum(_ref_conv(out, w1, b1), 0.0)
        r = _ref_conv(r, w2, b2)
        out = out + r
    out = _ref_conv(out, p["conv1_w"], p["conv1_b"])
    out = out1 + out
    out = _ref_conv(out, p["conv2_w"], p["conv2_b"])
    out = pixel_shuffle_nhwc(out, 2)
    o1 = _ref_conv(out, p["at1_w"], p["at1_b"], dilation=1)
    o2 = _ref_conv(out, p["at2_w"], p["at2_b"], dilation=2)
    o3 = _ref_conv(out, p["at3_w"], p["at3_b"], dilation=4)
    cat = jnp.concatenate([o1, o2, o3], axis=-1)
    out = _ref_conv(cat, p["at_s1f1_w"][None, None], p["at_s1f1_b"])
    params_out = _ref_conv(out, p["s1f1_param_w"][None, None], p["s1f1_param_b"])
    return out, params_out


# ----------------------------------------------------------------------------
# Deterministic parameter construction (shapes mirror the PyTorch __init__)
# ----------------------------------------------------------------------------
def make_params(key, in_ch, C_Q, res_num, param_num):
    keys = iter(jax.random.split(key, 64))

    def w3(cin, cout):
        return jax.random.normal(next(keys), (3, 3, cin, cout),
                                 jnp.float32) / jnp.sqrt(9.0 * cin)

    def w1(cin, cout):
        return jax.random.normal(next(keys), (cin, cout),
                                 jnp.float32) / jnp.sqrt(1.0 * cin)

    def bias(cout):
        return 0.01 * jax.random.normal(next(keys), (1, cout), jnp.float32)

    p = {}
    p["s1f1_w"], p["s1f1_b"] = w1(C_Q, in_ch), bias(in_ch)
    p["res_blocks"] = []
    for _ in range(res_num):
        p["res_blocks"].append(
            (w3(in_ch, in_ch), bias(in_ch), w3(in_ch, in_ch), bias(in_ch)))
    p["conv1_w"], p["conv1_b"] = w3(in_ch, in_ch), bias(in_ch)
    p["conv2_w"], p["conv2_b"] = w3(in_ch, 4 * in_ch), bias(4 * in_ch)
    p["at1_w"], p["at1_b"] = w3(in_ch, in_ch), bias(in_ch)
    p["at2_w"], p["at2_b"] = w3(in_ch, in_ch), bias(in_ch)
    p["at3_w"], p["at3_b"] = w3(in_ch, in_ch), bias(in_ch)
    p["at_s1f1_w"], p["at_s1f1_b"] = w1(3 * in_ch, in_ch), bias(in_ch)
    p["s1f1_param_w"], p["s1f1_param_b"] = w1(in_ch, param_num), bias(param_num)
    return p


if __name__ == "__main__":
    in_ch, C_Q, res_num, param_num = 8, 4, 2, 10
    N, H, W = 2, 8, 8

    key = jax.random.PRNGKey(0)
    kx, kp = jax.random.split(key)
    x = jax.random.normal(kx, (N, H, W, C_Q), jnp.float32)   # NHWC input
    params = make_params(kp, in_ch, C_Q, res_num, param_num)

    fwd = jax.jit(dec_unit_first)
    out, mix_params = fwd(x, params)
    out = jax.block_until_ready(out)
    mix_params = jax.block_until_ready(mix_params)

    assert out.shape == (N, 2 * H, 2 * W, in_ch)
    assert mix_params.shape == (N, 2 * H, 2 * W, param_num)

    # Cross-check against a pure-JAX (lax.conv) reference.
    out_ref, params_ref = jax.jit(dec_unit_first_ref)(x, params)
    assert jnp.allclose(out, out_ref, atol=2e-3, rtol=2e-3)
    assert jnp.allclose(mix_params, params_ref, atol=2e-3, rtol=2e-3)

    print("KERNEL_OK")
</pallas_src>

<mosaic_0001>
module attributes {stable_mosaic.version = 11 : i64} {
  func.func @_conv1x1_kernel(%arg0: i32, %arg1: memref<128x4xf32, #tpu.memory_space<vmem>>, %arg2: memref<4x8xf32, #tpu.memory_space<vmem>>, %arg3: memref<1x8xf32, #tpu.memory_space<vmem>>, %arg4: memref<128x8xf32, #tpu.memory_space<vmem>>) attributes {dimension_semantics = [#tpu.dimension_semantics<parallel>], iteration_bounds = array<i64: 1>, scalar_prefetch = 0 : i64, scratch_operands = 0 : i64, tpu.core_type = #tpu.core_type<tc>, window_params = [{transform_indices = @transform_0, window_bounds = array<i64: 128, 4>}, {pipeline_mode = #tpu.pipeline_mode<synchronous>, transform_indices = @transform_1, window_bounds = array<i64: 4, 8>}, {pipeline_mode = #tpu.pipeline_mode<synchronous>, transform_indices = @transform_2, window_bounds = array<i64: 1, 8>}, {transform_indices = @transform_3, window_bounds = array<i64: 128, 8>}]} {
    %c0 = arith.constant 0 : index
    %c0_0 = arith.constant 0 : index
    %0 = vector.load %arg1[%c0, %c0_0] : memref<128x4xf32, #tpu.memory_space<vmem>>, vector<128x4xf32>
    %c0_1 = arith.constant 0 : index
    %c0_2 = arith.constant 0 : index
    %1 = vector.load %arg2[%c0_1, %c0_2] : memref<4x8xf32, #tpu.memory_space<vmem>>, vector<4x8xf32>
    %cst = arith.constant dense<0.000000e+00> : vector<128x8xf32>
    %2 = tpu.matmul %0, %1, %cst {dimension_numbers = #tpu.dot_dimension_numbers<[1], [0], [0], [1], [0, 0, 1, 1], [], []>} : vector<128x4xf32>, vector<4x8xf32>, vector<128x8xf32> -> vector<128x8xf32>
    %c0_3 = arith.constant 0 : index
    %c0_4 = arith.constant 0 : index
    %3 = vector.load %arg3[%c0_3, %c0_4] : memref<1x8xf32, #tpu.memory_space<vmem>>, vector<1x8xf32>
    %4 = vector.shape_cast %3 : vector<1x8xf32> to vector<8xf32>
    %5 = vector.shape_cast %4 : vector<8xf32> to vector<1x8xf32>
    %6 = vector.broadcast %5 : vector<1x8xf32> to vector<128x8xf32>
    %7 = arith.addf %2, %6 : vector<128x8xf32>
    %c0_5 = arith.constant 0 : index
    %c0_6 = arith.constant 0 : index
    %8 = vector.load %arg4[%c0_5, %c0_6] : memref<128x8xf32, #tpu.memory_space<vmem>>, vector<128x8xf32>
    tpu.vector_store %arg4[%c0_5, %c0_6], %7 {strides = array<i32>} : memref<128x8xf32, #tpu.memory_space<vmem>>, vector<128x8xf32>,
    return
  }
  func.func @transform_0(%arg0: i32) -> (i32, i32) {
    %c0_i32 = arith.constant 0 : i32
    %c0_i32_0 = arith.constant 0 : i32
    return %arg0, %c0_i32 : i32, i32
  }
  func.func @transform_1(%arg0: i32) -> (i32, i32) {
    %c0_i32 = arith.constant 0 : i32
    %c0_i32_0 = arith.constant 0 : i32
    %c0_i32_1 = arith.constant 0 : i32
    return %c0_i32, %c0_i32_0 : i32, i32
  }
  func.func @transform_2(%arg0: i32) -> (i32, i32) {
    %c0_i32 = arith.constant 0 : i32
    %c0_i32_0 = arith.constant 0 : i32
    %c0_i32_1 = arith.constant 0 : i32
    return %c0_i32, %c0_i32_0 : i32, i32
  }
  func.func @transform_3(%arg0: i32) -> (i32, i32) {
    %c0_i32 = arith.constant 0 : i32
    %c0_i32_0 = arith.constant 0 : i32
    return %arg0, %c0_i32 : i32, i32
  }
}

module attributes {stable_mosaic.version = 11 : i64} {
  func.func @_conv3x3_res_kernel(%arg0: i32, %arg1: memref<1x8x8x8xf32, #tpu.memory_space<vmem>>, %arg2: memref<1x8x8x8xf32, #tpu.memory_space<vmem>>, %arg3: memref<72x8xf32, #tpu.memory_space<vmem>>, %arg4: memref<1x8xf32, #tpu.memory_space<vmem>>, %arg5: memref<1x8x8x8xf32, #tpu.memory_space<vmem>>, %arg6: memref<10x24x8xf32, #tpu.memory_space<vmem>>, %arg7: memref<64x72xf32, #tpu.memory_space<vmem>>) attributes {dimension_semantics = [#tpu.dimension_semantics<parallel>], iteration_bounds = array<i64: 2>, scalar_prefetch = 0 : i64, scratch_operands = 2 : i64, tpu.core_type = #tpu.core_type<tc>, window_params = [{transform_indices = @transform_0, window_bounds = array<i64: 1, 8, 8, 8>}, {transform_indices = @transform_1, window_bounds = array<i64: 1, 8, 8, 8>}, {pipeline_mode = #tpu.pipeline_mode<synchronous>, transform_indices = @transform_2, window_bounds = array<i64: 72, 8>}, {pipeline_mode = #tpu.pipeline_mode<synchronous>, transform_indices = @transform_3, window_bounds = array<i64: 1, 8>}, {transform_indices = @transform_4, window_bounds = array<i64: 1, 8, 8, 8>}]} {
    %c0 = arith.constant 0 : index
    %c0_0 = arith.constant 0 : index
    %c0_1 = arith.constant 0 : index
    %c0_2 = arith.constant 0 : index
    %0 = vector.load %arg1[%c0, %c0_0, %c0_1, %c0_2] : memref<1x8x8x8xf32, #tpu.memory_space<vmem>>, vector<1x8x8x8xf32>
    %1 = vector.shape_cast %0 : vector<1x8x8x8xf32> to vector<8x8x8xf32>
    %cst = arith.constant 0.000000e+00 : f32
    %2 = vector.broadcast %cst : f32 to vector<10x24x8xf32>
    %c0_3 = arith.constant 0 : index
    %c0_4 = arith.constant 0 : index
    %c0_5 = arith.constant 0 : index
    %3 = vector.load %arg6[%c0_3, %c0_4, %c0_5] : memref<10x24x8xf32, #tpu.memory_space<vmem>>, vector<10x24x8xf32>
    tpu.vector_store %arg6[%c0_3, %c0_4, %c0_5], %2 {strides = array<i32>} : memref<10x24x8xf32, #tpu.memory_space<vmem>>, vector<10x24x8xf32>,
    %c1 = arith.constant 1 : index
    %c8 = arith.constant 8 : index
    %c0_6 = arith.constant 0 : index
    %4 = vector.load %arg6[%c1, %c8, %c0_6] : memref<10x24x8xf32, #tpu.memory_space<vmem>>, vector<8x8x8xf32>
    tpu.vector_store %arg6[%c1, %c8, %c0_6], %1 {strides = array<i32>} : memref<10x24x8xf32, #tpu.memory_space<vmem>>, vector<8x8x8xf32>,
    %c0_7 = arith.constant 0 : index
    %c7 = arith.constant 7 : index
    %c0_8 = arith.constant 0 : index
    %5 = vector.load %arg6[%c0_7, %c7, %c0_8] : memref<10x24x8xf32, #tpu.memory_space<vmem>>, vector<8x8x8xf32>
    %6 = vector.shape_cast %5 : vector<8x8x8xf32> to vector<64x8xf32>
    %c0_9 = arith.constant 0 : index
    %c0_10 = arith.constant 0 : index
    %7 = vector.load %arg7[%c0_9, %c0_10] : memref<64x72xf32, #tpu.memory_space<vmem>>, vector<64x8xf32>
    tpu.vector_store %arg7[%c0_9, %c0_10], %6 {strides = array<i32>} : memref<64x72xf32, #tpu.memory_space<vmem>>, vector<64x8xf32>,
    %c0_11 = arith.constant 0 : index
    %c8_12 = arith.constant 8 : index
    %c0_13 = arith.constant 0 : index
    %8 = vector.load %arg6[%c0_11, %c8_12, %c0_13] : memref<10x24x8xf32, #tpu.memory_space<vmem>>, vector<8x8x8xf32>
    %9 = vector.shape_cast %8 : vector<8x8x8xf32> to vector<64x8xf32>
    %c0_14 = arith.constant 0 : index
    %c8_15 = arith.constant 8 : index
    %10 = vector.load %arg7[%c0_14, %c8_15] : memref<64x72xf32, #tpu.memory_space<vmem>>, vector<64x8xf32>
    tpu.vector_store %arg7[%c0_14, %c8_15], %9 {strides = array<i32>} : memref<64x72xf32, #tpu.memory_space<vmem>>, vector<64x8xf32>,
    %c0_16 = arith.constant 0 : index
    %c9 = arith.constant 9 : index
    %c0_17 = arith.constant 0 : index
    %11 = vector.load %arg6[%c0_16, %c9, %c0_17] : memref<10x24x8xf32, #tpu.memory_space<vmem>>, vector<8x8x8xf32>
    %12 = vector.shape_cast %11 : vector<8x8x8xf32> to vector<64x8xf32>
    %c0_18 = arith.constant 0 : index
    %c16 = arith.constant 16 : index
    %13 = vector.load %arg7[%c0_18, %c16] : memref<64x72xf32, #tpu.memory_space<vmem>>, vector<64x8xf32>
    tpu.vector_store %arg7[%c0_18, %c16], %12 {strides = array<i32>} : memref<64x72xf32, #tpu.memory_space<vmem>>, vector<64x8xf32>,
    %c1_19 = arith.constant 1 : index
    %c7_20 = arith.constant 7 : index
    %c0_21 = arith.constant 0 : index
    %14 = vector.load %arg6[%c1_19, %c7_20, %c0_21] : memref<10x24x8xf32, #tpu.memory_space<vmem>>, vector<8x8x8xf32>
    %15 = vector.shape_cast %14 : vector<8x8x8xf32> to vector<64x8xf32>
    %c0_22 = arith.constant 0 : index
    %c24 = arith.constant 24 : index
    %16 = vector.load %arg7[%c0_22, %c24] : memref<64x72xf32, #tpu.memory_space<vmem>>, vector<64x8xf32>
    tpu.vector_store %arg7[%c0_22, %c24], %15 {strides = array<i32>} : memref<64x72xf32, #tpu.memory_space<vmem>>, vector<64x8xf32>,
    %c1_23 = arith.constant 1 : index
    %c8_24 = arith.constant 8 : index
    %c0_25 = arith.constant 0 : index
    %17 = vector.load %arg6[%c1_23, %c8_24, %c0_25] : memref<10x24x8xf32, #tpu.memory_space<vmem>>, vector<8x8x8xf32>
    %18 = vector.shape_cast %17 : vector<8x8x8xf32> to vector<64x8xf32>
    %c0_26 = arith.constant 0 : index
    %c32 = arith.constant 32 : index
    %19 = vector.load %arg7[%c0_26, %c32] : memref<64x72xf32, #tpu.memory_space<vmem>>, vector<64x8xf32>
    tpu.vector_store %arg7[%c0_26, %c32], %18 {strides = array<i32>} : memref<64x72xf32, #tpu.memory_space<vmem>>, vector<64x8xf32>,
    %c1_27 = arith.constant 1 : index
    %c9_28 = arith.constant 9 : index
    %c0_29 = arith.constant 0 : index
    %20 = vector.load %arg6[%c1_27, %c9_28, %c0_29] : memref<10x24x8xf32, #tpu.memory_space<vmem>>, vector<8x8x8xf32>
    %21 = vector.shape_cast %20 : vector<8x8x8xf32> to vector<64x8xf32>
    %c0_30 = arith.constant 0 : index
    %c40 = arith.constant 40 : index
    %22 = vector.load %arg7[%c0_30, %c40] : memref<64x72xf32, #tpu.memory_space<vmem>>, vector<64x8xf32>
    tpu.vector_store %arg7[%c0_30, %c40], %21 {strides = array<i32>} : memref<64x72xf32, #tpu.memory_space<vmem>>, vector<64x8xf32>,
    %c2 = arith.constant 2 : index
    %c7_31 = arith.constant 7 : index
    %c0_32 = arith.constant 0 : index
    %23 = vector.load %arg6[%c2, %c7_31, %c0_32] : memref<10x24x8xf32, #tpu.memory_space<vmem>>, vector<8x8x8xf32>
    %24 = vector.shape_cast %23 : vector<8x8x8xf32> to vector<64x8xf32>
    %c0_33 = arith.constant 0 : index
    %c48 = arith.constant 48 : index
    %25 = vector.load %arg7[%c0_33, %c48] : memref<64x72xf32, #tpu.memory_space<vmem>>, vector<64x8xf32>
    tpu.vector_store %arg7[%c0_33, %c48], %24 {strides = array<i32>} : memref<64x72xf32, #tpu.memory_space<vmem>>, vector<64x8xf32>,
    %c2_34 = arith.constant 2 : index
    %c8_35 = arith.constant 8 : index
    %c0_36 = arith.constant 0 : index
    %26 = vector.load %arg6[%c2_34, %c8_35, %c0_36] : memref<10x24x8xf32, #tpu.memory_space<vmem>>, vector<8x8x8xf32>
    %27 = vector.shape_cast %26 : vector<8x8x8xf32> to vector<64x8xf32>
    %c0_37 = arith.constant 0 : index
    %c56 = arith.constant 56 : index
    %28 = vector.load %arg7[%c0_37, %c56] : memref<64x72xf32, #tpu.memory_space<vmem>>, vector<64x8xf32>
    tpu.vector_store %arg7[%c0_37, %c56], %27 {strides = array<i32>} : memref<64x72xf32, #tpu.memory_space<vmem>>, vector<64x8xf32>,
    %c2_38 = arith.constant 2 : index
    %c9_39 = arith.constant 9 : index
    %c0_40 = arith.constant 0 : index
    %29 = vector.load %arg6[%c2_38, %c9_39, %c0_40] : memref<10x24x8xf32, #tpu.memory_space<vmem>>, vector<8x8x8xf32>
    %30 = vector.shape_cast %29 : vector<8x8x8xf32> to vector<64x8xf32>
    %c0_41 = arith.constant 0 : index
    %c64 = arith.constant 64 : index
    %31 = vector.load %arg7[%c0_41, %c64] : memref<64x72xf32, #tpu.memory_space<vmem>>, vector<64x8xf32>
    tpu.vector_store %arg7[%c0_41, %c64], %30 {strides = array<i32>} : memref<64x72xf32, #tpu.memory_space<vmem>>, vector<64x8xf32>,
    %c0_42 = arith.constant 0 : index
    %c0_43 = arith.constant 0 : index
    %32 = vector.load %arg7[%c0_42, %c0_43] : memref<64x72xf32, #tpu.memory_space<vmem>>, vector<64x72xf32>
    %c0_44 = arith.constant 0 : index
    %c0_45 = arith.constant 0 : index
    %33 = vector.load %arg3[%c0_44, %c0_45] : memref<72x8xf32, #tpu.memory_space<vmem>>, vector<72x8xf32>
    %cst_46 = arith.constant dense<0.000000e+00> : vector<64x8xf32>
    %34 = tpu.matmul %32, %33, %cst_46 {dimension_numbers = #tpu.dot_dimension_numbers<[1], [0], [0], [1], [0, 0, 1, 1], [], []>} : vector<64x72xf32>, vector<72x8xf32>, vector<64x8xf32> -> vector<64x8xf32>
    %c0_47 = arith.constant 0 : index
    %c0_48 = arith.constant 0 : index
    %35 = vector.load %arg4[%c0_47, %c0_48] : memref<1x8xf32, #tpu.memory_space<vmem>>, vector<1x8xf32>
    %36 = vector.shape_cast %35 : vector<1x8xf32> to vector<8xf32>
    %37 = vector.shape_cast %36 : vector<8xf32> to vector<1x8xf32>
    %38 = vector.broadcast %37 : vector<1x8xf32> to vector<64x8xf32>
    %39 = arith.addf %34, %38 : vector<64x8xf32>
    %40 = vector.shape_cast %39 : vector<64x8xf32> to vector<8x8x8xf32>
    %c0_49 = arith.constant 0 : index
    %c0_50 = arith.constant 0 : index
    %c0_51 = arith.constant 0 : index
    %c0_52 = arith.constant 0 : index
    %41 = vector.load %arg2[%c0_49, %c0_50, %c0_51, %c0_52] : memref<1x8x8x8xf32, #tpu.memory_space<vmem>>, vector<1x8x8x8xf32>
    %42 = vector.shape_cast %41 : vector<1x8x8x8xf32> to vector<8x8x8xf32>
    %43 = arith.addf %40, %42 : vector<8x8x8xf32>
    %c0_53 = arith.constant 0 : index
    %c0_54 = arith.constant 0 : index
    %c0_55 = arith.constant 0 : index
    %c0_56 = arith.constant 0 : index
    %44 = vector.load %arg5[%c0_53, %c0_54, %c0_55, %c0_56] : memref<1x8x8x8xf32, #tpu.memory_space<vmem>>, vector<1x8x8x8xf32>
    %45 = vector.shape_cast %44 : vector<1x8x8x8xf32> to vector<8x8x8xf32>
    %46 = vector.shape_cast %43 : vector<8x8x8xf32> to vector<1x8x8x8xf32>
    tpu.vector_store %arg5[%c0_53, %c0_54, %c0_55, %c0_56], %46 {strides = array<i32>} : memref<1x8x8x8xf32, #tpu.memory_space<vmem>>, vector<1x8x8x8xf32>,
    return
  }
  func.func @transform_0(%arg0: i32) -> (i32, i32, i32, i32) {
    %c0_i32 = arith.constant 0 : i32
    %c0_i32_0 = arith.constant 0 : i32
    %c0_i32_1 = arith.constant 0 : i32
    %c0_i32_2 = arith.constant 0 : i32
    return %arg0, %c0_i32, %c0_i32_0, %c0_i32_1 : i32, i32, i32, i32
  }
  func.func @transform_1(%arg0: i32) -> (i32, i32, i32, i32) {
    %c0_i32 = arith.constant 0 : i32
    %c0_i32_0 = arith.constant 0 : i32
    %c0_i32_1 = arith.constant 0 : i32
    %c0_i32_2 = arith.constant 0 : i32
    return %arg0, %c0_i32, %c0_i32_0, %c0_i32_1 : i32, i32, i32, i32
  }
  func.func @transform_2(%arg0: i32) -> (i32, i32) {
    %c0_i32 = arith.constant 0 : i32
    %c0_i32_0 = arith.constant 0 : i32
    %c0_i32_1 = arith.constant 0 : i32
    return %c0_i32, %c0_i32_0 : i32, i32
  }
  func.func @transform_3(%arg0: i32) -> (i32, i32) {
    %c0_i32 = arith.constant 0 : i32
    %c0_i32_0 = arith.constant 0 : i32
    %c0_i32_1 = arith.constant 0 : i32
    return %c0_i32, %c0_i32_0 : i32, i32
  }
  func.func @transform_4(%arg0: i32) -> (i32, i32, i32, i32) {
    %c0_i32 = arith.constant 0 : i32
    %c0_i32_0 = arith.constant 0 : i32
    %c0_i32_1 = arith.constant 0 : i32
    %c0_i32_2 = arith.constant 0 : i32
    return %arg0, %c0_i32, %c0_i32_0, %c0_i32_1 : i32, i32, i32, i32
  }
}

module attributes {stable_mosaic.version = 11 : i64} {
  func.func @_resblock_kernel(%arg0: i32, %arg1: memref<1x8x8x8xf32, #tpu.memory_space<vmem>>, %arg2: memref<72x8xf32, #tpu.memory_space<vmem>>, %arg3: memref<1x8xf32, #tpu.memory_space<vmem>>, %arg4: memref<72x8xf32, #tpu.memory_space<vmem>>, %arg5: memref<1x8xf32, #tpu.memory_space<vmem>>, %arg6: memref<1x8x8x8xf32, #tpu.memory_space<vmem>>, %arg7: memref<10x24x8xf32, #tpu.memory_space<vmem>>, %arg8: memref<64x72xf32, #tpu.memory_space<vmem>>) attributes {dimension_semantics = [#tpu.dimension_semantics<parallel>], iteration_bounds = array<i64: 2>, scalar_prefetch = 0 : i64, scratch_operands = 2 : i64, tpu.core_type = #tpu.core_type<tc>, window_params = [{transform_indices = @transform_0, window_bounds = array<i64: 1, 8, 8, 8>}, {pipeline_mode = #tpu.pipeline_mode<synchronous>, transform_indices = @transform_1, window_bounds = array<i64: 72, 8>}, {pipeline_mode = #tpu.pipeline_mode<synchronous>, transform_indices = @transform_2, window_bounds = array<i64: 1, 8>}, {pipeline_mode = #tpu.pipeline_mode<synchronous>, transform_indices = @transform_3, window_bounds = array<i64: 72, 8>}, {pipeline_mode = #tpu.pipeline_mode<synchronous>, transform_indices = @transform_4, window_bounds = array<i64: 1, 8>}, {transform_indices = @transform_5, window_bounds = array<i64: 1, 8, 8, 8>}]} {
    %c0 = arith.constant 0 : index
    %c0_0 = arith.constant 0 : index
    %c0_1 = arith.constant 0 : index
    %c0_2 = arith.constant 0 : index
    %0 = vector.load %arg1[%c0, %c0_0, %c0_1, %c0_2] : memref<1x8x8x8xf32, #tpu.memory_space<vmem>>, vector<1x8x8x8xf32>
    %1 = vector.shape_cast %0 : vector<1x8x8x8xf32> to vector<8x8x8xf32>
    %cst = arith.constant 0.000000e+00 : f32
    %2 = vector.broadcast %cst : f32 to vector<10x24x8xf32>
    %c0_3 = arith.constant 0 : index
    %c0_4 = arith.constant 0 : index
    %c0_5 = arith.constant 0 : index
    %3 = vector.load %arg7[%c0_3, %c0_4, %c0_5] : memref<10x24x8xf32, #tpu.memory_space<vmem>>, vector<10x24x8xf32>
    tpu.vector_store %arg7[%c0_3, %c0_4, %c0_5], %2 {strides = array<i32>} : memref<10x24x8xf32, #tpu.memory_space<vmem>>, vector<10x24x8xf32>,
    %c1 = arith.constant 1 : index
    %c8 = arith.constant 8 : index
    %c0_6 = arith.constant 0 : index
    %4 = vector.load %arg7[%c1, %c8, %c0_6] : memref<10x24x8xf32, #tpu.memory_space<vmem>>, vector<8x8x8xf32>
    tpu.vector_store %arg7[%c1, %c8, %c0_6], %1 {strides = array<i32>} : memref<10x24x8xf32, #tpu.memory_space<vmem>>, vector<8x8x8xf32>,
    %c0_7 = arith.constant 0 : index
    %c7 = arith.constant 7 : index
    %c0_8 = arith.constant 0 : index
    %5 = vector.load %arg7[%c0_7, %c7, %c0_8] : memref<10x24x8xf32, #tpu.memory_space<vmem>>, vector<8x8x8xf32>
    %6 = vector.shape_cast %5 : vector<8x8x8xf32> to vector<64x8xf32>
    %c0_9 = arith.constant 0 : index
    %c0_10 = arith.constant 0 : index
    %7 = vector.load %arg8[%c0_9, %c0_10] : memref<64x72xf32, #tpu.memory_space<vmem>>, vector<64x8xf32>
    tpu.vector_store %arg8[%c0_9, %c0_10], %6 {strides = array<i32>} : memref<64x72xf32, #tpu.memory_space<vmem>>, vector<64x8xf32>,
    %c0_11 = arith.constant 0 : index
    %c8_12 = arith.constant 8 : index
    %c0_13 = arith.constant 0 : index
    %8 = vector.load %arg7[%c0_11, %c8_12, %c0_13] : memref<10x24x8xf32, #tpu.memory_space<vmem>>, vector<8x8x8xf32>
    %9 = vector.shape_cast %8 : vector<8x8x8xf32> to vector<64x8xf32>
    %c0_14 = arith.constant 0 : index
    %c8_15 = arith.constant 8 : index
    %10 = vector.load %arg8[%c0_14, %c8_15] : memref<64x72xf32, #tpu.memory_space<vmem>>, vector<64x8xf32>
    tpu.vector_store %arg8[%c0_14, %c8_15], %9 {strides = array<i32>} : memref<64x72xf32, #tpu.memory_space<vmem>>, vector<64x8xf32>,
    %c0_16 = arith.constant 0 : index
    %c9 = arith.constant 9 : index
    %c0_17 = arith.constant 0 : index
    %11 = vector.load %arg7[%c0_16, %c9, %c0_17] : memref<10x24x8xf32, #tpu.memory_space<vmem>>, vector<8x8x8xf32>
    %12 = vector.shape_cast %11 : vector<8x8x8xf32> to vector<64x8xf32>
    %c0_18 = arith.constant 0 : index
    %c16 = arith.constant 16 : index
    %13 = vector.load %arg8[%c0_18, %c16] : memref<64x72xf32, #tpu.memory_space<vmem>>, vector<64x8xf32>
    tpu.vector_store %arg8[%c0_18, %c16], %12 {strides = array<i32>} : memref<64x72xf32, #tpu.memory_space<vmem>>, vector<64x8xf32>,
    %c1_19 = arith.constant 1 : index
    %c7_20 = arith.constant 7 : index
    %c0_21 = arith.constant 0 : index
    %14 = vector.load %arg7[%c1_19, %c7_20, %c0_21] : memref<10x24x8xf32, #tpu.memory_space<vmem>>, vector<8x8x8xf32>
    %15 = vector.shape_cast %14 : vector<8x8x8xf32> to vector<64x8xf32>
    %c0_22 = arith.constant 0 : index
    %c24 = arith.constant 24 : index
    %16 = vector.load %arg8[%c0_22, %c24] : memref<64x72xf32, #tpu.memory_space<vmem>>, vector<64x8xf32>
    tpu.vector_store %arg8[%c0_22, %c24], %15 {strides = array<i32>} : memref<64x72xf32, #tpu.memory_space<vmem>>, vector<64x8xf32>,
    %c1_23 = arith.constant 1 : index
    %c8_24 = arith.constant 8 : index
    %c0_25 = arith.constant 0 : index
    %17 = vector.load %arg7[%c1_23, %c8_24, %c0_25] : memref<10x24x8xf32, #tpu.memory_space<vmem>>, vector<8x8x8xf32>
    %18 = vector.shape_cast %17 : vector<8x8x8xf32> to vector<64x8xf32>
    %c0_26 = arith.constant 0 : index
    %c32 = arith.constant 32 : index
    %19 = vector.load %arg8[%c0_26, %c32] : memref<64x72xf32, #tpu.memory_space<vmem>>, vector<64x8xf32>
    tpu.vector_store %arg8[%c0_26, %c32], %18 {strides = array<i32>} : memref<64x72xf32, #tpu.memory_space<vmem>>, vector<64x8xf32>,
    %c1_27 = arith.constant 1 : index
    %c9_28 = arith.constant 9 : index
    %c0_29 = arith.constant 0 : index
    %20 = vector.load %arg7[%c1_27, %c9_28, %c0_29] : memref<10x24x8xf32, #tpu.memory_space<vmem>>, vector<8x8x8xf32>
    %21 = vector.shape_cast %20 : vector<8x8x8xf32> to vector<64x8xf32>
    %c0_30 = arith.constant 0 : index
    %c40 = arith.constant 40 : index
    %22 = vector.load %arg8[%c0_30, %c40] : memref<64x72xf32, #tpu.memory_space<vmem>>, vector<64x8xf32>
    tpu.vector_store %arg8[%c0_30, %c40], %21 {strides = array<i32>} : memref<64x72xf32, #tpu.memory_space<vmem>>, vector<64x8xf32>,
    %c2 = arith.constant 2 : index
    %c7_31 = arith.constant 7 : index
    %c0_32 = arith.constant 0 : index
    %23 = vector.load %arg7[%c2, %c7_31, %c0_32] : memref<10x24x8xf32, #tpu.memory_space<vmem>>, vector<8x8x8xf32>
    %24 = vector.shape_cast %23 : vector<8x8x8xf32> to vector<64x8xf32>
    %c0_33 = arith.constant 0 : index
    %c48 = arith.constant 48 : index
    %25 = vector.load %arg8[%c0_33, %c48] : memref<64x72xf32, #tpu.memory_space<vmem>>, vector<64x8xf32>
    tpu.vector_store %arg8[%c0_33, %c48], %24 {strides = array<i32>} : memref<64x72xf32, #tpu.memory_space<vmem>>, vector<64x8xf32>,
    %c2_34 = arith.constant 2 : index
    %c8_35 = arith.constant 8 : index
    %c0_36 = arith.constant 0 : index
    %26 = vector.load %arg7[%c2_34, %c8_35, %c0_36] : memref<10x24x8xf32, #tpu.memory_space<vmem>>, vector<8x8x8xf32>
    %27 = vector.shape_cast %26 : vector<8x8x8xf32> to vector<64x8xf32>
    %c0_37 = arith.constant 0 : index
    %c56 = arith.constant 56 : index
    %28 = vector.load %arg8[%c0_37, %c56] : memref<64x72xf32, #tpu.memory_space<vmem>>, vector<64x8xf32>
    tpu.vector_store %arg8[%c0_37, %c56], %27 {strides = array<i32>} : memref<64x72xf32, #tpu.memory_space<vmem>>, vector<64x8xf32>,
    %c2_38 = arith.constant 2 : index
    %c9_39 = arith.constant 9 : index
    %c0_40 = arith.constant 0 : index
    %29 = vector.load %arg7[%c2_38, %c9_39, %c0_40] : memref<10x24x8xf32, #tpu.memory_space<vmem>>, vector<8x8x8xf32>
    %30 = vector.shape_cast %29 : vector<8x8x8xf32> to vector<64x8xf32>
    %c0_41 = arith.constant 0 : index
    %c64 = arith.constant 64 : index
    %31 = vector.load %arg8[%c0_41, %c64] : memref<64x72xf32, #tpu.memory_space<vmem>>, vector<64x8xf32>
    tpu.vector_store %arg8[%c0_41, %c64], %30 {strides = array<i32>} : memref<64x72xf32, #tpu.memory_space<vmem>>, vector<64x8xf32>,
    %c0_42 = arith.constant 0 : index
    %c0_43 = arith.constant 0 : index
    %32 = vector.load %arg8[%c0_42, %c0_43] : memref<64x72xf32, #tpu.memory_space<vmem>>, vector<64x72xf32>
    %c0_44 = arith.constant 0 : index
    %c0_45 = arith.constant 0 : index
    %33 = vector.load %arg2[%c0_44, %c0_45] : memref<72x8xf32, #tpu.memory_space<vmem>>, vector<72x8xf32>
    %cst_46 = arith.constant dense<0.000000e+00> : vector<64x8xf32>
    %34 = tpu.matmul %32, %33, %cst_46 {dimension_numbers = #tpu.dot_dimension_numbers<[1], [0], [0], [1], [0, 0, 1, 1], [], []>} : vector<64x72xf32>, vector<72x8xf32>, vector<64x8xf32> -> vector<64x8xf32>
    %c0_47 = arith.constant 0 : index
    %c0_48 = arith.constant 0 : index
    %35 = vector.load %arg3[%c0_47, %c0_48] : memref<1x8xf32, #tpu.memory_space<vmem>>, vector<1x8xf32>
    %36 = vector.shape_cast %35 : vector<1x8xf32> to vector<8xf32>
    %37 = vector.shape_cast %36 : vector<8xf32> to vector<1x8xf32>
    %38 = vector.broadcast %37 : vector<1x8xf32> to vector<64x8xf32>
    %39 = arith.addf %34, %38 : vector<64x8xf32>
    %cst_49 = arith.constant 0.000000e+00 : f32
    %40 = vector.broadcast %cst_49 : f32 to vector<64x8xf32>
    %41 = arith.maximumf %39, %40 : vector<64x8xf32>
    %42 = vector.shape_cast %41 : vector<64x8xf32> to vector<8x8x8xf32>
    %cst_50 = arith.constant 0.000000e+00 : f32
    %43 = vector.broadcast %cst_50 : f32 to vector<10x24x8xf32>
    %c0_51 = arith.constant 0 : index
    %c0_52 = arith.constant 0 : index
    %c0_53 = arith.constant 0 : index
    %44 = vector.load %arg7[%c0_51, %c0_52, %c0_53] : memref<10x24x8xf32, #tpu.memory_space<vmem>>, vector<10x24x8xf32>
    tpu.vector_store %arg7[%c0_51, %c0_52, %c0_53], %43 {strides = array<i32>} : memref<10x24x8xf32, #tpu.memory_space<vmem>>, vector<10x24x8xf32>,
    %c1_54 = arith.constant 1 : index
    %c8_55 = arith.constant 8 : index
    %c0_56 = arith.constant 0 : index
    %45 = vector.load %arg7[%c1_54, %c8_55, %c0_56] : memref<10x24x8xf32, #tpu.memory_space<vmem>>, vector<8x8x8xf32>
    tpu.vector_store %arg7[%c1_54, %c8_55, %c0_56], %42 {strides = array<i32>} : memref<10x24x8xf32, #tpu.memory_space<vmem>>, vector<8x8x8xf32>,
    %c0_57 = arith.constant 0 : index
    %c7_58 = arith.constant 7 : index
    %c0_59 = arith.constant 0 : index
    %46 = vector.load %arg7[%c0_57, %c7_58, %c0_59] : memref<10x24x8xf32, #tpu.memory_space<vmem>>, vector<8x8x8xf32>
    %47 = vector.shape_cast %46 : vector<8x8x8xf32> to vector<64x8xf32>
    %c0_60 = arith.constant 0 : index
    %c0_61 = arith.constant 0 : index
    %48 = vector.load %arg8[%c0_60, %c0_61] : memref<64x72xf32, #tpu.memory_space<vmem>>, vector<64x8xf32>
    tpu.vector_store %arg8[%c0_60, %c0_61], %47 {strides = array<i32>} : memref<64x72xf32, #tpu.memory_space<vmem>>, vector<64x8xf32>,
    %c0_62 = arith.constant 0 : index
    %c8_63 = arith.constant 8 : index
    %c0_64 = arith.constant 0 : index
    %49 = vector.load %arg7[%c0_62, %c8_63, %c0_64] : memref<10x24x8xf32, #tpu.memory_space<vmem>>, vector<8x8x8xf32>
    %50 = vector.shape_cast %49 : vector<8x8x8xf32> to vector<64x8xf32>
    %c0_65 = arith.constant 0 : index
    %c8_66 = arith.constant 8 : index
    %51 = vector.load %arg8[%c0_65, %c8_66] : memref<64x72xf32, #tpu.memory_space<vmem>>, vector<64x8xf32>
    tpu.vector_store %arg8[%c0_65, %c8_66], %50 {strides = array<i32>} : memref<64x72xf32, #tpu.memory_space<vmem>>, vector<64x8xf32>,
    %c0_67 = arith.constant 0 : index
    %c9_68 = arith.constant 9 : index
    %c0_69 = arith.constant 0 : index
    %52 = vector.load %arg7[%c0_67, %c9_68, %c0_69] : memref<10x24x8xf32, #tpu.memory_space<vmem>>, vector<8x8x8xf32>
    %53 = vector.shape_cast %52 : vector<8x8x8xf32> to vector<64x8xf32>
    %c0_70 = arith.constant 0 : index
    %c16_71 = arith.constant 16 : index
    %54 = vector.load %arg8[%c0_70, %c16_71] : memref<64x72xf32, #tpu.memory_space<vmem>>, vector<64x8xf32>
    tpu.vector_store %arg8[%c0_70, %c16_71], %53 {strides = array<i32>} : memref<64x72xf32, #tpu.memory_space<vmem>>, vector<64x8xf32>,
    %c1_72 = arith.constant 1 : index
    %c7_73 = arith.constant 7 : index
    %c0_74 = arith.constant 0 : index
    %55 = vector.load %arg7[%c1_72, %c7_73, %c0_74] : memref<10x24x8xf32, #tpu.memory_space<vmem>>, vector<8x8x8xf32>
    %56 = vector.shape_cast %55 : vector<8x8x8xf32> to vector<64x8xf32>
    %c0_75 = arith.constant 0 : index
    %c24_76 = arith.constant 24 : index
    %57 = vector.load %arg8[%c0_75, %c24_76] : memref<64x72xf32, #tpu.memory_space<vmem>>, vector<64x8xf32>
    tpu.vector_store %arg8[%c0_75, %c24_76], %56 {strides = array<i32>} : memref<64x72xf32, #tpu.memory_space<vmem>>, vector<64x8xf32>,
    %c1_77 = arith.constant 1 : index
    %c8_78 = arith.constant 8 : index
    %c0_79 = arith.constant 0 : index
    %58 = vector.load %arg7[%c1_77, %c8_78, %c0_79] : memref<10x24x8xf32, #tpu.memory_space<vmem>>, vector<8x8x8xf32>
    %59 = vector.shape_cast %58 : vector<8x8x8xf32> to vector<64x8xf32>
    %c0_80 = arith.constant 0 : index
    %c32_81 = arith.constant 32 : index
    %60 = vector.load %arg8[%c0_80, %c32_81] : memref<64x72xf32, #tpu.memory_space<vmem>>, vector<64x8xf32>
    tpu.vector_store %arg8[%c0_80, %c32_81], %59 {strides = array<i32>} : memref<64x72xf32, #tpu.memory_space<vmem>>, vector<64x8xf32>,
    %c1_82 = arith.constant 1 : index
    %c9_83 = arith.constant 9 : index
    %c0_84 = arith.constant 0 : index
    %61 = vector.load %arg7[%c1_82, %c9_83, %c0_84] : memref<10x24x8xf32, #tpu.memory_space<vmem>>, vector<8x8x8xf32>
    %62 = vector.shape_cast %61 : vector<8x8x8xf32> to vector<64x8xf32>
    %c0_85 = arith.constant 0 : index
    %c40_86 = arith.constant 40 : index
    %63 = vector.load %arg8[%c0_85, %c40_86] : memref<64x72xf32, #tpu.memory_space<vmem>>, vector<64x8xf32>
    tpu.vector_store %arg8[%c0_85, %c40_86], %62 {strides = array<i32>} : memref<64x72xf32, #tpu.memory_space<vmem>>, vector<64x8xf32>,
    %c2_87 = arith.constant 2 : index
    %c7_88 = arith.constant 7 : index
    %c0_89 = arith.constant 0 : index
    %64 = vector.load %arg7[%c2_87, %c7_88, %c0_89] : memref<10x24x8xf32, #tpu.memory_space<vmem>>, vector<8x8x8xf32>
    %65 = vector.shape_cast %64 : vector<8x8x8xf32> to vector<64x8xf32>
    %c0_90 = arith.constant 0 : index
    %c48_91 = arith.constant 48 : index
    %66 = vector.load %arg8[%c0_90, %c48_91] : memref<64x72xf32, #tpu.memory_space<vmem>>, vector<64x8xf32>
    tpu.vector_store %arg8[%c0_90, %c48_91], %65 {strides = array<i32>} : memref<64x72xf32, #tpu.memory_space<vmem>>, vector<64x8xf32>,
    %c2_92 = arith.constant 2 : index
    %c8_93 = arith.constant 8 : index
    %c0_94 = arith.constant 0 : index
    %67 = vector.load %arg7[%c2_92, %c8_93, %c0_94] : memref<10x24x8xf32, #tpu.memory_space<vmem>>, vector<8x8x8xf32>
    %68 = vector.shape_cast %67 : vector<8x8x8xf32> to vector<64x8xf32>
    %c0_95 = arith.constant 0 : index
    %c56_96 = arith.constant 56 : index
    %69 = vector.load %arg8[%c0_95, %c56_96] : memref<64x72xf32, #tpu.memory_space<vmem>>, vector<64x8xf32>
    tpu.vector_store %arg8[%c0_95, %c56_96], %68 {strides = array<i32>} : memref<64x72xf32, #tpu.memory_space<vmem>>, vector<64x8xf32>,
    %c2_97 = arith.constant 2 : index
    %c9_98 = arith.constant 9 : index
    %c0_99 = arith.constant 0 : index
    %70 = vector.load %arg7[%c2_97, %c9_98, %c0_99] : memref<10x24x8xf32, #tpu.memory_space<vmem>>, vector<8x8x8xf32>
    %71 = vector.shape_cast %70 : vector<8x8x8xf32> to vector<64x8xf32>
    %c0_100 = arith.constant 0 : index
    %c64_101 = arith.constant 64 : index
    %72 = vector.load %arg8[%c0_100, %c64_101] : memref<64x72xf32, #tpu.memory_space<vmem>>, vector<64x8xf32>
    tpu.vector_store %arg8[%c0_100, %c64_101], %71 {strides = array<i32>} : memref<64x72xf32, #tpu.memory_space<vmem>>, vector<64x8xf32>,
    %c0_102 = arith.constant 0 : index
    %c0_103 = arith.constant 0 : index
    %73 = vector.load %arg8[%c0_102, %c0_103] : memref<64x72xf32, #tpu.memory_space<vmem>>, vector<64x72xf32>
    %c0_104 = arith.constant 0 : index
    %c0_105 = arith.constant 0 : index
    %74 = vector.load %arg4[%c0_104, %c0_105] : memref<72x8xf32, #tpu.memory_space<vmem>>, vector<72x8xf32>
    %cst_106 = arith.constant dense<0.000000e+00> : vector<64x8xf32>
    %75 = tpu.matmul %73, %74, %cst_106 {dimension_numbers = #tpu.dot_dimension_numbers<[1], [0], [0], [1], [0, 0, 1, 1], [], []>} : vector<64x72xf32>, vector<72x8xf32>, vector<64x8xf32> -> vector<64x8xf32>
    %c0_107 = arith.constant 0 : index
    %c0_108 = arith.constant 0 : index
    %76 = vector.load %arg5[%c0_107, %c0_108] : memref<1x8xf32, #tpu.memory_space<vmem>>, vector<1x8xf32>
    %77 = vector.shape_cast %76 : vector<1x8xf32> to vector<8xf32>
    %78 = vector.shape_cast %77 : vector<8xf32> to vector<1x8xf32>
    %79 = vector.broadcast %78 : vector<1x8xf32> to vector<64x8xf32>
    %80 = arith.addf %75, %79 : vector<64x8xf32>
    %81 = vector.shape_cast %80 : vector<64x8xf32> to vector<8x8x8xf32>
    %c0_109 = arith.constant 0 : index
    %c0_110 = arith.constant 0 : index
    %c0_111 = arith.constant 0 : index
    %c0_112 = arith.constant 0 : index
    %82 = vector.load %arg1[%c0_109, %c0_110, %c0_111, %c0_112] : memref<1x8x8x8xf32, #tpu.memory_space<vmem>>, vector<1x8x8x8xf32>
    %83 = vector.shape_cast %82 : vector<1x8x8x8xf32> to vector<8x8x8xf32>
    %84 = arith.addf %81, %83 : vector<8x8x8xf32>
    %c0_113 = arith.constant 0 : index
    %c0_114 = arith.constant 0 : index
    %c0_115 = arith.constant 0 : index
    %c0_116 = arith.constant 0 : index
    %85 = vector.load %arg6[%c0_113, %c0_114, %c0_115, %c0_116] : memref<1x8x8x8xf32, #tpu.memory_space<vmem>>, vector<1x8x8x8xf32>
    %86 = vector.shape_cast %85 : vector<1x8x8x8xf32> to vector<8x8x8xf32>
    %87 = vector.shape_cast %84 : vector<8x8x8xf32> to vector<1x8x8x8xf32>
    tpu.vector_store %arg6[%c0_113, %c0_114, %c0_115, %c0_116], %87 {strides = array<i32>} : memref<1x8x8x8xf32, #tpu.memory_space<vmem>>, vector<1x8x8x8xf32>,
    return
  }
  func.func @transform_0(%arg0: i32) -> (i32, i32, i32, i32) {
    %c0_i32 = arith.constant 0 : i32
    %c0_i32_0 = arith.constant 0 : i32
    %c0_i32_1 = arith.constant 0 : i32
    %c0_i32_2 = arith.constant 0 : i32
    return %arg0, %c0_i32, %c0_i32_0, %c0_i32_1 : i32, i32, i32, i32
  }
  func.func @transform_1(%arg0: i32) -> (i32, i32) {
    %c0_i32 = arith.constant 0 : i32
    %c0_i32_0 = arith.constant 0 : i32
    %c0_i32_1 = arith.constant 0 : i32
    return %c0_i32, %c0_i32_0 : i32, i32
  }
  func.func @transform_2(%arg0: i32) -> (i32, i32) {
    %c0_i32 = arith.constant 0 : i32
    %c0_i32_0 = arith.constant 0 : i32
    %c0_i32_1 = arith.constant 0 : i32
    return %c0_i32, %c0_i32_0 : i32, i32
  }
  func.func @transform_3(%arg0: i32) -> (i32, i32) {
    %c0_i32 = arith.constant 0 : i32
    %c0_i32_0 = arith.constant 0 : i32
    %c0_i32_1 = arith.constant 0 : i32
    return %c0_i32, %c0_i32_0 : i32, i32
  }
  func.func @transform_4(%arg0: i32) -> (i32, i32) {
    %c0_i32 = arith.constant 0 : i32
    %c0_i32_0 = arith.constant 0 : i32
    %c0_i32_1 = arith.constant 0 : i32
    return %c0_i32, %c0_i32_0 : i32, i32
  }
  func.func @transform_5(%arg0: i32) -> (i32, i32, i32, i32) {
    %c0_i32 = arith.constant 0 : i32
    %c0_i32_0 = arith.constant 0 : i32
    %c0_i32_1 = arith.constant 0 : i32
    %c0_i32_2 = arith.constant 0 : i32
    return %arg0, %c0_i32, %c0_i32_0, %c0_i32_1 : i32, i32, i32, i32
  }
}

module attributes {stable_mosaic.version = 11 : i64} {
  func.func @_conv3x3_kernel(%arg0: i32, %arg1: memref<1x8x8x8xf32, #tpu.memory_space<vmem>>, %arg2: memref<72x32xf32, #tpu.memory_space<vmem>>, %arg3: memref<1x32xf32, #tpu.memory_space<vmem>>, %arg4: memref<1x8x8x32xf32, #tpu.memory_space<vmem>>, %arg5: memref<10x24x8xf32, #tpu.memory_space<vmem>>, %arg6: memref<64x72xf32, #tpu.memory_space<vmem>>) attributes {dimension_semantics = [#tpu.dimension_semantics<parallel>], iteration_bounds = array<i64: 2>, scalar_prefetch = 0 : i64, scratch_operands = 2 : i64, tpu.core_type = #tpu.core_type<tc>, window_params = [{transform_indices = @transform_0, window_bounds = array<i64: 1, 8, 8, 8>}, {pipeline_mode = #tpu.pipeline_mode<synchronous>, transform_indices = @transform_1, window_bounds = array<i64: 72, 32>}, {pipeline_mode = #tpu.pipeline_mode<synchronous>, transform_indices = @transform_2, window_bounds = array<i64: 1, 32>}, {transform_indices = @transform_3, window_bounds = array<i64: 1, 8, 8, 32>}]} {
    %c0 = arith.constant 0 : index
    %c0_0 = arith.constant 0 : index
    %c0_1 = arith.constant 0 : index
    %c0_2 = arith.constant 0 : index
    %0 = vector.load %arg1[%c0, %c0_0, %c0_1, %c0_2] : memref<1x8x8x8xf32, #tpu.memory_space<vmem>>, vector<1x8x8x8xf32>
    %1 = vector.shape_cast %0 : vector<1x8x8x8xf32> to vector<8x8x8xf32>
    %cst = arith.constant 0.000000e+00 : f32
    %2 = vector.broadcast %cst : f32 to vector<10x24x8xf32>
    %c0_3 = arith.constant 0 : index
    %c0_4 = arith.constant 0 : index
    %c0_5 = arith.constant 0 : index
    %3 = vector.load %arg5[%c0_3, %c0_4, %c0_5] : memref<10x24x8xf32, #tpu.memory_space<vmem>>, vector<10x24x8xf32>
    tpu.vector_store %arg5[%c0_3, %c0_4, %c0_5], %2 {strides = array<i32>} : memref<10x24x8xf32, #tpu.memory_space<vmem>>, vector<10x24x8xf32>,
    %c1 = arith.constant 1 : index
    %c8 = arith.constant 8 : index
    %c0_6 = arith.constant 0 : index
    %4 = vector.load %arg5[%c1, %c8, %c0_6] : memref<10x24x8xf32, #tpu.memory_space<vmem>>, vector<8x8x8xf32>
    tpu.vector_store %arg5[%c1, %c8, %c0_6], %1 {strides = array<i32>} : memref<10x24x8xf32, #tpu.memory_space<vmem>>, vector<8x8x8xf32>,
    %c0_7 = arith.constant 0 : index
    %c7 = arith.constant 7 : index
    %c0_8 = arith.constant 0 : index
    %5 = vector.load %arg5[%c0_7, %c7, %c0_8] : memref<10x24x8xf32, #tpu.memory_space<vmem>>, vector<8x8x8xf32>
    %6 = vector.shape_cast %5 : vector<8x8x8xf32> to vector<64x8xf32>
    %c0_9 = arith.constant 0 : index
    %c0_10 = arith.constant 0 : index
    %7 = vector.load %arg6[%c0_9, %c0_10] : memref<64x72xf32, #tpu.memory_space<vmem>>, vector<64x8xf32>
    tpu.vector_store %arg6[%c0_9, %c0_10], %6 {strides = array<i32>} : memref<64x72xf32, #tpu.memory_space<vmem>>, vector<64x8xf32>,
    %c0_11 = arith.constant 0 : index
    %c8_12 = arith.constant 8 : index
    %c0_13 = arith.constant 0 : index
    %8 = vector.load %arg5[%c0_11, %c8_12, %c0_13] : memref<10x24x8xf32, #tpu.memory_space<vmem>>, vector<8x8x8xf32>
    %9 = vector.shape_cast %8 : vector<8x8x8xf32> to vector<64x8xf32>
    %c0_14 = arith.constant 0 : index
    %c8_15 = arith.constant 8 : index
    %10 = vector.load %arg6[%c0_14, %c8_15] : memref<64x72xf32, #tpu.memory_space<vmem>>, vector<64x8xf32>
    tpu.vector_store %arg6[%c0_14, %c8_15], %9 {strides = array<i32>} : memref<64x72xf32, #tpu.memory_space<vmem>>, vector<64x8xf32>,
    %c0_16 = arith.constant 0 : index
    %c9 = arith.constant 9 : index
    %c0_17 = arith.constant 0 : index
    %11 = vector.load %arg5[%c0_16, %c9, %c0_17] : memref<10x24x8xf32, #tpu.memory_space<vmem>>, vector<8x8x8xf32>
    %12 = vector.shape_cast %11 : vector<8x8x8xf32> to vector<64x8xf32>
    %c0_18 = arith.constant 0 : index
    %c16 = arith.constant 16 : index
    %13 = vector.load %arg6[%c0_18, %c16] : memref<64x72xf32, #tpu.memory_space<vmem>>, vector<64x8xf32>
    tpu.vector_store %arg6[%c0_18, %c16], %12 {strides = array<i32>} : memref<64x72xf32, #tpu.memory_space<vmem>>, vector<64x8xf32>,
    %c1_19 = arith.constant 1 : index
    %c7_20 = arith.constant 7 : index
    %c0_21 = arith.constant 0 : index
    %14 = vector.load %arg5[%c1_19, %c7_20, %c0_21] : memref<10x24x8xf32, #tpu.memory_space<vmem>>, vector<8x8x8xf32>
    %15 = vector.shape_cast %14 : vector<8x8x8xf32> to vector<64x8xf32>
    %c0_22 = arith.constant 0 : index
    %c24 = arith.constant 24 : index
    %16 = vector.load %arg6[%c0_22, %c24] : memref<64x72xf32, #tpu.memory_space<vmem>>, vector<64x8xf32>
    tpu.vector_store %arg6[%c0_22, %c24], %15 {strides = array<i32>} : memref<64x72xf32, #tpu.memory_space<vmem>>, vector<64x8xf32>,
    %c1_23 = arith.constant 1 : index
    %c8_24 = arith.constant 8 : index
    %c0_25 = arith.constant 0 : index
    %17 = vector.load %arg5[%c1_23, %c8_24, %c0_25] : memref<10x24x8xf32, #tpu.memory_space<vmem>>, vector<8x8x8xf32>
    %18 = vector.shape_cast %17 : vector<8x8x8xf32> to vector<64x8xf32>
    %c0_26 = arith.constant 0 : index
    %c32 = arith.constant 32 : index
    %19 = vector.load %arg6[%c0_26, %c32] : memref<64x72xf32, #tpu.memory_space<vmem>>, vector<64x8xf32>
    tpu.vector_store %arg6[%c0_26, %c32], %18 {strides = array<i32>} : memref<64x72xf32, #tpu.memory_space<vmem>>, vector<64x8xf32>,
    %c1_27 = arith.constant 1 : index
    %c9_28 = arith.constant 9 : index
    %c0_29 = arith.constant 0 : index
    %20 = vector.load %arg5[%c1_27, %c9_28, %c0_29] : memref<10x24x8xf32, #tpu.memory_space<vmem>>, vector<8x8x8xf32>
    %21 = vector.shape_cast %20 : vector<8x8x8xf32> to vector<64x8xf32>
    %c0_30 = arith.constant 0 : index
    %c40 = arith.constant 40 : index
    %22 = vector.load %arg6[%c0_30, %c40] : memref<64x72xf32, #tpu.memory_space<vmem>>, vector<64x8xf32>
    tpu.vector_store %arg6[%c0_30, %c40], %21 {strides = array<i32>} : memref<64x72xf32, #tpu.memory_space<vmem>>, vector<64x8xf32>,
    %c2 = arith.constant 2 : index
    %c7_31 = arith.constant 7 : index
    %c0_32 = arith.constant 0 : index
    %23 = vector.load %arg5[%c2, %c7_31, %c0_32] : memref<10x24x8xf32, #tpu.memory_space<vmem>>, vector<8x8x8xf32>
    %24 = vector.shape_cast %23 : vector<8x8x8xf32> to vector<64x8xf32>
    %c0_33 = arith.constant 0 : index
    %c48 = arith.constant 48 : index
    %25 = vector.load %arg6[%c0_33, %c48] : memref<64x72xf32, #tpu.memory_space<vmem>>, vector<64x8xf32>
    tpu.vector_store %arg6[%c0_33, %c48], %24 {strides = array<i32>} : memref<64x72xf32, #tpu.memory_space<vmem>>, vector<64x8xf32>,
    %c2_34 = arith.constant 2 : index
    %c8_35 = arith.constant 8 : index
    %c0_36 = arith.constant 0 : index
    %26 = vector.load %arg5[%c2_34, %c8_35, %c0_36] : memref<10x24x8xf32, #tpu.memory_space<vmem>>, vector<8x8x8xf32>
    %27 = vector.shape_cast %26 : vector<8x8x8xf32> to vector<64x8xf32>
    %c0_37 = arith.constant 0 : index
    %c56 = arith.constant 56 : index
    %28 = vector.load %arg6[%c0_37, %c56] : memref<64x72xf32, #tpu.memory_space<vmem>>, vector<64x8xf32>
    tpu.vector_store %arg6[%c0_37, %c56], %27 {strides = array<i32>} : memref<64x72xf32, #tpu.memory_space<vmem>>, vector<64x8xf32>,
    %c2_38 = arith.constant 2 : index
    %c9_39 = arith.constant 9 : index
    %c0_40 = arith.constant 0 : index
    %29 = vector.load %arg5[%c2_38, %c9_39, %c0_40] : memref<10x24x8xf32, #tpu.memory_space<vmem>>, vector<8x8x8xf32>
    %30 = vector.shape_cast %29 : vector<8x8x8xf32> to vector<64x8xf32>
    %c0_41 = arith.constant 0 : index
    %c64 = arith.constant 64 : index
    %31 = vector.load %arg6[%c0_41, %c64] : memref<64x72xf32, #tpu.memory_space<vmem>>, vector<64x8xf32>
    tpu.vector_store %arg6[%c0_41, %c64], %30 {strides = array<i32>} : memref<64x72xf32, #tpu.memory_space<vmem>>, vector<64x8xf32>,
    %c0_42 = arith.constant 0 : index
    %c0_43 = arith.constant 0 : index
    %32 = vector.load %arg6[%c0_42, %c0_43] : memref<64x72xf32, #tpu.memory_space<vmem>>, vector<64x72xf32>
    %c0_44 = arith.constant 0 : index
    %c0_45 = arith.constant 0 : index
    %33 = vector.load %arg2[%c0_44, %c0_45] : memref<72x32xf32, #tpu.memory_space<vmem>>, vector<72x32xf32>
    %cst_46 = arith.constant dense<0.000000e+00> : vector<64x32xf32>
    %34 = tpu.matmul %32, %33, %cst_46 {dimension_numbers = #tpu.dot_dimension_numbers<[1], [0], [0], [1], [0, 0, 1, 1], [], []>} : vector<64x72xf32>, vector<72x32xf32>, vector<64x32xf32> -> vector<64x32xf32>
    %c0_47 = arith.constant 0 : index
    %c0_48 = arith.constant 0 : index
    %35 = vector.load %arg3[%c0_47, %c0_48] : memref<1x32xf32, #tpu.memory_space<vmem>>, vector<1x32xf32>
    %36 = vector.shape_cast %35 : vector<1x32xf32> to vector<32xf32>
    %37 = vector.shape_cast %36 : vector<32xf32> to vector<1x32xf32>
    %38 = vector.broadcast %37 : vector<1x32xf32> to vector<64x32xf32>
    %39 = arith.addf %34, %38 : vector<64x32xf32>
    %40 = vector.shape_cast %39 : vector<64x32xf32> to vector<8x8x32xf32>
    %c0_49 = arith.constant 0 : index
    %c0_50 = arith.constant 0 : index
    %c0_51 = arith.constant 0 : index
    %c0_52 = arith.constant 0 : index
    %41 = vector.load %arg4[%c0_49, %c0_50, %c0_51, %c0_52] : memref<1x8x8x32xf32, #tpu.memory_space<vmem>>, vector<1x8x8x32xf32>
    %42 = vector.shape_cast %41 : vector<1x8x8x32xf32> to vector<8x8x32xf32>
    %43 = vector.shape_cast %40 : vector<8x8x32xf32> to vector<1x8x8x32xf32>
    tpu.vector_store %arg4[%c0_49, %c0_50, %c0_51, %c0_52], %43 {strides = array<i32>} : memref<1x8x8x32xf32, #tpu.memory_space<vmem>>, vector<1x8x8x32xf32>,
    return
  }
  func.func @transform_0(%arg0: i32) -> (i32, i32, i32, i32) {
    %c0_i32 = arith.constant 0 : i32
    %c0_i32_0 = arith.constant 0 : i32
    %c0_i32_1 = arith.constant 0 : i32
    %c0_i32_2 = arith.constant 0 : i32
    return %arg0, %c0_i32, %c0_i32_0, %c0_i32_1 : i32, i32, i32, i32
  }
  func.func @transform_1(%arg0: i32) -> (i32, i32) {
    %c0_i32 = arith.constant 0 : i32
    %c0_i32_0 = arith.constant 0 : i32
    %c0_i32_1 = arith.constant 0 : i32
    return %c0_i32, %c0_i32_0 : i32, i32
  }
  func.func @transform_2(%arg0: i32) -> (i32, i32) {
    %c0_i32 = arith.constant 0 : i32
    %c0_i32_0 = arith.constant 0 : i32
    %c0_i32_1 = arith.constant 0 : i32
    return %c0_i32, %c0_i32_0 : i32, i32
  }
  func.func @transform_3(%arg0: i32) -> (i32, i32, i32, i32) {
    %c0_i32 = arith.constant 0 : i32
    %c0_i32_0 = arith.constant 0 : i32
    %c0_i32_1 = arith.constant 0 : i32
    %c0_i32_2 = arith.constant 0 : i32
    return %arg0, %c0_i32, %c0_i32_0, %c0_i32_1 : i32, i32, i32, i32
  }
}

module attributes {stable_mosaic.version = 11 : i64} {
  func.func @_atrous_head_kernel(%arg0: i32, %arg1: memref<1x16x16x8xf32, #tpu.memory_space<vmem>>, %arg2: memref<216x8xf32, #tpu.memory_space<vmem>>, %arg3: memref<1x8xf32, #tpu.memory_space<vmem>>, %arg4: memref<8x10xf32, #tpu.memory_space<vmem>>, %arg5: memref<1x10xf32, #tpu.memory_space<vmem>>, %arg6: memref<1x16x16x8xf32, #tpu.memory_space<vmem>>, %arg7: memref<1x16x16x10xf32, #tpu.memory_space<vmem>>, %arg8: memref<24x32x8xf32, #tpu.memory_space<vmem>>, %arg9: memref<256x216xf32, #tpu.memory_space<vmem>>) attributes {dimension_semantics = [#tpu.dimension_semantics<parallel>], iteration_bounds = array<i64: 2>, scalar_prefetch = 0 : i64, scratch_operands = 2 : i64, tpu.core_type = #tpu.core_type<tc>, window_params = [{transform_indices = @transform_0, window_bounds = array<i64: 1, 16, 16, 8>}, {pipeline_mode = #tpu.pipeline_mode<synchronous>, transform_indices = @transform_1, window_bounds = array<i64: 216, 8>}, {pipeline_mode = #tpu.pipeline_mode<synchronous>, transform_indices = @transform_2, window_bounds = array<i64: 1, 8>}, {pipeline_mode = #tpu.pipeline_mode<synchronous>, transform_indices = @transform_3, window_bounds = array<i64: 8, 10>}, {pipeline_mode = #tpu.pipeline_mode<synchronous>, transform_indices = @transform_4, window_bounds = array<i64: 1, 10>}, {transform_indices = @transform_5, window_bounds = array<i64: 1, 16, 16, 8>}, {transform_indices = @transform_6, window_bounds = array<i64: 1, 16, 16, 10>}]} {
    %c0 = arith.constant 0 : index
    %c0_0 = arith.constant 0 : index
    %c0_1 = arith.constant 0 : index
    %c0_2 = arith.constant 0 : index
    %0 = vector.load %arg1[%c0, %c0_0, %c0_1, %c0_2] : memref<1x16x16x8xf32, #tpu.memory_space<vmem>>, vector<1x16x16x8xf32>
    %1 = vector.shape_cast %0 : vector<1x16x16x8xf32> to vector<16x16x8xf32>
    %cst = arith.constant 0.000000e+00 : f32
    %2 = vector.broadcast %cst : f32 to vector<24x32x8xf32>
    %c0_3 = arith.constant 0 : index
    %c0_4 = arith.constant 0 : index
    %c0_5 = arith.constant 0 : index
    %3 = vector.load %arg8[%c0_3, %c0_4, %c0_5] : memref<24x32x8xf32, #tpu.memory_space<vmem>>, vector<24x32x8xf32>
    tpu.vector_store %arg8[%c0_3, %c0_4, %c0_5], %2 {strides = array<i32>} : memref<24x32x8xf32, #tpu.memory_space<vmem>>, vector<24x32x8xf32>,
    %c4 = arith.constant 4 : index
    %c8 = arith.constant 8 : index
    %c0_6 = arith.constant 0 : index
    %4 = vector.load %arg8[%c4, %c8, %c0_6] : memref<24x32x8xf32, #tpu.memory_space<vmem>>, vector<16x16x8xf32>
    tpu.vector_store %arg8[%c4, %c8, %c0_6], %1 {strides = array<i32>} : memref<24x32x8xf32, #tpu.memory_space<vmem>>, vector<16x16x8xf32>,
    %c3 = arith.constant 3 : index
    %c7 = arith.constant 7 : index
    %c0_7 = arith.constant 0 : index
    %5 = vector.load %arg8[%c3, %c7, %c0_7] : memref<24x32x8xf32, #tpu.memory_space<vmem>>, vector<16x16x8xf32>
    %6 = vector.shape_cast %5 : vector<16x16x8xf32> to vector<256x8xf32>
    %c0_8 = arith.constant 0 : index
    %c0_9 = arith.constant 0 : index
    %7 = vector.load %arg9[%c0_8, %c0_9] : memref<256x216xf32, #tpu.memory_space<vmem>>, vector<256x8xf32>
    tpu.vector_store %arg9[%c0_8, %c0_9], %6 {strides = array<i32>} : memref<256x216xf32, #tpu.memory_space<vmem>>, vector<256x8xf32>,
    %c3_10 = arith.constant 3 : index
    %c8_11 = arith.constant 8 : index
    %c0_12 = arith.constant 0 : index
    %8 = vector.load %arg8[%c3_10, %c8_11, %c0_12] : memref<24x32x8xf32, #tpu.memory_space<vmem>>, vector<16x16x8xf32>
    %9 = vector.shape_cast %8 : vector<16x16x8xf32> to vector<256x8xf32>
    %c0_13 = arith.constant 0 : index
    %c8_14 = arith.constant 8 : index
    %10 = vector.load %arg9[%c0_13, %c8_14] : memref<256x216xf32, #tpu.memory_space<vmem>>, vector<256x8xf32>
    tpu.vector_store %arg9[%c0_13, %c8_14], %9 {strides = array<i32>} : memref<256x216xf32, #tpu.memory_space<vmem>>, vector<256x8xf32>,
    %c3_15 = arith.constant 3 : index
    %c9 = arith.constant 9 : index
    %c0_16 = arith.constant 0 : index
    %11 = vector.load %arg8[%c3_15, %c9, %c0_16] : memref<24x32x8xf32, #tpu.memory_space<vmem>>, vector<16x16x8xf32>
    %12 = vector.shape_cast %11 : vector<16x16x8xf32> to vector<256x8xf32>
    %c0_17 = arith.constant 0 : index
    %c16 = arith.constant 16 : index
    %13 = vector.load %arg9[%c0_17, %c16] : memref<256x216xf32, #tpu.memory_space<vmem>>, vector<256x8xf32>
    tpu.vector_store %arg9[%c0_17, %c16], %12 {strides = array<i32>} : memref<256x216xf32, #tpu.memory_space<vmem>>, vector<256x8xf32>,
    %c4_18 = arith.constant 4 : index
    %c7_19 = arith.constant 7 : index
    %c0_20 = arith.constant 0 : index
    %14 = vector.load %arg8[%c4_18, %c7_19, %c0_20] : memref<24x32x8xf32, #tpu.memory_space<vmem>>, vector<16x16x8xf32>
    %15 = vector.shape_cast %14 : vector<16x16x8xf32> to vector<256x8xf32>
    %c0_21 = arith.constant 0 : index
    %c24 = arith.constant 24 : index
    %16 = vector.load %arg9[%c0_21, %c24] : memref<256x216xf32, #tpu.memory_space<vmem>>, vector<256x8xf32>
    tpu.vector_store %arg9[%c0_21, %c24], %15 {strides = array<i32>} : memref<256x216xf32, #tpu.memory_space<vmem>>, vector<256x8xf32>,
    %c4_22 = arith.constant 4 : index
    %c8_23 = arith.constant 8 : index
    %c0_24 = arith.constant 0 : index
    %17 = vector.load %arg8[%c4_22, %c8_23, %c0_24] : memref<24x32x8xf32, #tpu.memory_space<vmem>>, vector<16x16x8xf32>
    %18 = vector.shape_cast %17 : vector<16x16x8xf32> to vector<256x8xf32>
    %c0_25 = arith.constant 0 : index
    %c32 = arith.constant 32 : index
    %19 = vector.load %arg9[%c0_25, %c32] : memref<256x216xf32, #tpu.memory_space<vmem>>, vector<256x8xf32>
    tpu.vector_store %arg9[%c0_25, %c32], %18 {strides = array<i32>} : memref<256x216xf32, #tpu.memory_space<vmem>>, vector<256x8xf32>,
    %c4_26 = arith.constant 4 : index
    %c9_27 = arith.constant 9 : index
    %c0_28 = arith.constant 0 : index
    %20 = vector.load %arg8[%c4_26, %c9_27, %c0_28] : memref<24x32x8xf32, #tpu.memory_space<vmem>>, vector<16x16x8xf32>
    %21 = vector.shape_cast %20 : vector<16x16x8xf32> to vector<256x8xf32>
    %c0_29 = arith.constant 0 : index
    %c40 = arith.constant 40 : index
    %22 = vector.load %arg9[%c0_29, %c40] : memref<256x216xf32, #tpu.memory_space<vmem>>, vector<256x8xf32>
    tpu.vector_store %arg9[%c0_29, %c40], %21 {strides = array<i32>} : memref<256x216xf32, #tpu.memory_space<vmem>>, vector<256x8xf32>,
    %c5 = arith.constant 5 : index
    %c7_30 = arith.constant 7 : index
    %c0_31 = arith.constant 0 : index
    %23 = vector.load %arg8[%c5, %c7_30, %c0_31] : memref<24x32x8xf32, #tpu.memory_space<vmem>>, vector<16x16x8xf32>
    %24 = vector.shape_cast %23 : vector<16x16x8xf32> to vector<256x8xf32>
    %c0_32 = arith.constant 0 : index
    %c48 = arith.constant 48 : index
    %25 = vector.load %arg9[%c0_32, %c48] : memref<256x216xf32, #tpu.memory_space<vmem>>, vector<256x8xf32>
    tpu.vector_store %arg9[%c0_32, %c48], %24 {strides = array<i32>} : memref<256x216xf32, #tpu.memory_space<vmem>>, vector<256x8xf32>,
    %c5_33 = arith.constant 5 : index
    %c8_34 = arith.constant 8 : index
    %c0_35 = arith.constant 0 : index
    %26 = vector.load %arg8[%c5_33, %c8_34, %c0_35] : memref<24x32x8xf32, #tpu.memory_space<vmem>>, vector<16x16x8xf32>
    %27 = vector.shape_cast %26 : vector<16x16x8xf32> to vector<256x8xf32>
    %c0_36 = arith.constant 0 : index
    %c56 = arith.constant 56 : index
    %28 = vector.load %arg9[%c0_36, %c56] : memref<256x216xf32, #tpu.memory_space<vmem>>, vector<256x8xf32>
    tpu.vector_store %arg9[%c0_36, %c56], %27 {strides = array<i32>} : memref<256x216xf32, #tpu.memory_space<vmem>>, vector<256x8xf32>,
    %c5_37 = arith.constant 5 : index
    %c9_38 = arith.constant 9 : index
    %c0_39 = arith.constant 0 : index
    %29 = vector.load %arg8[%c5_37, %c9_38, %c0_39] : memref<24x32x8xf32, #tpu.memory_space<vmem>>, vector<16x16x8xf32>
    %30 = vector.shape_cast %29 : vector<16x16x8xf32> to vector<256x8xf32>
    %c0_40 = arith.constant 0 : index
    %c64 = arith.constant 64 : index
    %31 = vector.load %arg9[%c0_40, %c64] : memref<256x216xf32, #tpu.memory_space<vmem>>, vector<256x8xf32>
    tpu.vector_store %arg9[%c0_40, %c64], %30 {strides = array<i32>} : memref<256x216xf32, #tpu.memory_space<vmem>>, vector<256x8xf32>,
    %c2 = arith.constant 2 : index
    %c6 = arith.constant 6 : index
    %c0_41 = arith.constant 0 : index
    %32 = vector.load %arg8[%c2, %c6, %c0_41] : memref<24x32x8xf32, #tpu.memory_space<vmem>>, vector<16x16x8xf32>
    %33 = vector.shape_cast %32 : vector<16x16x8xf32> to vector<256x8xf32>
    %c0_42 = arith.constant 0 : index
    %c72 = arith.constant 72 : index
    %34 = vector.load %arg9[%c0_42, %c72] : memref<256x216xf32, #tpu.memory_space<vmem>>, vector<256x8xf32>
    tpu.vector_store %arg9[%c0_42, %c72], %33 {strides = array<i32>} : memref<256x216xf32, #tpu.memory_space<vmem>>, vector<256x8xf32>,
    %c2_43 = arith.constant 2 : index
    %c8_44 = arith.constant 8 : index
    %c0_45 = arith.constant 0 : index
    %35 = vector.load %arg8[%c2_43, %c8_44, %c0_45] : memref<24x32x8xf32, #tpu.memory_space<vmem>>, vector<16x16x8xf32>
    %36 = vector.shape_cast %35 : vector<16x16x8xf32> to vector<256x8xf32>
    %c0_46 = arith.constant 0 : index
    %c80 = arith.constant 80 : index
    %37 = vector.load %arg9[%c0_46, %c80] : memref<256x216xf32, #tpu.memory_space<vmem>>, vector<256x8xf32>
    tpu.vector_store %arg9[%c0_46, %c80], %36 {strides = array<i32>} : memref<256x216xf32, #tpu.memory_space<vmem>>, vector<256x8xf32>,
    %c2_47 = arith.constant 2 : index
    %c10 = arith.constant 10 : index
    %c0_48 = arith.constant 0 : index
    %38 = vector.load %arg8[%c2_47, %c10, %c0_48] : memref<24x32x8xf32, #tpu.memory_space<vmem>>, vector<16x16x8xf32>
    %39 = vector.shape_cast %38 : vector<16x16x8xf32> to vector<256x8xf32>
    %c0_49 = arith.constant 0 : index
    %c88 = arith.constant 88 : index
    %40 = vector.load %arg9[%c0_49, %c88] : memref<256x216xf32, #tpu.memory_space<vmem>>, vector<256x8xf32>
    tpu.vector_store %arg9[%c0_49, %c88], %39 {strides = array<i32>} : memref<256x216xf32, #tpu.memory_space<vmem>>, vector<256x8xf32>,
    %c4_50 = arith.constant 4 : index
    %c6_51 = arith.constant 6 : index
    %c0_52 = arith.constant 0 : index
    %41 = vector.load %arg8[%c4_50, %c6_51, %c0_52] : memref<24x32x8xf32, #tpu.memory_space<vmem>>, vector<16x16x8xf32>
    %42 = vector.shape_cast %41 : vector<16x16x8xf32> to vector<256x8xf32>
    %c0_53 = arith.constant 0 : index
    %c96 = arith.constant 96 : index
    %43 = vector.load %arg9[%c0_53, %c96] : memref<256x216xf32, #tpu.memory_space<vmem>>, vector<256x8xf32>
    tpu.vector_store %arg9[%c0_53, %c96], %42 {strides = array<i32>} : memref<256x216xf32, #tpu.memory_space<vmem>>, vector<256x8xf32>,
    %c4_54 = arith.constant 4 : index
    %c8_55 = arith.constant 8 : index
    %c0_56 = arith.constant 0 : index
    %44 = vector.load %arg8[%c4_54, %c8_55, %c0_56] : memref<24x32x8xf32, #tpu.memory_space<vmem>>, vector<16x16x8xf32>
    %45 = vector.shape_cast %44 : vector<16x16x8xf32> to vector<256x8xf32>
    %c0_57 = arith.constant 0 : index
    %c104 = arith.constant 104 : index
    %46 = vector.load %arg9[%c0_57, %c104] : memref<256x216xf32, #tpu.memory_space<vmem>>, vector<256x8xf32>
    tpu.vector_store %arg9[%c0_57, %c104], %45 {strides = array<i32>} : memref<256x216xf32, #tpu.memory_space<vmem>>, vector<256x8xf32>,
    %c4_58 = arith.constant 4 : index
    %c10_59 = arith.constant 10 : index
    %c0_60 = arith.constant 0 : index
    %47 = vector.load %arg8[%c4_58, %c10_59, %c0_60] : memref<24x32x8xf32, #tpu.memory_space<vmem>>, vector<16x16x8xf32>
    %48 = vector.shape_cast %47 : vector<16x16x8xf32> to vector<256x8xf32>
    %c0_61 = arith.constant 0 : index
    %c112 = arith.constant 112 : index
    %49 = vector.load %arg9[%c0_61, %c112] : memref<256x216xf32, #tpu.memory_space<vmem>>, vector<256x8xf32>
    tpu.vector_store %arg9[%c0_61, %c112], %48 {strides = array<i32>} : memref<256x216xf32, #tpu.memory_space<vmem>>, vector<256x8xf32>,
    %c6_62 = arith.constant 6 : index
    %c6_63 = arith.constant 6 : index
    %c0_64 = arith.constant 0 : index
    %50 = vector.load %arg8[%c6_62, %c6_63, %c0_64] : memref<24x32x8xf32, #tpu.memory_space<vmem>>, vector<16x16x8xf32>
    %51 = vector.shape_cast %50 : vector<16x16x8xf32> to vector<256x8xf32>
    %c0_65 = arith.constant 0 : index
    %c120 = arith.constant 120 : index
    %52 = vector.load %arg9[%c0_65, %c120] : memref<256x216xf32, #tpu.memory_space<vmem>>, vector<256x8xf32>
    tpu.vector_store %arg9[%c0_65, %c120], %51 {strides = array<i32>} : memref<256x216xf32, #tpu.memory_space<vmem>>, vector<256x8xf32>,
    %c6_66 = arith.constant 6 : index
    %c8_67 = arith.constant 8 : index
    %c0_68 = arith.constant 0 : index
    %53 = vector.load %arg8[%c6_66, %c8_67, %c0_68] : memref<24x32x8xf32, #tpu.memory_space<vmem>>, vector<16x16x8xf32>
    %54 = vector.shape_cast %53 : vector<16x16x8xf32> to vector<256x8xf32>
    %c0_69 = arith.constant 0 : index
    %c128 = arith.constant 128 : index
    %55 = vector.load %arg9[%c0_69, %c128] : memref<256x216xf32, #tpu.memory_space<vmem>>, vector<256x8xf32>
    tpu.vector_store %arg9[%c0_69, %c128], %54 {strides = array<i32>} : memref<256x216xf32, #tpu.memory_space<vmem>>, vector<256x8xf32>,
    %c6_70 = arith.constant 6 : index
    %c10_71 = arith.constant 10 : index
    %c0_72 = arith.constant 0 : index
    %56 = vector.load %arg8[%c6_70, %c10_71, %c0_72] : memref<24x32x8xf32, #tpu.memory_space<vmem>>, vector<16x16x8xf32>
    %57 = vector.shape_cast %56 : vector<16x16x8xf32> to vector<256x8xf32>
    %c0_73 = arith.constant 0 : index
    %c136 = arith.constant 136 : index
    %58 = vector.load %arg9[%c0_73, %c136] : memref<256x216xf32, #tpu.memory_space<vmem>>, vector<256x8xf32>
    tpu.vector_store %arg9[%c0_73, %c136], %57 {strides = array<i32>} : memref<256x216xf32, #tpu.memory_space<vmem>>, vector<256x8xf32>,
    %c0_74 = arith.constant 0 : index
    %c4_75 = arith.constant 4 : index
    %c0_76 = arith.constant 0 : index
    %59 = vector.load %arg8[%c0_74, %c4_75, %c0_76] : memref<24x32x8xf32, #tpu.memory_space<vmem>>, vector<16x16x8xf32>
    %60 = vector.shape_cast %59 : vector<16x16x8xf32> to vector<256x8xf32>
    %c0_77 = arith.constant 0 : index
    %c144 = arith.constant 144 : index
    %61 = vector.load %arg9[%c0_77, %c144] : memref<256x216xf32, #tpu.memory_space<vmem>>, vector<256x8xf32>
    tpu.vector_store %arg9[%c0_77, %c144], %60 {strides = array<i32>} : memref<256x216xf32, #tpu.memory_space<vmem>>, vector<256x8xf32>,
    %c0_78 = arith.constant 0 : index
    %c8_79 = arith.constant 8 : index
    %c0_80 = arith.constant 0 : index
    %62 = vector.load %arg8[%c0_78, %c8_79, %c0_80] : memref<24x32x8xf32, #tpu.memory_space<vmem>>, vector<16x16x8xf32>
    %63 = vector.shape_cast %62 : vector<16x16x8xf32> to vector<256x8xf32>
    %c0_81 = arith.constant 0 : index
    %c152 = arith.constant 152 : index
    %64 = vector.load %arg9[%c0_81, %c152] : memref<256x216xf32, #tpu.memory_space<vmem>>, vector<256x8xf32>
    tpu.vector_store %arg9[%c0_81, %c152], %63 {strides = array<i32>} : memref<256x216xf32, #tpu.memory_space<vmem>>, vector<256x8xf32>,
    %c0_82 = arith.constant 0 : index
    %c12 = arith.constant 12 : index
    %c0_83 = arith.constant 0 : index
    %65 = vector.load %arg8[%c0_82, %c12, %c0_83] : memref<24x32x8xf32, #tpu.memory_space<vmem>>, vector<16x16x8xf32>
    %66 = vector.shape_cast %65 : vector<16x16x8xf32> to vector<256x8xf32>
    %c0_84 = arith.constant 0 : index
    %c160 = arith.constant 160 : index
    %67 = vector.load %arg9[%c0_84, %c160] : memref<256x216xf32, #tpu.memory_space<vmem>>, vector<256x8xf32>
    tpu.vector_store %arg9[%c0_84, %c160], %66 {strides = array<i32>} : memref<256x216xf32, #tpu.memory_space<vmem>>, vector<256x8xf32>,
    %c4_85 = arith.constant 4 : index
    %c4_86 = arith.constant 4 : index
    %c0_87 = arith.constant 0 : index
    %68 = vector.load %arg8[%c4_85, %c4_86, %c0_87] : memref<24x32x8xf32, #tpu.memory_space<vmem>>, vector<16x16x8xf32>
    %69 = vector.shape_cast %68 : vector<16x16x8xf32> to vector<256x8xf32>
    %c0_88 = arith.constant 0 : index
    %c168 = arith.constant 168 : index
    %70 = vector.load %arg9[%c0_88, %c168] : memref<256x216xf32, #tpu.memory_space<vmem>>, vector<256x8xf32>
    tpu.vector_store %arg9[%c0_88, %c168], %69 {strides = array<i32>} : memref<256x216xf32, #tpu.memory_space<vmem>>, vector<256x8xf32>,
    %c4_89 = arith.constant 4 : index
    %c8_90 = arith.constant 8 : index
    %c0_91 = arith.constant 0 : index
    %71 = vector.load %arg8[%c4_89, %c8_90, %c0_91] : memref<24x32x8xf32, #tpu.memory_space<vmem>>, vector<16x16x8xf32>
    %72 = vector.shape_cast %71 : vector<16x16x8xf32> to vector<256x8xf32>
    %c0_92 = arith.constant 0 : index
    %c176 = arith.constant 176 : index
    %73 = vector.load %arg9[%c0_92, %c176] : memref<256x216xf32, #tpu.memory_space<vmem>>, vector<256x8xf32>
    tpu.vector_store %arg9[%c0_92, %c176], %72 {strides = array<i32>} : memref<256x216xf32, #tpu.memory_space<vmem>>, vector<256x8xf32>,
    %c4_93 = arith.constant 4 : index
    %c12_94 = arith.constant 12 : index
    %c0_95 = arith.constant 0 : index
    %74 = vector.load %arg8[%c4_93, %c12_94, %c0_95] : memref<24x32x8xf32, #tpu.memory_space<vmem>>, vector<16x16x8xf32>
    %75 = vector.shape_cast %74 : vector<16x16x8xf32> to vector<256x8xf32>
    %c0_96 = arith.constant 0 : index
    %c184 = arith.constant 184 : index
    %76 = vector.load %arg9[%c0_96, %c184] : memref<256x216xf32, #tpu.memory_space<vmem>>, vector<256x8xf32>
    tpu.vector_store %arg9[%c0_96, %c184], %75 {strides = array<i32>} : memref<256x216xf32, #tpu.memory_space<vmem>>, vector<256x8xf32>,
    %c8_97 = arith.constant 8 : index
    %c4_98 = arith.constant 4 : index
    %c0_99 = arith.constant 0 : index
    %77 = vector.load %arg8[%c8_97, %c4_98, %c0_99] : memref<24x32x8xf32, #tpu.memory_space<vmem>>, vector<16x16x8xf32>
    %78 = vector.shape_cast %77 : vector<16x16x8xf32> to vector<256x8xf32>
    %c0_100 = arith.constant 0 : index
    %c192 = arith.constant 192 : index
    %79 = vector.load %arg9[%c0_100, %c192] : memref<256x216xf32, #tpu.memory_space<vmem>>, vector<256x8xf32>
    tpu.vector_store %arg9[%c0_100, %c192], %78 {strides = array<i32>} : memref<256x216xf32, #tpu.memory_space<vmem>>, vector<256x8xf32>,
    %c8_101 = arith.constant 8 : index
    %c8_102 = arith.constant 8 : index
    %c0_103 = arith.constant 0 : index
    %80 = vector.load %arg8[%c8_101, %c8_102, %c0_103] : memref<24x32x8xf32, #tpu.memory_space<vmem>>, vector<16x16x8xf32>
    %81 = vector.shape_cast %80 : vector<16x16x8xf32> to vector<256x8xf32>
    %c0_104 = arith.constant 0 : index
    %c200 = arith.constant 200 : index
    %82 = vector.load %arg9[%c0_104, %c200] : memref<256x216xf32, #tpu.memory_space<vmem>>, vector<256x8xf32>
    tpu.vector_store %arg9[%c0_104, %c200], %81 {strides = array<i32>} : memref<256x216xf32, #tpu.memory_space<vmem>>, vector<256x8xf32>,
    %c8_105 = arith.constant 8 : index
    %c12_106 = arith.constant 12 : index
    %c0_107 = arith.constant 0 : index
    %83 = vector.load %arg8[%c8_105, %c12_106, %c0_107] : memref<24x32x8xf32, #tpu.memory_space<vmem>>, vector<16x16x8xf32>
    %84 = vector.shape_cast %83 : vector<16x16x8xf32> to vector<256x8xf32>
    %c0_108 = arith.constant 0 : index
    %c208 = arith.constant 208 : index
    %85 = vector.load %arg9[%c0_108, %c208] : memref<256x216xf32, #tpu.memory_space<vmem>>, vector<256x8xf32>
    tpu.vector_store %arg9[%c0_108, %c208], %84 {strides = array<i32>} : memref<256x216xf32, #tpu.memory_space<vmem>>, vector<256x8xf32>,
    %c0_109 = arith.constant 0 : index
    %c0_110 = arith.constant 0 : index
    %86 = vector.load %arg9[%c0_109, %c0_110] : memref<256x216xf32, #tpu.memory_space<vmem>>, vector<256x216xf32>
    %c0_111 = arith.constant 0 : index
    %c0_112 = arith.constant 0 : index
    %87 = vector.load %arg2[%c0_111, %c0_112] : memref<216x8xf32, #tpu.memory_space<vmem>>, vector<216x8xf32>
    %cst_113 = arith.constant dense<0.000000e+00> : vector<256x8xf32>
    %88 = tpu.matmul %86, %87, %cst_113 {dimension_numbers = #tpu.dot_dimension_numbers<[1], [0], [0], [1], [0, 0, 1, 1], [], []>} : vector<256x216xf32>, vector<216x8xf32>, vector<256x8xf32> -> vector<256x8xf32>
    %c0_114 = arith.constant 0 : index
    %c0_115 = arith.constant 0 : index
    %89 = vector.load %arg3[%c0_114, %c0_115] : memref<1x8xf32, #tpu.memory_space<vmem>>, vector<1x8xf32>
    %90 = vector.shape_cast %89 : vector<1x8xf32> to vector<8xf32>
    %91 = vector.shape_cast %90 : vector<8xf32> to vector<1x8xf32>
    %92 = vector.broadcast %91 : vector<1x8xf32> to vector<256x8xf32>
    %93 = arith.addf %88, %92 : vector<256x8xf32>
    %94 = vector.shape_cast %93 : vector<256x8xf32> to vector<16x16x8xf32>
    %c0_116 = arith.constant 0 : index
    %c0_117 = arith.constant 0 : index
    %c0_118 = arith.constant 0 : index
    %c0_119 = arith.constant 0 : index
    %95 = vector.load %arg6[%c0_116, %c0_117, %c0_118, %c0_119] : memref<1x16x16x8xf32, #tpu.memory_space<vmem>>, vector<1x16x16x8xf32>
    %96 = vector.shape_cast %95 : vector<1x16x16x8xf32> to vector<16x16x8xf32>
    %97 = vector.shape_cast %94 : vector<16x16x8xf32> to vector<1x16x16x8xf32>
    tpu.vector_store %arg6[%c0_116, %c0_117, %c0_118, %c0_119], %97 {strides = array<i32>} : memref<1x16x16x8xf32, #tpu.memory_space<vmem>>, vector<1x16x16x8xf32>,
    %c0_120 = arith.constant 0 : index
    %c0_121 = arith.constant 0 : index
    %98 = vector.load %arg4[%c0_120, %c0_121] : memref<8x10xf32, #tpu.memory_space<vmem>>, vector<8x10xf32>
    %cst_122 = arith.constant dense<0.000000e+00> : vector<256x10xf32>
    %99 = tpu.matmul %93, %98, %cst_122 {dimension_numbers = #tpu.dot_dimension_numbers<[1], [0], [0], [1], [0, 0, 1, 1], [], []>} : vector<256x8xf32>, vector<8x10xf32>, vector<256x10xf32> -> vector<256x10xf32>
    %c0_123 = arith.constant 0 : index
    %c0_124 = arith.constant 0 : index
    %100 = vector.load %arg5[%c0_123, %c0_124] : memref<1x10xf32, #tpu.memory_space<vmem>>, vector<1x10xf32>
    %101 = vector.shape_cast %100 : vector<1x10xf32> to vector<10xf32>
    %102 = vector.shape_cast %101 : vector<10xf32> to vector<1x10xf32>
    %103 = vector.broadcast %102 : vector<1x10xf32> to vector<256x10xf32>
    %104 = arith.addf %99, %103 : vector<256x10xf32>
    %105 = vector.shape_cast %104 : vector<256x10xf32> to vector<16x16x10xf32>
    %c0_125 = arith.constant 0 : index
    %c0_126 = arith.constant 0 : index
    %c0_127 = arith.constant 0 : index
    %c0_128 = arith.constant 0 : index
    %106 = vector.load %arg7[%c0_125, %c0_126, %c0_127, %c0_128] : memref<1x16x16x10xf32, #tpu.memory_space<vmem>>, vector<1x16x16x10xf32>
    %107 = vector.shape_cast %106 : vector<1x16x16x10xf32> to vector<16x16x10xf32>
    %108 = vector.shape_cast %105 : vector<16x16x10xf32> to vector<1x16x16x10xf32>
    tpu.vector_store %arg7[%c0_125, %c0_126, %c0_127, %c0_128], %108 {strides = array<i32>} : memref<1x16x16x10xf32, #tpu.memory_space<vmem>>, vector<1x16x16x10xf32>,
    return
  }
  func.func @transform_0(%arg0: i32) -> (i32, i32, i32, i32) {
    %c0_i32 = arith.constant 0 : i32
    %c0_i32_0 = arith.constant 0 : i32
    %c0_i32_1 = arith.constant 0 : i32
    %c0_i32_2 = arith.constant 0 : i32
    return %arg0, %c0_i32, %c0_i32_0, %c0_i32_1 : i32, i32, i32, i32
  }
  func.func @transform_1(%arg0: i32) -> (i32, i32) {
    %c0_i32 = arith.constant 0 : i32
    %c0_i32_0 = arith.constant 0 : i32
    %c0_i32_1 = arith.constant 0 : i32
    return %c0_i32, %c0_i32_0 : i32, i32
  }
  func.func @transform_2(%arg0: i32) -> (i32, i32) {
    %c0_i32 = arith.constant 0 : i32
    %c0_i32_0 = arith.constant 0 : i32
    %c0_i32_1 = arith.constant 0 : i32
    return %c0_i32, %c0_i32_0 : i32, i32
  }
  func.func @transform_3(%arg0: i32) -> (i32, i32) {
    %c0_i32 = arith.constant 0 : i32
    %c0_i32_0 = arith.constant 0 : i32
    %c0_i32_1 = arith.constant 0 : i32
    return %c0_i32, %c0_i32_0 : i32, i32
  }
  func.func @transform_4(%arg0: i32) -> (i32, i32) {
    %c0_i32 = arith.constant 0 : i32
    %c0_i32_0 = arith.constant 0 : i32
    %c0_i32_1 = arith.constant 0 : i32
    return %c0_i32, %c0_i32_0 : i32, i32
  }
  func.func @transform_5(%arg0: i32) -> (i32, i32, i32, i32) {
    %c0_i32 = arith.constant 0 : i32
    %c0_i32_0 = arith.constant 0 : i32
    %c0_i32_1 = arith.constant 0 : i32
    %c0_i32_2 = arith.constant 0 : i32
    return %arg0, %c0_i32, %c0_i32_0, %c0_i32_1 : i32, i32, i32, i32
  }
  func.func @transform_6(%arg0: i32) -> (i32, i32, i32, i32) {
    %c0_i32 = arith.constant 0 : i32
    %c0_i32_0 = arith.constant 0 : i32
    %c0_i32_1 = arith.constant 0 : i32
    %c0_i32_2 = arith.constant 0 : i32
    return %arg0, %c0_i32, %c0_i32_0, %c0_i32_1 : i32, i32, i32, i32
  }
}

</mosaic_0001>

<bundles_post_ra>
// kernel: dec_unit_first.6
= control target key start
LH: loop header
LB: loop body
LE: loop exit
PB: predicated region body
PF: predicated region fallthrough
CT: control target
= control target key end

     0   :  { %vm87_vm0 = vcmask 1043456   ;;  %vm38_vm1 = vcmask 31744   ;;  %vm236_vm2 = vcmask 64512   ;;  %s474_s1 = inlined_call_operand.vmem [shape: f32[4,8], index: 1, kind: input, shape index: {}]   ;;  %s475_s0 = inlined_call_operand.vmem [shape: f32[128,4], index: 0, kind: input, shape index: {}]   ;;  %s476_s2 = inlined_call_operand.vmem [shape: f32[1,8], index: 2, kind: input, shape index: {}]   ;;  %s477_s3 = inlined_call_operand.vmem [shape: f32[128,8], index: 3, kind: output, shape index: {}]  }
   0x1   :  { %v30_v0 = vld [vmem:[%s474_s1] sm:$0xf]  ;;  %v15_v3 = vld [vmem:[%s475_s0 + $0x8] sm:$0xff]  ;;  %v16_v5 = vld [vmem:[%s475_s0 + $0x10] sm:$0xff] }
   0x2   :  { %v14_v1 = vld [vmem:[%s475_s0] sm:$0xff]  ;;  %292 = vmatprep.subr.msk.mxu0 %vm87_vm0, %v30_v0  ;;  %318 = vmatprep.subr.msk.mxu1 %vm87_vm0, %v30_v0  ;;  %v23_v4 = vld [vmem:[%s475_s0 + $0x48] sm:$0xff]  ;;  %v24_v6 = vld [vmem:[%s475_s0 + $0x50] sm:$0xff] }
   0x3   :  { %v22_v2 = vld [vmem:[%s475_s0 + $0x40] sm:$0xff]  ;;  %293 = vmatpush3.msk.msra.mxu0 %vm87_vm0, %v30_v0  ;;  %319 = vmatpush3.msk.msra.mxu1 %vm87_vm0, %v30_v0  ;;  %v17_v7 = vld [vmem:[%s475_s0 + $0x18] sm:$0xff]  ;;  %v19_v11 = vld [vmem:[%s475_s0 + $0x28] sm:$0xff] }
   0x4   :  { %294 = vmatprep.mubr.msk.f32.mxu0 %vm38_vm1, %v14_v1  ;;  %306 = vmatprep.mubr.msk.f32.mxu1 %vm38_vm1, %v22_v2  ;;  %v25_v8 = vld [vmem:[%s475_s0 + $0x58] sm:$0xff]  ;;  %v18_v9 = vld [vmem:[%s475_s0 + $0x20] sm:$0xff]  ;;  %v27_v12 = vld [vmem:[%s475_s0 + $0x68] sm:$0xff] }
   0x5   :  { %295 = vmatmul.mubr.msk.f32.vlgmr.msra.gmra.mxu0 %vm38_vm1, %v15_v3  ;;  %307 = vmatmul.mubr.msk.f32.vlgmr.msra.gmra.mxu1 %vm38_vm1, %v23_v4  ;;  %v26_v10 = vld [vmem:[%s475_s0 + $0x60] sm:$0xff]  ;;  %v20_v13 = vld [vmem:[%s475_s0 + $0x30] sm:$0xff]  ;;  %v21_v15 = vld [vmem:[%s475_s0 + $0x38] sm:$0xff] }
   0x6   :  { %297 = vmatprep.mubr.msk.f32.mxu0 %vm38_vm1, %v16_v5  ;;  %309 = vmatprep.mubr.msk.f32.mxu1 %vm38_vm1, %v24_v6  ;;  %v28_v14 = vld [vmem:[%s475_s0 + $0x70] sm:$0xff]  ;;  %v29_v16 = vld [vmem:[%s475_s0 + $0x78] sm:$0xff]  ;;  %v257_v17 = vld [vmem:[%s476_s2] ss:$0 sm:$0xff] }
   0x9   :  { %298 = vmatmul.mubr.msk.f32.gmra.mxu0 %vm38_vm1, %v17_v7  ;;  %310 = vmatmul.mubr.msk.f32.gmra.mxu1 %vm38_vm1, %v25_v8 }
   0xa   :  { %300 = vmatprep.mubr.msk.f32.mxu0 %vm38_vm1, %v18_v9  ;;  %312 = vmatprep.mubr.msk.f32.mxu1 %vm38_vm1, %v26_v10 }
   0xd   :  { %301 = vmatmul.mubr.msk.f32.gmra.mxu0 %vm38_vm1, %v19_v11  ;;  %313 = vmatmul.mubr.msk.f32.gmra.mxu1 %vm38_vm1, %v27_v12 }
   0xe   :  { %303 = vmatprep.mubr.msk.f32.mxu0 %vm38_vm1, %v20_v13  ;;  %315 = vmatprep.mubr.msk.f32.mxu1 %vm38_vm1, %v28_v14 }
  0x11   :  { %304 = vmatmul.mubr.msk.f32.gmra.mxu0 %vm38_vm1, %v21_v15  ;;  %316 = vmatmul.mubr.msk.f32.gmra.mxu1 %vm38_vm1, %v29_v16 }
  0xc5   :  { %v296_v18 = vpop.f32.mrf.mxu0  ;;  %v308_v19 = vpop.f32.mrf.mxu1 }
  0xc6   :  { %v163_v20 = vadd.f32 %v296_v18, %v257_v17  ;;  %v203_v21 = vadd.f32 %v308_v19, %v257_v17 }
  0xc7   :  { %v157_v22 = vpop.f32.mrf.mxu0  ;;  %v197_v23 = vpop.f32.mrf.mxu1 }
  0xc8   :  { %238 = vst.msk [vmem:[%s477_s3 + $0x8] sm:$0xff] %vm236_vm2, %v163_v20  ;;  %246 = vst.msk [vmem:[%s477_s3 + $0x48] sm:$0xff] %vm236_vm2, %v203_v21  ;;  %v158_v24 = vadd.f32 %v257_v17, %v157_v22  ;;  %v198_v25 = vadd.f32 %v257_v17, %v197_v23 }
  0xc9   :  { %v299_v26 = vpop.f32.mrf.mxu0  ;;  %v311_v27 = vpop.f32.mrf.mxu1 }
  0xca   :  { %237 = vst.msk [vmem:[%s477_s3] sm:$0xff] %vm236_vm2, %v158_v24  ;;  %245 = vst.msk [vmem:[%s477_s3 + $0x40] sm:$0xff] %vm236_vm2, %v198_v25  ;;  %v173_v28 = vadd.f32 %v299_v26, %v257_v17  ;;  %v213_v29 = vadd.f32 %v311_v27, %v257_v17 }
  0xcb   :  { %v167_v30 = vpop.f32.mrf.mxu0  ;;  %v207_v31 = vpop.f32.mrf.mxu1 }
  0xcc   :  { %240 = vst.msk [vmem:[%s477_s3 + $0x18] sm:$0xff] %vm236_vm2, %v173_v28  ;;  %248 = vst.msk [vmem:[%s477_s3 + $0x58] sm:$0xff] %vm236_vm2, %v213_v29  ;;  %v168_v32 = vadd.f32 %v257_v17, %v167_v30  ;;  %v208_v33 = vadd.f32 %v257_v17, %v207_v31 }
  0xcd   :  { %v302_v34 = vpop.f32.mrf.mxu0  ;;  %v314_v35 = vpop.f32.mrf.mxu1 }
  0xce   :  { %239 = vst.msk [vmem:[%s477_s3 + $0x10] sm:$0xff] %vm236_vm2, %v168_v32  ;;  %247 = vst.msk [vmem:[%s477_s3 + $0x50] sm:$0xff] %vm236_vm2, %v208_v33  ;;  %v183_v36 = vadd.f32 %v302_v34, %v257_v17  ;;  %v223_v37 = vadd.f32 %v314_v35, %v257_v17 }
  0xcf   :  { %v177_v38 = vpop.f32.mrf.mxu0  ;;  %v217_v39 = vpop.f32.mrf.mxu1 }
  0xd0   :  { %242 = vst.msk [vmem:[%s477_s3 + $0x28] sm:$0xff] %vm236_vm2, %v183_v36  ;;  %250 = vst.msk [vmem:[%s477_s3 + $0x68] sm:$0xff] %vm236_vm2, %v223_v37  ;;  %v178_v40 = vadd.f32 %v257_v17, %v177_v38  ;;  %v218_v41 = vadd.f32 %v257_v17, %v217_v39 }
  0xd1   :  { %v305_v42 = vpop.f32.mrf.mxu0  ;;  %v317_v43 = vpop.f32.mrf.mxu1 }
  0xd2   :  { %241 = vst.msk [vmem:[%s477_s3 + $0x20] sm:$0xff] %vm236_vm2, %v178_v40  ;;  %249 = vst.msk [vmem:[%s477_s3 + $0x60] sm:$0xff] %vm236_vm2, %v218_v41  ;;  %v193_v44 = vadd.f32 %v305_v42, %v257_v17  ;;  %v233_v45 = vadd.f32 %v317_v43, %v257_v17 }
  0xd3   :  { %v187_v46 = vpop.f32.mrf.mxu0  ;;  %v227_v47 = vpop.f32.mrf.mxu1 }
  0xd4   :  { %244 = vst.msk [vmem:[%s477_s3 + $0x38] sm:$0xff] %vm236_vm2, %v193_v44  ;;  %252 = vst.msk [vmem:[%s477_s3 + $0x78] sm:$0xff] %vm236_vm2, %v233_v45  ;;  %v188_v48 = vadd.f32 %v257_v17, %v187_v46  ;;  %v228_v49 = vadd.f32 %v257_v17, %v227_v47 }
  0xd6   :  { %243 = vst.msk [vmem:[%s477_s3 + $0x30] sm:$0xff] %vm236_vm2, %v188_v48  ;;  %251 = vst.msk [vmem:[%s477_s3 + $0x70] sm:$0xff] %vm236_vm2, %v228_v49 }

// kernel: dec_unit_first.10
= control target key start
LH: loop header
LB: loop body
LE: loop exit
PB: predicated region body
PF: predicated region fallthrough
CT: control target
= control target key end

     0   :  { %s987_s12 = smov 0   ;;  %s1285_s0 = inlined_call_operand.vmem [shape: f32[2,8,8,8], index: 0, kind: input, shape index: {}]   ;;  %s1286_s1 = inlined_call_operand.vmem [shape: f32[72,32], index: 1, kind: input, shape index: {}]   ;;  %s1287_s2 = inlined_call_operand.vmem [shape: f32[1,32], index: 2, kind: input, shape index: {}]   ;;  %s1288_s3 = inlined_call_operand.vmem [shape: f32[2,8,8,32], index: 3, kind: output, shape index: {}]  }
   0x1 LB: > { %s846_s13 = sadd.s32 4294967295, %s956_s12   ;;  %p850_p0 = scmp.ge.s32.totalorder %s956_s12, 1  ;;  %s956_s12 = sphi %s987_s12, %s13_s12  }
   0x2   : > { %p137_p1 = scmp.lt.s32.totalorder %s956_s12, 3 }
   0x4   : > { %p138_p2 = pnand %p850_p0, %p137_p1 }
   0x5   : > { %p997_p3 = scmp.lt.s32.totalorder (!%p138_p2), %s846_s13, 1  ;;  %s959_s19 = smov (!%p138_p2), 8  }
   0x6   : > { %141 = sbr.rel (%p138_p2) target bundleno = 480 (0x1e0), region = 32  ;;  %s960_s20 = smov (!%p138_p2), 16  }
   0x7   : > { %s961_s21 = smov (!%p138_p2), 24   ;;  %s962_s22 = smov (!%p138_p2), 32  }
   0x8   : > { %s963_s23 = smov (!%p138_p2), 40   ;;  %s964_s24 = smov (!%p138_p2), 48  }
   0x9   : > { %s965_s25 = smov (!%p138_p2), 56   ;;  %s966_s7 = smov (!%p138_p2), 64  }
   0xb   : > { %vm179_vm0 = vcmask 64512   ;;  %v958_v0 = vmov 0.0   ;;  %s1291_s13 = smov (!%p997_p3, %s846_s13), 1  ;;  %v644_v34 = vld [vmem:[%s1286_s1 + $0x40] sm:$0xff]  ;;  %v643_v35 = vld [vmem:[%s1286_s1 + $0x38] sm:$0xff]  ;;  %v642_v36 = vld [vmem:[%s1286_s1 + $0x30] sm:$0xff] }
   0xc   : > { %181 = vst.msk [vmem:[#allocation2 + $0x8] sm:$0xff] %vm179_vm0, %v958_v0  ;;  %180 = vst.msk [vmem:[#allocation2] sm:$0xff] %vm179_vm0, %v958_v0  ;;  %s866_s15 = sshll.u32 %s1291_s13, 6  ;;  %885 = vmatprep.subr.mxu0 %v644_v34  ;;  %915 = vmatprep.subr.mxu1 %v644_v34  ;;  %v641_v37 = vld [vmem:[%s1286_s1 + $0x28] sm:$0xff]  ;;  %v640_v38 = vld [vmem:[%s1286_s1 + $0x20] sm:$0xff]  ;;  %vm275_vm1 = vcmask 130112  }
   0xd   : > { %182 = vst.msk [vmem:[#allocation2 + $0x10] sm:$0xff] %vm179_vm0, %v958_v0  ;;  %183 = vst.msk [vmem:[#allocation2 + $0x18] sm:$0xff] %vm179_vm0, %v958_v0  ;;  %s165_s18 = scalar_lea.vmem %s1285_s0, %s866_s15  ;;  %886 = vmatpush3.msra.mxu0 %v644_v34  ;;  %924 = vmatpush3.msra.mxu1 %v644_v34  ;;  %v639_v39 = vld [vmem:[%s1286_s1 + $0x18] sm:$0xff]  ;;  %v638_v40 = vld [vmem:[%s1286_s1 + $0x10] sm:$0xff]  ;;  %vm324_vm2 = vcmask 195712   ;;  %vm373_vm3 = vcmask 261312  }
   0xe   : > { %184 = vst.msk [vmem:[#allocation2 + $0x20] sm:$0xff] %vm179_vm0, %v958_v0  ;;  %185 = vst.msk [vmem:[#allocation2 + $0x28] sm:$0xff] %vm179_vm0, %v958_v0  ;;  %v171_v1 = vld [vmem:[%s165_s18] sm:$0xff]  ;;  %v174_v3 = vld [vmem:[%s165_s18 + $0x18] sm:$0xff]  ;;  %887 = vmatprep.subr.mxu0 %v643_v35  ;;  %916 = vmatprep.subr.mxu1 %v643_v35  ;;  %vm422_vm4 = vcmask 326912   ;;  %vm471_vm5 = vcmask 392512  }
   0xf   : > { %186 = vst.msk [vmem:[#allocation2 + $0x30] sm:$0xff] %vm179_vm0, %v958_v0  ;;  %187 = vst.msk [vmem:[#allocation2 + $0x38] sm:$0xff] %vm179_vm0, %v958_v0  ;;  %v175_v2 = vld [vmem:[%s165_s18 + $0x20] sm:$0xff]  ;;  %v172_v4 = vld [vmem:[%s165_s18 + $0x8] sm:$0xff]  ;;  %888 = vmatpush3.msra.mxu0 %v643_v35  ;;  %925 = vmatpush3.msra.mxu1 %v643_v35  ;;  %vm521_vm6 = vcmask 458112   ;;  %vm570_vm7 = vcmask 523712  }
  0x10   : > { %188 = vst.msk [vmem:[#allocation2 + $0x40] sm:$0xff] %vm179_vm0, %v958_v0  ;;  %189 = vst.msk [vmem:[#allocation2 + $0x48] sm:$0xff] %vm179_vm0, %v958_v0  ;;  %v176_v5 = vld [vmem:[%s165_s18 + $0x28] sm:$0xff]  ;;  %v173_v6 = vld [vmem:[%s165_s18 + $0x10] sm:$0xff]  ;;  %889 = vmatprep.subr.mxu0 %v642_v36  ;;  %917 = vmatprep.subr.mxu1 %v642_v36  ;;  %vm619_vm8 = vcmask 589312   ;;  %vm652_vm9 = vcmask 588800  }
  0x11   : > { %190 = vst.msk [vmem:[#allocation2 + $0x50] sm:$0xff] %vm179_vm0, %v958_v0  ;;  %191 = vst.msk [vmem:[#allocation2 + $0x58] sm:$0xff] %vm179_vm0, %v958_v0  ;;  %v177_v8 = vld [vmem:[%s165_s18 + $0x30] sm:$0xff]  ;;  %v178_v9 = vld [vmem:[%s165_s18 + $0x38] sm:$0xff]  ;;  %890 = vmatpush3.msra.mxu0 %v642_v36  ;;  %926 = vmatpush3.msra.mxu1 %v642_v36  ;;  %vm782_vm10 = vcmask 261120  }
  0x12   : > { %192 = vst.msk [vmem:[#allocation2 + $0x60] sm:$0xff] %vm179_vm0, %v958_v0  ;;  %193 = vst.msk [vmem:[#allocation2 + $0x68] sm:$0xff] %vm179_vm0, %v958_v0  ;;  %891 = vmatprep.subr.mxu0 %v641_v37  ;;  %918 = vmatprep.subr.mxu1 %v641_v37  ;;  %v637_v42 = vld [vmem:[%s1286_s1 + $0x8] sm:$0xff]  ;;  %v636_v43 = vld [vmem:[%s1286_s1] sm:$0xff] }
  0x13   : > { %194 = vst.msk [vmem:[#allocation2 + $0x70] sm:$0xff] %vm179_vm0, %v958_v0  ;;  %195 = vst.msk [vmem:[#allocation2 + $0x78] sm:$0xff] %vm179_vm0, %v958_v0  ;;  %v235_v7 = vld [vmem:[#allocation2 + $0x8] sm:$0xff]  ;;  %892 = vmatpush3.msra.mxu0 %v641_v37  ;;  %927 = vmatpush3.msra.mxu1 %v641_v37 }
  0x14   : > { %196 = vst.msk [vmem:[#allocation2 + $0x80] sm:$0xff] %vm179_vm0, %v958_v0  ;;  %197 = vst.msk [vmem:[#allocation2 + $0x88] sm:$0xff] %vm179_vm0, %v958_v0  ;;  %251 = vrot.lane.b32.xlu0 %v235_v7, %s959_s19  ;;  %v219_v10 = vld [vmem:[#allocation2 + $0x7] sm:$0xff]  ;;  %893 = vmatprep.subr.mxu0 %v640_v38 }
  0x15   : > { %198 = vst.msk [vmem:[#allocation2 + $0x90] sm:$0xff] %vm179_vm0, %v958_v0  ;;  %199 = vst.msk [vmem:[#allocation2 + $0x98] sm:$0xff] %vm179_vm0, %v958_v0  ;;  %v284_v11 = vld [vmem:[#allocation2 + $0x9] sm:$0xff]  ;;  %894 = vmatpush3.msra.mxu0 %v640_v38  ;;  %919 = vmatprep.subr.mxu1 %v640_v38 }
  0x16   : > { %200 = vst.msk [vmem:[#allocation2 + $0xa0] sm:$0xff] %vm179_vm0, %v958_v0  ;;  %201 = vst.msk [vmem:[#allocation2 + $0xa8] sm:$0xff] %vm179_vm0, %v958_v0  ;;  %895 = vmatprep.subr.mxu0 %v639_v39  ;;  %928 = vmatpush3.msra.mxu1 %v640_v38 }
  0x17   : > { %202 = vst.msk [vmem:[#allocation2 + $0xb0] sm:$0xff] %vm179_vm0, %v958_v0  ;;  %203 = vst.msk [vmem:[#allocation2 + $0xb8] sm:$0xff] %vm179_vm0, %v958_v0  ;;  %896 = vmatpush3.msra.mxu0 %v639_v39  ;;  %920 = vmatprep.subr.mxu1 %v639_v39 }
  0x18   : > { %204 = vst.msk [vmem:[#allocation2 + $0xc0] sm:$0xff] %vm179_vm0, %v958_v0  ;;  %205 = vst.msk [vmem:[#allocation2 + $0xc8] sm:$0xff] %vm179_vm0, %v958_v0  ;;  %300 = vrot.lane.b32.xlu0 %v284_v11, %s960_s20  ;;  %897 = vmatprep.subr.mxu0 %v638_v40 }
  0x19   : > { %206 = vst.msk [vmem:[#allocation2 + $0xd0] sm:$0xff] %vm179_vm0, %v958_v0  ;;  %207 = vst.msk [vmem:[#allocation2 + $0xd8] sm:$0xff] %vm179_vm0, %v958_v0  ;;  %929 = vmatpush3.msra.mxu1 %v639_v39  ;;  %898 = vmatpush3.msra.mxu0 %v638_v40 }
  0x1a   : > { %208 = vst.msk [vmem:[#allocation2 + $0xe0] sm:$0xff] %vm179_vm0, %v958_v0  ;;  %209 = vst.msk [vmem:[#allocation2 + $0xe8] sm:$0xff] %vm179_vm0, %v958_v0  ;;  %921 = vmatprep.subr.mxu1 %v638_v40  ;;  %899 = vmatprep.subr.mxu0 %v637_v42 }
  0x1b   : > { %211 = vst.msk [vmem:[#allocation2 + $0x20] sm:$0xff] %vm179_vm0, %v171_v1  ;;  %215 = vst.msk [vmem:[#allocation2 + $0x80] sm:$0xff] %vm179_vm0, %v175_v2  ;;  %930 = vmatpush3.msra.mxu1 %v638_v40  ;;  %900 = vmatpush3.msra.mxu0 %v637_v42 }
  0x1c   : > { %214 = vst.msk [vmem:[#allocation2 + $0x68] sm:$0xff] %vm179_vm0, %v174_v3  ;;  %212 = vst.msk [vmem:[#allocation2 + $0x38] sm:$0xff] %vm179_vm0, %v172_v4  ;;  %922 = vmatprep.subr.mxu1 %v637_v42  ;;  %901 = vmatprep.subr.mxu0 %v636_v43 }
  0x1d   : > { %216 = vst.msk [vmem:[#allocation2 + $0x98] sm:$0xff] %vm179_vm0, %v176_v5  ;;  %213 = vst.msk [vmem:[#allocation2 + $0x50] sm:$0xff] %vm179_vm0, %v173_v6  ;;  %931 = vmatpush3.msra.mxu1 %v637_v42  ;;  %902 = vmatpush3.msra.mxu0 %v636_v43 }
  0x1e   : > { %217 = vst.msk [vmem:[#allocation2 + $0xb0] sm:$0xff] %vm179_vm0, %v177_v8  ;;  %218 = vst.msk [vmem:[#allocation2 + $0xc8] sm:$0xff] %vm179_vm0, %v178_v9  ;;  %923 = vmatprep.subr.mxu1 %v636_v43 }
  0x1f   : > { %227 = vst.msk [vmem:[#allocation3] sm:$0xff] %vm179_vm0, %v219_v10  ;;  %932 = vmatpush3.msra.mxu1 %v636_v43 }
  0x21   : > { %v488_v45 = vld [vmem:[#allocation2 + $0xdf] sm:$0xff] }
  0x22   : > { %v236_v12 = vld [vmem:[#allocation2 + $0x20] sm:$0xff] }
  0x23   : > { %v1054_v13 = vld [vmem:[#allocation2 + $0x68] sm:$0xff]  ;;  %253 = vrot.lane.b32.xlu1 %v236_v12, %s959_s19  ;;  %v1057_v14 = vld [vmem:[#allocation2 + $0x80] sm:$0xff]  ;;  %v334_v17 = vld [vmem:[#allocation2 + $0x37] sm:$0xff] }
  0x24   : > { %v333_v15 = vld [vmem:[#allocation2 + $0x1f] sm:$0xff]  ;;  %259 = vrot.lane.b32.xlu0 %v1054_v13, %s959_s19  ;;  %v338_v18 = vld [vmem:[#allocation2 + $0x97] sm:$0xff]  ;;  %229 = vst.msk [vmem:[#allocation3 + $0x10] sm:$0xff] %vm179_vm0, %v334_v17  ;;  %v1070_v20 = vld [vmem:[#allocation2 + $0x69] sm:$0xff] }
  0x25   : > { %v1059_v16 = vld [vmem:[#allocation2 + $0x7f] sm:$0xff]  ;;  %228 = vst.msk [vmem:[#allocation3 + $0x8] sm:$0xff] %vm179_vm0, %v333_v15  ;;  %233 = vst.msk [vmem:[#allocation3 + $0x30] sm:$0xff] %vm179_vm0, %v338_v18  ;;  %v335_v21 = vld [vmem:[#allocation2 + $0x4f] sm:$0xff] }
  0x26   : > { %232 = vst.msk [vmem:[#allocation3 + $0x28] sm:$0xff] %vm179_vm0, %v1059_v16  ;;  %v285_v19 = vld [vmem:[#allocation2 + $0x21] sm:$0xff]  ;;  %v339_v22 = vld [vmem:[#allocation2 + $0xaf] sm:$0xff]  ;;  %230 = vst.msk [vmem:[#allocation3 + $0x18] sm:$0xff] %vm179_vm0, %v335_v21 }
  0x27   : > { %261 = vrot.lane.b32.xlu1 %v1057_v14, %s959_s19  ;;  %v1072_v23 = vld [vmem:[#allocation2 + $0x67] sm:$0xff]  ;;  %234 = vst.msk [vmem:[#allocation3 + $0x38] sm:$0xff] %vm179_vm0, %v339_v22  ;;  %v237_v25 = vld [vmem:[#allocation2 + $0x38] sm:$0xff]  ;;  %v238_v27 = vld [vmem:[#allocation2 + $0x50] sm:$0xff] }
  0x28   : > { %302 = vrot.lane.b32.xlu0 %v285_v19, %s960_s20  ;;  %231 = vst.msk [vmem:[#allocation3 + $0x20] sm:$0xff] %vm179_vm0, %v1072_v23  ;;  %v1081_v24 = vld [vmem:[#allocation2 + $0x81] sm:$0xff]  ;;  %v241_v26 = vld [vmem:[#allocation2 + $0x98] sm:$0xff]  ;;  %v242_v29 = vld [vmem:[#allocation2 + $0xb0] sm:$0xff] }
  0x29   : > { %v286_v28 = vld [vmem:[#allocation2 + $0x39] sm:$0xff]  ;;  %v1106_v31 = vld [vmem:[#allocation2 + $0x51] sm:$0xff]  ;;  %v1124_v33 = vld [vmem:[#allocation2 + $0xc7] sm:$0xff] }
  0x2a   : > { %v290_v30 = vld [vmem:[#allocation2 + $0x99] sm:$0xff]  ;;  %v1112_v32 = vld [vmem:[#allocation2 + $0xb1] sm:$0xff]  ;;  %v389_v41 = vld [vmem:[#allocation2 + $0xc8] sm:$0xff] }
  0x2b   : > { %308 = vrot.lane.b32.xlu1 %v1070_v20, %s960_s20  ;;  %v438_v44 = vld [vmem:[#allocation2 + $0xc9] sm:$0xff]  ;;  %v537_v48 = vld [vmem:[#allocation2 + $0xe0] sm:$0xff] }
  0x2c   : > { %349 = vrot.lane.b32.xlu0 %v333_v15, %s961_s21  ;;  %v586_v53 = vld [vmem:[#allocation2 + $0xe1] sm:$0xff] }
  0x2f   : > { %310 = vrot.lane.b32.xlu1 %v1081_v24, %s960_s20 }
  0x30   : > { %351 = vrot.lane.b32.xlu0 %v334_v17, %s961_s21 }
  0x33   : > { %357 = vrot.lane.b32.xlu1 %v1059_v16, %s961_s21 }
  0x34   : > { %398 = vrot.lane.b32.xlu0 %v236_v12, %s962_s22 }
  0x37   : > { %359 = vrot.lane.b32.xlu1 %v338_v18, %s961_s21 }
  0x38   : > { %255 = vrot.lane.b32.xlu0 %v237_v25, %s959_s19 }
  0x3b   : > { %406 = vrot.lane.b32.xlu1 %v1057_v14, %s962_s22 }
  0x3c   : > { %400 = vrot.lane.b32.xlu0 %v237_v25, %s962_s22 }
  0x3f   : > { %263 = vrot.lane.b32.xlu1 %v241_v26, %s959_s19 }
  0x40   : > { %447 = vrot.lane.b32.xlu0 %v285_v19, %s963_s23 }
  0x43   : > { %408 = vrot.lane.b32.xlu1 %v241_v26, %s962_s22 }
  0x44   : > { %257 = vrot.lane.b32.xlu0 %v238_v27, %s959_s19 }
  0x47   : > { %455 = vrot.lane.b32.xlu1 %v1081_v24, %s963_s23 }
  0x48   : > { %304 = vrot.lane.b32.xlu0 %v286_v28, %s960_s20 }
  0x4b   : > { %265 = vrot.lane.b32.xlu1 %v242_v29, %s959_s19 }
  0x4c   : > { %449 = vrot.lane.b32.xlu0 %v286_v28, %s963_s23 }
  0x4f   : > { %312 = vrot.lane.b32.xlu1 %v290_v30, %s960_s20 }
  0x50   : > { %497 = vrot.lane.b32.xlu0 %v334_v17, %s964_s24 }
  0x53   : > { %457 = vrot.lane.b32.xlu1 %v290_v30, %s963_s23 }
  0x54   : > { %306 = vrot.lane.b32.xlu0 %v1106_v31, %s960_s20 }
  0x57   : > { %505 = vrot.lane.b32.xlu1 %v338_v18, %s964_s24 }
  0x58   : > { %353 = vrot.lane.b32.xlu0 %v335_v21, %s961_s21 }
  0x5b   : > { %314 = vrot.lane.b32.xlu1 %v1112_v32, %s960_s20 }
  0x5c   : > { %499 = vrot.lane.b32.xlu0 %v335_v21, %s964_s24 }
  0x5f   : > { %361 = vrot.lane.b32.xlu1 %v339_v22, %s961_s21 }
  0x60   : > { %546 = vrot.lane.b32.xlu0 %v237_v25, %s965_s25 }
  0x63   : > { %507 = vrot.lane.b32.xlu1 %v339_v22, %s964_s24 }
  0x64   : > { %355 = vrot.lane.b32.xlu0 %v1072_v23, %s961_s21 }
  0x67   : > { %554 = vrot.lane.b32.xlu1 %v241_v26, %s965_s25 }
  0x68   : > { %402 = vrot.lane.b32.xlu0 %v238_v27, %s962_s22 }
  0x6b   : > { %363 = vrot.lane.b32.xlu1 %v1124_v33, %s961_s21 }
  0x6c   : > { %548 = vrot.lane.b32.xlu0 %v238_v27, %s965_s25 }
  0x6f   : > { %410 = vrot.lane.b32.xlu1 %v242_v29, %s962_s22 }
  0x70   : > { %595 = vrot.lane.b32.xlu0 %v286_v28, %s966_s7 }
  0x73   : > { %556 = vrot.lane.b32.xlu1 %v242_v29, %s965_s25 }
  0x74   : > { %404 = vrot.lane.b32.xlu0 %v1054_v13, %s962_s22 }
  0x77   : > { %603 = vrot.lane.b32.xlu1 %v290_v30, %s966_s7 }
  0x78   : > { %451 = vrot.lane.b32.xlu0 %v1106_v31, %s963_s23 }
  0x7b   : > { %412 = vrot.lane.b32.xlu1 %v389_v41, %s962_s22 }
  0x7c   : > { %597 = vrot.lane.b32.xlu0 %v1106_v31, %s966_s7 }
  0x7f   : > { %459 = vrot.lane.b32.xlu1 %v1112_v32, %s963_s23 }
  0x80   : > { %453 = vrot.lane.b32.xlu0 %v1070_v20, %s963_s23 }
  0x83   : > { %605 = vrot.lane.b32.xlu1 %v1112_v32, %s966_s7 }
  0x84   : > { %501 = vrot.lane.b32.xlu0 %v1072_v23, %s964_s24 }
  0x86   : > { %v252_v46 = vpop.permute.xlu0 %251 }
  0x87   : > { %461 = vrot.lane.b32.xlu1 %v438_v44, %s963_s23  ;;  %276 = vst.msk [vmem:[#allocation3] sm:$0xff] %vm275_vm1, %v252_v46 }
  0x88   : > { %503 = vrot.lane.b32.xlu0 %v1059_v16, %s964_s24 }
  0x8a   : > { %v301_v47 = vpop.permute.xlu0 %300 }
  0x8b   : > { %509 = vrot.lane.b32.xlu1 %v1124_v33, %s964_s24  ;;  %325 = vst.msk [vmem:[#allocation3] sm:$0xff] %vm324_vm2, %v301_v47 }
  0x8c   : > { %550 = vrot.lane.b32.xlu0 %v1054_v13, %s965_s25 }
  0x8f   : > { %511 = vrot.lane.b32.xlu1 %v488_v45, %s964_s24 }
  0x90   : > { %552 = vrot.lane.b32.xlu0 %v1057_v14, %s965_s25 }
  0x93   : > { %558 = vrot.lane.b32.xlu1 %v389_v41, %s965_s25 }
  0x94   : > { %599 = vrot.lane.b32.xlu0 %v1070_v20, %s966_s7 }
  0x95   : > { %v254_v49 = vpop.permute.xlu1 %253 }
  0x96   : > { %277 = vst.msk [vmem:[#allocation3 + $0x8] sm:$0xff] %vm275_vm1, %v254_v49  ;;  %v260_v50 = vpop.permute.xlu0 %259 }
  0x97   : > { %560 = vrot.lane.b32.xlu1 %v537_v48, %s965_s25  ;;  %280 = vst.msk [vmem:[#allocation3 + $0x20] sm:$0xff] %vm275_vm1, %v260_v50  ;;  %s170_s25 = scalar_lea.vmem %s1288_s3, %s866_s15 }
  0x98   : > { %601 = vrot.lane.b32.xlu0 %v1081_v24, %s966_s7 }
  0x99   : > { %v262_v51 = vpop.permute.xlu1 %261 }
  0x9a   : > { %281 = vst.msk [vmem:[#allocation3 + $0x28] sm:$0xff] %vm275_vm1, %v262_v51  ;;  %v303_v52 = vpop.permute.xlu0 %302 }
  0x9b   : > { %607 = vrot.lane.b32.xlu1 %v438_v44, %s966_s7  ;;  %326 = vst.msk [vmem:[#allocation3 + $0x8] sm:$0xff] %vm324_vm2, %v303_v52 }
  0x9d   : > { %v309_v54 = vpop.permute.xlu1 %308 }
  0x9e   : > { %329 = vst.msk [vmem:[#allocation3 + $0x20] sm:$0xff] %vm324_vm2, %v309_v54  ;;  %v350_v55 = vpop.permute.xlu0 %349 }
  0x9f   : > { %609 = vrot.lane.b32.xlu1 %v586_v53, %s966_s7  ;;  %374 = vst.msk [vmem:[#allocation3] sm:$0xff] %vm373_vm3, %v350_v55 }
  0xa1   : > { %v311_v56 = vpop.permute.xlu1 %310 }
  0xa2   : > { %330 = vst.msk [vmem:[#allocation3 + $0x28] sm:$0xff] %vm324_vm2, %v311_v56  ;;  %v352_v57 = vpop.permute.xlu0 %351  ;;  %v855_v56 = vld [vmem:[%s1287_s2] ss:$0 sm:$0xff] }
  0xa3   : > { %375 = vst.msk [vmem:[#allocation3 + $0x8] sm:$0xff] %vm373_vm3, %v352_v57 }
  0xa5   : > { %v358_v58 = vpop.permute.xlu1 %357 }
  0xa6   : > { %378 = vst.msk [vmem:[#allocation3 + $0x20] sm:$0xff] %vm373_vm3, %v358_v58  ;;  %v399_v59 = vpop.permute.xlu0 %398 }
  0xa7   : > { %423 = vst.msk [vmem:[#allocation3] sm:$0xff] %vm422_vm4, %v399_v59 }
  0xa9   : > { %v360_v60 = vpop.permute.xlu1 %359 }
  0xaa   : > { %379 = vst.msk [vmem:[#allocation3 + $0x28] sm:$0xff] %vm373_vm3, %v360_v60  ;;  %v256_v61 = vpop.permute.xlu0 %255 }
  0xab   : > { %278 = vst.msk [vmem:[#allocation3 + $0x10] sm:$0xff] %vm275_vm1, %v256_v61 }
  0xad   : > { %v407_v62 = vpop.permute.xlu1 %406 }
  0xae   : > { %427 = vst.msk [vmem:[#allocation3 + $0x20] sm:$0xff] %vm422_vm4, %v407_v62  ;;  %v401_v63 = vpop.permute.xlu0 %400 }
  0xaf   : > { %424 = vst.msk [vmem:[#allocation3 + $0x8] sm:$0xff] %vm422_vm4, %v401_v63 }
  0xb1   : > { %v264_v0 = vpop.permute.xlu1 %263 }
  0xb2   : > { %282 = vst.msk [vmem:[#allocation3 + $0x30] sm:$0xff] %vm275_vm1, %v264_v0  ;;  %v448_v1 = vpop.permute.xlu0 %447 }
  0xb3   : > { %472 = vst.msk [vmem:[#allocation3] sm:$0xff] %vm471_vm5, %v448_v1 }
  0xb5   : > { %v409_v2 = vpop.permute.xlu1 %408 }
  0xb6   : > { %428 = vst.msk [vmem:[#allocation3 + $0x28] sm:$0xff] %vm422_vm4, %v409_v2  ;;  %v258_v3 = vpop.permute.xlu0 %257 }
  0xb7   : > { %279 = vst.msk [vmem:[#allocation3 + $0x18] sm:$0xff] %vm275_vm1, %v258_v3 }
  0xb9   : > { %v456_v4 = vpop.permute.xlu1 %455 }
  0xba   : > { %476 = vst.msk [vmem:[#allocation3 + $0x20] sm:$0xff] %vm471_vm5, %v456_v4  ;;  %v305_v5 = vpop.permute.xlu0 %304 }
  0xbb   : > { %327 = vst.msk [vmem:[#allocation3 + $0x10] sm:$0xff] %vm324_vm2, %v305_v5 }
  0xbd   : > { %v266_v6 = vpop.permute.xlu1 %265 }
  0xbe   : > { %283 = vst.msk [vmem:[#allocation3 + $0x38] sm:$0xff] %vm275_vm1, %v266_v6  ;;  %v450_v7 = vpop.permute.xlu0 %449 }
  0xbf   : > { %473 = vst.msk [vmem:[#allocation3 + $0x8] sm:$0xff] %vm471_vm5, %v450_v7 }
  0xc1   : > { %v313_v8 = vpop.permute.xlu1 %312 }
  0xc2   : > { %331 = vst.msk [vmem:[#allocation3 + $0x30] sm:$0xff] %vm324_vm2, %v313_v8  ;;  %v498_v9 = vpop.permute.xlu0 %497 }
  0xc3   : > { %522 = vst.msk [vmem:[#allocation3] sm:$0xff] %vm521_vm6, %v498_v9 }
  0xc5   : > { %v458_v10 = vpop.permute.xlu1 %457 }
  0xc6   : > { %477 = vst.msk [vmem:[#allocation3 + $0x28] sm:$0xff] %vm471_vm5, %v458_v10  ;;  %v307_v11 = vpop.permute.xlu0 %306 }
  0xc7   : > { %328 = vst.msk [vmem:[#allocation3 + $0x18] sm:$0xff] %vm324_vm2, %v307_v11 }
  0xc9   : > { %v506_v12 = vpop.permute.xlu1 %505 }
  0xca   : > { %526 = vst.msk [vmem:[#allocation3 + $0x20] sm:$0xff] %vm521_vm6, %v506_v12  ;;  %v354_v13 = vpop.permute.xlu0 %353 }
  0xcb   : > { %376 = vst.msk [vmem:[#allocation3 + $0x10] sm:$0xff] %vm373_vm3, %v354_v13 }
  0xcd   : > { %v315_v14 = vpop.permute.xlu1 %314 }
  0xce   : > { %332 = vst.msk [vmem:[#allocation3 + $0x38] sm:$0xff] %vm324_vm2, %v315_v14  ;;  %v500_v15 = vpop.permute.xlu0 %499 }
  0xcf   : > { %523 = vst.msk [vmem:[#allocation3 + $0x8] sm:$0xff] %vm521_vm6, %v500_v15 }
  0xd1   : > { %v362_v16 = vpop.permute.xlu1 %361 }
  0xd2   : > { %380 = vst.msk [vmem:[#allocation3 + $0x30] sm:$0xff] %vm373_vm3, %v362_v16  ;;  %v547_v17 = vpop.permute.xlu0 %546 }
  0xd3   : > { %571 = vst.msk [vmem:[#allocation3] sm:$0xff] %vm570_vm7, %v547_v17 }
  0xd5   : > { %v508_v18 = vpop.permute.xlu1 %507 }
  0xd6   : > { %527 = vst.msk [vmem:[#allocation3 + $0x28] sm:$0xff] %vm521_vm6, %v508_v18  ;;  %v356_v19 = vpop.permute.xlu0 %355 }
  0xd7   : > { %377 = vst.msk [vmem:[#allocation3 + $0x18] sm:$0xff] %vm373_vm3, %v356_v19 }
  0xd9   : > { %v555_v20 = vpop.permute.xlu1 %554 }
  0xda   : > { %575 = vst.msk [vmem:[#allocation3 + $0x20] sm:$0xff] %vm570_vm7, %v555_v20  ;;  %v403_v21 = vpop.permute.xlu0 %402 }
  0xdb   : > { %425 = vst.msk [vmem:[#allocation3 + $0x10] sm:$0xff] %vm422_vm4, %v403_v21 }
  0xdd   : > { %v364_v22 = vpop.permute.xlu1 %363 }
  0xde   : > { %381 = vst.msk [vmem:[#allocation3 + $0x38] sm:$0xff] %vm373_vm3, %v364_v22  ;;  %v549_v23 = vpop.permute.xlu0 %548 }
  0xdf   : > { %572 = vst.msk [vmem:[#allocation3 + $0x8] sm:$0xff] %vm570_vm7, %v549_v23 }
  0xe1   : > { %v411_v24 = vpop.permute.xlu1 %410 }
  0xe2   : > { %429 = vst.msk [vmem:[#allocation3 + $0x30] sm:$0xff] %vm422_vm4, %v411_v24  ;;  %v596_v25 = vpop.permute.xlu0 %595 }
  0xe3   : > { %620 = vst.msk [vmem:[#allocation3] sm:$0xff] %vm619_vm8, %v596_v25 }
  0xe5   : > { %v557_v26 = vpop.permute.xlu1 %556 }
  0xe6   : > { %576 = vst.msk [vmem:[#allocation3 + $0x28] sm:$0xff] %vm570_vm7, %v557_v26  ;;  %v405_v27 = vpop.permute.xlu0 %404 }
  0xe7   : > { %426 = vst.msk [vmem:[#allocation3 + $0x18] sm:$0xff] %vm422_vm4, %v405_v27 }
  0xe9   : > { %v604_v28 = vpop.permute.xlu1 %603 }
  0xea   : > { %624 = vst.msk [vmem:[#allocation3 + $0x20] sm:$0xff] %vm619_vm8, %v604_v28  ;;  %v452_v29 = vpop.permute.xlu0 %451  ;;  %v628_v30 = vld [vmem:[#allocation3] sm:$0xff] }
  0xeb   : > { %474 = vst.msk [vmem:[#allocation3 + $0x10] sm:$0xff] %vm471_vm5, %v452_v29  ;;  %903 = vmatprep.mubr.msk.f32.mxu0 %vm652_vm9, %v628_v30 }
  0xed   : > { %v413_v31 = vpop.permute.xlu1 %412 }
  0xee   : > { %430 = vst.msk [vmem:[#allocation3 + $0x38] sm:$0xff] %vm422_vm4, %v413_v31  ;;  %v598_v32 = vpop.permute.xlu0 %597 }
  0xef   : > { %621 = vst.msk [vmem:[#allocation3 + $0x8] sm:$0xff] %vm619_vm8, %v598_v32 }
  0xf1   : > { %v460_v33 = vpop.permute.xlu1 %459  ;;  %v632_v34 = vld [vmem:[#allocation3 + $0x20] sm:$0xff] }
  0xf2   : > { %478 = vst.msk [vmem:[#allocation3 + $0x30] sm:$0xff] %vm471_vm5, %v460_v33  ;;  %909 = vmatprep.mubr.msk.f32.mxu1 %vm652_vm9, %v632_v34  ;;  %v454_v35 = vpop.permute.xlu0 %453 }
  0xf3   : > { %475 = vst.msk [vmem:[#allocation3 + $0x18] sm:$0xff] %vm471_vm5, %v454_v35 }
  0xf5   : > { %v606_v36 = vpop.permute.xlu1 %605 }
  0xf6   : > { %625 = vst.msk [vmem:[#allocation3 + $0x28] sm:$0xff] %vm619_vm8, %v606_v36  ;;  %v502_v37 = vpop.permute.xlu0 %501  ;;  %v629_v38 = vld [vmem:[#allocation3 + $0x8] sm:$0xff] }
  0xf7   : > { %524 = vst.msk [vmem:[#allocation3 + $0x10] sm:$0xff] %vm521_vm6, %v502_v37  ;;  %904 = vmatmul.mubr.msk.f32.vlgmr.msra.gmra.mxu0 %vm652_vm9, %v629_v38 }
  0xf9   : > { %v462_v39 = vpop.permute.xlu1 %461 }
  0xfa   : > { %479 = vst.msk [vmem:[#allocation3 + $0x38] sm:$0xff] %vm471_vm5, %v462_v39  ;;  %v504_v40 = vpop.permute.xlu0 %503 }
  0xfb   : > { %525 = vst.msk [vmem:[#allocation3 + $0x18] sm:$0xff] %vm521_vm6, %v504_v40 }
  0xfd   : > { %v510_v41 = vpop.permute.xlu1 %509  ;;  %v633_v42 = vld [vmem:[#allocation3 + $0x28] sm:$0xff] }
  0xfe   : > { %528 = vst.msk [vmem:[#allocation3 + $0x30] sm:$0xff] %vm521_vm6, %v510_v41  ;;  %910 = vmatmul.mubr.msk.f32.vlgmr.msra.gmra.mxu1 %vm652_vm9, %v633_v42  ;;  %v551_v43 = vpop.permute.xlu0 %550 }
  0xff   : > { %573 = vst.msk [vmem:[#allocation3 + $0x10] sm:$0xff] %vm570_vm7, %v551_v43 }
 0x101   : > { %v512_v44 = vpop.permute.xlu1 %511 }
 0x102   : > { %529 = vst.msk [vmem:[#allocation3 + $0x38] sm:$0xff] %vm521_vm6, %v512_v44  ;;  %v553_v45 = vpop.permute.xlu0 %552 }
 0x103   : > { %574 = vst.msk [vmem:[#allocation3 + $0x18] sm:$0xff] %vm570_vm7, %v553_v45 }
 0x105   : > { %v559_v46 = vpop.permute.xlu1 %558 }
 0x106   : > { %577 = vst.msk [vmem:[#allocation3 + $0x30] sm:$0xff] %vm570_vm7, %v559_v46  ;;  %v600_v47 = vpop.permute.xlu0 %599 }
 0x107   : > { %622 = vst.msk [vmem:[#allocation3 + $0x10] sm:$0xff] %vm619_vm8, %v600_v47 }
 0x109   : > { %v561_v48 = vpop.permute.xlu1 %560 }
 0x10a   : > { %578 = vst.msk [vmem:[#allocation3 + $0x38] sm:$0xff] %vm570_vm7, %v561_v48  ;;  %v602_v49 = vpop.permute.xlu0 %601 }
 0x10b   : > { %623 = vst.msk [vmem:[#allocation3 + $0x18] sm:$0xff] %vm619_vm8, %v602_v49 }
 0x10d   : > { %v608_v50 = vpop.permute.xlu1 %607 }
 0x10e   : > { %626 = vst.msk [vmem:[#allocation3 + $0x30] sm:$0xff] %vm619_vm8, %v608_v50  ;;  %v630_v51 = vld [vmem:[#allocation3 + $0x10] sm:$0xff] }
 0x10f   : > { %906 = vmatprep.mubr.msk.f32.mxu0 %vm652_vm9, %v630_v51 }
 0x111   : > { %v610_v52 = vpop.permute.xlu1 %609 }
 0x112   : > { %627 = vst.msk [vmem:[#allocation3 + $0x38] sm:$0xff] %vm619_vm8, %v610_v52  ;;  %v631_v53 = vld [vmem:[#allocation3 + $0x18] sm:$0xff] }
 0x113   : > { %907 = vmatmul.mubr.msk.f32.gmra.mxu0 %vm652_vm9, %v631_v53 }
 0x115   : > { %v634_v54 = vld [vmem:[#allocation3 + $0x30] sm:$0xff] }
 0x116   : > { %912 = vmatprep.mubr.msk.f32.mxu1 %vm652_vm9, %v634_v54 }
 0x119   : > { %v635_v55 = vld [vmem:[#allocation3 + $0x38] sm:$0xff] }
 0x11a   : > { %913 = vmatmul.mubr.msk.f32.gmra.mxu1 %vm652_vm9, %v635_v55 }
 0x1b7   : > { %v905_v57 = vpop.f32.mrf.mxu0 }
 0x1b8   : > { %v749_v58 = vadd.f32 %v905_v57, %v855_v56 }
 0x1b9   : > { %v743_v59 = vpop.f32.mrf.mxu0 }
 0x1ba   : > { %784 = vst.msk [vmem:[%s170_s25 + $0x8] sm:$0xff] %vm782_vm10, %v749_v58  ;;  %v744_v60 = vadd.f32 %v855_v56, %v743_v59 }
 0x1bc   : > { %783 = vst.msk [vmem:[%s170_s25] sm:$0xff] %vm782_vm10, %v744_v60 }
 0x1be   : > { %v911_v61 = vpop.f32.mrf.mxu1 }
 0x1bf   : > { %v769_v62 = vadd.f32 %v911_v61, %v855_v56 }
 0x1c0   : > { %v763_v63 = vpop.f32.mrf.mxu1 }
 0x1c1   : > { %788 = vst.msk [vmem:[%s170_s25 + $0x28] sm:$0xff] %vm782_vm10, %v769_v62  ;;  %v764_v0 = vadd.f32 %v855_v56, %v763_v63 }
 0x1c3   : > { %787 = vst.msk [vmem:[%s170_s25 + $0x20] sm:$0xff] %vm782_vm10, %v764_v0 }
 0x1d3   : > { %v908_v1 = vpop.f32.mrf.mxu0 }
 0x1d4   : > { %v759_v2 = vadd.f32 %v908_v1, %v855_v56 }
 0x1d5   : > { %v753_v3 = vpop.f32.mrf.mxu0 }
 0x1d6   : > { %786 = vst.msk [vmem:[%s170_s25 + $0x18] sm:$0xff] %vm782_vm10, %v759_v2  ;;  %v754_v4 = vadd.f32 %v855_v56, %v753_v3 }
 0x1d8   : > { %785 = vst.msk [vmem:[%s170_s25 + $0x10] sm:$0xff] %vm782_vm10, %v754_v4 }
 0x1da   : > { %v914_v5 = vpop.f32.mrf.mxu1 }
 0x1db   : > { %v779_v6 = vadd.f32 %v914_v5, %v855_v56 }
 0x1dc   : > { %v773_v7 = vpop.f32.mrf.mxu1 }
 0x1dd   : > { %790 = vst.msk [vmem:[%s170_s25 + $0x38] sm:$0xff] %vm782_vm10, %v779_v6  ;;  %v774_v8 = vadd.f32 %v855_v56, %v773_v7 }
 0x1df   : > { %789 = vst.msk [vmem:[%s170_s25 + $0x30] sm:$0xff] %vm782_vm10, %v774_v8 }
 0x1e0 PF: > { %s13_s12 = sadd.s32 1, %s956_s12  }
 0x1e1   : > { %p10_p4 = scmp.ge.s32.totalorder %s13_s12, 4  }
 0x1e3   :  { %12 = sbr.rel (!%p10_p4) target bundleno = 1 (0x1), region = 64 }

// kernel: dec_unit_first.9
= control target key start
LH: loop header
LB: loop body
LE: loop exit
PB: predicated region body
PF: predicated region fallthrough
CT: control target
= control target key end

     0   :  { %s1069_s15 = smov 0   ;;  %s1388_s0 = inlined_call_operand.vmem [shape: f32[2,8,8,8], index: 0, kind: input, shape index: {}]   ;;  %s1389_s1 = inlined_call_operand.vmem [shape: f32[2,8,8,8], index: 1, kind: input, shape index: {}]   ;;  %s1390_s2 = inlined_call_operand.vmem [shape: f32[72,8], index: 2, kind: input, shape index: {}]   ;;  %s1391_s3 = inlined_call_operand.vmem [shape: f32[1,8], index: 3, kind: input, shape index: {}]   ;;  %s1392_s4 = inlined_call_operand.vmem [shape: f32[2,8,8,8], index: 4, kind: output, shape index: {}]  }
   0x1 LB: > { %s920_s16 = sadd.s32 4294967295, %s1033_s15   ;;  %p924_p0 = scmp.ge.s32.totalorder %s1033_s15, 1  ;;  %s1033_s15 = sphi %s1069_s15, %s14_s15  }
   0x2   : > { %p172_p1 = scmp.lt.s32.totalorder %s1033_s15, 3 }
   0x4   : > { %p173_p2 = pnand %p924_p0, %p172_p1 }
   0x5   : > { %p1079_p3 = scmp.lt.s32.totalorder (!%p173_p2), %s920_s16, 1  ;;  %s1036_s22 = smov (!%p173_p2), 8  }
   0x6   : > { %176 = sbr.rel (%p173_p2) target bundleno = 482 (0x1e2), region = 36  ;;  %s1037_s23 = smov (!%p173_p2), 16  }
   0x7   : > { %s1038_s24 = smov (!%p173_p2), 24   ;;  %s1039_s25 = smov (!%p173_p2), 32  }
   0x8   : > { %s1040_s26 = smov (!%p173_p2), 40   ;;  %s1041_s27 = smov (!%p173_p2), 48  }
   0x9   : > { %s1042_s28 = smov (!%p173_p2), 56   ;;  %s1043_s11 = smov (!%p173_p2), 64  }
   0xb   : > { %vm226_vm0 = vcmask 64512   ;;  %v1035_v0 = vmov 0.0   ;;  %s1395_s16 = smov (!%p1079_p3, %s920_s16), 1  ;;  %v691_v34 = vld [vmem:[%s1390_s2 + $0x40] sm:$0xff]  ;;  %v690_v35 = vld [vmem:[%s1390_s2 + $0x38] sm:$0xff]  ;;  %v689_v36 = vld [vmem:[%s1390_s2 + $0x30] sm:$0xff] }
   0xc   : > { %228 = vst.msk [vmem:[#allocation2 + $0x8] sm:$0xff] %vm226_vm0, %v1035_v0  ;;  %227 = vst.msk [vmem:[#allocation2] sm:$0xff] %vm226_vm0, %v1035_v0  ;;  %s1117_s18 = sshll.u32 %s1395_s16, 6  ;;  %962 = vmatprep.subr.mxu0 %v691_v34  ;;  %992 = vmatprep.subr.mxu1 %v691_v34  ;;  %v688_v37 = vld [vmem:[%s1390_s2 + $0x28] sm:$0xff]  ;;  %v687_v38 = vld [vmem:[%s1390_s2 + $0x20] sm:$0xff]  ;;  %vm322_vm1 = vcmask 130112  }
   0xd   : > { %229 = vst.msk [vmem:[#allocation2 + $0x10] sm:$0xff] %vm226_vm0, %v1035_v0  ;;  %230 = vst.msk [vmem:[#allocation2 + $0x18] sm:$0xff] %vm226_vm0, %v1035_v0  ;;  %s207_s21 = scalar_lea.vmem %s1388_s0, %s1117_s18  ;;  %963 = vmatpush3.msra.mxu0 %v691_v34  ;;  %1001 = vmatpush3.msra.mxu1 %v691_v34  ;;  %v686_v39 = vld [vmem:[%s1390_s2 + $0x18] sm:$0xff]  ;;  %v685_v40 = vld [vmem:[%s1390_s2 + $0x10] sm:$0xff]  ;;  %vm371_vm2 = vcmask 195712   ;;  %vm420_vm3 = vcmask 261312   ;;  %s1360_s5 = scalar_lea.vmem %s1392_s4, %s1117_s18 }
   0xe   : > { %231 = vst.msk [vmem:[#allocation2 + $0x20] sm:$0xff] %vm226_vm0, %v1035_v0  ;;  %232 = vst.msk [vmem:[#allocation2 + $0x28] sm:$0xff] %vm226_vm0, %v1035_v0  ;;  %v218_v1 = vld [vmem:[%s207_s21] sm:$0xff]  ;;  %v221_v3 = vld [vmem:[%s207_s21 + $0x18] sm:$0xff]  ;;  %964 = vmatprep.subr.mxu0 %v690_v35  ;;  %993 = vmatprep.subr.mxu1 %v690_v35  ;;  %vm469_vm4 = vcmask 326912   ;;  %vm518_vm5 = vcmask 392512  }
   0xf   : > { %233 = vst.msk [vmem:[#allocation2 + $0x30] sm:$0xff] %vm226_vm0, %v1035_v0  ;;  %234 = vst.msk [vmem:[#allocation2 + $0x38] sm:$0xff] %vm226_vm0, %v1035_v0  ;;  %v222_v2 = vld [vmem:[%s207_s21 + $0x20] sm:$0xff]  ;;  %v219_v4 = vld [vmem:[%s207_s21 + $0x8] sm:$0xff]  ;;  %965 = vmatpush3.msra.mxu0 %v690_v35  ;;  %1002 = vmatpush3.msra.mxu1 %v690_v35  ;;  %vm568_vm6 = vcmask 458112   ;;  %vm617_vm7 = vcmask 523712  }
  0x10   : > { %235 = vst.msk [vmem:[#allocation2 + $0x40] sm:$0xff] %vm226_vm0, %v1035_v0  ;;  %236 = vst.msk [vmem:[#allocation2 + $0x48] sm:$0xff] %vm226_vm0, %v1035_v0  ;;  %v223_v5 = vld [vmem:[%s207_s21 + $0x28] sm:$0xff]  ;;  %v220_v6 = vld [vmem:[%s207_s21 + $0x10] sm:$0xff]  ;;  %966 = vmatprep.subr.mxu0 %v689_v36  ;;  %994 = vmatprep.subr.mxu1 %v689_v36  ;;  %vm666_vm8 = vcmask 589312   ;;  %vm699_vm9 = vcmask 588800  }
  0x11   : > { %237 = vst.msk [vmem:[#allocation2 + $0x50] sm:$0xff] %vm226_vm0, %v1035_v0  ;;  %238 = vst.msk [vmem:[#allocation2 + $0x58] sm:$0xff] %vm226_vm0, %v1035_v0  ;;  %v224_v8 = vld [vmem:[%s207_s21 + $0x30] sm:$0xff]  ;;  %v225_v9 = vld [vmem:[%s207_s21 + $0x38] sm:$0xff]  ;;  %967 = vmatpush3.msra.mxu0 %v689_v36  ;;  %1003 = vmatpush3.msra.mxu1 %v689_v36 }
  0x12   : > { %239 = vst.msk [vmem:[#allocation2 + $0x60] sm:$0xff] %vm226_vm0, %v1035_v0  ;;  %240 = vst.msk [vmem:[#allocation2 + $0x68] sm:$0xff] %vm226_vm0, %v1035_v0  ;;  %968 = vmatprep.subr.mxu0 %v688_v37  ;;  %995 = vmatprep.subr.mxu1 %v688_v37  ;;  %v684_v42 = vld [vmem:[%s1390_s2 + $0x8] sm:$0xff]  ;;  %v683_v43 = vld [vmem:[%s1390_s2] sm:$0xff] }
  0x13   : > { %241 = vst.msk [vmem:[#allocation2 + $0x70] sm:$0xff] %vm226_vm0, %v1035_v0  ;;  %242 = vst.msk [vmem:[#allocation2 + $0x78] sm:$0xff] %vm226_vm0, %v1035_v0  ;;  %v282_v7 = vld [vmem:[#allocation2 + $0x8] sm:$0xff]  ;;  %969 = vmatpush3.msra.mxu0 %v688_v37  ;;  %1004 = vmatpush3.msra.mxu1 %v688_v37 }
  0x14   : > { %243 = vst.msk [vmem:[#allocation2 + $0x80] sm:$0xff] %vm226_vm0, %v1035_v0  ;;  %244 = vst.msk [vmem:[#allocation2 + $0x88] sm:$0xff] %vm226_vm0, %v1035_v0  ;;  %298 = vrot.lane.b32.xlu0 %v282_v7, %s1036_s22  ;;  %v266_v10 = vld [vmem:[#allocation2 + $0x7] sm:$0xff]  ;;  %970 = vmatprep.subr.mxu0 %v687_v38 }
  0x15   : > { %245 = vst.msk [vmem:[#allocation2 + $0x90] sm:$0xff] %vm226_vm0, %v1035_v0  ;;  %246 = vst.msk [vmem:[#allocation2 + $0x98] sm:$0xff] %vm226_vm0, %v1035_v0  ;;  %v331_v11 = vld [vmem:[#allocation2 + $0x9] sm:$0xff]  ;;  %971 = vmatpush3.msra.mxu0 %v687_v38  ;;  %996 = vmatprep.subr.mxu1 %v687_v38 }
  0x16   : > { %247 = vst.msk [vmem:[#allocation2 + $0xa0] sm:$0xff] %vm226_vm0, %v1035_v0  ;;  %248 = vst.msk [vmem:[#allocation2 + $0xa8] sm:$0xff] %vm226_vm0, %v1035_v0  ;;  %972 = vmatprep.subr.mxu0 %v686_v39  ;;  %1005 = vmatpush3.msra.mxu1 %v687_v38 }
  0x17   : > { %249 = vst.msk [vmem:[#allocation2 + $0xb0] sm:$0xff] %vm226_vm0, %v1035_v0  ;;  %250 = vst.msk [vmem:[#allocation2 + $0xb8] sm:$0xff] %vm226_vm0, %v1035_v0  ;;  %973 = vmatpush3.msra.mxu0 %v686_v39  ;;  %997 = vmatprep.subr.mxu1 %v686_v39 }
  0x18   : > { %251 = vst.msk [vmem:[#allocation2 + $0xc0] sm:$0xff] %vm226_vm0, %v1035_v0  ;;  %252 = vst.msk [vmem:[#allocation2 + $0xc8] sm:$0xff] %vm226_vm0, %v1035_v0  ;;  %347 = vrot.lane.b32.xlu0 %v331_v11, %s1037_s23  ;;  %974 = vmatprep.subr.mxu0 %v685_v40 }
  0x19   : > { %253 = vst.msk [vmem:[#allocation2 + $0xd0] sm:$0xff] %vm226_vm0, %v1035_v0  ;;  %254 = vst.msk [vmem:[#allocation2 + $0xd8] sm:$0xff] %vm226_vm0, %v1035_v0  ;;  %1006 = vmatpush3.msra.mxu1 %v686_v39  ;;  %975 = vmatpush3.msra.mxu0 %v685_v40 }
  0x1a   : > { %255 = vst.msk [vmem:[#allocation2 + $0xe0] sm:$0xff] %vm226_vm0, %v1035_v0  ;;  %256 = vst.msk [vmem:[#allocation2 + $0xe8] sm:$0xff] %vm226_vm0, %v1035_v0  ;;  %998 = vmatprep.subr.mxu1 %v685_v40  ;;  %976 = vmatprep.subr.mxu0 %v684_v42 }
  0x1b   : > { %258 = vst.msk [vmem:[#allocation2 + $0x20] sm:$0xff] %vm226_vm0, %v218_v1  ;;  %262 = vst.msk [vmem:[#allocation2 + $0x80] sm:$0xff] %vm226_vm0, %v222_v2  ;;  %1007 = vmatpush3.msra.mxu1 %v685_v40  ;;  %977 = vmatpush3.msra.mxu0 %v684_v42 }
  0x1c   : > { %261 = vst.msk [vmem:[#allocation2 + $0x68] sm:$0xff] %vm226_vm0, %v221_v3  ;;  %259 = vst.msk [vmem:[#allocation2 + $0x38] sm:$0xff] %vm226_vm0, %v219_v4  ;;  %999 = vmatprep.subr.mxu1 %v684_v42  ;;  %978 = vmatprep.subr.mxu0 %v683_v43 }
  0x1d   : > { %263 = vst.msk [vmem:[#allocation2 + $0x98] sm:$0xff] %vm226_vm0, %v223_v5  ;;  %260 = vst.msk [vmem:[#allocation2 + $0x50] sm:$0xff] %vm226_vm0, %v220_v6  ;;  %1008 = vmatpush3.msra.mxu1 %v684_v42  ;;  %979 = vmatpush3.msra.mxu0 %v683_v43 }
  0x1e   : > { %264 = vst.msk [vmem:[#allocation2 + $0xb0] sm:$0xff] %vm226_vm0, %v224_v8  ;;  %265 = vst.msk [vmem:[#allocation2 + $0xc8] sm:$0xff] %vm226_vm0, %v225_v9  ;;  %1000 = vmatprep.subr.mxu1 %v683_v43 }
  0x1f   : > { %274 = vst.msk [vmem:[#allocation3] sm:$0xff] %vm226_vm0, %v266_v10  ;;  %1009 = vmatpush3.msra.mxu1 %v683_v43 }
  0x21   : > { %v535_v45 = vld [vmem:[#allocation2 + $0xdf] sm:$0xff] }
  0x22   : > { %v283_v12 = vld [vmem:[#allocation2 + $0x20] sm:$0xff] }
  0x23   : > { %v1134_v13 = vld [vmem:[#allocation2 + $0x68] sm:$0xff]  ;;  %300 = vrot.lane.b32.xlu1 %v283_v12, %s1036_s22  ;;  %v1137_v14 = vld [vmem:[#allocation2 + $0x80] sm:$0xff]  ;;  %v381_v17 = vld [vmem:[#allocation2 + $0x37] sm:$0xff] }
  0x24   : > { %v380_v15 = vld [vmem:[#allocation2 + $0x1f] sm:$0xff]  ;;  %306 = vrot.lane.b32.xlu0 %v1134_v13, %s1036_s22  ;;  %v385_v18 = vld [vmem:[#allocation2 + $0x97] sm:$0xff]  ;;  %276 = vst.msk [vmem:[#allocation3 + $0x10] sm:$0xff] %vm226_vm0, %v381_v17  ;;  %v1150_v20 = vld [vmem:[#allocation2 + $0x69] sm:$0xff] }
  0x25   : > { %v1139_v16 = vld [vmem:[#allocation2 + $0x7f] sm:$0xff]  ;;  %275 = vst.msk [vmem:[#allocation3 + $0x8] sm:$0xff] %vm226_vm0, %v380_v15  ;;  %280 = vst.msk [vmem:[#allocation3 + $0x30] sm:$0xff] %vm226_vm0, %v385_v18  ;;  %v382_v21 = vld [vmem:[#allocation2 + $0x4f] sm:$0xff] }
  0x26   : > { %279 = vst.msk [vmem:[#allocation3 + $0x28] sm:$0xff] %vm226_vm0, %v1139_v16  ;;  %v332_v19 = vld [vmem:[#allocation2 + $0x21] sm:$0xff]  ;;  %v386_v22 = vld [vmem:[#allocation2 + $0xaf] sm:$0xff]  ;;  %277 = vst.msk [vmem:[#allocation3 + $0x18] sm:$0xff] %vm226_vm0, %v382_v21 }
  0x27   : > { %308 = vrot.lane.b32.xlu1 %v1137_v14, %s1036_s22  ;;  %v1152_v23 = vld [vmem:[#allocation2 + $0x67] sm:$0xff]  ;;  %281 = vst.msk [vmem:[#allocation3 + $0x38] sm:$0xff] %vm226_vm0, %v386_v22  ;;  %v284_v25 = vld [vmem:[#allocation2 + $0x38] sm:$0xff]  ;;  %v285_v27 = vld [vmem:[#allocation2 + $0x50] sm:$0xff] }
  0x28   : > { %349 = vrot.lane.b32.xlu0 %v332_v19, %s1037_s23  ;;  %278 = vst.msk [vmem:[#allocation3 + $0x20] sm:$0xff] %vm226_vm0, %v1152_v23  ;;  %v1161_v24 = vld [vmem:[#allocation2 + $0x81] sm:$0xff]  ;;  %v288_v26 = vld [vmem:[#allocation2 + $0x98] sm:$0xff]  ;;  %v289_v29 = vld [vmem:[#allocation2 + $0xb0] sm:$0xff] }
  0x29   : > { %v333_v28 = vld [vmem:[#allocation2 + $0x39] sm:$0xff]  ;;  %v1186_v31 = vld [vmem:[#allocation2 + $0x51] sm:$0xff]  ;;  %v1204_v33 = vld [vmem:[#allocation2 + $0xc7] sm:$0xff] }
  0x2a   : > { %v337_v30 = vld [vmem:[#allocation2 + $0x99] sm:$0xff]  ;;  %v1192_v32 = vld [vmem:[#allocation2 + $0xb1] sm:$0xff]  ;;  %v436_v41 = vld [vmem:[#allocation2 + $0xc8] sm:$0xff] }
  0x2b   : > { %355 = vrot.lane.b32.xlu1 %v1150_v20, %s1037_s23  ;;  %v485_v44 = vld [vmem:[#allocation2 + $0xc9] sm:$0xff]  ;;  %v584_v48 = vld [vmem:[#allocation2 + $0xe0] sm:$0xff] }
  0x2c   : > { %396 = vrot.lane.b32.xlu0 %v380_v15, %s1038_s24  ;;  %v633_v53 = vld [vmem:[#allocation2 + $0xe1] sm:$0xff] }
  0x2f   : > { %357 = vrot.lane.b32.xlu1 %v1161_v24, %s1037_s23 }
  0x30   : > { %398 = vrot.lane.b32.xlu0 %v381_v17, %s1038_s24 }
  0x33   : > { %404 = vrot.lane.b32.xlu1 %v1139_v16, %s1038_s24 }
  0x34   : > { %445 = vrot.lane.b32.xlu0 %v283_v12, %s1039_s25 }
  0x37   : > { %406 = vrot.lane.b32.xlu1 %v385_v18, %s1038_s24 }
  0x38   : > { %302 = vrot.lane.b32.xlu0 %v284_v25, %s1036_s22 }
  0x3b   : > { %453 = vrot.lane.b32.xlu1 %v1137_v14, %s1039_s25 }
  0x3c   : > { %447 = vrot.lane.b32.xlu0 %v284_v25, %s1039_s25 }
  0x3f   : > { %310 = vrot.lane.b32.xlu1 %v288_v26, %s1036_s22 }
  0x40   : > { %494 = vrot.lane.b32.xlu0 %v332_v19, %s1040_s26 }
  0x43   : > { %455 = vrot.lane.b32.xlu1 %v288_v26, %s1039_s25 }
  0x44   : > { %304 = vrot.lane.b32.xlu0 %v285_v27, %s1036_s22 }
  0x47   : > { %502 = vrot.lane.b32.xlu1 %v1161_v24, %s1040_s26 }
  0x48   : > { %351 = vrot.lane.b32.xlu0 %v333_v28, %s1037_s23 }
  0x4b   : > { %312 = vrot.lane.b32.xlu1 %v289_v29, %s1036_s22 }
  0x4c   : > { %496 = vrot.lane.b32.xlu0 %v333_v28, %s1040_s26 }
  0x4f   : > { %359 = vrot.lane.b32.xlu1 %v337_v30, %s1037_s23 }
  0x50   : > { %544 = vrot.lane.b32.xlu0 %v381_v17, %s1041_s27 }
  0x53   : > { %504 = vrot.lane.b32.xlu1 %v337_v30, %s1040_s26 }
  0x54   : > { %353 = vrot.lane.b32.xlu0 %v1186_v31, %s1037_s23 }
  0x57   : > { %552 = vrot.lane.b32.xlu1 %v385_v18, %s1041_s27 }
  0x58   : > { %400 = vrot.lane.b32.xlu0 %v382_v21, %s1038_s24 }
  0x5b   : > { %361 = vrot.lane.b32.xlu1 %v1192_v32, %s1037_s23 }
  0x5c   : > { %546 = vrot.lane.b32.xlu0 %v382_v21, %s1041_s27 }
  0x5f   : > { %408 = vrot.lane.b32.xlu1 %v386_v22, %s1038_s24 }
  0x60   : > { %593 = vrot.lane.b32.xlu0 %v284_v25, %s1042_s28 }
  0x63   : > { %554 = vrot.lane.b32.xlu1 %v386_v22, %s1041_s27 }
  0x64   : > { %402 = vrot.lane.b32.xlu0 %v1152_v23, %s1038_s24 }
  0x67   : > { %601 = vrot.lane.b32.xlu1 %v288_v26, %s1042_s28 }
  0x68   : > { %449 = vrot.lane.b32.xlu0 %v285_v27, %s1039_s25 }
  0x6b   : > { %410 = vrot.lane.b32.xlu1 %v1204_v33, %s1038_s24 }
  0x6c   : > { %595 = vrot.lane.b32.xlu0 %v285_v27, %s1042_s28 }
  0x6f   : > { %457 = vrot.lane.b32.xlu1 %v289_v29, %s1039_s25 }
  0x70   : > { %642 = vrot.lane.b32.xlu0 %v333_v28, %s1043_s11 }
  0x73   : > { %603 = vrot.lane.b32.xlu1 %v289_v29, %s1042_s28 }
  0x74   : > { %451 = vrot.lane.b32.xlu0 %v1134_v13, %s1039_s25 }
  0x77   : > { %650 = vrot.lane.b32.xlu1 %v337_v30, %s1043_s11 }
  0x78   : > { %498 = vrot.lane.b32.xlu0 %v1186_v31, %s1040_s26 }
  0x7b   : > { %459 = vrot.lane.b32.xlu1 %v436_v41, %s1039_s25 }
  0x7c   : > { %644 = vrot.lane.b32.xlu0 %v1186_v31, %s1043_s11 }
  0x7f   : > { %506 = vrot.lane.b32.xlu1 %v1192_v32, %s1040_s26 }
  0x80   : > { %500 = vrot.lane.b32.xlu0 %v1150_v20, %s1040_s26 }
  0x83   : > { %652 = vrot.lane.b32.xlu1 %v1192_v32, %s1043_s11 }
  0x84   : > { %548 = vrot.lane.b32.xlu0 %v1152_v23, %s1041_s27 }
  0x86   : > { %v299_v46 = vpop.permute.xlu0 %298 }
  0x87   : > { %508 = vrot.lane.b32.xlu1 %v485_v44, %s1040_s26  ;;  %323 = vst.msk [vmem:[#allocation3] sm:$0xff] %vm322_vm1, %v299_v46  ;;  %s1350_s26 = scalar_lea.vmem %s1389_s1, %s1117_s18 }
  0x88   : > { %550 = vrot.lane.b32.xlu0 %v1139_v16, %s1041_s27 }
  0x8a   : > { %v348_v47 = vpop.permute.xlu0 %347 }
  0x8b   : > { %556 = vrot.lane.b32.xlu1 %v1204_v33, %s1041_s27  ;;  %372 = vst.msk [vmem:[#allocation3] sm:$0xff] %vm371_vm2, %v348_v47 }
  0x8c   : > { %597 = vrot.lane.b32.xlu0 %v1134_v13, %s1042_s28 }
  0x8f   : > { %558 = vrot.lane.b32.xlu1 %v535_v45, %s1041_s27 }
  0x90   : > { %599 = vrot.lane.b32.xlu0 %v1137_v14, %s1042_s28 }
  0x93   : > { %605 = vrot.lane.b32.xlu1 %v436_v41, %s1042_s28 }
  0x94   : > { %646 = vrot.lane.b32.xlu0 %v1150_v20, %s1043_s11 }
  0x95   : > { %v301_v49 = vpop.permute.xlu1 %300 }
  0x96   : > { %324 = vst.msk [vmem:[#allocation3 + $0x8] sm:$0xff] %vm322_vm1, %v301_v49  ;;  %v307_v50 = vpop.permute.xlu0 %306 }
  0x97   : > { %607 = vrot.lane.b32.xlu1 %v584_v48, %s1042_s28  ;;  %327 = vst.msk [vmem:[#allocation3 + $0x20] sm:$0xff] %vm322_vm1, %v307_v50 }
  0x98   : > { %648 = vrot.lane.b32.xlu0 %v1161_v24, %s1043_s11 }
  0x99   : > { %v309_v51 = vpop.permute.xlu1 %308 }
  0x9a   : > { %328 = vst.msk [vmem:[#allocation3 + $0x28] sm:$0xff] %vm322_vm1, %v309_v51  ;;  %v350_v52 = vpop.permute.xlu0 %349 }
  0x9b   : > { %654 = vrot.lane.b32.xlu1 %v485_v44, %s1043_s11  ;;  %373 = vst.msk [vmem:[#allocation3 + $0x8] sm:$0xff] %vm371_vm2, %v350_v52 }
  0x9d   : > { %v356_v54 = vpop.permute.xlu1 %355 }
  0x9e   : > { %376 = vst.msk [vmem:[#allocation3 + $0x20] sm:$0xff] %vm371_vm2, %v356_v54  ;;  %v397_v55 = vpop.permute.xlu0 %396 }
  0x9f   : > { %656 = vrot.lane.b32.xlu1 %v633_v53, %s1043_s11  ;;  %421 = vst.msk [vmem:[#allocation3] sm:$0xff] %vm420_vm3, %v397_v55 }
  0xa1   : > { %v358_v56 = vpop.permute.xlu1 %357 }
  0xa2   : > { %377 = vst.msk [vmem:[#allocation3 + $0x28] sm:$0xff] %vm371_vm2, %v358_v56  ;;  %v399_v57 = vpop.permute.xlu0 %398  ;;  %v931_v56 = vld [vmem:[%s1391_s3] ss:$0 sm:$0xff] }
  0xa3   : > { %422 = vst.msk [vmem:[#allocation3 + $0x8] sm:$0xff] %vm420_vm3, %v399_v57 }
  0xa5   : > { %v405_v58 = vpop.permute.xlu1 %404 }
  0xa6   : > { %425 = vst.msk [vmem:[#allocation3 + $0x20] sm:$0xff] %vm420_vm3, %v405_v58  ;;  %v446_v59 = vpop.permute.xlu0 %445  ;;  %v830_v58 = vld [vmem:[%s1350_s26 + $0x8] sm:$0xff] }
  0xa7   : > { %470 = vst.msk [vmem:[#allocation3] sm:$0xff] %vm469_vm4, %v446_v59 }
  0xa9   : > { %v407_v60 = vpop.permute.xlu1 %406 }
  0xaa   : > { %426 = vst.msk [vmem:[#allocation3 + $0x28] sm:$0xff] %vm420_vm3, %v407_v60  ;;  %v303_v61 = vpop.permute.xlu0 %302 }
  0xab   : > { %325 = vst.msk [vmem:[#allocation3 + $0x10] sm:$0xff] %vm322_vm1, %v303_v61  ;;  %v829_v61 = vld [vmem:[%s1350_s26] sm:$0xff] }
  0xad   : > { %v454_v62 = vpop.permute.xlu1 %453 }
  0xae   : > { %474 = vst.msk [vmem:[#allocation3 + $0x20] sm:$0xff] %vm469_vm4, %v454_v62  ;;  %v448_v63 = vpop.permute.xlu0 %447 }
  0xaf   : > { %471 = vst.msk [vmem:[#allocation3 + $0x8] sm:$0xff] %vm469_vm4, %v448_v63 }
  0xb1   : > { %v311_v0 = vpop.permute.xlu1 %310 }
  0xb2   : > { %329 = vst.msk [vmem:[#allocation3 + $0x30] sm:$0xff] %vm322_vm1, %v311_v0  ;;  %v495_v1 = vpop.permute.xlu0 %494 }
  0xb3   : > { %519 = vst.msk [vmem:[#allocation3] sm:$0xff] %vm518_vm5, %v495_v1 }
  0xb5   : > { %v456_v2 = vpop.permute.xlu1 %455 }
  0xb6   : > { %475 = vst.msk [vmem:[#allocation3 + $0x28] sm:$0xff] %vm469_vm4, %v456_v2  ;;  %v305_v3 = vpop.permute.xlu0 %304  ;;  %v834_v2 = vld [vmem:[%s1350_s26 + $0x28] sm:$0xff] }
  0xb7   : > { %326 = vst.msk [vmem:[#allocation3 + $0x18] sm:$0xff] %vm322_vm1, %v305_v3 }
  0xb9   : > { %v503_v4 = vpop.permute.xlu1 %502 }
  0xba   : > { %523 = vst.msk [vmem:[#allocation3 + $0x20] sm:$0xff] %vm518_vm5, %v503_v4  ;;  %v352_v5 = vpop.permute.xlu0 %351 }
  0xbb   : > { %374 = vst.msk [vmem:[#allocation3 + $0x10] sm:$0xff] %vm371_vm2, %v352_v5  ;;  %v833_v5 = vld [vmem:[%s1350_s26 + $0x20] sm:$0xff] }
  0xbd   : > { %v313_v6 = vpop.permute.xlu1 %312 }
  0xbe   : > { %330 = vst.msk [vmem:[#allocation3 + $0x38] sm:$0xff] %vm322_vm1, %v313_v6  ;;  %v497_v7 = vpop.permute.xlu0 %496 }
  0xbf   : > { %520 = vst.msk [vmem:[#allocation3 + $0x8] sm:$0xff] %vm518_vm5, %v497_v7 }
  0xc1   : > { %v360_v8 = vpop.permute.xlu1 %359 }
  0xc2   : > { %378 = vst.msk [vmem:[#allocation3 + $0x30] sm:$0xff] %vm371_vm2, %v360_v8  ;;  %v545_v9 = vpop.permute.xlu0 %544 }
  0xc3   : > { %569 = vst.msk [vmem:[#allocation3] sm:$0xff] %vm568_vm6, %v545_v9 }
  0xc5   : > { %v505_v10 = vpop.permute.xlu1 %504 }
  0xc6   : > { %524 = vst.msk [vmem:[#allocation3 + $0x28] sm:$0xff] %vm518_vm5, %v505_v10  ;;  %v354_v11 = vpop.permute.xlu0 %353  ;;  %v832_v10 = vld [vmem:[%s1350_s26 + $0x18] sm:$0xff] }
  0xc7   : > { %375 = vst.msk [vmem:[#allocation3 + $0x18] sm:$0xff] %vm371_vm2, %v354_v11 }
  0xc9   : > { %v553_v12 = vpop.permute.xlu1 %552 }
  0xca   : > { %573 = vst.msk [vmem:[#allocation3 + $0x20] sm:$0xff] %vm568_vm6, %v553_v12  ;;  %v401_v13 = vpop.permute.xlu0 %400 }
  0xcb   : > { %423 = vst.msk [vmem:[#allocation3 + $0x10] sm:$0xff] %vm420_vm3, %v401_v13  ;;  %v831_v13 = vld [vmem:[%s1350_s26 + $0x10] sm:$0xff] }
  0xcd   : > { %v362_v14 = vpop.permute.xlu1 %361 }
  0xce   : > { %379 = vst.msk [vmem:[#allocation3 + $0x38] sm:$0xff] %vm371_vm2, %v362_v14  ;;  %v547_v15 = vpop.permute.xlu0 %546 }
  0xcf   : > { %570 = vst.msk [vmem:[#allocation3 + $0x8] sm:$0xff] %vm568_vm6, %v547_v15 }
  0xd1   : > { %v409_v16 = vpop.permute.xlu1 %408 }
  0xd2   : > { %427 = vst.msk [vmem:[#allocation3 + $0x30] sm:$0xff] %vm420_vm3, %v409_v16  ;;  %v594_v17 = vpop.permute.xlu0 %593 }
  0xd3   : > { %618 = vst.msk [vmem:[#allocation3] sm:$0xff] %vm617_vm7, %v594_v17 }
  0xd5   : > { %v555_v18 = vpop.permute.xlu1 %554 }
  0xd6   : > { %574 = vst.msk [vmem:[#allocation3 + $0x28] sm:$0xff] %vm568_vm6, %v555_v18  ;;  %v403_v19 = vpop.permute.xlu0 %402  ;;  %v836_v18 = vld [vmem:[%s1350_s26 + $0x38] sm:$0xff] }
  0xd7   : > { %424 = vst.msk [vmem:[#allocation3 + $0x18] sm:$0xff] %vm420_vm3, %v403_v19 }
  0xd9   : > { %v602_v20 = vpop.permute.xlu1 %601 }
  0xda   : > { %622 = vst.msk [vmem:[#allocation3 + $0x20] sm:$0xff] %vm617_vm7, %v602_v20  ;;  %v450_v21 = vpop.permute.xlu0 %449 }
  0xdb   : > { %472 = vst.msk [vmem:[#allocation3 + $0x10] sm:$0xff] %vm469_vm4, %v450_v21  ;;  %v835_v21 = vld [vmem:[%s1350_s26 + $0x30] sm:$0xff] }
  0xdd   : > { %v411_v22 = vpop.permute.xlu1 %410 }
  0xde   : > { %428 = vst.msk [vmem:[#allocation3 + $0x38] sm:$0xff] %vm420_vm3, %v411_v22  ;;  %v596_v23 = vpop.permute.xlu0 %595 }
  0xdf   : > { %619 = vst.msk [vmem:[#allocation3 + $0x8] sm:$0xff] %vm617_vm7, %v596_v23 }
  0xe1   : > { %v458_v24 = vpop.permute.xlu1 %457 }
  0xe2   : > { %476 = vst.msk [vmem:[#allocation3 + $0x30] sm:$0xff] %vm469_vm4, %v458_v24  ;;  %v643_v25 = vpop.permute.xlu0 %642 }
  0xe3   : > { %667 = vst.msk [vmem:[#allocation3] sm:$0xff] %vm666_vm8, %v643_v25 }
  0xe5   : > { %v604_v26 = vpop.permute.xlu1 %603 }
  0xe6   : > { %623 = vst.msk [vmem:[#allocation3 + $0x28] sm:$0xff] %vm617_vm7, %v604_v26  ;;  %v452_v27 = vpop.permute.xlu0 %451 }
  0xe7   : > { %473 = vst.msk [vmem:[#allocation3 + $0x18] sm:$0xff] %vm469_vm4, %v452_v27 }
  0xe9   : > { %v651_v28 = vpop.permute.xlu1 %650 }
  0xea   : > { %671 = vst.msk [vmem:[#allocation3 + $0x20] sm:$0xff] %vm666_vm8, %v651_v28  ;;  %v499_v29 = vpop.permute.xlu0 %498  ;;  %v675_v30 = vld [vmem:[#allocation3] sm:$0xff] }
  0xeb   : > { %521 = vst.msk [vmem:[#allocation3 + $0x10] sm:$0xff] %vm518_vm5, %v499_v29  ;;  %980 = vmatprep.mubr.msk.f32.mxu0 %vm699_vm9, %v675_v30 }
  0xed   : > { %v460_v31 = vpop.permute.xlu1 %459 }
  0xee   : > { %477 = vst.msk [vmem:[#allocation3 + $0x38] sm:$0xff] %vm469_vm4, %v460_v31  ;;  %v645_v32 = vpop.permute.xlu0 %644 }
  0xef   : > { %668 = vst.msk [vmem:[#allocation3 + $0x8] sm:$0xff] %vm666_vm8, %v645_v32 }
  0xf1   : > { %v507_v33 = vpop.permute.xlu1 %506  ;;  %v679_v34 = vld [vmem:[#allocation3 + $0x20] sm:$0xff] }
  0xf2   : > { %525 = vst.msk [vmem:[#allocation3 + $0x30] sm:$0xff] %vm518_vm5, %v507_v33  ;;  %986 = vmatprep.mubr.msk.f32.mxu1 %vm699_vm9, %v679_v34  ;;  %v501_v35 = vpop.permute.xlu0 %500 }
  0xf3   : > { %522 = vst.msk [vmem:[#allocation3 + $0x18] sm:$0xff] %vm518_vm5, %v501_v35 }
  0xf5   : > { %v653_v36 = vpop.permute.xlu1 %652 }
  0xf6   : > { %672 = vst.msk [vmem:[#allocation3 + $0x28] sm:$0xff] %vm666_vm8, %v653_v36  ;;  %v549_v37 = vpop.permute.xlu0 %548  ;;  %v676_v38 = vld [vmem:[#allocation3 + $0x8] sm:$0xff] }
  0xf7   : > { %571 = vst.msk [vmem:[#allocation3 + $0x10] sm:$0xff] %vm568_vm6, %v549_v37  ;;  %981 = vmatmul.mubr.msk.f32.vlgmr.msra.gmra.mxu0 %vm699_vm9, %v676_v38 }
  0xf9   : > { %v509_v39 = vpop.permute.xlu1 %508 }
  0xfa   : > { %526 = vst.msk [vmem:[#allocation3 + $0x38] sm:$0xff] %vm518_vm5, %v509_v39  ;;  %v551_v40 = vpop.permute.xlu0 %550 }
  0xfb   : > { %572 = vst.msk [vmem:[#allocation3 + $0x18] sm:$0xff] %vm568_vm6, %v551_v40 }
  0xfd   : > { %v557_v41 = vpop.permute.xlu1 %556  ;;  %v680_v42 = vld [vmem:[#allocation3 + $0x28] sm:$0xff] }
  0xfe   : > { %575 = vst.msk [vmem:[#allocation3 + $0x30] sm:$0xff] %vm568_vm6, %v557_v41  ;;  %987 = vmatmul.mubr.msk.f32.vlgmr.msra.gmra.mxu1 %vm699_vm9, %v680_v42  ;;  %v598_v43 = vpop.permute.xlu0 %597 }
  0xff   : > { %620 = vst.msk [vmem:[#allocation3 + $0x10] sm:$0xff] %vm617_vm7, %v598_v43 }
 0x101   : > { %v559_v44 = vpop.permute.xlu1 %558 }
 0x102   : > { %576 = vst.msk [vmem:[#allocation3 + $0x38] sm:$0xff] %vm568_vm6, %v559_v44  ;;  %v600_v45 = vpop.permute.xlu0 %599 }
 0x103   : > { %621 = vst.msk [vmem:[#allocation3 + $0x18] sm:$0xff] %vm617_vm7, %v600_v45 }
 0x105   : > { %v606_v46 = vpop.permute.xlu1 %605 }
 0x106   : > { %624 = vst.msk [vmem:[#allocation3 + $0x30] sm:$0xff] %vm617_vm7, %v606_v46  ;;  %v647_v47 = vpop.permute.xlu0 %646 }
 0x107   : > { %669 = vst.msk [vmem:[#allocation3 + $0x10] sm:$0xff] %vm666_vm8, %v647_v47 }
 0x109   : > { %v608_v48 = vpop.permute.xlu1 %607 }
 0x10a   : > { %625 = vst.msk [vmem:[#allocation3 + $0x38] sm:$0xff] %vm617_vm7, %v608_v48  ;;  %v649_v49 = vpop.permute.xlu0 %648 }
 0x10b   : > { %670 = vst.msk [vmem:[#allocation3 + $0x18] sm:$0xff] %vm666_vm8, %v649_v49 }
 0x10d   : > { %v655_v50 = vpop.permute.xlu1 %654 }
 0x10e   : > { %673 = vst.msk [vmem:[#allocation3 + $0x30] sm:$0xff] %vm666_vm8, %v655_v50  ;;  %v677_v51 = vld [vmem:[#allocation3 + $0x10] sm:$0xff] }
 0x10f   : > { %983 = vmatprep.mubr.msk.f32.mxu0 %vm699_vm9, %v677_v51 }
 0x111   : > { %v657_v52 = vpop.permute.xlu1 %656 }
 0x112   : > { %674 = vst.msk [vmem:[#allocation3 + $0x38] sm:$0xff] %vm666_vm8, %v657_v52  ;;  %v678_v53 = vld [vmem:[#allocation3 + $0x18] sm:$0xff] }
 0x113   : > { %984 = vmatmul.mubr.msk.f32.gmra.mxu0 %vm699_vm9, %v678_v53 }
 0x115   : > { %v681_v54 = vld [vmem:[#allocation3 + $0x30] sm:$0xff] }
 0x116   : > { %989 = vmatprep.mubr.msk.f32.mxu1 %vm699_vm9, %v681_v54 }
 0x119   : > { %v682_v55 = vld [vmem:[#allocation3 + $0x38] sm:$0xff] }
 0x11a   : > { %990 = vmatmul.mubr.msk.f32.gmra.mxu1 %vm699_vm9, %v682_v55 }
 0x1b7   : > { %v982_v57 = vpop.f32.mrf.mxu0 }
 0x1b8   : > { %v796_v59 = vadd.f32 %v982_v57, %v931_v56 }
 0x1b9   : > { %v790_v60 = vpop.f32.mrf.mxu0 }
 0x1ba   : > { %v838_v62 = vadd.f32 %v830_v58, %v796_v59  ;;  %v791_v63 = vadd.f32 %v931_v56, %v790_v60 }
 0x1bc   : > { %846 = vst.msk [vmem:[%s1360_s5 + $0x8] sm:$0xff] %vm226_vm0, %v838_v62  ;;  %v837_v0 = vadd.f32 %v829_v61, %v791_v63 }
 0x1be   : > { %v988_v1 = vpop.f32.mrf.mxu1  ;;  %845 = vst.msk [vmem:[%s1360_s5] sm:$0xff] %vm226_vm0, %v837_v0 }
 0x1bf   : > { %v816_v3 = vadd.f32 %v988_v1, %v931_v56 }
 0x1c0   : > { %v810_v4 = vpop.f32.mrf.mxu1 }
 0x1c1   : > { %v842_v6 = vadd.f32 %v834_v2, %v816_v3  ;;  %v811_v7 = vadd.f32 %v931_v56, %v810_v4 }
 0x1c3   : > { %850 = vst.msk [vmem:[%s1360_s5 + $0x28] sm:$0xff] %vm226_vm0, %v842_v6  ;;  %v841_v8 = vadd.f32 %v833_v5, %v811_v7 }
 0x1c5   : > { %849 = vst.msk [vmem:[%s1360_s5 + $0x20] sm:$0xff] %vm226_vm0, %v841_v8 }
 0x1d3   : > { %v985_v9 = vpop.f32.mrf.mxu0 }
 0x1d4   : > { %v806_v11 = vadd.f32 %v985_v9, %v931_v56 }
 0x1d5   : > { %v800_v12 = vpop.f32.mrf.mxu0 }
 0x1d6   : > { %v840_v14 = vadd.f32 %v832_v10, %v806_v11  ;;  %v801_v15 = vadd.f32 %v931_v56, %v800_v12 }
 0x1d8   : > { %848 = vst.msk [vmem:[%s1360_s5 + $0x18] sm:$0xff] %vm226_vm0, %v840_v14  ;;  %v839_v16 = vadd.f32 %v831_v13, %v801_v15 }
 0x1da   : > { %v991_v17 = vpop.f32.mrf.mxu1  ;;  %847 = vst.msk [vmem:[%s1360_s5 + $0x10] sm:$0xff] %vm226_vm0, %v839_v16 }
 0x1db   : > { %v826_v19 = vadd.f32 %v991_v17, %v931_v56 }
 0x1dc   : > { %v820_v20 = vpop.f32.mrf.mxu1 }
 0x1dd   : > { %v844_v22 = vadd.f32 %v836_v18, %v826_v19  ;;  %v821_v23 = vadd.f32 %v931_v56, %v820_v20 }
 0x1df   : > { %852 = vst.msk [vmem:[%s1360_s5 + $0x38] sm:$0xff] %vm226_vm0, %v844_v22  ;;  %v843_v24 = vadd.f32 %v835_v21, %v821_v23 }
 0x1e1   : > { %851 = vst.msk [vmem:[%s1360_s5 + $0x30] sm:$0xff] %vm226_vm0, %v843_v24 }
 0x1e2 PF: > { %s14_s15 = sadd.s32 1, %s1033_s15  }
 0x1e3   : > { %p11_p4 = scmp.ge.s32.totalorder %s14_s15, 4  }
 0x1e5   :  { %13 = sbr.rel (!%p11_p4) target bundleno = 1 (0x1), region = 71 }

// kernel: dec_unit_first.7
= control target key start
LH: loop header
LB: loop body
LE: loop exit
PB: predicated region body
PF: predicated region fallthrough
CT: control target
= control target key end

     0   :  { %s1703_s18 = smov 0   ;;  %s2386_s0 = inlined_call_operand.vmem [shape: f32[2,8,8,8], index: 0, kind: input, shape index: {}]   ;;  %s2387_s1 = inlined_call_operand.vmem [shape: f32[72,8], index: 1, kind: input, shape index: {}]   ;;  %s2388_s2 = inlined_call_operand.vmem [shape: f32[1,8], index: 2, kind: input, shape index: {}]   ;;  %s2389_s3 = inlined_call_operand.vmem [shape: f32[72,8], index: 3, kind: input, shape index: {}]   ;;  %s2390_s4 = inlined_call_operand.vmem [shape: f32[1,8], index: 4, kind: input, shape index: {}]   ;;  %s2391_s5 = inlined_call_operand.vmem [shape: f32[2,8,8,8], index: 5, kind: output, shape index: {}]  }
   0x1 LB: > { %s1514_s19 = sadd.s32 4294967295, %s1662_s18   ;;  %p1518_p0 = scmp.ge.s32.totalorder %s1662_s18, 1  ;;  %s1662_s18 = sphi %s1703_s18, %s15_s18  }
   0x2   : > { %p187_p1 = scmp.lt.s32.totalorder %s1662_s18, 3 }
   0x4   : > { %p188_p2 = pnand %p1518_p0, %p187_p1 }
   0x5   : > { %p215_p3 = scmp.lt.s32.totalorder (!%p188_p2), %s1514_s19, 1  ;;  %s1665_s24 = smov (!%p188_p2), 8  }
   0x6   : > { %191 = sbr.rel (%p188_p2) target bundleno = 864 (0x360), region = 40  ;;  %s1666_s25 = smov (!%p188_p2), 16  }
   0x7   : > { %s1667_s26 = smov (!%p188_p2), 24   ;;  %s1668_s27 = smov (!%p188_p2), 32  }
   0x8   : > { %s1669_s28 = smov (!%p188_p2), 40   ;;  %s1670_s6 = smov (!%p188_p2), 48  }
   0x9   : > { %s1671_s13 = smov (!%p188_p2), 56   ;;  %s1672_s29 = smov (!%p188_p2), 64  }
   0xb   : > { %vm233_vm0 = vcmask 64512   ;;  %v1664_v0 = vmov 0.0   ;;  %s2393_s19 = smov (!%p215_p3, %s1514_s19), 1  ;;  %v698_v39 = vld [vmem:[%s2387_s1 + $0x40] sm:$0xff]  ;;  %v697_v40 = vld [vmem:[%s2387_s1 + $0x38] sm:$0xff]  ;;  %v696_v41 = vld [vmem:[%s2387_s1 + $0x30] sm:$0xff] }
   0xc   : > { %235 = vst.msk [vmem:[#allocation2 + $0x8] sm:$0xff] %vm233_vm0, %v1664_v0  ;;  %234 = vst.msk [vmem:[#allocation2] sm:$0xff] %vm233_vm0, %v1664_v0  ;;  %s1543_s20 = sshll.u32 %s2393_s19, 6  ;;  %1579 = vmatprep.subr.mxu0 %v698_v39  ;;  %v695_v42 = vld [vmem:[%s2387_s1 + $0x28] sm:$0xff]  ;;  %v694_v43 = vld [vmem:[%s2387_s1 + $0x20] sm:$0xff]  ;;  %vm329_vm1 = vcmask 130112  }
   0xd   : > { %236 = vst.msk [vmem:[#allocation2 + $0x10] sm:$0xff] %vm233_vm0, %v1664_v0  ;;  %237 = vst.msk [vmem:[#allocation2 + $0x18] sm:$0xff] %vm233_vm0, %v1664_v0  ;;  %s1783_s23 = scalar_lea.vmem %s2386_s0, %s1543_s20  ;;  %1580 = vmatpush3.msra.mxu0 %v698_v39  ;;  %v693_v44 = vld [vmem:[%s2387_s1 + $0x18] sm:$0xff]  ;;  %v692_v45 = vld [vmem:[%s2387_s1 + $0x10] sm:$0xff]  ;;  %vm378_vm2 = vcmask 195712   ;;  %vm427_vm3 = vcmask 261312  }
   0xe   : > { %238 = vst.msk [vmem:[#allocation2 + $0x20] sm:$0xff] %vm233_vm0, %v1664_v0  ;;  %239 = vst.msk [vmem:[#allocation2 + $0x28] sm:$0xff] %vm233_vm0, %v1664_v0  ;;  %v225_v1 = vld [vmem:[%s1783_s23] sm:$0xff]  ;;  %v226_v2 = vld [vmem:[%s1783_s23 + $0x8] sm:$0xff]  ;;  %1581 = vmatprep.subr.mxu0 %v697_v40  ;;  %vm476_vm4 = vcmask 326912   ;;  %vm525_vm5 = vcmask 392512  }
   0xf   : > { %240 = vst.msk [vmem:[#allocation2 + $0x30] sm:$0xff] %vm233_vm0, %v1664_v0  ;;  %241 = vst.msk [vmem:[#allocation2 + $0x38] sm:$0xff] %vm233_vm0, %v1664_v0  ;;  %v227_v3 = vld [vmem:[%s1783_s23 + $0x10] sm:$0xff]  ;;  %v228_v6 = vld [vmem:[%s1783_s23 + $0x18] sm:$0xff]  ;;  %1582 = vmatpush3.msra.mxu0 %v697_v40  ;;  %vm575_vm6 = vcmask 458112   ;;  %vm624_vm7 = vcmask 523712  }
  0x10   : > { %242 = vst.msk [vmem:[#allocation2 + $0x40] sm:$0xff] %vm233_vm0, %v1664_v0  ;;  %243 = vst.msk [vmem:[#allocation2 + $0x48] sm:$0xff] %vm233_vm0, %v1664_v0  ;;  %v229_v7 = vld [vmem:[%s1783_s23 + $0x20] sm:$0xff]  ;;  %v230_v8 = vld [vmem:[%s1783_s23 + $0x28] sm:$0xff]  ;;  %1583 = vmatprep.subr.mxu0 %v696_v41  ;;  %vm673_vm8 = vcmask 589312   ;;  %vm706_vm9 = vcmask 588800  }
  0x11   : > { %244 = vst.msk [vmem:[#allocation2 + $0x50] sm:$0xff] %vm233_vm0, %v1664_v0  ;;  %245 = vst.msk [vmem:[#allocation2 + $0x58] sm:$0xff] %vm233_vm0, %v1664_v0  ;;  %v231_v10 = vld [vmem:[%s1783_s23 + $0x30] sm:$0xff]  ;;  %v232_v11 = vld [vmem:[%s1783_s23 + $0x38] sm:$0xff]  ;;  %1584 = vmatpush3.msra.mxu0 %v696_v41 }
  0x12   : > { %246 = vst.msk [vmem:[#allocation2 + $0x60] sm:$0xff] %vm233_vm0, %v1664_v0  ;;  %247 = vst.msk [vmem:[#allocation2 + $0x68] sm:$0xff] %vm233_vm0, %v1664_v0  ;;  %1585 = vmatprep.subr.mxu0 %v695_v42  ;;  %v691_v46 = vld [vmem:[%s2387_s1 + $0x8] sm:$0xff]  ;;  %v690_v47 = vld [vmem:[%s2387_s1] sm:$0xff] }
  0x13   : > { %248 = vst.msk [vmem:[#allocation2 + $0x70] sm:$0xff] %vm233_vm0, %v1664_v0  ;;  %249 = vst.msk [vmem:[#allocation2 + $0x78] sm:$0xff] %vm233_vm0, %v1664_v0  ;;  %v289_v4 = vld [vmem:[#allocation2 + $0x8] sm:$0xff]  ;;  %1586 = vmatpush3.msra.mxu0 %v695_v42 }
  0x14   : > { %250 = vst.msk [vmem:[#allocation2 + $0x80] sm:$0xff] %vm233_vm0, %v1664_v0  ;;  %251 = vst.msk [vmem:[#allocation2 + $0x88] sm:$0xff] %vm233_vm0, %v1664_v0  ;;  %v338_v5 = vld [vmem:[#allocation2 + $0x9] sm:$0xff]  ;;  %305 = vrot.lane.b32.xlu0 %v289_v4, %s1665_s24  ;;  %1587 = vmatprep.subr.mxu0 %v694_v43 }
  0x15   : > { %252 = vst.msk [vmem:[#allocation2 + $0x90] sm:$0xff] %vm233_vm0, %v1664_v0  ;;  %253 = vst.msk [vmem:[#allocation2 + $0x98] sm:$0xff] %vm233_vm0, %v1664_v0  ;;  %354 = vrot.lane.b32.xlu1 %v338_v5, %s1666_s25  ;;  %v273_v9 = vld [vmem:[#allocation2 + $0x7] sm:$0xff]  ;;  %1588 = vmatpush3.msra.mxu0 %v694_v43 }
  0x16   : > { %254 = vst.msk [vmem:[#allocation2 + $0xa0] sm:$0xff] %vm233_vm0, %v1664_v0  ;;  %255 = vst.msk [vmem:[#allocation2 + $0xa8] sm:$0xff] %vm233_vm0, %v1664_v0  ;;  %1589 = vmatprep.subr.mxu0 %v693_v44 }
  0x17   : > { %256 = vst.msk [vmem:[#allocation2 + $0xb0] sm:$0xff] %vm233_vm0, %v1664_v0  ;;  %257 = vst.msk [vmem:[#allocation2 + $0xb8] sm:$0xff] %vm233_vm0, %v1664_v0  ;;  %1590 = vmatpush3.msra.mxu0 %v693_v44 }
  0x18   : > { %258 = vst.msk [vmem:[#allocation2 + $0xc0] sm:$0xff] %vm233_vm0, %v1664_v0  ;;  %259 = vst.msk [vmem:[#allocation2 + $0xc8] sm:$0xff] %vm233_vm0, %v1664_v0  ;;  %1591 = vmatprep.subr.mxu0 %v692_v45 }
  0x19   : > { %260 = vst.msk [vmem:[#allocation2 + $0xd0] sm:$0xff] %vm233_vm0, %v1664_v0  ;;  %261 = vst.msk [vmem:[#allocation2 + $0xd8] sm:$0xff] %vm233_vm0, %v1664_v0  ;;  %1592 = vmatpush3.msra.mxu0 %v692_v45 }
  0x1a   : > { %262 = vst.msk [vmem:[#allocation2 + $0xe0] sm:$0xff] %vm233_vm0, %v1664_v0  ;;  %263 = vst.msk [vmem:[#allocation2 + $0xe8] sm:$0xff] %vm233_vm0, %v1664_v0  ;;  %1593 = vmatprep.subr.mxu0 %v691_v46 }
  0x1b   : > { %265 = vst.msk [vmem:[#allocation2 + $0x20] sm:$0xff] %vm233_vm0, %v225_v1  ;;  %266 = vst.msk [vmem:[#allocation2 + $0x38] sm:$0xff] %vm233_vm0, %v226_v2  ;;  %1594 = vmatpush3.msra.mxu0 %v691_v46 }
  0x1c   : > { %267 = vst.msk [vmem:[#allocation2 + $0x50] sm:$0xff] %vm233_vm0, %v227_v3  ;;  %846 = vst.msk [vmem:[#allocation2 + $0x10] sm:$0xff] %vm233_vm0, %v1664_v0  ;;  %1595 = vmatprep.subr.mxu0 %v690_v47 }
  0x1d   : > { %268 = vst.msk [vmem:[#allocation2 + $0x68] sm:$0xff] %vm233_vm0, %v228_v6  ;;  %269 = vst.msk [vmem:[#allocation2 + $0x80] sm:$0xff] %vm233_vm0, %v229_v7  ;;  %1596 = vmatpush3.msra.mxu0 %v690_v47 }
  0x1e   : > { %270 = vst.msk [vmem:[#allocation2 + $0x98] sm:$0xff] %vm233_vm0, %v230_v8  ;;  %281 = vst.msk [vmem:[#allocation3] sm:$0xff] %vm233_vm0, %v273_v9 }
  0x1f   : > { %844 = vst.msk [vmem:[#allocation2] sm:$0xff] %vm233_vm0, %v1664_v0  ;;  %845 = vst.msk [vmem:[#allocation2 + $0x8] sm:$0xff] %vm233_vm0, %v1664_v0 }
  0x20   : > { %271 = vst.msk [vmem:[#allocation2 + $0xb0] sm:$0xff] %vm233_vm0, %v231_v10  ;;  %272 = vst.msk [vmem:[#allocation2 + $0xc8] sm:$0xff] %vm233_vm0, %v232_v11 }
  0x21   : > { %v1920_v36 = vld [vmem:[#allocation2 + $0xdf] sm:$0xff] }
  0x22   : > { %v1810_v12 = vld [vmem:[#allocation2 + $0x21] sm:$0xff]  ;;  %v1814_v14 = vld [vmem:[#allocation2 + $0x37] sm:$0xff]  ;;  %871 = vst.msk [vmem:[#allocation2 + $0xd8] sm:$0xff] %vm233_vm0, %v1664_v0 }
  0x23   : > { %v1812_v13 = vld [vmem:[#allocation2 + $0x20] sm:$0xff]  ;;  %356 = vrot.lane.b32.xlu1 %v1810_v12, %s1666_s25  ;;  %v1820_v16 = vld [vmem:[#allocation2 + $0x38] sm:$0xff]  ;;  %849 = vst.msk [vmem:[#allocation2 + $0x28] sm:$0xff] %vm233_vm0, %v1664_v0  ;;  %283 = vst.msk [vmem:[#allocation3 + $0x10] sm:$0xff] %vm233_vm0, %v1814_v14 }
  0x24   : > { %307 = vrot.lane.b32.xlu0 %v1812_v13, %s1665_s24  ;;  %v387_v15 = vld [vmem:[#allocation2 + $0x1f] sm:$0xff]  ;;  %850 = vst.msk [vmem:[#allocation2 + $0x30] sm:$0xff] %vm233_vm0, %v1664_v0  ;;  %v1830_v18 = vld [vmem:[#allocation2 + $0x50] sm:$0xff]  ;;  %v1845_v21 = vld [vmem:[#allocation2 + $0x67] sm:$0xff] }
  0x25   : > { %v1824_v17 = vld [vmem:[#allocation2 + $0x39] sm:$0xff]  ;;  %v1832_v19 = vld [vmem:[#allocation2 + $0x4f] sm:$0xff]  ;;  %282 = vst.msk [vmem:[#allocation3 + $0x8] sm:$0xff] %vm233_vm0, %v387_v15  ;;  %847 = vst.msk [vmem:[#allocation2 + $0x18] sm:$0xff] %vm233_vm0, %v1664_v0 }
  0x26   : > { %v1834_v20 = vld [vmem:[#allocation2 + $0x51] sm:$0xff]  ;;  %852 = vst.msk [vmem:[#allocation2 + $0x40] sm:$0xff] %vm233_vm0, %v1664_v0  ;;  %848 = vst.msk [vmem:[#allocation2 + $0x20] sm:$0xff] %vm233_vm0, %v1664_v0  ;;  %v1847_v22 = vld [vmem:[#allocation2 + $0x68] sm:$0xff] }
  0x27   : > { %851 = vst.msk [vmem:[#allocation2 + $0x38] sm:$0xff] %vm233_vm0, %v1664_v0  ;;  %855 = vst.msk [vmem:[#allocation2 + $0x58] sm:$0xff] %vm233_vm0, %v1664_v0  ;;  %v1851_v23 = vld [vmem:[#allocation2 + $0x69] sm:$0xff]  ;;  %v1859_v24 = vld [vmem:[#allocation2 + $0x80] sm:$0xff]  ;;  %405 = vrot.lane.b32.xlu1 %v1814_v14, %s1667_s26 }
  0x28   : > { %284 = vst.msk [vmem:[#allocation3 + $0x18] sm:$0xff] %vm233_vm0, %v1832_v19  ;;  %853 = vst.msk [vmem:[#allocation2 + $0x48] sm:$0xff] %vm233_vm0, %v1664_v0  ;;  %v1861_v25 = vld [vmem:[#allocation2 + $0x7f] sm:$0xff]  ;;  %403 = vrot.lane.b32.xlu0 %v387_v15, %s1667_s26  ;;  %v1876_v27 = vld [vmem:[#allocation2 + $0x97] sm:$0xff] }
  0x29   : > { %854 = vst.msk [vmem:[#allocation2 + $0x50] sm:$0xff] %vm233_vm0, %v1664_v0  ;;  %v1863_v26 = vld [vmem:[#allocation2 + $0x81] sm:$0xff]  ;;  %858 = vst.msk [vmem:[#allocation2 + $0x70] sm:$0xff] %vm233_vm0, %v1664_v0  ;;  %v1878_v28 = vld [vmem:[#allocation2 + $0x98] sm:$0xff] }
  0x2a   : > { %285 = vst.msk [vmem:[#allocation3 + $0x20] sm:$0xff] %vm233_vm0, %v1845_v21  ;;  %856 = vst.msk [vmem:[#allocation2 + $0x60] sm:$0xff] %vm233_vm0, %v1664_v0  ;;  %v1882_v29 = vld [vmem:[#allocation2 + $0xb0] sm:$0xff]  ;;  %v1890_v30 = vld [vmem:[#allocation2 + $0x99] sm:$0xff] }
  0x2b   : > { %857 = vst.msk [vmem:[#allocation2 + $0x68] sm:$0xff] %vm233_vm0, %v1664_v0  ;;  %861 = vst.msk [vmem:[#allocation2 + $0x88] sm:$0xff] %vm233_vm0, %v1664_v0  ;;  %v1892_v31 = vld [vmem:[#allocation2 + $0xb1] sm:$0xff]  ;;  %v1900_v33 = vld [vmem:[#allocation2 + $0xc7] sm:$0xff]  ;;  %309 = vrot.lane.b32.xlu1 %v1820_v16, %s1665_s24 }
  0x2c   : > { %286 = vst.msk [vmem:[#allocation3 + $0x28] sm:$0xff] %vm233_vm0, %v1861_v25  ;;  %859 = vst.msk [vmem:[#allocation2 + $0x78] sm:$0xff] %vm233_vm0, %v1664_v0  ;;  %v1894_v32 = vld [vmem:[#allocation2 + $0xaf] sm:$0xff]  ;;  %v1922_v37 = vld [vmem:[#allocation2 + $0xe0] sm:$0xff]  ;;  %452 = vrot.lane.b32.xlu0 %v1812_v13, %s1668_s27 }
  0x2d   : > { %860 = vst.msk [vmem:[#allocation2 + $0x80] sm:$0xff] %vm233_vm0, %v1664_v0  ;;  %287 = vst.msk [vmem:[#allocation3 + $0x30] sm:$0xff] %vm233_vm0, %v1876_v27  ;;  %v1902_v34 = vld [vmem:[#allocation2 + $0xc8] sm:$0xff] }
  0x2e   : > { %862 = vst.msk [vmem:[#allocation2 + $0x90] sm:$0xff] %vm233_vm0, %v1664_v0  ;;  %864 = vst.msk [vmem:[#allocation2 + $0xa0] sm:$0xff] %vm233_vm0, %v1664_v0  ;;  %v1908_v35 = vld [vmem:[#allocation2 + $0xc9] sm:$0xff]  ;;  %v1928_v38 = vld [vmem:[#allocation2 + $0xe1] sm:$0xff] }
  0x2f   : > { %867 = vst.msk [vmem:[#allocation2 + $0xb8] sm:$0xff] %vm233_vm0, %v1664_v0  ;;  %863 = vst.msk [vmem:[#allocation2 + $0x98] sm:$0xff] %vm233_vm0, %v1664_v0  ;;  %501 = vrot.lane.b32.xlu1 %v1810_v12, %s1669_s28 }
  0x30   : > { %288 = vst.msk [vmem:[#allocation3 + $0x38] sm:$0xff] %vm233_vm0, %v1894_v32  ;;  %865 = vst.msk [vmem:[#allocation2 + $0xa8] sm:$0xff] %vm233_vm0, %v1664_v0  ;;  %454 = vrot.lane.b32.xlu0 %v1820_v16, %s1668_s27 }
  0x31   : > { %866 = vst.msk [vmem:[#allocation2 + $0xb0] sm:$0xff] %vm233_vm0, %v1664_v0  ;;  %868 = vst.msk [vmem:[#allocation2 + $0xc0] sm:$0xff] %vm233_vm0, %v1664_v0 }
  0x32   : > { %869 = vst.msk [vmem:[#allocation2 + $0xc8] sm:$0xff] %vm233_vm0, %v1664_v0  ;;  %870 = vst.msk [vmem:[#allocation2 + $0xd0] sm:$0xff] %vm233_vm0, %v1664_v0 }
  0x33   : > { %872 = vst.msk [vmem:[#allocation2 + $0xe0] sm:$0xff] %vm233_vm0, %v1664_v0  ;;  %873 = vst.msk [vmem:[#allocation2 + $0xe8] sm:$0xff] %vm233_vm0, %v1664_v0  ;;  %358 = vrot.lane.b32.xlu1 %v1824_v17, %s1666_s25 }
  0x34   : > { %311 = vrot.lane.b32.xlu0 %v1830_v18, %s1665_s24 }
  0x37   : > { %551 = vrot.lane.b32.xlu1 %v1814_v14, %s1670_s6 }
  0x38   : > { %503 = vrot.lane.b32.xlu0 %v1824_v17, %s1669_s28 }
  0x3b   : > { %407 = vrot.lane.b32.xlu1 %v1832_v19, %s1667_s26 }
  0x3c   : > { %360 = vrot.lane.b32.xlu0 %v1834_v20, %s1666_s25 }
  0x3f   : > { %600 = vrot.lane.b32.xlu1 %v1820_v16, %s1671_s13 }
  0x40   : > { %553 = vrot.lane.b32.xlu0 %v1832_v19, %s1670_s6 }
  0x43   : > { %456 = vrot.lane.b32.xlu1 %v1830_v18, %s1668_s27 }
  0x44   : > { %409 = vrot.lane.b32.xlu0 %v1845_v21, %s1667_s26 }
  0x47   : > { %649 = vrot.lane.b32.xlu1 %v1824_v17, %s1672_s29 }
  0x48   : > { %602 = vrot.lane.b32.xlu0 %v1830_v18, %s1671_s13 }
  0x4b   : > { %458 = vrot.lane.b32.xlu1 %v1847_v22, %s1668_s27 }
  0x4c   : > { %313 = vrot.lane.b32.xlu0 %v1847_v22, %s1665_s24 }
  0x4f   : > { %651 = vrot.lane.b32.xlu1 %v1834_v20, %s1672_s29 }
  0x50   : > { %505 = vrot.lane.b32.xlu0 %v1834_v20, %s1669_s28 }
  0x53   : > { %362 = vrot.lane.b32.xlu1 %v1851_v23, %s1666_s25 }
  0x54   : > { %315 = vrot.lane.b32.xlu0 %v1859_v24, %s1665_s24 }
  0x57   : > { %555 = vrot.lane.b32.xlu1 %v1845_v21, %s1670_s6 }
  0x58   : > { %507 = vrot.lane.b32.xlu0 %v1851_v23, %s1669_s28 }
  0x5b   : > { %411 = vrot.lane.b32.xlu1 %v1861_v25, %s1667_s26 }
  0x5c   : > { %364 = vrot.lane.b32.xlu0 %v1863_v26, %s1666_s25 }
  0x5f   : > { %604 = vrot.lane.b32.xlu1 %v1847_v22, %s1671_s13 }
  0x60   : > { %557 = vrot.lane.b32.xlu0 %v1861_v25, %s1670_s6 }
  0x63   : > { %460 = vrot.lane.b32.xlu1 %v1859_v24, %s1668_s27 }
  0x64   : > { %413 = vrot.lane.b32.xlu0 %v1876_v27, %s1667_s26 }
  0x67   : > { %653 = vrot.lane.b32.xlu1 %v1851_v23, %s1672_s29 }
  0x68   : > { %606 = vrot.lane.b32.xlu0 %v1859_v24, %s1671_s13 }
  0x6b   : > { %462 = vrot.lane.b32.xlu1 %v1878_v28, %s1668_s27 }
  0x6c   : > { %317 = vrot.lane.b32.xlu0 %v1878_v28, %s1665_s24 }
  0x6f   : > { %655 = vrot.lane.b32.xlu1 %v1863_v26, %s1672_s29 }
  0x70   : > { %509 = vrot.lane.b32.xlu0 %v1863_v26, %s1669_s28 }
  0x73   : > { %366 = vrot.lane.b32.xlu1 %v1890_v30, %s1666_s25 }
  0x74   : > { %319 = vrot.lane.b32.xlu0 %v1882_v29, %s1665_s24 }
  0x77   : > { %559 = vrot.lane.b32.xlu1 %v1876_v27, %s1670_s6 }
  0x78   : > { %511 = vrot.lane.b32.xlu0 %v1890_v30, %s1669_s28 }
  0x7b   : > { %415 = vrot.lane.b32.xlu1 %v1894_v32, %s1667_s26 }
  0x7c   : > { %368 = vrot.lane.b32.xlu0 %v1892_v31, %s1666_s25 }
  0x7f   : > { %608 = vrot.lane.b32.xlu1 %v1878_v28, %s1671_s13 }
  0x80   : > { %561 = vrot.lane.b32.xlu0 %v1894_v32, %s1670_s6 }
  0x83   : > { %464 = vrot.lane.b32.xlu1 %v1882_v29, %s1668_s27 }
  0x84   : > { %417 = vrot.lane.b32.xlu0 %v1900_v33, %s1667_s26 }
  0x86   : > { %v306_v48 = vpop.permute.xlu0 %305 }
  0x87   : > { %657 = vrot.lane.b32.xlu1 %v1890_v30, %s1672_s29  ;;  %v355_v49 = vpop.permute.xlu1 %354  ;;  %330 = vst.msk [vmem:[#allocation3] sm:$0xff] %vm329_vm1, %v306_v48 }
  0x88   : > { %610 = vrot.lane.b32.xlu0 %v1882_v29, %s1671_s13  ;;  %379 = vst.msk [vmem:[#allocation3] sm:$0xff] %vm378_vm2, %v355_v49 }
  0x8b   : > { %513 = vrot.lane.b32.xlu1 %v1892_v31, %s1669_s28 }
  0x8c   : > { %466 = vrot.lane.b32.xlu0 %v1902_v34, %s1668_s27 }
  0x8f   : > { %515 = vrot.lane.b32.xlu1 %v1908_v35, %s1669_s28 }
  0x90   : > { %659 = vrot.lane.b32.xlu0 %v1892_v31, %s1672_s29 }
  0x93   : > { %565 = vrot.lane.b32.xlu1 %v1920_v36, %s1670_s6 }
  0x94   : > { %563 = vrot.lane.b32.xlu0 %v1900_v33, %s1670_s6 }
  0x95   : > { %v357_v50 = vpop.permute.xlu1 %356 }
  0x96   : > { %v308_v51 = vpop.permute.xlu0 %307 }
  0x97   : > { %331 = vst.msk [vmem:[#allocation3 + $0x8] sm:$0xff] %vm329_vm1, %v308_v51  ;;  %614 = vrot.lane.b32.xlu1 %v1922_v37, %s1671_s13 }
  0x98   : > { %380 = vst.msk [vmem:[#allocation3 + $0x8] sm:$0xff] %vm378_vm2, %v357_v50  ;;  %612 = vrot.lane.b32.xlu0 %v1902_v34, %s1671_s13 }
  0x99   : > { %v406_v52 = vpop.permute.xlu1 %405 }
  0x9a   : > { %v404_v53 = vpop.permute.xlu0 %403  ;;  %429 = vst.msk [vmem:[#allocation3 + $0x8] sm:$0xff] %vm427_vm3, %v406_v52 }
  0x9b   : > { %428 = vst.msk [vmem:[#allocation3] sm:$0xff] %vm427_vm3, %v404_v53  ;;  %663 = vrot.lane.b32.xlu1 %v1928_v38, %s1672_s29 }
  0x9c   : > { %661 = vrot.lane.b32.xlu0 %v1908_v35, %s1672_s29 }
  0x9d   : > { %v310_v54 = vpop.permute.xlu1 %309 }
  0x9e   : > { %v453_v55 = vpop.permute.xlu0 %452  ;;  %332 = vst.msk [vmem:[#allocation3 + $0x10] sm:$0xff] %vm329_vm1, %v310_v54  ;;  %v1145_v54 = vld [vmem:[#allocation2 + $0xdf] sm:$0xff] }
  0x9f   : > { %477 = vst.msk [vmem:[#allocation3] sm:$0xff] %vm476_vm4, %v453_v55  ;;  %v898_v55 = vld [vmem:[#allocation2 + $0x8] sm:$0xff]  ;;  %1168 = vrot.lane.b32.xlu1 %v1145_v54, %s1670_s6 }
  0xa0   : > { %914 = vrot.lane.b32.xlu0 %v898_v55, %s1665_s24 }
  0xa1   : > { %v502_v56 = vpop.permute.xlu1 %501 }
  0xa2   : > { %v455_v57 = vpop.permute.xlu0 %454  ;;  %526 = vst.msk [vmem:[#allocation3] sm:$0xff] %vm525_vm5, %v502_v56  ;;  %v1193_v56 = vld [vmem:[#allocation2 + $0xe0] sm:$0xff] }
  0xa3   : > { %478 = vst.msk [vmem:[#allocation3 + $0x8] sm:$0xff] %vm476_vm4, %v455_v57  ;;  %v946_v57 = vld [vmem:[#allocation2 + $0x9] sm:$0xff]  ;;  %1216 = vrot.lane.b32.xlu1 %v1193_v56, %s1671_s13 }
  0xa4   : > { %962 = vrot.lane.b32.xlu0 %v946_v57, %s1666_s25 }
  0xa5   : > { %v359_v58 = vpop.permute.xlu1 %358 }
  0xa6   : > { %v312_v59 = vpop.permute.xlu0 %311  ;;  %381 = vst.msk [vmem:[#allocation3 + $0x10] sm:$0xff] %vm378_vm2, %v359_v58 }
  0xa7   : > { %333 = vst.msk [vmem:[#allocation3 + $0x18] sm:$0xff] %vm329_vm1, %v312_v59 }
  0xa9   : > { %v552_v60 = vpop.permute.xlu1 %551 }
  0xaa   : > { %v504_v61 = vpop.permute.xlu0 %503  ;;  %576 = vst.msk [vmem:[#allocation3] sm:$0xff] %vm575_vm6, %v552_v60  ;;  %v882_v60 = vld [vmem:[#allocation2 + $0x7] sm:$0xff] }
  0xab   : > { %527 = vst.msk [vmem:[#allocation3 + $0x8] sm:$0xff] %vm525_vm5, %v504_v61 }
  0xad   : > { %v408_v62 = vpop.permute.xlu1 %407 }
  0xae   : > { %v361_v63 = vpop.permute.xlu0 %360  ;;  %430 = vst.msk [vmem:[#allocation3 + $0x10] sm:$0xff] %vm427_vm3, %v408_v62 }
  0xaf   : > { %382 = vst.msk [vmem:[#allocation3 + $0x18] sm:$0xff] %vm378_vm2, %v361_v63  ;;  %v2161_v63 = vld [vmem:[%s2388_s2] ss:$0 sm:$0xff] }
  0xb1   : > { %v601_v0 = vpop.permute.xlu1 %600 }
  0xb2   : > { %v554_v1 = vpop.permute.xlu0 %553  ;;  %625 = vst.msk [vmem:[#allocation3] sm:$0xff] %vm624_vm7, %v601_v0 }
  0xb3   : > { %577 = vst.msk [vmem:[#allocation3 + $0x8] sm:$0xff] %vm575_vm6, %v554_v1 }
  0xb5   : > { %v457_v2 = vpop.permute.xlu1 %456 }
  0xb6   : > { %v410_v3 = vpop.permute.xlu0 %409  ;;  %479 = vst.msk [vmem:[#allocation3 + $0x10] sm:$0xff] %vm476_vm4, %v457_v2 }
  0xb7   : > { %431 = vst.msk [vmem:[#allocation3 + $0x18] sm:$0xff] %vm427_vm3, %v410_v3 }
  0xb9   : > { %v650_v4 = vpop.permute.xlu1 %649 }
  0xba   : > { %v603_v5 = vpop.permute.xlu0 %602  ;;  %674 = vst.msk [vmem:[#allocation3] sm:$0xff] %vm673_vm8, %v650_v4 }
  0xbb   : > { %626 = vst.msk [vmem:[#allocation3 + $0x8] sm:$0xff] %vm624_vm7, %v603_v5 }
  0xbd   : > { %v459_v6 = vpop.permute.xlu1 %458 }
  0xbe   : > { %v314_v7 = vpop.permute.xlu0 %313  ;;  %480 = vst.msk [vmem:[#allocation3 + $0x18] sm:$0xff] %vm476_vm4, %v459_v6 }
  0xbf   : > { %334 = vst.msk [vmem:[#allocation3 + $0x20] sm:$0xff] %vm329_vm1, %v314_v7 }
  0xc1   : > { %v652_v8 = vpop.permute.xlu1 %651  ;;  %v682_v10 = vld [vmem:[#allocation3] sm:$0xff] }
  0xc2   : > { %v506_v9 = vpop.permute.xlu0 %505  ;;  %675 = vst.msk [vmem:[#allocation3 + $0x8] sm:$0xff] %vm673_vm8, %v652_v8  ;;  %1597 = vmatprep.mubr.msk.f32.mxu0 %vm706_vm9, %v682_v10 }
  0xc3   : > { %528 = vst.msk [vmem:[#allocation3 + $0x10] sm:$0xff] %vm525_vm5, %v506_v9 }
  0xc4   : > { %890 = vst.msk [vmem:[#allocation3] sm:$0xff] %vm233_vm0, %v882_v60 }
  0xc5   : > { %v363_v11 = vpop.permute.xlu1 %362 }
  0xc6   : > { %v316_v12 = vpop.permute.xlu0 %315  ;;  %383 = vst.msk [vmem:[#allocation3 + $0x20] sm:$0xff] %vm378_vm2, %v363_v11 }
  0xc7   : > { %335 = vst.msk [vmem:[#allocation3 + $0x28] sm:$0xff] %vm329_vm1, %v316_v12 }
  0xc9   : > { %v556_v13 = vpop.permute.xlu1 %555  ;;  %v683_v15 = vld [vmem:[#allocation3 + $0x8] sm:$0xff] }
  0xca   : > { %v508_v14 = vpop.permute.xlu0 %507  ;;  %578 = vst.msk [vmem:[#allocation3 + $0x10] sm:$0xff] %vm575_vm6, %v556_v13  ;;  %1598 = vmatmul.mubr.msk.f32.vlgmr.msra.gmra.mxu0 %vm706_vm9, %v683_v15 }
  0xcb   : > { %529 = vst.msk [vmem:[#allocation3 + $0x18] sm:$0xff] %vm525_vm5, %v508_v14 }
  0xcd   : > { %v412_v16 = vpop.permute.xlu1 %411 }
  0xce   : > { %v365_v17 = vpop.permute.xlu0 %364  ;;  %432 = vst.msk [vmem:[#allocation3 + $0x20] sm:$0xff] %vm427_vm3, %v412_v16 }
  0xcf   : > { %384 = vst.msk [vmem:[#allocation3 + $0x28] sm:$0xff] %vm378_vm2, %v365_v17 }
  0xd1   : > { %v605_v18 = vpop.permute.xlu1 %604 }
  0xd2   : > { %v558_v19 = vpop.permute.xlu0 %557  ;;  %627 = vst.msk [vmem:[#allocation3 + $0x10] sm:$0xff] %vm624_vm7, %v605_v18 }
  0xd3   : > { %579 = vst.msk [vmem:[#allocation3 + $0x18] sm:$0xff] %vm575_vm6, %v558_v19 }
  0xd5   : > { %v461_v20 = vpop.permute.xlu1 %460 }
  0xd6   : > { %v414_v21 = vpop.permute.xlu0 %413  ;;  %481 = vst.msk [vmem:[#allocation3 + $0x20] sm:$0xff] %vm476_vm4, %v461_v20 }
  0xd7   : > { %433 = vst.msk [vmem:[#allocation3 + $0x28] sm:$0xff] %vm427_vm3, %v414_v21 }
  0xd9   : > { %v654_v22 = vpop.permute.xlu1 %653 }
  0xda   : > { %v607_v23 = vpop.permute.xlu0 %606  ;;  %676 = vst.msk [vmem:[#allocation3 + $0x10] sm:$0xff] %vm673_vm8, %v654_v22  ;;  %v1298_v22 = vld [vmem:[%s2389_s3 + $0x40] sm:$0xff] }
  0xdb   : > { %628 = vst.msk [vmem:[#allocation3 + $0x18] sm:$0xff] %vm624_vm7, %v607_v23  ;;  %1609 = vmatprep.subr.mxu1 %v1298_v22  ;;  %v1297_v23 = vld [vmem:[%s2389_s3 + $0x38] sm:$0xff] }
  0xdc   : > { %1610 = vmatpush3.msra.mxu1 %v1298_v22 }
  0xdd   : > { %v463_v24 = vpop.permute.xlu1 %462  ;;  %1611 = vmatprep.subr.mxu1 %v1297_v23 }
  0xde   : > { %v318_v25 = vpop.permute.xlu0 %317  ;;  %482 = vst.msk [vmem:[#allocation3 + $0x28] sm:$0xff] %vm476_vm4, %v463_v24  ;;  %1612 = vmatpush3.msra.mxu1 %v1297_v23 }
  0xdf   : > { %336 = vst.msk [vmem:[#allocation3 + $0x30] sm:$0xff] %vm329_vm1, %v318_v25  ;;  %v1296_v25 = vld [vmem:[%s2389_s3 + $0x30] sm:$0xff] }
  0xe0   : > { %1613 = vmatprep.subr.mxu1 %v1296_v25 }
  0xe1   : > { %v656_v26 = vpop.permute.xlu1 %655  ;;  %v684_v28 = vld [vmem:[#allocation3 + $0x10] sm:$0xff]  ;;  %1614 = vmatpush3.msra.mxu1 %v1296_v25 }
  0xe2   : > { %v510_v27 = vpop.permute.xlu0 %509  ;;  %677 = vst.msk [vmem:[#allocation3 + $0x18] sm:$0xff] %vm673_vm8, %v656_v26  ;;  %1600 = vmatprep.mubr.msk.f32.mxu0 %vm706_vm9, %v684_v28  ;;  %v1295_v26 = vld [vmem:[%s2389_s3 + $0x28] sm:$0xff]  ;;  %v1294_v28 = vld [vmem:[%s2389_s3 + $0x20] sm:$0xff] }
  0xe3   : > { %530 = vst.msk [vmem:[#allocation3 + $0x20] sm:$0xff] %vm525_vm5, %v510_v27  ;;  %1615 = vmatprep.subr.mxu1 %v1295_v26 }
  0xe4   : > { %1616 = vmatpush3.msra.mxu1 %v1295_v26 }
  0xe5   : > { %v367_v30 = vpop.permute.xlu1 %366  ;;  %1617 = vmatprep.subr.mxu1 %v1294_v28 }
  0xe6   : > { %v320_v29 = vpop.permute.xlu0 %319  ;;  %385 = vst.msk [vmem:[#allocation3 + $0x30] sm:$0xff] %vm378_vm2, %v367_v30  ;;  %v1293_v30 = vld [vmem:[%s2389_s3 + $0x18] sm:$0xff]  ;;  %1618 = vmatpush3.msra.mxu1 %v1294_v28 }
  0xe7   : > { %337 = vst.msk [vmem:[#allocation3 + $0x38] sm:$0xff] %vm329_vm1, %v320_v29  ;;  %1619 = vmatprep.subr.mxu1 %v1293_v30 }
  0xe8   : > { %1620 = vmatpush3.msra.mxu1 %v1293_v30 }
  0xe9   : > { %v685_v32 = vld [vmem:[#allocation3 + $0x18] sm:$0xff]  ;;  %v560_v33 = vpop.permute.xlu1 %559 }
  0xea   : > { %v512_v31 = vpop.permute.xlu0 %511  ;;  %1601 = vmatmul.mubr.msk.f32.gmra.mxu0 %vm706_vm9, %v685_v32  ;;  %580 = vst.msk [vmem:[#allocation3 + $0x20] sm:$0xff] %vm575_vm6, %v560_v33 }
  0xeb   : > { %531 = vst.msk [vmem:[#allocation3 + $0x28] sm:$0xff] %vm525_vm5, %v512_v31 }
  0xed   : > { %v416_v35 = vpop.permute.xlu1 %415 }
  0xee   : > { %v369_v34 = vpop.permute.xlu0 %368  ;;  %434 = vst.msk [vmem:[#allocation3 + $0x30] sm:$0xff] %vm427_vm3, %v416_v35  ;;  %v1292_v35 = vld [vmem:[%s2389_s3 + $0x10] sm:$0xff] }
  0xef   : > { %386 = vst.msk [vmem:[#allocation3 + $0x38] sm:$0xff] %vm378_vm2, %v369_v34  ;;  %1621 = vmatprep.subr.mxu1 %v1292_v35 }
  0xf0   : > { %1622 = vmatpush3.msra.mxu1 %v1292_v35 }
  0xf1   : > { %v609_v37 = vpop.permute.xlu1 %608 }
  0xf2   : > { %v562_v36 = vpop.permute.xlu0 %561  ;;  %629 = vst.msk [vmem:[#allocation3 + $0x20] sm:$0xff] %vm624_vm7, %v609_v37  ;;  %v1291_v37 = vld [vmem:[%s2389_s3 + $0x8] sm:$0xff] }
  0xf3   : > { %581 = vst.msk [vmem:[#allocation3 + $0x28] sm:$0xff] %vm575_vm6, %v562_v36  ;;  %1623 = vmatprep.subr.mxu1 %v1291_v37 }
  0xf4   : > { %1624 = vmatpush3.msra.mxu1 %v1291_v37 }
  0xf5   : > { %v465_v39 = vpop.permute.xlu1 %464 }
  0xf6   : > { %v418_v38 = vpop.permute.xlu0 %417  ;;  %483 = vst.msk [vmem:[#allocation3 + $0x30] sm:$0xff] %vm476_vm4, %v465_v39 }
  0xf7   : > { %435 = vst.msk [vmem:[#allocation3 + $0x38] sm:$0xff] %vm427_vm3, %v418_v38  ;;  %v1290_v38 = vld [vmem:[%s2389_s3] sm:$0xff] }
  0xf8   : > { %1625 = vmatprep.subr.mxu1 %v1290_v38 }
  0xf9   : > { %v658_v41 = vpop.permute.xlu1 %657  ;;  %1626 = vmatpush3.msra.mxu1 %v1290_v38 }
  0xfa   : > { %v611_v40 = vpop.permute.xlu0 %610  ;;  %678 = vst.msk [vmem:[#allocation3 + $0x20] sm:$0xff] %vm673_vm8, %v658_v41 }
  0xfb   : > { %630 = vst.msk [vmem:[#allocation3 + $0x28] sm:$0xff] %vm624_vm7, %v611_v40 }
  0xfd   : > { %v514_v43 = vpop.permute.xlu1 %513 }
  0xfe   : > { %v467_v42 = vpop.permute.xlu0 %466  ;;  %532 = vst.msk [vmem:[#allocation3 + $0x30] sm:$0xff] %vm525_vm5, %v514_v43 }
  0xff   : > { %484 = vst.msk [vmem:[#allocation3 + $0x38] sm:$0xff] %vm476_vm4, %v467_v42 }
 0x101   : > { %v686_v45 = vld [vmem:[#allocation3 + $0x20] sm:$0xff]  ;;  %v516_v46 = vpop.permute.xlu1 %515 }
 0x102   : > { %v660_v44 = vpop.permute.xlu0 %659  ;;  %1603 = vmatprep.mubr.msk.f32.mxu0 %vm706_vm9, %v686_v45  ;;  %533 = vst.msk [vmem:[#allocation3 + $0x38] sm:$0xff] %vm525_vm5, %v516_v46 }
 0x103   : > { %679 = vst.msk [vmem:[#allocation3 + $0x28] sm:$0xff] %vm673_vm8, %v660_v44 }
 0x105   : > { %v566_v48 = vpop.permute.xlu1 %565 }
 0x106   : > { %v564_v47 = vpop.permute.xlu0 %563  ;;  %583 = vst.msk [vmem:[#allocation3 + $0x38] sm:$0xff] %vm575_vm6, %v566_v48 }
 0x107   : > { %582 = vst.msk [vmem:[#allocation3 + $0x30] sm:$0xff] %vm575_vm6, %v564_v47 }
 0x109   : > { %v615_v51 = vpop.permute.xlu1 %614 }
 0x10a   : > { %v687_v49 = vld [vmem:[#allocation3 + $0x28] sm:$0xff]  ;;  %v613_v50 = vpop.permute.xlu0 %612  ;;  %632 = vst.msk [vmem:[#allocation3 + $0x38] sm:$0xff] %vm624_vm7, %v615_v51 }
 0x10b   : > { %1604 = vmatmul.mubr.msk.f32.gmra.mxu0 %vm706_vm9, %v687_v49  ;;  %631 = vst.msk [vmem:[#allocation3 + $0x30] sm:$0xff] %vm624_vm7, %v613_v50 }
 0x10d   : > { %v664_v53 = vpop.permute.xlu1 %663 }
 0x10e   : > { %v662_v52 = vpop.permute.xlu0 %661  ;;  %681 = vst.msk [vmem:[#allocation3 + $0x38] sm:$0xff] %vm673_vm8, %v664_v53 }
 0x10f   : > { %680 = vst.msk [vmem:[#allocation3 + $0x30] sm:$0xff] %vm673_vm8, %v662_v52 }
 0x111   : > { %v2261_v55 = vpop.permute.xlu1 %1168 }
 0x112   : > { %v915_v61 = vpop.permute.xlu0 %914 }
 0x113   : > { %938 = vst.msk [vmem:[#allocation3] sm:$0xff] %vm329_vm1, %v915_v61 }
 0x115   : > { %v689_v59 = vld [vmem:[#allocation3 + $0x38] sm:$0xff]  ;;  %v2267_v57 = vpop.permute.xlu1 %1216 }
 0x116   : > { %v688_v58 = vld [vmem:[#allocation3 + $0x30] sm:$0xff]  ;;  %v963_v62 = vpop.permute.xlu0 %962 }
 0x117   : > { %1606 = vmatprep.mubr.msk.f32.mxu0 %vm706_vm9, %v688_v58  ;;  %986 = vst.msk [vmem:[#allocation3] sm:$0xff] %vm378_vm2, %v963_v62 }
 0x118   : > { %1607 = vmatmul.mubr.msk.f32.gmra.mxu0 %vm706_vm9, %v689_v59  ;;  %v1241_v59 = vld [vmem:[#allocation2 + $0xe1] sm:$0xff] }
 0x18a   : > { %v1599_v0 = vpop.f32.mrf.mxu0 }
 0x18b   : > { %v803_v1 = vadd.f32 %v1599_v0, %v2161_v63 }
 0x18c   : > { %v797_v2 = vpop.f32.mrf.mxu0 }
 0x18d   : > { %v837_v3 = vmax.f32 %v803_v1, 0.0  ;;  %v798_v4 = vadd.f32 %v2161_v63, %v797_v2 }
 0x18f   : > { %875 = vst.msk [vmem:[#allocation2 + $0x38] sm:$0xff] %vm233_vm0, %v837_v3  ;;  %v836_v5 = vmax.f32 %v798_v4, 0.0 }
 0x191   : > { %874 = vst.msk [vmem:[#allocation2 + $0x20] sm:$0xff] %vm233_vm0, %v836_v5 }
 0x196   : > { %v1043_v6 = vld [vmem:[#allocation2 + $0x38] sm:$0xff] }
 0x197   : > { %v995_v7 = vld [vmem:[#allocation2 + $0x37] sm:$0xff]  ;;  %1060 = vrot.lane.b32.xlu0 %v1043_v6, %s1668_s27 }
 0x198   : > { %1012 = vrot.lane.b32.xlu1 %v995_v7, %s1667_s26  ;;  %892 = vst.msk [vmem:[#allocation3 + $0x10] sm:$0xff] %vm233_vm0, %v995_v7  ;;  %v994_v8 = vld [vmem:[#allocation2 + $0x1f] sm:$0xff] }
 0x199   : > { %891 = vst.msk [vmem:[#allocation3 + $0x8] sm:$0xff] %vm233_vm0, %v994_v8  ;;  %v1091_v9 = vld [vmem:[#allocation2 + $0x39] sm:$0xff]  ;;  %v947_v17 = vld [vmem:[#allocation2 + $0x21] sm:$0xff] }
 0x19a   : > { %v1042_v10 = vld [vmem:[#allocation2 + $0x20] sm:$0xff] }
 0x19b   : > { %1108 = vrot.lane.b32.xlu0 %v1091_v9, %s1669_s28 }
 0x19c   : > { %918 = vrot.lane.b32.xlu1 %v1043_v6, %s1665_s24 }
 0x19f   : > { %1010 = vrot.lane.b32.xlu0 %v994_v8, %s1667_s26 }
 0x1a0   : > { %966 = vrot.lane.b32.xlu1 %v1091_v9, %s1666_s25 }
 0x1a3   : > { %1058 = vrot.lane.b32.xlu0 %v1042_v10, %s1668_s27 }
 0x1a4   : > { %1154 = vrot.lane.b32.xlu1 %v995_v7, %s1670_s6 }
 0x1a8   : > { %1202 = vrot.lane.b32.xlu1 %v1043_v6, %s1671_s13 }
 0x1aa   : > { %v1602_v11 = vpop.f32.mrf.mxu0 }
 0x1ab   : > { %v813_v12 = vadd.f32 %v1602_v11, %v2161_v63 }
 0x1ac   : > { %1250 = vrot.lane.b32.xlu1 %v1091_v9, %s1672_s29  ;;  %v807_v13 = vpop.f32.mrf.mxu0 }
 0x1ad   : > { %v839_v14 = vmax.f32 %v813_v12, 0.0  ;;  %v808_v15 = vadd.f32 %v2161_v63, %v807_v13 }
 0x1af   : > { %877 = vst.msk [vmem:[#allocation2 + $0x68] sm:$0xff] %vm233_vm0, %v839_v14  ;;  %v838_v16 = vmax.f32 %v808_v15, 0.0 }
 0x1b0   : > { %916 = vrot.lane.b32.xlu1 %v1042_v10, %s1665_s24 }
 0x1b1   : > { %876 = vst.msk [vmem:[#allocation2 + $0x50] sm:$0xff] %vm233_vm0, %v838_v16 }
 0x1b4   : > { %964 = vrot.lane.b32.xlu1 %v947_v17, %s1666_s25 }
 0x1b6   : > { %v997_v18 = vld [vmem:[#allocation2 + $0x67] sm:$0xff] }
 0x1b7   : > { %1016 = vrot.lane.b32.xlu0 %v997_v18, %s1667_s26  ;;  %894 = vst.msk [vmem:[#allocation3 + $0x20] sm:$0xff] %vm233_vm0, %v997_v18  ;;  %v902_v20 = vld [vmem:[#allocation2 + $0x68] sm:$0xff] }
 0x1b8   : > { %1106 = vrot.lane.b32.xlu1 %v947_v17, %s1669_s28  ;;  %v1139_v19 = vld [vmem:[#allocation2 + $0x4f] sm:$0xff] }
 0x1b9   : > { %893 = vst.msk [vmem:[#allocation3 + $0x18] sm:$0xff] %vm233_vm0, %v1139_v19  ;;  %v1093_v21 = vld [vmem:[#allocation2 + $0x69] sm:$0xff]  ;;  %v949_v27 = vld [vmem:[#allocation2 + $0x51] sm:$0xff] }
 0x1ba   : > { %v901_v24 = vld [vmem:[#allocation2 + $0x50] sm:$0xff] }
 0x1bb   : > { %922 = vrot.lane.b32.xlu0 %v902_v20, %s1665_s24 }
 0x1bc   : > { %1064 = vrot.lane.b32.xlu1 %v902_v20, %s1668_s27 }
 0x1bf   : > { %1112 = vrot.lane.b32.xlu0 %v1093_v21, %s1669_s28 }
 0x1c0   : > { %970 = vrot.lane.b32.xlu1 %v1093_v21, %s1666_s25 }
 0x1c3   : > { %920 = vrot.lane.b32.xlu0 %v901_v24, %s1665_s24 }
 0x1c4   : > { %1158 = vrot.lane.b32.xlu1 %v997_v18, %s1670_s6 }
 0x1c7   : > { %968 = vrot.lane.b32.xlu0 %v949_v27, %s1666_s25 }
 0x1c8   : > { %1206 = vrot.lane.b32.xlu1 %v902_v20, %s1671_s13 }
 0x1cb   : > { %v1605_v29 = vpop.f32.mrf.mxu0  ;;  %1156 = vrot.lane.b32.xlu0 %v1139_v19, %s1670_s6 }
 0x1cc   : > { %v823_v31 = vadd.f32 %v1605_v29, %v2161_v63  ;;  %1254 = vrot.lane.b32.xlu1 %v1093_v21, %s1672_s29 }
 0x1cd   : > { %v817_v32 = vpop.f32.mrf.mxu0 }
 0x1ce   : > { %v841_v33 = vmax.f32 %v823_v31, 0.0  ;;  %v818_v34 = vadd.f32 %v2161_v63, %v817_v32 }
 0x1cf   : > { %1204 = vrot.lane.b32.xlu0 %v901_v24, %s1671_s13 }
 0x1d0   : > { %879 = vst.msk [vmem:[#allocation2 + $0x98] sm:$0xff] %vm233_vm0, %v841_v33  ;;  %v840_v36 = vmax.f32 %v818_v34, 0.0  ;;  %1014 = vrot.lane.b32.xlu1 %v1139_v19, %s1667_s26 }
 0x1d2   : > { %878 = vst.msk [vmem:[#allocation2 + $0x80] sm:$0xff] %vm233_vm0, %v840_v36 }
 0x1d3   : > { %1110 = vrot.lane.b32.xlu0 %v949_v27, %s1669_s28 }
 0x1d4   : > { %1062 = vrot.lane.b32.xlu1 %v901_v24, %s1668_s27 }
 0x1d7   : > { %v999_v39 = vld [vmem:[#allocation2 + $0x97] sm:$0xff] }
 0x1d8   : > { %1020 = vrot.lane.b32.xlu0 %v999_v39, %s1667_s26  ;;  %1252 = vrot.lane.b32.xlu1 %v949_v27, %s1672_s29  ;;  %v1608_v40 = vpop.f32.mrf.mxu0  ;;  %896 = vst.msk [vmem:[#allocation3 + $0x30] sm:$0xff] %vm233_vm0, %v999_v39  ;;  %v904_v44 = vld [vmem:[#allocation2 + $0x98] sm:$0xff] }
 0x1d9   : > { %v833_v41 = vadd.f32 %v1608_v40, %v2161_v63  ;;  %v1141_v42 = vld [vmem:[#allocation2 + $0x7f] sm:$0xff] }
 0x1da   : > { %v827_v43 = vpop.f32.mrf.mxu0  ;;  %895 = vst.msk [vmem:[#allocation3 + $0x28] sm:$0xff] %vm233_vm0, %v1141_v42  ;;  %v1095_v48 = vld [vmem:[#allocation2 + $0x99] sm:$0xff]  ;;  %v951_v51 = vld [vmem:[#allocation2 + $0x81] sm:$0xff] }
 0x1db   : > { %v843_v45 = vmax.f32 %v833_v41, 0.0  ;;  %v828_v46 = vadd.f32 %v2161_v63, %v827_v43  ;;  %v903_v49 = vld [vmem:[#allocation2 + $0x80] sm:$0xff] }
 0x1dc   : > { %926 = vrot.lane.b32.xlu0 %v904_v44, %s1665_s24  ;;  %1068 = vrot.lane.b32.xlu1 %v904_v44, %s1668_s27 }
 0x1dd   : > { %881 = vst.msk [vmem:[#allocation2 + $0xc8] sm:$0xff] %vm233_vm0, %v843_v45  ;;  %v842_v47 = vmax.f32 %v828_v46, 0.0 }
 0x1df   : > { %880 = vst.msk [vmem:[#allocation2 + $0xb0] sm:$0xff] %vm233_vm0, %v842_v47 }
 0x1e0   : > { %1116 = vrot.lane.b32.xlu0 %v1095_v48, %s1669_s28  ;;  %974 = vrot.lane.b32.xlu1 %v1095_v48, %s1666_s25 }
 0x1e4   : > { %924 = vrot.lane.b32.xlu0 %v903_v49, %s1665_s24  ;;  %1162 = vrot.lane.b32.xlu1 %v999_v39, %s1670_s6  ;;  %v1001_v52 = vld [vmem:[#allocation2 + $0xc7] sm:$0xff] }
 0x1e5   : > { %v1049_v53 = vld [vmem:[#allocation2 + $0xc8] sm:$0xff] }
 0x1e6   : > { %v1000_v50 = vld [vmem:[#allocation2 + $0xaf] sm:$0xff] }
 0x1e7   : > { %897 = vst.msk [vmem:[#allocation3 + $0x38] sm:$0xff] %vm233_vm0, %v1000_v50  ;;  %v1097_v54 = vld [vmem:[#allocation2 + $0xc9] sm:$0xff]  ;;  %v1096_v58 = vld [vmem:[#allocation2 + $0xb1] sm:$0xff] }
 0x1e8   : > { %972 = vrot.lane.b32.xlu0 %v951_v51, %s1666_s25  ;;  %1210 = vrot.lane.b32.xlu1 %v904_v44, %s1671_s13  ;;  %v1048_v56 = vld [vmem:[#allocation2 + $0xb0] sm:$0xff] }
 0x1ec   : > { %1160 = vrot.lane.b32.xlu0 %v1141_v42, %s1670_s6  ;;  %1258 = vrot.lane.b32.xlu1 %v1095_v48, %s1672_s29 }
 0x1f0   : > { %1208 = vrot.lane.b32.xlu0 %v903_v49, %s1671_s13  ;;  %1018 = vrot.lane.b32.xlu1 %v1141_v42, %s1667_s26 }
 0x1f4   : > { %1114 = vrot.lane.b32.xlu0 %v951_v51, %s1669_s28  ;;  %1066 = vrot.lane.b32.xlu1 %v903_v49, %s1668_s27 }
 0x1f8   : > { %1024 = vrot.lane.b32.xlu0 %v1001_v52, %s1667_s26  ;;  %1256 = vrot.lane.b32.xlu1 %v951_v51, %s1672_s29 }
 0x1fc   : > { %1072 = vrot.lane.b32.xlu0 %v1049_v53, %s1668_s27  ;;  %1120 = vrot.lane.b32.xlu1 %v1097_v54, %s1669_s28 }
 0x200   : > { %1166 = vrot.lane.b32.xlu0 %v1001_v52, %s1670_s6  ;;  %1022 = vrot.lane.b32.xlu1 %v1000_v50, %s1667_s26 }
 0x204   : > { %1214 = vrot.lane.b32.xlu0 %v1049_v53, %s1671_s13  ;;  %1070 = vrot.lane.b32.xlu1 %v1048_v56, %s1668_s27 }
 0x208   : > { %928 = vrot.lane.b32.xlu0 %v1048_v56, %s1665_s24  ;;  %1118 = vrot.lane.b32.xlu1 %v1096_v58, %s1669_s28  ;;  %s2358_s28 = scalar_lea.vmem %s2391_s5, %s1543_s20 }
 0x209   : > { %v1061_v60 = vpop.permute.xlu0 %1060 }
 0x20a   : > { %v1013_v61 = vpop.permute.xlu1 %1012 }
 0x20c   : > { %976 = vrot.lane.b32.xlu0 %v1096_v58, %s1666_s25  ;;  %1264 = vrot.lane.b32.xlu1 %v1241_v59, %s1672_s29 }
 0x20d   : > { %v1109_v62 = vpop.permute.xlu0 %1108 }
 0x20e   : > { %v919_v63 = vpop.permute.xlu1 %918 }
 0x20f   : > { %940 = vst.msk [vmem:[#allocation3 + $0x10] sm:$0xff] %vm329_vm1, %v919_v63 }
 0x210   : > { %1164 = vrot.lane.b32.xlu0 %v1000_v50, %s1670_s6 }
 0x211   : > { %v1011_v1 = vpop.permute.xlu0 %1010 }
 0x212   : > { %v967_v0 = vpop.permute.xlu1 %966  ;;  %1034 = vst.msk [vmem:[#allocation3] sm:$0xff] %vm427_vm3, %v1011_v1 }
 0x213   : > { %988 = vst.msk [vmem:[#allocation3 + $0x10] sm:$0xff] %vm378_vm2, %v967_v0 }
 0x214   : > { %1212 = vrot.lane.b32.xlu0 %v1048_v56, %s1671_s13 }
 0x215   : > { %v1059_v3 = vpop.permute.xlu0 %1058 }
 0x216   : > { %v1155_v2 = vpop.permute.xlu1 %1154  ;;  %1082 = vst.msk [vmem:[#allocation3] sm:$0xff] %vm476_vm4, %v1059_v3 }
 0x218   : > { %1260 = vrot.lane.b32.xlu0 %v1096_v58, %s1672_s29 }
 0x21a   : > { %v1203_v4 = vpop.permute.xlu1 %1202 }
 0x21c   : > { %1262 = vrot.lane.b32.xlu0 %v1097_v54, %s1672_s29 }
 0x21e   : > { %v1251_v5 = vpop.permute.xlu1 %1250 }
 0x222   : > { %v917_v6 = vpop.permute.xlu1 %916 }
 0x223   : > { %939 = vst.msk [vmem:[#allocation3 + $0x8] sm:$0xff] %vm329_vm1, %v917_v6 }
 0x226   : > { %v965_v7 = vpop.permute.xlu1 %964 }
 0x227   : > { %987 = vst.msk [vmem:[#allocation3 + $0x8] sm:$0xff] %vm378_vm2, %v965_v7 }
 0x228   : > { %1035 = vst.msk [vmem:[#allocation3 + $0x8] sm:$0xff] %vm427_vm3, %v1013_v61 }
 0x229   : > { %1083 = vst.msk [vmem:[#allocation3 + $0x8] sm:$0xff] %vm476_vm4, %v1061_v60  ;;  %v1017_v8 = vpop.permute.xlu0 %1016 }
 0x22a   : > { %1131 = vst.msk [vmem:[#allocation3 + $0x8] sm:$0xff] %vm525_vm5, %v1109_v62  ;;  %v1107_v9 = vpop.permute.xlu1 %1106 }
 0x22b   : > { %1130 = vst.msk [vmem:[#allocation3] sm:$0xff] %vm525_vm5, %v1107_v9 }
 0x22c   : > { %1178 = vst.msk [vmem:[#allocation3] sm:$0xff] %vm575_vm6, %v1155_v2  ;;  %v1436_v2 = vld [vmem:[%s1783_s23 + $0x8] sm:$0xff] }
 0x22d   : > { %1226 = vst.msk [vmem:[#allocation3] sm:$0xff] %vm624_vm7, %v1203_v4  ;;  %v923_v10 = vpop.permute.xlu0 %922 }
 0x22e   : > { %1274 = vst.msk [vmem:[#allocation3] sm:$0xff] %vm673_vm8, %v1251_v5  ;;  %v1065_v11 = vpop.permute.xlu1 %1064  ;;  %v1435_v5 = vld [vmem:[%s1783_s23] sm:$0xff] }
 0x22f   : > { %942 = vst.msk [vmem:[#allocation3 + $0x20] sm:$0xff] %vm329_vm1, %v923_v10  ;;  %v1438_v10 = vld [vmem:[%s1783_s23 + $0x18] sm:$0xff] }
 0x231   : > { %v1113_v12 = vpop.permute.xlu0 %1112 }
 0x232   : > { %v971_v13 = vpop.permute.xlu1 %970 }
 0x233   : > { %990 = vst.msk [vmem:[#allocation3 + $0x20] sm:$0xff] %vm378_vm2, %v971_v13  ;;  %v1437_v13 = vld [vmem:[%s1783_s23 + $0x10] sm:$0xff] }
 0x235   : > { %v1282_v14 = vld [vmem:[#allocation3] sm:$0xff]  ;;  %v921_v15 = vpop.permute.xlu0 %920 }
 0x236   : > { %1627 = vmatprep.mubr.msk.f32.mxu1 %vm706_vm9, %v1282_v14  ;;  %v1159_v16 = vpop.permute.xlu1 %1158  ;;  %941 = vst.msk [vmem:[#allocation3 + $0x18] sm:$0xff] %vm329_vm1, %v921_v15 }
 0x239   : > { %v969_v17 = vpop.permute.xlu0 %968 }
 0x23a   : > { %v1207_v18 = vpop.permute.xlu1 %1206  ;;  %989 = vst.msk [vmem:[#allocation3 + $0x18] sm:$0xff] %vm378_vm2, %v969_v17 }
 0x23b   : > { %1037 = vst.msk [vmem:[#allocation3 + $0x18] sm:$0xff] %vm427_vm3, %v1017_v8 }
 0x23c   : > { %1085 = vst.msk [vmem:[#allocation3 + $0x18] sm:$0xff] %vm476_vm4, %v1065_v11 }
 0x23d   : > { %1133 = vst.msk [vmem:[#allocation3 + $0x18] sm:$0xff] %vm525_vm5, %v1113_v12  ;;  %v1157_v19 = vpop.permute.xlu0 %1156 }
 0x23e   : > { %v1255_v20 = vpop.permute.xlu1 %1254  ;;  %1179 = vst.msk [vmem:[#allocation3 + $0x8] sm:$0xff] %vm575_vm6, %v1157_v19 }
 0x241   : > { %v1205_v21 = vpop.permute.xlu0 %1204 }
 0x242   : > { %v1015_v22 = vpop.permute.xlu1 %1014  ;;  %1227 = vst.msk [vmem:[#allocation3 + $0x8] sm:$0xff] %vm624_vm7, %v1205_v21  ;;  %v1439_v21 = vld [vmem:[%s1783_s23 + $0x20] sm:$0xff] }
 0x243   : > { %1036 = vst.msk [vmem:[#allocation3 + $0x10] sm:$0xff] %vm427_vm3, %v1015_v22 }
 0x245   : > { %v1111_v23 = vpop.permute.xlu0 %1110 }
 0x246   : > { %v1063_v24 = vpop.permute.xlu1 %1062 }
 0x247   : > { %1084 = vst.msk [vmem:[#allocation3 + $0x10] sm:$0xff] %vm476_vm4, %v1063_v24 }
 0x248   : > { %1132 = vst.msk [vmem:[#allocation3 + $0x10] sm:$0xff] %vm525_vm5, %v1111_v23 }
 0x249   : > { %1180 = vst.msk [vmem:[#allocation3 + $0x10] sm:$0xff] %vm575_vm6, %v1159_v16 }
 0x24a   : > { %1228 = vst.msk [vmem:[#allocation3 + $0x10] sm:$0xff] %vm624_vm7, %v1207_v18  ;;  %v1021_v25 = vpop.permute.xlu0 %1020  ;;  %v1253_v26 = vpop.permute.xlu1 %1252  ;;  %v1440_v18 = vld [vmem:[%s1783_s23 + $0x28] sm:$0xff] }
 0x24b   : > { %1276 = vst.msk [vmem:[#allocation3 + $0x10] sm:$0xff] %vm673_vm8, %v1255_v20  ;;  %1275 = vst.msk [vmem:[#allocation3 + $0x8] sm:$0xff] %vm673_vm8, %v1253_v26  ;;  %v1442_v26 = vld [vmem:[%s1783_s23 + $0x38] sm:$0xff] }
 0x24e   : > { %v927_v27 = vpop.permute.xlu0 %926  ;;  %v1069_v28 = vpop.permute.xlu1 %1068 }
 0x24f   : > { %944 = vst.msk [vmem:[#allocation3 + $0x30] sm:$0xff] %vm329_vm1, %v927_v27 }
 0x252   : > { %v1117_v29 = vpop.permute.xlu0 %1116  ;;  %v975_v30 = vpop.permute.xlu1 %974  ;;  %v1283_v31 = vld [vmem:[#allocation3 + $0x8] sm:$0xff]  ;;  %v1284_v32 = vld [vmem:[#allocation3 + $0x10] sm:$0xff] }
 0x253   : > { %992 = vst.msk [vmem:[#allocation3 + $0x30] sm:$0xff] %vm378_vm2, %v975_v30  ;;  %1628 = vmatmul.mubr.msk.f32.vlgmr.msra.gmra.mxu1 %vm706_vm9, %v1283_v31 }
 0x254   : > { %1630 = vmatprep.mubr.msk.f32.mxu1 %vm706_vm9, %v1284_v32 }
 0x256   : > { %v925_v33 = vpop.permute.xlu0 %924  ;;  %v1163_v34 = vpop.permute.xlu1 %1162 }
 0x257   : > { %943 = vst.msk [vmem:[#allocation3 + $0x28] sm:$0xff] %vm329_vm1, %v925_v33 }
 0x25a   : > { %v973_v35 = vpop.permute.xlu0 %972  ;;  %v1211_v36 = vpop.permute.xlu1 %1210 }
 0x25b   : > { %991 = vst.msk [vmem:[#allocation3 + $0x28] sm:$0xff] %vm378_vm2, %v973_v35 }
 0x25c   : > { %1039 = vst.msk [vmem:[#allocation3 + $0x28] sm:$0xff] %vm427_vm3, %v1021_v25 }
 0x25d   : > { %1087 = vst.msk [vmem:[#allocation3 + $0x28] sm:$0xff] %vm476_vm4, %v1069_v28 }
 0x25e   : > { %1135 = vst.msk [vmem:[#allocation3 + $0x28] sm:$0xff] %vm525_vm5, %v1117_v29  ;;  %v1161_v37 = vpop.permute.xlu0 %1160  ;;  %v1259_v38 = vpop.permute.xlu1 %1258  ;;  %v1441_v29 = vld [vmem:[%s1783_s23 + $0x30] sm:$0xff] }
 0x25f   : > { %1181 = vst.msk [vmem:[#allocation3 + $0x18] sm:$0xff] %vm575_vm6, %v1161_v37 }
 0x262   : > { %v1209_v39 = vpop.permute.xlu0 %1208  ;;  %v1019_v40 = vpop.permute.xlu1 %1018 }
 0x263   : > { %1229 = vst.msk [vmem:[#allocation3 + $0x18] sm:$0xff] %vm624_vm7, %v1209_v39 }
 0x264   : > { %1038 = vst.msk [vmem:[#allocation3 + $0x20] sm:$0xff] %vm427_vm3, %v1019_v40 }
 0x266   : > { %v1115_v41 = vpop.permute.xlu0 %1114  ;;  %v1067_v42 = vpop.permute.xlu1 %1066 }
 0x267   : > { %1086 = vst.msk [vmem:[#allocation3 + $0x20] sm:$0xff] %vm476_vm4, %v1067_v42 }
 0x268   : > { %1134 = vst.msk [vmem:[#allocation3 + $0x20] sm:$0xff] %vm525_vm5, %v1115_v41 }
 0x269   : > { %1182 = vst.msk [vmem:[#allocation3 + $0x20] sm:$0xff] %vm575_vm6, %v1163_v34 }
 0x26a   : > { %1230 = vst.msk [vmem:[#allocation3 + $0x20] sm:$0xff] %vm624_vm7, %v1211_v36  ;;  %v1025_v43 = vpop.permute.xlu0 %1024  ;;  %v1257_v44 = vpop.permute.xlu1 %1256 }
 0x26b   : > { %1278 = vst.msk [vmem:[#allocation3 + $0x20] sm:$0xff] %vm673_vm8, %v1259_v38  ;;  %1277 = vst.msk [vmem:[#allocation3 + $0x18] sm:$0xff] %vm673_vm8, %v1257_v44 }
 0x26e   : > { %v1073_v45 = vpop.permute.xlu0 %1072  ;;  %v1121_v46 = vpop.permute.xlu1 %1120 }
 0x272   : > { %v1167_v47 = vpop.permute.xlu0 %1166  ;;  %v1023_v48 = vpop.permute.xlu1 %1022  ;;  %v1285_v49 = vld [vmem:[#allocation3 + $0x18] sm:$0xff]  ;;  %v1286_v50 = vld [vmem:[#allocation3 + $0x20] sm:$0xff] }
 0x273   : > { %1040 = vst.msk [vmem:[#allocation3 + $0x30] sm:$0xff] %vm427_vm3, %v1023_v48  ;;  %1631 = vmatmul.mubr.msk.f32.gmra.mxu1 %vm706_vm9, %v1285_v49 }
 0x274   : > { %1633 = vmatprep.mubr.msk.f32.mxu1 %vm706_vm9, %v1286_v50 }
 0x276   : > { %v1215_v51 = vpop.permute.xlu0 %1214  ;;  %v1071_v52 = vpop.permute.xlu1 %1070 }
 0x277   : > { %1088 = vst.msk [vmem:[#allocation3 + $0x30] sm:$0xff] %vm476_vm4, %v1071_v52 }
 0x27a   : > { %v929_v53 = vpop.permute.xlu0 %928  ;;  %v1119_v54 = vpop.permute.xlu1 %1118 }
 0x27b   : > { %945 = vst.msk [vmem:[#allocation3 + $0x38] sm:$0xff] %vm329_vm1, %v929_v53 }
 0x27c   : > { %1136 = vst.msk [vmem:[#allocation3 + $0x30] sm:$0xff] %vm525_vm5, %v1119_v54 }
 0x27d   : > { %1184 = vst.msk [vmem:[#allocation3 + $0x30] sm:$0xff] %vm575_vm6, %v1167_v47 }
 0x27e   : > { %1232 = vst.msk [vmem:[#allocation3 + $0x30] sm:$0xff] %vm624_vm7, %v1215_v51  ;;  %v977_v56 = vpop.permute.xlu0 %976  ;;  %v1265_v59 = vpop.permute.xlu1 %1264 }
 0x27f   : > { %993 = vst.msk [vmem:[#allocation3 + $0x38] sm:$0xff] %vm378_vm2, %v977_v56 }
 0x280   : > { %1041 = vst.msk [vmem:[#allocation3 + $0x38] sm:$0xff] %vm427_vm3, %v1025_v43 }
 0x281   : > { %1089 = vst.msk [vmem:[#allocation3 + $0x38] sm:$0xff] %vm476_vm4, %v1073_v45 }
 0x282   : > { %1137 = vst.msk [vmem:[#allocation3 + $0x38] sm:$0xff] %vm525_vm5, %v1121_v46  ;;  %v1165_v58 = vpop.permute.xlu0 %1164 }
 0x283   : > { %1183 = vst.msk [vmem:[#allocation3 + $0x28] sm:$0xff] %vm575_vm6, %v1165_v58  ;;  %1185 = vst.msk [vmem:[#allocation3 + $0x38] sm:$0xff] %vm575_vm6, %v2261_v55 }
 0x284   : > { %1233 = vst.msk [vmem:[#allocation3 + $0x38] sm:$0xff] %vm624_vm7, %v2267_v57  ;;  %v1532_v57 = vld [vmem:[%s2390_s4] ss:$0 sm:$0xff] }
 0x285   : > { %1281 = vst.msk [vmem:[#allocation3 + $0x38] sm:$0xff] %vm673_vm8, %v1265_v59 }
 0x286   : > { %v1213_v60 = vpop.permute.xlu0 %1212 }
 0x287   : > { %1231 = vst.msk [vmem:[#allocation3 + $0x28] sm:$0xff] %vm624_vm7, %v1213_v60 }
 0x28a   : > { %v1261_v61 = vpop.permute.xlu0 %1260 }
 0x28b   : > { %1279 = vst.msk [vmem:[#allocation3 + $0x28] sm:$0xff] %vm673_vm8, %v1261_v61 }
 0x28c   : > { %v1289_v55 = vld [vmem:[#allocation3 + $0x38] sm:$0xff] }
 0x28e   : > { %v1263_v62 = vpop.permute.xlu0 %1262 }
 0x28f   : > { %1280 = vst.msk [vmem:[#allocation3 + $0x30] sm:$0xff] %vm673_vm8, %v1263_v62 }
 0x292   : > { %v1287_v63 = vld [vmem:[#allocation3 + $0x28] sm:$0xff] }
 0x293   : > { %1634 = vmatmul.mubr.msk.f32.gmra.mxu1 %vm706_vm9, %v1287_v63 }
 0x296   : > { %v1288_v0 = vld [vmem:[#allocation3 + $0x30] sm:$0xff] }
 0x297   : > { %1636 = vmatprep.mubr.msk.f32.mxu1 %vm706_vm9, %v1288_v0 }
 0x298   : > { %1637 = vmatmul.mubr.msk.f32.gmra.mxu1 %vm706_vm9, %v1289_v55 }
 0x313   : > { %v1629_v1 = vpop.f32.mrf.mxu1 }
 0x314   : > { %v1402_v3 = vadd.f32 %v1629_v1, %v1532_v57 }
 0x315   : > { %v1396_v4 = vpop.f32.mrf.mxu1 }
 0x316   : > { %v1444_v6 = vadd.f32 %v1436_v2, %v1402_v3  ;;  %v1397_v7 = vadd.f32 %v1532_v57, %v1396_v4 }
 0x318   : > { %1452 = vst.msk [vmem:[%s2358_s28 + $0x8] sm:$0xff] %vm233_vm0, %v1444_v6  ;;  %v1443_v8 = vadd.f32 %v1435_v5, %v1397_v7 }
 0x31a   : > { %1451 = vst.msk [vmem:[%s2358_s28] sm:$0xff] %vm233_vm0, %v1443_v8 }
 0x333   : > { %v1632_v9 = vpop.f32.mrf.mxu1 }
 0x334   : > { %v1412_v11 = vadd.f32 %v1632_v9, %v1532_v57 }
 0x335   : > { %v1406_v12 = vpop.f32.mrf.mxu1 }
 0x336   : > { %v1446_v14 = vadd.f32 %v1438_v10, %v1412_v11  ;;  %v1407_v15 = vadd.f32 %v1532_v57, %v1406_v12 }
 0x338   : > { %1454 = vst.msk [vmem:[%s2358_s28 + $0x18] sm:$0xff] %vm233_vm0, %v1446_v14  ;;  %v1445_v16 = vadd.f32 %v1437_v13, %v1407_v15 }
 0x33a   : > { %1453 = vst.msk [vmem:[%s2358_s28 + $0x10] sm:$0xff] %vm233_vm0, %v1445_v16 }
 0x353   : > { %v1635_v17 = vpop.f32.mrf.mxu1 }
 0x354   : > { %v1422_v19 = vadd.f32 %v1635_v17, %v1532_v57 }
 0x355   : > { %v1416_v20 = vpop.f32.mrf.mxu1 }
 0x356   : > { %v1448_v22 = vadd.f32 %v1440_v18, %v1422_v19  ;;  %v1417_v23 = vadd.f32 %v1532_v57, %v1416_v20 }
 0x358   : > { %1456 = vst.msk [vmem:[%s2358_s28 + $0x28] sm:$0xff] %vm233_vm0, %v1448_v22  ;;  %v1447_v24 = vadd.f32 %v1439_v21, %v1417_v23  ;;  %v1638_v25 = vpop.f32.mrf.mxu1 }
 0x359   : > { %v1432_v27 = vadd.f32 %v1638_v25, %v1532_v57 }
 0x35a   : > { %1455 = vst.msk [vmem:[%s2358_s28 + $0x20] sm:$0xff] %vm233_vm0, %v1447_v24  ;;  %v1426_v28 = vpop.f32.mrf.mxu1 }
 0x35b   : > { %v1450_v30 = vadd.f32 %v1442_v26, %v1432_v27  ;;  %v1427_v31 = vadd.f32 %v1532_v57, %v1426_v28 }
 0x35d   : > { %1458 = vst.msk [vmem:[%s2358_s28 + $0x38] sm:$0xff] %vm233_vm0, %v1450_v30  ;;  %v1449_v32 = vadd.f32 %v1441_v29, %v1427_v31 }
 0x35f   : > { %1457 = vst.msk [vmem:[%s2358_s28 + $0x30] sm:$0xff] %vm233_vm0, %v1449_v32 }
 0x360 PF: > { %s15_s18 = sadd.s32 1, %s1662_s18  }
 0x361   : > { %p12_p4 = scmp.ge.s32.totalorder %s15_s18, 4  }
 0x363   :  { %14 = sbr.rel (!%p12_p4) target bundleno = 1 (0x1), region = 72 }

// kernel: dec_unit_first.11
= control target key start
LH: loop header
LB: loop body
LE: loop exit
PB: predicated region body
PF: predicated region fallthrough
CT: control target
= control target key end

     0   :  { %s6580_s21 = smov 0   ;;  %s10275_s0 = inlined_call_operand.vmem [shape: f32[2,16,16,8], index: 0, kind: input, shape index: {}]   ;;  %s10276_s1 = inlined_call_operand.vmem [shape: f32[216,8], index: 1, kind: input, shape index: {}]   ;;  %s10277_s2 = inlined_call_operand.vmem [shape: f32[1,8], index: 2, kind: input, shape index: {}]   ;;  %s10278_s3 = inlined_call_operand.vmem [shape: f32[8,10], index: 3, kind: input, shape index: {}]   ;;  %s10279_s4 = inlined_call_operand.vmem [shape: f32[1,10], index: 4, kind: input, shape index: {}]   ;;  %s10280_s5 = inlined_call_operand.vmem [shape: f32[2,16,16,8], index: 5, kind: output, shape index: {0}]   ;;  %s10281_s6 = inlined_call_operand.vmem [shape: f32[2,16,16,10], index: 6, kind: output, shape index: {1}]  }
   0x1 LB: > { %s6277_s22 = sadd.s32 4294967295, %s6527_s21   ;;  %p6281_p0 = scmp.ge.s32.totalorder %s6527_s21, 1  ;;  %s6527_s21 = sphi %s6580_s21, %s17_s21  }
   0x2   : > { %p215_p1 = scmp.lt.s32.totalorder %s6527_s21, 3 }
   0x4   : > { %p216_p2 = pnand %p6281_p0, %p215_p1 }
   0x6   : > { %219 = sbr.rel (%p216_p2) target bundleno = 2181 (0x885), region = 40 }
   0xb   : > { %vm297_vm0 = vcmask 64512   ;;  %p6590_p3 = scmp.lt.s32.totalorder %s6277_s22, 1  ;;  %v10282_v0 = vmov 0.0   ;;  %s6530_s28 = smov 8   ;;  %vm652_vm1 = vcmask 130112   ;;  %vm845_vm2 = vcmask 195712  }
   0xc   : > { %311 = vst.msk [vmem:[#allocation2 + $0x68] sm:$0xff] %vm297_vm0, %v10282_v0  ;;  %298 = vst.msk [vmem:[#allocation2] sm:$0xff] %vm297_vm0, %v10282_v0  ;;  %5570 = vmatprep.subr.mxu0 %v10282_v0  ;;  %6442 = vmatprep.subr.mxu1 %v10282_v0  ;;  %s6531_s29 = smov 16   ;;  %s6532_s30 = smov 24   ;;  %vm1038_vm3 = vcmask 261312   ;;  %vm1231_vm4 = vcmask 326912  }
   0xd   : > { %299 = vst.msk [vmem:[#allocation2 + $0x8] sm:$0xff] %vm297_vm0, %v10282_v0  ;;  %300 = vst.msk [vmem:[#allocation2 + $0x10] sm:$0xff] %vm297_vm0, %v10282_v0  ;;  %s10377_s22 = smov (!%p6590_p3, %s6277_s22), 1  ;;  %s6533_s7 = smov 32   ;;  %vm1424_vm5 = vcmask 392512   ;;  %vm1618_vm6 = vcmask 458112  }
   0xe   : > { %301 = vst.msk [vmem:[#allocation2 + $0x18] sm:$0xff] %vm297_vm0, %v10282_v0  ;;  %302 = vst.msk [vmem:[#allocation2 + $0x20] sm:$0xff] %vm297_vm0, %v10282_v0  ;;  %s6792_s24 = sshll.u32 %s10377_s22, 8  ;;  %s6534_s8 = smov 40   ;;  %vm1811_vm7 = vcmask 523712   ;;  %vm2004_vm8 = vcmask 589312  }
   0xf   : > { %303 = vst.msk [vmem:[#allocation2 + $0x28] sm:$0xff] %vm297_vm0, %v10282_v0  ;;  %304 = vst.msk [vmem:[#allocation2 + $0x30] sm:$0xff] %vm297_vm0, %v10282_v0  ;;  %s6798_s27 = scalar_lea.vmem %s10275_s0, %s6792_s24  ;;  %s6535_s9 = smov 48   ;;  %vm2198_vm9 = vcmask 654912   ;;  %vm2391_vm10 = vcmask 720512   ;;  %vm2584_vm11 = vcmask 786112  }
  0x10   : > { %305 = vst.msk [vmem:[#allocation2 + $0x38] sm:$0xff] %vm297_vm0, %v10282_v0  ;;  %306 = vst.msk [vmem:[#allocation2 + $0x40] sm:$0xff] %vm297_vm0, %v10282_v0  ;;  %v265_v1 = vld [vmem:[%s6798_s27] sm:$0xff]  ;;  %v267_v2 = vld [vmem:[%s6798_s27 + $0x10] sm:$0xff]  ;;  %s6536_s10 = smov 56   ;;  %s6537_s11 = smov 64  }
  0x11   : > { %307 = vst.msk [vmem:[#allocation2 + $0x48] sm:$0xff] %vm297_vm0, %v10282_v0  ;;  %308 = vst.msk [vmem:[#allocation2 + $0x50] sm:$0xff] %vm297_vm0, %v10282_v0  ;;  %v266_v3 = vld [vmem:[%s6798_s27 + $0x8] sm:$0xff]  ;;  %v269_v4 = vld [vmem:[%s6798_s27 + $0x20] sm:$0xff]  ;;  %s6538_s12 = smov 72   ;;  %s6539_s13 = smov 80  }
  0x12   : > { %309 = vst.msk [vmem:[#allocation2 + $0x58] sm:$0xff] %vm297_vm0, %v10282_v0  ;;  %310 = vst.msk [vmem:[#allocation2 + $0x60] sm:$0xff] %vm297_vm0, %v10282_v0  ;;  %v268_v5 = vld [vmem:[%s6798_s27 + $0x18] sm:$0xff]  ;;  %v271_v6 = vld [vmem:[%s6798_s27 + $0x30] sm:$0xff]  ;;  %s6540_s14 = smov 88   ;;  %s6541_s15 = smov 96  }
  0x13   : > { %312 = vst.msk [vmem:[#allocation2 + $0x70] sm:$0xff] %vm297_vm0, %v10282_v0  ;;  %313 = vst.msk [vmem:[#allocation2 + $0x78] sm:$0xff] %vm297_vm0, %v10282_v0  ;;  %v492_v7 = vld [vmem:[#allocation2 + $0x68] sm:$0xff]  ;;  %v273_v10 = vld [vmem:[%s6798_s27 + $0x40] sm:$0xff]  ;;  %s6542_s16 = smov 104   ;;  %vm2777_vm12 = vcmask 851712  }
  0x14   : > { %314 = vst.msk [vmem:[#allocation2 + $0x80] sm:$0xff] %vm297_vm0, %v10282_v0  ;;  %315 = vst.msk [vmem:[#allocation2 + $0x88] sm:$0xff] %vm297_vm0, %v10282_v0  ;;  %v270_v9 = vld [vmem:[%s6798_s27 + $0x28] sm:$0xff]  ;;  %556 = vrot.lane.b32.xlu0 %v492_v7, %s6530_s28  ;;  %v272_v11 = vld [vmem:[%s6798_s27 + $0x38] sm:$0xff]  ;;  %s6543_s17 = smov 112   ;;  %vm2970_vm13 = vcmask 917312  }
  0x15   : > { %316 = vst.msk [vmem:[#allocation2 + $0x90] sm:$0xff] %vm297_vm0, %v10282_v0  ;;  %317 = vst.msk [vmem:[#allocation2 + $0x98] sm:$0xff] %vm297_vm0, %v10282_v0  ;;  %v275_v12 = vld [vmem:[%s6798_s27 + $0x50] sm:$0xff]  ;;  %v274_v13 = vld [vmem:[%s6798_s27 + $0x48] sm:$0xff]  ;;  %s6544_s18 = smov 120   ;;  %vm3163_vm14 = vcmask 982912  }
  0x16   : > { %318 = vst.msk [vmem:[#allocation2 + $0xa0] sm:$0xff] %vm297_vm0, %v10282_v0  ;;  %319 = vst.msk [vmem:[#allocation2 + $0xa8] sm:$0xff] %vm297_vm0, %v10282_v0  ;;  %v277_v14 = vld [vmem:[%s6798_s27 + $0x60] sm:$0xff]  ;;  %v276_v15 = vld [vmem:[%s6798_s27 + $0x58] sm:$0xff]  ;;  %vm3357_vm15 = vcmask 1048512  }
  0x17   : > { %320 = vst.msk [vmem:[#allocation2 + $0xb0] sm:$0xff] %vm297_vm0, %v10282_v0  ;;  %321 = vst.msk [vmem:[#allocation2 + $0xb8] sm:$0xff] %vm297_vm0, %v10282_v0  ;;  %v279_v16 = vld [vmem:[%s6798_s27 + $0x70] sm:$0xff]  ;;  %v278_v17 = vld [vmem:[%s6798_s27 + $0x68] sm:$0xff] }
  0x18   : > { %322 = vst.msk [vmem:[#allocation2 + $0xc0] sm:$0xff] %vm297_vm0, %v10282_v0  ;;  %323 = vst.msk [vmem:[#allocation2 + $0xc8] sm:$0xff] %vm297_vm0, %v10282_v0  ;;  %v281_v18 = vld [vmem:[%s6798_s27 + $0x80] sm:$0xff]  ;;  %v280_v19 = vld [vmem:[%s6798_s27 + $0x78] sm:$0xff] }
  0x19   : > { %324 = vst.msk [vmem:[#allocation2 + $0xd0] sm:$0xff] %vm297_vm0, %v10282_v0  ;;  %325 = vst.msk [vmem:[#allocation2 + $0xd8] sm:$0xff] %vm297_vm0, %v10282_v0  ;;  %v283_v20 = vld [vmem:[%s6798_s27 + $0x90] sm:$0xff]  ;;  %v282_v21 = vld [vmem:[%s6798_s27 + $0x88] sm:$0xff] }
  0x1a   : > { %326 = vst.msk [vmem:[#allocation2 + $0xe0] sm:$0xff] %vm297_vm0, %v10282_v0  ;;  %327 = vst.msk [vmem:[#allocation2 + $0xe8] sm:$0xff] %vm297_vm0, %v10282_v0  ;;  %v493_v8 = vld [vmem:[#allocation2 + $0x70] sm:$0xff]  ;;  %v285_v22 = vld [vmem:[%s6798_s27 + $0xa0] sm:$0xff] }
  0x1b   : > { %328 = vst.msk [vmem:[#allocation2 + $0xf0] sm:$0xff] %vm297_vm0, %v10282_v0  ;;  %329 = vst.msk [vmem:[#allocation2 + $0xf8] sm:$0xff] %vm297_vm0, %v10282_v0  ;;  %558 = vrot.lane.b32.xlu0 %v493_v8, %s6530_s28  ;;  %v284_v23 = vld [vmem:[%s6798_s27 + $0x98] sm:$0xff]  ;;  %v287_v24 = vld [vmem:[%s6798_s27 + $0xb0] sm:$0xff] }
  0x1c   : > { %330 = vst.msk [vmem:[#allocation2 + $0x100] sm:$0xff] %vm297_vm0, %v10282_v0  ;;  %331 = vst.msk [vmem:[#allocation2 + $0x108] sm:$0xff] %vm297_vm0, %v10282_v0  ;;  %v286_v28 = vld [vmem:[%s6798_s27 + $0xa8] sm:$0xff]  ;;  %v289_v29 = vld [vmem:[%s6798_s27 + $0xc0] sm:$0xff] }
  0x1d   : > { %332 = vst.msk [vmem:[#allocation2 + $0x110] sm:$0xff] %vm297_vm0, %v10282_v0  ;;  %333 = vst.msk [vmem:[#allocation2 + $0x118] sm:$0xff] %vm297_vm0, %v10282_v0  ;;  %v288_v33 = vld [vmem:[%s6798_s27 + $0xb8] sm:$0xff]  ;;  %v291_v34 = vld [vmem:[%s6798_s27 + $0xd0] sm:$0xff] }
  0x1e   : > { %334 = vst.msk [vmem:[#allocation2 + $0x120] sm:$0xff] %vm297_vm0, %v10282_v0  ;;  %335 = vst.msk [vmem:[#allocation2 + $0x128] sm:$0xff] %vm297_vm0, %v10282_v0  ;;  %v290_v35 = vld [vmem:[%s6798_s27 + $0xc8] sm:$0xff]  ;;  %v293_v36 = vld [vmem:[%s6798_s27 + $0xe0] sm:$0xff] }
  0x1f   : > { %336 = vst.msk [vmem:[#allocation2 + $0x130] sm:$0xff] %vm297_vm0, %v10282_v0  ;;  %337 = vst.msk [vmem:[#allocation2 + $0x138] sm:$0xff] %vm297_vm0, %v10282_v0  ;;  %v292_v37 = vld [vmem:[%s6798_s27 + $0xd8] sm:$0xff]  ;;  %v294_v39 = vld [vmem:[%s6798_s27 + $0xe8] sm:$0xff] }
  0x20   : > { %338 = vst.msk [vmem:[#allocation2 + $0x140] sm:$0xff] %vm297_vm0, %v10282_v0  ;;  %339 = vst.msk [vmem:[#allocation2 + $0x148] sm:$0xff] %vm297_vm0, %v10282_v0  ;;  %v428_v45 = vld [vmem:[#allocation2 + $0x67] sm:$0xff]  ;;  %v429_v46 = vld [vmem:[#allocation2 + $0x6f] sm:$0xff] }
  0x21   : > { %340 = vst.msk [vmem:[#allocation2 + $0x150] sm:$0xff] %vm297_vm0, %v10282_v0  ;;  %341 = vst.msk [vmem:[#allocation2 + $0x158] sm:$0xff] %vm297_vm0, %v10282_v0 }
  0x22   : > { %342 = vst.msk [vmem:[#allocation2 + $0x160] sm:$0xff] %vm297_vm0, %v10282_v0  ;;  %343 = vst.msk [vmem:[#allocation2 + $0x168] sm:$0xff] %vm297_vm0, %v10282_v0 }
  0x23   : > { %344 = vst.msk [vmem:[#allocation2 + $0x170] sm:$0xff] %vm297_vm0, %v10282_v0  ;;  %345 = vst.msk [vmem:[#allocation2 + $0x178] sm:$0xff] %vm297_vm0, %v10282_v0 }
  0x24   : > { %346 = vst.msk [vmem:[#allocation2 + $0x180] sm:$0xff] %vm297_vm0, %v10282_v0  ;;  %347 = vst.msk [vmem:[#allocation2 + $0x188] sm:$0xff] %vm297_vm0, %v10282_v0 }
  0x25   : > { %348 = vst.msk [vmem:[#allocation2 + $0x190] sm:$0xff] %vm297_vm0, %v10282_v0  ;;  %349 = vst.msk [vmem:[#allocation2 + $0x198] sm:$0xff] %vm297_vm0, %v10282_v0 }
  0x26   : > { %350 = vst.msk [vmem:[#allocation2 + $0x1a0] sm:$0xff] %vm297_vm0, %v10282_v0  ;;  %351 = vst.msk [vmem:[#allocation2 + $0x1a8] sm:$0xff] %vm297_vm0, %v10282_v0 }
  0x27   : > { %352 = vst.msk [vmem:[#allocation2 + $0x1b0] sm:$0xff] %vm297_vm0, %v10282_v0  ;;  %353 = vst.msk [vmem:[#allocation2 + $0x1b8] sm:$0xff] %vm297_vm0, %v10282_v0 }
  0x28   : > { %354 = vst.msk [vmem:[#allocation2 + $0x1c0] sm:$0xff] %vm297_vm0, %v10282_v0  ;;  %355 = vst.msk [vmem:[#allocation2 + $0x1c8] sm:$0xff] %vm297_vm0, %v10282_v0 }
  0x29   : > { %356 = vst.msk [vmem:[#allocation2 + $0x1d0] sm:$0xff] %vm297_vm0, %v10282_v0  ;;  %357 = vst.msk [vmem:[#allocation2 + $0x1d8] sm:$0xff] %vm297_vm0, %v10282_v0 }
  0x2a   : > { %358 = vst.msk [vmem:[#allocation2 + $0x1e0] sm:$0xff] %vm297_vm0, %v10282_v0  ;;  %359 = vst.msk [vmem:[#allocation2 + $0x1e8] sm:$0xff] %vm297_vm0, %v10282_v0 }
  0x2b   : > { %360 = vst.msk [vmem:[#allocation2 + $0x1f0] sm:$0xff] %vm297_vm0, %v10282_v0  ;;  %361 = vst.msk [vmem:[#allocation2 + $0x1f8] sm:$0xff] %vm297_vm0, %v10282_v0 }
  0x2c   : > { %362 = vst.msk [vmem:[#allocation2 + $0x200] sm:$0xff] %vm297_vm0, %v10282_v0  ;;  %363 = vst.msk [vmem:[#allocation2 + $0x208] sm:$0xff] %vm297_vm0, %v10282_v0 }
  0x2d   : > { %364 = vst.msk [vmem:[#allocation2 + $0x210] sm:$0xff] %vm297_vm0, %v10282_v0  ;;  %365 = vst.msk [vmem:[#allocation2 + $0x218] sm:$0xff] %vm297_vm0, %v10282_v0 }
  0x2e   : > { %366 = vst.msk [vmem:[#allocation2 + $0x220] sm:$0xff] %vm297_vm0, %v10282_v0  ;;  %367 = vst.msk [vmem:[#allocation2 + $0x228] sm:$0xff] %vm297_vm0, %v10282_v0 }
  0x2f   : > { %368 = vst.msk [vmem:[#allocation2 + $0x230] sm:$0xff] %vm297_vm0, %v10282_v0  ;;  %369 = vst.msk [vmem:[#allocation2 + $0x238] sm:$0xff] %vm297_vm0, %v10282_v0 }
  0x30   : > { %370 = vst.msk [vmem:[#allocation2 + $0x240] sm:$0xff] %vm297_vm0, %v10282_v0  ;;  %371 = vst.msk [vmem:[#allocation2 + $0x248] sm:$0xff] %vm297_vm0, %v10282_v0 }
  0x31   : > { %372 = vst.msk [vmem:[#allocation2 + $0x250] sm:$0xff] %vm297_vm0, %v10282_v0  ;;  %373 = vst.msk [vmem:[#allocation2 + $0x258] sm:$0xff] %vm297_vm0, %v10282_v0 }
  0x32   : > { %374 = vst.msk [vmem:[#allocation2 + $0x260] sm:$0xff] %vm297_vm0, %v10282_v0  ;;  %375 = vst.msk [vmem:[#allocation2 + $0x268] sm:$0xff] %vm297_vm0, %v10282_v0 }
  0x33   : > { %376 = vst.msk [vmem:[#allocation2 + $0x270] sm:$0xff] %vm297_vm0, %v10282_v0  ;;  %377 = vst.msk [vmem:[#allocation2 + $0x278] sm:$0xff] %vm297_vm0, %v10282_v0 }
  0x34   : > { %378 = vst.msk [vmem:[#allocation2 + $0x280] sm:$0xff] %vm297_vm0, %v10282_v0  ;;  %379 = vst.msk [vmem:[#allocation2 + $0x288] sm:$0xff] %vm297_vm0, %v10282_v0 }
  0x35   : > { %380 = vst.msk [vmem:[#allocation2 + $0x290] sm:$0xff] %vm297_vm0, %v10282_v0  ;;  %381 = vst.msk [vmem:[#allocation2 + $0x298] sm:$0xff] %vm297_vm0, %v10282_v0 }
  0x36   : > { %382 = vst.msk [vmem:[#allocation2 + $0x2a0] sm:$0xff] %vm297_vm0, %v10282_v0  ;;  %383 = vst.msk [vmem:[#allocation2 + $0x2a8] sm:$0xff] %vm297_vm0, %v10282_v0 }
  0x37   : > { %384 = vst.msk [vmem:[#allocation2 + $0x2b0] sm:$0xff] %vm297_vm0, %v10282_v0  ;;  %385 = vst.msk [vmem:[#allocation2 + $0x2b8] sm:$0xff] %vm297_vm0, %v10282_v0 }
  0x38   : > { %386 = vst.msk [vmem:[#allocation2 + $0x2c0] sm:$0xff] %vm297_vm0, %v10282_v0  ;;  %387 = vst.msk [vmem:[#allocation2 + $0x2c8] sm:$0xff] %vm297_vm0, %v10282_v0 }
  0x39   : > { %388 = vst.msk [vmem:[#allocation2 + $0x2d0] sm:$0xff] %vm297_vm0, %v10282_v0  ;;  %389 = vst.msk [vmem:[#allocation2 + $0x2d8] sm:$0xff] %vm297_vm0, %v10282_v0 }
  0x3a   : > { %390 = vst.msk [vmem:[#allocation2 + $0x2e0] sm:$0xff] %vm297_vm0, %v10282_v0  ;;  %391 = vst.msk [vmem:[#allocation2 + $0x2e8] sm:$0xff] %vm297_vm0, %v10282_v0 }
  0x3b   : > { %392 = vst.msk [vmem:[#allocation2 + $0x2f0] sm:$0xff] %vm297_vm0, %v10282_v0  ;;  %393 = vst.msk [vmem:[#allocation2 + $0x2f8] sm:$0xff] %vm297_vm0, %v10282_v0 }
  0x3c   : > { %395 = vst.msk [vmem:[#allocation2 + $0x88] sm:$0xff] %vm297_vm0, %v265_v1  ;;  %397 = vst.msk [vmem:[#allocation2 + $0xa8] sm:$0xff] %vm297_vm0, %v267_v2 }
  0x3d   : > { %396 = vst.msk [vmem:[#allocation2 + $0x90] sm:$0xff] %vm297_vm0, %v266_v3  ;;  %399 = vst.msk [vmem:[#allocation2 + $0xc8] sm:$0xff] %vm297_vm0, %v269_v4 }
  0x3e   : > { %398 = vst.msk [vmem:[#allocation2 + $0xb0] sm:$0xff] %vm297_vm0, %v268_v5  ;;  %401 = vst.msk [vmem:[#allocation2 + $0xe8] sm:$0xff] %vm297_vm0, %v271_v6 }
  0x3f   : > { %400 = vst.msk [vmem:[#allocation2 + $0xd0] sm:$0xff] %vm297_vm0, %v270_v9  ;;  %403 = vst.msk [vmem:[#allocation2 + $0x108] sm:$0xff] %vm297_vm0, %v273_v10 }
  0x40   : > { %402 = vst.msk [vmem:[#allocation2 + $0xf0] sm:$0xff] %vm297_vm0, %v272_v11  ;;  %405 = vst.msk [vmem:[#allocation2 + $0x128] sm:$0xff] %vm297_vm0, %v275_v12 }
  0x41   : > { %404 = vst.msk [vmem:[#allocation2 + $0x110] sm:$0xff] %vm297_vm0, %v274_v13  ;;  %407 = vst.msk [vmem:[#allocation2 + $0x148] sm:$0xff] %vm297_vm0, %v277_v14 }
  0x42   : > { %406 = vst.msk [vmem:[#allocation2 + $0x130] sm:$0xff] %vm297_vm0, %v276_v15  ;;  %409 = vst.msk [vmem:[#allocation2 + $0x168] sm:$0xff] %vm297_vm0, %v279_v16 }
  0x43   : > { %408 = vst.msk [vmem:[#allocation2 + $0x150] sm:$0xff] %vm297_vm0, %v278_v17  ;;  %411 = vst.msk [vmem:[#allocation2 + $0x188] sm:$0xff] %vm297_vm0, %v281_v18  ;;  %v6843_v25 = vld [vmem:[#allocation2 + $0x88] sm:$0xff] }
  0x44   : > { %410 = vst.msk [vmem:[#allocation2 + $0x170] sm:$0xff] %vm297_vm0, %v280_v19  ;;  %413 = vst.msk [vmem:[#allocation2 + $0x1a8] sm:$0xff] %vm297_vm0, %v283_v20  ;;  %v6845_v26 = vld [vmem:[#allocation2 + $0xa8] sm:$0xff]  ;;  %560 = vrot.lane.b32.xlu1 %v6843_v25, %s6530_s28  ;;  %v6852_v27 = vld [vmem:[#allocation2 + $0x90] sm:$0xff] }
  0x45   : > { %412 = vst.msk [vmem:[#allocation2 + $0x190] sm:$0xff] %vm297_vm0, %v282_v21  ;;  %415 = vst.msk [vmem:[#allocation2 + $0x1c8] sm:$0xff] %vm297_vm0, %v285_v22  ;;  %564 = vrot.lane.b32.xlu0 %v6845_v26, %s6530_s28  ;;  %v6860_v30 = vld [vmem:[#allocation2 + $0xc8] sm:$0xff]  ;;  %v6864_v31 = vld [vmem:[#allocation2 + $0xb0] sm:$0xff] }
  0x46   : > { %414 = vst.msk [vmem:[#allocation2 + $0x1b0] sm:$0xff] %vm297_vm0, %v284_v23  ;;  %417 = vst.msk [vmem:[#allocation2 + $0x1e8] sm:$0xff] %vm297_vm0, %v287_v24  ;;  %v6868_v32 = vld [vmem:[#allocation2 + $0xe8] sm:$0xff]  ;;  %v6880_v38 = vld [vmem:[#allocation2 + $0xd0] sm:$0xff] }
  0x47   : > { %416 = vst.msk [vmem:[#allocation2 + $0x1d0] sm:$0xff] %vm297_vm0, %v286_v28  ;;  %419 = vst.msk [vmem:[#allocation2 + $0x208] sm:$0xff] %vm297_vm0, %v289_v29  ;;  %v6888_v40 = vld [vmem:[#allocation2 + $0x108] sm:$0xff]  ;;  %v6892_v41 = vld [vmem:[#allocation2 + $0xf0] sm:$0xff] }
  0x48   : > { %562 = vrot.lane.b32.xlu1 %v6852_v27, %s6530_s28  ;;  %418 = vst.msk [vmem:[#allocation2 + $0x1f0] sm:$0xff] %vm297_vm0, %v288_v33  ;;  %421 = vst.msk [vmem:[#allocation2 + $0x228] sm:$0xff] %vm297_vm0, %v291_v34  ;;  %v6896_v42 = vld [vmem:[#allocation2 + $0x128] sm:$0xff]  ;;  %v6900_v43 = vld [vmem:[#allocation2 + $0x110] sm:$0xff] }
  0x49   : > { %568 = vrot.lane.b32.xlu0 %v6860_v30, %s6530_s28  ;;  %420 = vst.msk [vmem:[#allocation2 + $0x210] sm:$0xff] %vm297_vm0, %v290_v35  ;;  %423 = vst.msk [vmem:[#allocation2 + $0x248] sm:$0xff] %vm297_vm0, %v293_v36  ;;  %v6904_v44 = vld [vmem:[#allocation2 + $0x148] sm:$0xff]  ;;  %v6909_v47 = vld [vmem:[#allocation2 + $0x130] sm:$0xff] }
  0x4a   : > { %422 = vst.msk [vmem:[#allocation2 + $0x230] sm:$0xff] %vm297_vm0, %v292_v37  ;;  %424 = vst.msk [vmem:[#allocation2 + $0x250] sm:$0xff] %vm297_vm0, %v294_v39  ;;  %v6912_v48 = vld [vmem:[#allocation2 + $0x87] sm:$0xff]  ;;  %v6924_v51 = vld [vmem:[#allocation2 + $0x8f] sm:$0xff] }
  0x4b   : > { %460 = vst.msk [vmem:[#allocation3] sm:$0xff] %vm297_vm0, %v428_v45  ;;  %461 = vst.msk [vmem:[#allocation3 + $0x10] sm:$0xff] %vm297_vm0, %v429_v46  ;;  %v6918_v49 = vld [vmem:[#allocation2 + $0xa7] sm:$0xff]  ;;  %v6930_v53 = vld [vmem:[#allocation2 + $0x150] sm:$0xff] }
  0x4c   : > { %566 = vrot.lane.b32.xlu1 %v6864_v31, %s6530_s28  ;;  %462 = vst.msk [vmem:[#allocation3 + $0x20] sm:$0xff] %vm297_vm0, %v6912_v48  ;;  %v6920_v50 = vld [vmem:[#allocation2 + $0x168] sm:$0xff]  ;;  %464 = vst.msk [vmem:[#allocation3 + $0x40] sm:$0xff] %vm297_vm0, %v6918_v49  ;;  %v6966_v63 = vld [vmem:[#allocation2 + $0x170] sm:$0xff] }
  0x4d   : > { %572 = vrot.lane.b32.xlu0 %v6868_v32, %s6530_s28  ;;  %v6926_v52 = vld [vmem:[#allocation2 + $0xc7] sm:$0xff]  ;;  %463 = vst.msk [vmem:[#allocation3 + $0x30] sm:$0xff] %vm297_vm0, %v6924_v51  ;;  %v6936_v54 = vld [vmem:[#allocation2 + $0xaf] sm:$0xff]  ;;  %v296_v37 = vld [vmem:[%s6798_s27 + $0xf8] sm:$0xff] }
  0x4e   : > { %466 = vst.msk [vmem:[#allocation3 + $0x60] sm:$0xff] %vm297_vm0, %v6926_v52  ;;  %v6938_v55 = vld [vmem:[#allocation2 + $0xe7] sm:$0xff]  ;;  %465 = vst.msk [vmem:[#allocation3 + $0x50] sm:$0xff] %vm297_vm0, %v6936_v54  ;;  %v6946_v57 = vld [vmem:[#allocation2 + $0xcf] sm:$0xff] }
  0x4f   : > { %v6940_v56 = vld [vmem:[#allocation2 + $0x188] sm:$0xff]  ;;  %468 = vst.msk [vmem:[#allocation3 + $0x80] sm:$0xff] %vm297_vm0, %v6938_v55  ;;  %467 = vst.msk [vmem:[#allocation3 + $0x70] sm:$0xff] %vm297_vm0, %v6946_v57  ;;  %v7030_v14 = vld [vmem:[#allocation2 + $0x190] sm:$0xff] }
  0x50   : > { %570 = vrot.lane.b32.xlu1 %v6880_v38, %s6530_s28  ;;  %v6948_v58 = vld [vmem:[#allocation2 + $0x107] sm:$0xff]  ;;  %v6950_v59 = vld [vmem:[#allocation2 + $0xef] sm:$0xff]  ;;  %426 = vst.msk [vmem:[#allocation2 + $0x270] sm:$0xff] %vm297_vm0, %v296_v37 }
  0x51   : > { %576 = vrot.lane.b32.xlu0 %v6888_v40, %s6530_s28  ;;  %470 = vst.msk [vmem:[#allocation3 + $0xa0] sm:$0xff] %vm297_vm0, %v6948_v58  ;;  %469 = vst.msk [vmem:[#allocation3 + $0x90] sm:$0xff] %vm297_vm0, %v6950_v59  ;;  %v6960_v60 = vld [vmem:[#allocation2 + $0x127] sm:$0xff]  ;;  %v6962_v61 = vld [vmem:[#allocation2 + $0x10f] sm:$0xff] }
  0x52   : > { %v6964_v62 = vld [vmem:[#allocation2 + $0x147] sm:$0xff]  ;;  %472 = vst.msk [vmem:[#allocation3 + $0xc0] sm:$0xff] %vm297_vm0, %v6960_v60  ;;  %471 = vst.msk [vmem:[#allocation3 + $0xb0] sm:$0xff] %vm297_vm0, %v6962_v61  ;;  %v6974_v1 = vld [vmem:[#allocation2 + $0x12f] sm:$0xff] }
  0x53   : > { %474 = vst.msk [vmem:[#allocation3 + $0xe0] sm:$0xff] %vm297_vm0, %v6964_v62  ;;  %v6976_v2 = vld [vmem:[#allocation2 + $0x167] sm:$0xff]  ;;  %v6978_v3 = vld [vmem:[#allocation2 + $0x14f] sm:$0xff]  ;;  %473 = vst.msk [vmem:[#allocation3 + $0xd0] sm:$0xff] %vm297_vm0, %v6974_v1 }
  0x54   : > { %574 = vrot.lane.b32.xlu1 %v6892_v41, %s6530_s28  ;;  %476 = vst.msk [vmem:[#allocation3 + $0x100] sm:$0xff] %vm297_vm0, %v6976_v2  ;;  %475 = vst.msk [vmem:[#allocation3 + $0xf0] sm:$0xff] %vm297_vm0, %v6978_v3  ;;  %v6988_v4 = vld [vmem:[#allocation2 + $0x187] sm:$0xff]  ;;  %v6990_v5 = vld [vmem:[#allocation2 + $0x16f] sm:$0xff] }
  0x55   : > { %580 = vrot.lane.b32.xlu0 %v6896_v42, %s6530_s28  ;;  %v6992_v6 = vld [vmem:[#allocation2 + $0x1a7] sm:$0xff]  ;;  %478 = vst.msk [vmem:[#allocation3 + $0x120] sm:$0xff] %vm297_vm0, %v6988_v4  ;;  %477 = vst.msk [vmem:[#allocation3 + $0x110] sm:$0xff] %vm297_vm0, %v6990_v5  ;;  %v7000_v7 = vld [vmem:[#allocation2 + $0x18f] sm:$0xff] }
  0x56   : > { %480 = vst.msk [vmem:[#allocation3 + $0x140] sm:$0xff] %vm297_vm0, %v6992_v6  ;;  %v7002_v8 = vld [vmem:[#allocation2 + $0x1c7] sm:$0xff]  ;;  %v7004_v9 = vld [vmem:[#allocation2 + $0x1af] sm:$0xff]  ;;  %479 = vst.msk [vmem:[#allocation3 + $0x130] sm:$0xff] %vm297_vm0, %v7000_v7 }
  0x57   : > { %482 = vst.msk [vmem:[#allocation3 + $0x160] sm:$0xff] %vm297_vm0, %v7002_v8  ;;  %481 = vst.msk [vmem:[#allocation3 + $0x150] sm:$0xff] %vm297_vm0, %v7004_v9  ;;  %v7014_v10 = vld [vmem:[#allocation2 + $0x1e7] sm:$0xff]  ;;  %v7016_v11 = vld [vmem:[#allocation2 + $0x1cf] sm:$0xff] }
  0x58   : > { %578 = vrot.lane.b32.xlu1 %v6900_v43, %s6530_s28  ;;  %v7018_v12 = vld [vmem:[#allocation2 + $0x1a8] sm:$0xff]  ;;  %484 = vst.msk [vmem:[#allocation3 + $0x180] sm:$0xff] %vm297_vm0, %v7014_v10  ;;  %483 = vst.msk [vmem:[#allocation3 + $0x170] sm:$0xff] %vm297_vm0, %v7016_v11  ;;  %v7046_v18 = vld [vmem:[#allocation2 + $0x1b0] sm:$0xff] }
  0x59   : > { %584 = vrot.lane.b32.xlu0 %v6904_v44, %s6530_s28  ;;  %v7024_v13 = vld [vmem:[#allocation2 + $0x207] sm:$0xff]  ;;  %v7032_v15 = vld [vmem:[#allocation2 + $0x1ef] sm:$0xff] }
  0x5a   : > { %486 = vst.msk [vmem:[#allocation3 + $0x1a0] sm:$0xff] %vm297_vm0, %v7024_v13  ;;  %485 = vst.msk [vmem:[#allocation3 + $0x190] sm:$0xff] %vm297_vm0, %v7032_v15  ;;  %v7038_v16 = vld [vmem:[#allocation2 + $0x1c8] sm:$0xff]  ;;  %v7062_v22 = vld [vmem:[#allocation2 + $0x1d0] sm:$0xff] }
  0x5b   : > { %v7040_v17 = vld [vmem:[#allocation2 + $0x227] sm:$0xff]  ;;  %v7048_v19 = vld [vmem:[#allocation2 + $0x20f] sm:$0xff] }
  0x5c   : > { %582 = vrot.lane.b32.xlu1 %v6909_v47, %s6530_s28  ;;  %488 = vst.msk [vmem:[#allocation3 + $0x1c0] sm:$0xff] %vm297_vm0, %v7040_v17  ;;  %487 = vst.msk [vmem:[#allocation3 + $0x1b0] sm:$0xff] %vm297_vm0, %v7048_v19  ;;  %v7054_v20 = vld [vmem:[#allocation2 + $0x1e8] sm:$0xff]  ;;  %v7074_v28 = vld [vmem:[#allocation2 + $0x1f0] sm:$0xff] }
  0x5d   : > { %588 = vrot.lane.b32.xlu0 %v6920_v50, %s6530_s28  ;;  %v7056_v21 = vld [vmem:[#allocation2 + $0x247] sm:$0xff]  ;;  %v7064_v23 = vld [vmem:[#allocation2 + $0x22f] sm:$0xff] }
  0x5e   : > { %490 = vst.msk [vmem:[#allocation3 + $0x1e0] sm:$0xff] %vm297_vm0, %v7056_v21  ;;  %489 = vst.msk [vmem:[#allocation3 + $0x1d0] sm:$0xff] %vm297_vm0, %v7064_v23  ;;  %v7070_v24 = vld [vmem:[#allocation2 + $0x208] sm:$0xff]  ;;  %v295_v33 = vld [vmem:[%s6798_s27 + $0xf0] sm:$0xff] }
  0x5f   : > { %v7076_v29 = vld [vmem:[#allocation2 + $0x24f] sm:$0xff]  ;;  %425 = vst.msk [vmem:[#allocation2 + $0x268] sm:$0xff] %vm297_vm0, %v295_v33 }
  0x60   : > { %586 = vrot.lane.b32.xlu1 %v6930_v53, %s6530_s28  ;;  %491 = vst.msk [vmem:[#allocation3 + $0x1f0] sm:$0xff] %vm297_vm0, %v7076_v29  ;;  %v7084_v34 = vld [vmem:[#allocation2 + $0x228] sm:$0xff]  ;;  %v7088_v35 = vld [vmem:[#allocation2 + $0x210] sm:$0xff] }
  0x61   : > { %592 = vrot.lane.b32.xlu0 %v6940_v56, %s6530_s28  ;;  %10315 = vst [vmem:[#allocation4_spill] sm:$0xff] %v7088_v35  ;;  %v7092_v36 = vld [vmem:[#allocation2 + $0x248] sm:$0xff]  ;;  %v7098_v39 = vld [vmem:[#allocation2 + $0x230] sm:$0xff] }
  0x62   : > { %10316 = vst [vmem:[#allocation5_spill] sm:$0xff] %v7092_v36  ;;  %10317 = vst [vmem:[#allocation6_spill] sm:$0xff] %v7098_v39  ;;  %v685_v45 = vld [vmem:[#allocation2 + $0x69] sm:$0xff]  ;;  %v686_v37 = vld [vmem:[#allocation2 + $0x71] sm:$0xff] }
  0x63   : > { %v7104_v46 = vld [vmem:[#allocation2 + $0x250] sm:$0xff] }
  0x64   : > { %590 = vrot.lane.b32.xlu1 %v6966_v63, %s6530_s28  ;;  %10318 = vst [vmem:[#allocation7_spill] sm:$0xff] %v7104_v46  ;;  %v7107_v33 = vld [vmem:[#allocation2 + $0x89] sm:$0xff] }
  0x65   : > { %596 = vrot.lane.b32.xlu0 %v7018_v12, %s6530_s28  ;;  %10319 = vst [vmem:[#allocation8_spill] sm:$0xff] %v7107_v33  ;;  %v7113_v0 = vld [vmem:[#allocation2 + $0xa9] sm:$0xff] }
  0x66   : > { %10320 = vst [vmem:[#allocation9_spill] sm:$0xff] %v7113_v0 }
  0x68   : > { %594 = vrot.lane.b32.xlu1 %v7030_v14, %s6530_s28 }
  0x69   : > { %600 = vrot.lane.b32.xlu0 %v7038_v16, %s6530_s28 }
  0x6c   : > { %598 = vrot.lane.b32.xlu1 %v7046_v18, %s6530_s28 }
  0x6d   : > { %604 = vrot.lane.b32.xlu0 %v7054_v20, %s6530_s28 }
  0x70   : > { %602 = vrot.lane.b32.xlu1 %v7062_v22, %s6530_s28 }
  0x71   : > { %608 = vrot.lane.b32.xlu0 %v7070_v24, %s6530_s28 }
  0x74   : > { %606 = vrot.lane.b32.xlu1 %v7074_v28, %s6530_s28 }
  0x75   : > { %612 = vrot.lane.b32.xlu0 %v7084_v34, %s6530_s28 }
  0x78   : > { %610 = vrot.lane.b32.xlu1 %v7088_v35, %s6530_s28 }
  0x79   : > { %616 = vrot.lane.b32.xlu0 %v7092_v36, %s6530_s28  ;;  %v7116_v36 = vld [vmem:[#allocation2 + $0x91] sm:$0xff] }
  0x7a   : > { %10321 = vst [vmem:[#allocation10_spill] sm:$0xff] %v7116_v36 }
  0x7c   : > { %614 = vrot.lane.b32.xlu1 %v7098_v39, %s6530_s28  ;;  %v7120_v39 = vld [vmem:[#allocation2 + $0xc9] sm:$0xff] }
  0x7d   : > { %749 = vrot.lane.b32.xlu0 %v685_v45, %s6531_s29  ;;  %10322 = vst [vmem:[#allocation11_spill] sm:$0xff] %v7120_v39  ;;  %v7124_v45 = vld [vmem:[#allocation2 + $0xb1] sm:$0xff] }
  0x7e   : > { %10323 = vst [vmem:[#allocation12_spill] sm:$0xff] %v7124_v45 }
  0x80   : > { %618 = vrot.lane.b32.xlu1 %v7104_v46, %s6530_s28 }
  0x81   : > { %753 = vrot.lane.b32.xlu0 %v7107_v33, %s6531_s29  ;;  %v7128_v33 = vld [vmem:[#allocation2 + $0xe9] sm:$0xff] }
  0x82   : > { %10324 = vst [vmem:[#allocation13_spill] sm:$0xff] %v7128_v33 }
  0x84   : > { %751 = vrot.lane.b32.xlu1 %v686_v37, %s6531_s29  ;;  %v7132_v37 = vld [vmem:[#allocation2 + $0xd1] sm:$0xff] }
  0x85   : > { %757 = vrot.lane.b32.xlu0 %v7113_v0, %s6531_s29  ;;  %10325 = vst [vmem:[#allocation14_spill] sm:$0xff] %v7132_v37  ;;  %v7136_v0 = vld [vmem:[#allocation2 + $0x109] sm:$0xff] }
  0x86   : > { %10326 = vst [vmem:[#allocation15_spill] sm:$0xff] %v7136_v0  ;;  %v557_v46 = vpop.permute.xlu0 %556 }
  0x87   : > { %653 = vst.msk [vmem:[#allocation3] sm:$0xff] %vm652_vm1, %v557_v46  ;;  %v7219_v46 = vld [vmem:[#allocation2 + $0x249] sm:$0xff] }
  0x88   : > { %755 = vrot.lane.b32.xlu1 %v7116_v36, %s6531_s29  ;;  %v7140_v36 = vld [vmem:[#allocation2 + $0xf1] sm:$0xff] }
  0x89   : > { %761 = vrot.lane.b32.xlu0 %v7120_v39, %s6531_s29  ;;  %10327 = vst [vmem:[#allocation16_spill] sm:$0xff] %v7140_v36  ;;  %v7144_v39 = vld [vmem:[#allocation2 + $0x129] sm:$0xff] }
  0x8a   : > { %10328 = vst [vmem:[#allocation17_spill] sm:$0xff] %v7144_v39 }
  0x8c   : > { %759 = vrot.lane.b32.xlu1 %v7124_v45, %s6531_s29  ;;  %v7148_v45 = vld [vmem:[#allocation2 + $0x111] sm:$0xff] }
  0x8d   : > { %765 = vrot.lane.b32.xlu0 %v7128_v33, %s6531_s29  ;;  %10329 = vst [vmem:[#allocation18_spill] sm:$0xff] %v7148_v45  ;;  %v7152_v33 = vld [vmem:[#allocation2 + $0x149] sm:$0xff] }
  0x8e   : > { %10330 = vst [vmem:[#allocation19_spill] sm:$0xff] %v7152_v33 }
  0x90   : > { %763 = vrot.lane.b32.xlu1 %v7132_v37, %s6531_s29  ;;  %v7156_v37 = vld [vmem:[#allocation2 + $0x131] sm:$0xff] }
  0x91   : > { %769 = vrot.lane.b32.xlu0 %v7136_v0, %s6531_s29  ;;  %10331 = vst [vmem:[#allocation20_spill] sm:$0xff] %v7156_v37  ;;  %v7160_v0 = vld [vmem:[#allocation2 + $0x169] sm:$0xff] }
  0x92   : > { %10332 = vst [vmem:[#allocation21_spill] sm:$0xff] %v7160_v0 }
  0x94   : > { %767 = vrot.lane.b32.xlu1 %v7140_v36, %s6531_s29  ;;  %v7164_v36 = vld [vmem:[#allocation2 + $0x151] sm:$0xff] }
  0x95   : > { %773 = vrot.lane.b32.xlu0 %v7144_v39, %s6531_s29  ;;  %10333 = vst [vmem:[#allocation22_spill] sm:$0xff] %v7164_v36  ;;  %v7168_v39 = vld [vmem:[#allocation2 + $0x189] sm:$0xff] }
  0x96   : > { %10334 = vst [vmem:[#allocation23_spill] sm:$0xff] %v7168_v39 }
  0x98   : > { %771 = vrot.lane.b32.xlu1 %v7148_v45, %s6531_s29  ;;  %v7172_v45 = vld [vmem:[#allocation2 + $0x171] sm:$0xff] }
  0x99   : > { %777 = vrot.lane.b32.xlu0 %v7152_v33, %s6531_s29  ;;  %10335 = vst [vmem:[#allocation24_spill] sm:$0xff] %v7172_v45  ;;  %v7176_v33 = vld [vmem:[#allocation2 + $0x1a9] sm:$0xff] }
  0x9a   : > { %10336 = vst [vmem:[#allocation25_spill] sm:$0xff] %v7176_v33 }
  0x9c   : > { %775 = vrot.lane.b32.xlu1 %v7156_v37, %s6531_s29  ;;  %v7180_v37 = vld [vmem:[#allocation2 + $0x191] sm:$0xff] }
  0x9d   : > { %781 = vrot.lane.b32.xlu0 %v7160_v0, %s6531_s29  ;;  %10337 = vst [vmem:[#allocation26_spill] sm:$0xff] %v7180_v37  ;;  %v7184_v0 = vld [vmem:[#allocation2 + $0x1c9] sm:$0xff] }
  0x9e   : > { %10338 = vst [vmem:[#allocation27_spill] sm:$0xff] %v7184_v0 }
  0xa0   : > { %779 = vrot.lane.b32.xlu1 %v7164_v36, %s6531_s29  ;;  %v7188_v36 = vld [vmem:[#allocation2 + $0x1b1] sm:$0xff] }
  0xa1   : > { %785 = vrot.lane.b32.xlu0 %v7168_v39, %s6531_s29  ;;  %10339 = vst [vmem:[#allocation28_spill] sm:$0xff] %v7188_v36  ;;  %v7192_v39 = vld [vmem:[#allocation2 + $0x1e9] sm:$0xff] }
  0xa2   : > { %10340 = vst [vmem:[#allocation29_spill] sm:$0xff] %v7192_v39 }
  0xa4   : > { %783 = vrot.lane.b32.xlu1 %v7172_v45, %s6531_s29  ;;  %v7196_v45 = vld [vmem:[#allocation2 + $0x1d1] sm:$0xff] }
  0xa5   : > { %789 = vrot.lane.b32.xlu0 %v7176_v33, %s6531_s29  ;;  %10341 = vst [vmem:[#allocation30_spill] sm:$0xff] %v7196_v45  ;;  %v7200_v33 = vld [vmem:[#allocation2 + $0x209] sm:$0xff] }
  0xa6   : > { %10342 = vst [vmem:[#allocation31_spill] sm:$0xff] %v7200_v33 }
  0xa8   : > { %787 = vrot.lane.b32.xlu1 %v7180_v37, %s6531_s29  ;;  %v559_v37 = vpop.permute.xlu0 %558 }
  0xa9   : > { %793 = vrot.lane.b32.xlu0 %v7184_v0, %s6531_s29  ;;  %v7205_v0 = vld [vmem:[#allocation2 + $0x1f1] sm:$0xff]  ;;  %654 = vst.msk [vmem:[#allocation3 + $0x10] sm:$0xff] %vm652_vm1, %v559_v37 }
  0xac   : > { %791 = vrot.lane.b32.xlu1 %v7188_v36, %s6531_s29  ;;  %v7209_v36 = vld [vmem:[#allocation2 + $0x229] sm:$0xff] }
  0xad   : > { %797 = vrot.lane.b32.xlu0 %v7192_v39, %s6531_s29  ;;  %10343 = vst [vmem:[#allocation32_spill] sm:$0xff] %v7209_v36  ;;  %v7214_v39 = vld [vmem:[#allocation2 + $0x211] sm:$0xff] }
  0xae   : > { %10344 = vst [vmem:[#allocation33_spill] sm:$0xff] %v7214_v39 }
  0xb0   : > { %795 = vrot.lane.b32.xlu1 %v7196_v45, %s6531_s29 }
  0xb1   : > { %801 = vrot.lane.b32.xlu0 %v7200_v33, %s6531_s29  ;;  %v7224_v33 = vld [vmem:[#allocation2 + $0x231] sm:$0xff] }
  0xb4   : > { %799 = vrot.lane.b32.xlu1 %v7205_v0, %s6531_s29 }
  0xb5   : > { %805 = vrot.lane.b32.xlu0 %v7209_v36, %s6531_s29 }
  0xb6   : > { %v561_v45 = vpop.permute.xlu1 %560 }
  0xb7   : > { %655 = vst.msk [vmem:[#allocation3 + $0x20] sm:$0xff] %vm652_vm1, %v561_v45  ;;  %v565_v35 = vpop.permute.xlu0 %564  ;;  %v7232_v45 = vld [vmem:[#allocation2 + $0x251] sm:$0xff] }
  0xb8   : > { %803 = vrot.lane.b32.xlu1 %v7214_v39, %s6531_s29  ;;  %657 = vst.msk [vmem:[#allocation3 + $0x40] sm:$0xff] %vm652_vm1, %v565_v35 }
  0xb9   : > { %809 = vrot.lane.b32.xlu0 %v7219_v46, %s6531_s29 }
  0xba   : > { %v563_v37 = vpop.permute.xlu1 %562 }
  0xbb   : > { %656 = vst.msk [vmem:[#allocation3 + $0x30] sm:$0xff] %vm652_vm1, %v563_v37  ;;  %v569_v36 = vpop.permute.xlu0 %568 }
  0xbc   : > { %807 = vrot.lane.b32.xlu1 %v7224_v33, %s6531_s29  ;;  %659 = vst.msk [vmem:[#allocation3 + $0x60] sm:$0xff] %vm652_vm1, %v569_v36 }
  0xbd   : > { %942 = vrot.lane.b32.xlu0 %v6912_v48, %s6532_s30 }
  0xbe   : > { %v567_v35 = vpop.permute.xlu1 %566 }
  0xbf   : > { %658 = vst.msk [vmem:[#allocation3 + $0x50] sm:$0xff] %vm652_vm1, %v567_v35  ;;  %v573_v39 = vpop.permute.xlu0 %572 }
  0xc0   : > { %811 = vrot.lane.b32.xlu1 %v7232_v45, %s6531_s29  ;;  %661 = vst.msk [vmem:[#allocation3 + $0x80] sm:$0xff] %vm652_vm1, %v573_v39 }
  0xc1   : > { %946 = vrot.lane.b32.xlu0 %v6918_v49, %s6532_s30 }
  0xc2   : > { %v571_v37 = vpop.permute.xlu1 %570 }
  0xc3   : > { %660 = vst.msk [vmem:[#allocation3 + $0x70] sm:$0xff] %vm652_vm1, %v571_v37  ;;  %v577_v36 = vpop.permute.xlu0 %576 }
  0xc4   : > { %944 = vrot.lane.b32.xlu1 %v6924_v51, %s6532_s30  ;;  %663 = vst.msk [vmem:[#allocation3 + $0xa0] sm:$0xff] %vm652_vm1, %v577_v36 }
  0xc5   : > { %950 = vrot.lane.b32.xlu0 %v6926_v52, %s6532_s30 }
  0xc6   : > { %v575_v48 = vpop.permute.xlu1 %574 }
  0xc7   : > { %662 = vst.msk [vmem:[#allocation3 + $0x90] sm:$0xff] %vm652_vm1, %v575_v48  ;;  %v581_v35 = vpop.permute.xlu0 %580 }
  0xc8   : > { %948 = vrot.lane.b32.xlu1 %v6936_v54, %s6532_s30  ;;  %665 = vst.msk [vmem:[#allocation3 + $0xc0] sm:$0xff] %vm652_vm1, %v581_v35 }
  0xc9   : > { %954 = vrot.lane.b32.xlu0 %v6938_v55, %s6532_s30 }
  0xca   : > { %v579_v39 = vpop.permute.xlu1 %578 }
  0xcb   : > { %664 = vst.msk [vmem:[#allocation3 + $0xb0] sm:$0xff] %vm652_vm1, %v579_v39  ;;  %v585_v51 = vpop.permute.xlu0 %584 }
  0xcc   : > { %952 = vrot.lane.b32.xlu1 %v6946_v57, %s6532_s30  ;;  %667 = vst.msk [vmem:[#allocation3 + $0xe0] sm:$0xff] %vm652_vm1, %v585_v51 }
  0xcd   : > { %958 = vrot.lane.b32.xlu0 %v6948_v58, %s6532_s30 }
  0xce   : > { %v583_v37 = vpop.permute.xlu1 %582 }
  0xcf   : > { %666 = vst.msk [vmem:[#allocation3 + $0xd0] sm:$0xff] %vm652_vm1, %v583_v37  ;;  %v589_v36 = vpop.permute.xlu0 %588 }
  0xd0   : > { %956 = vrot.lane.b32.xlu1 %v6950_v59, %s6532_s30  ;;  %669 = vst.msk [vmem:[#allocation3 + $0x100] sm:$0xff] %vm652_vm1, %v589_v36 }
  0xd1   : > { %962 = vrot.lane.b32.xlu0 %v6960_v60, %s6532_s30 }
  0xd2   : > { %v587_v48 = vpop.permute.xlu1 %586 }
  0xd3   : > { %668 = vst.msk [vmem:[#allocation3 + $0xf0] sm:$0xff] %vm652_vm1, %v587_v48  ;;  %v593_v35 = vpop.permute.xlu0 %592 }
  0xd4   : > { %960 = vrot.lane.b32.xlu1 %v6962_v61, %s6532_s30  ;;  %671 = vst.msk [vmem:[#allocation3 + $0x120] sm:$0xff] %vm652_vm1, %v593_v35 }
  0xd5   : > { %966 = vrot.lane.b32.xlu0 %v6964_v62, %s6532_s30 }
  0xd6   : > { %v591_v39 = vpop.permute.xlu1 %590 }
  0xd7   : > { %670 = vst.msk [vmem:[#allocation3 + $0x110] sm:$0xff] %vm652_vm1, %v591_v39  ;;  %v597_v51 = vpop.permute.xlu0 %596 }
  0xd8   : > { %964 = vrot.lane.b32.xlu1 %v6974_v1, %s6532_s30  ;;  %673 = vst.msk [vmem:[#allocation3 + $0x140] sm:$0xff] %vm652_vm1, %v597_v51 }
  0xd9   : > { %970 = vrot.lane.b32.xlu0 %v6976_v2, %s6532_s30 }
  0xda   : > { %v595_v37 = vpop.permute.xlu1 %594 }
  0xdb   : > { %672 = vst.msk [vmem:[#allocation3 + $0x130] sm:$0xff] %vm652_vm1, %v595_v37  ;;  %v601_v36 = vpop.permute.xlu0 %600 }
  0xdc   : > { %968 = vrot.lane.b32.xlu1 %v6978_v3, %s6532_s30  ;;  %675 = vst.msk [vmem:[#allocation3 + $0x160] sm:$0xff] %vm652_vm1, %v601_v36 }
  0xdd   : > { %974 = vrot.lane.b32.xlu0 %v6988_v4, %s6532_s30 }
  0xde   : > { %v599_v48 = vpop.permute.xlu1 %598 }
  0xdf   : > { %674 = vst.msk [vmem:[#allocation3 + $0x150] sm:$0xff] %vm652_vm1, %v599_v48  ;;  %v605_v35 = vpop.permute.xlu0 %604 }
  0xe0   : > { %972 = vrot.lane.b32.xlu1 %v6990_v5, %s6532_s30  ;;  %677 = vst.msk [vmem:[#allocation3 + $0x180] sm:$0xff] %vm652_vm1, %v605_v35 }
  0xe1   : > { %978 = vrot.lane.b32.xlu0 %v6992_v6, %s6532_s30 }
  0xe2   : > { %v603_v39 = vpop.permute.xlu1 %602 }
  0xe3   : > { %676 = vst.msk [vmem:[#allocation3 + $0x170] sm:$0xff] %vm652_vm1, %v603_v39  ;;  %v609_v51 = vpop.permute.xlu0 %608 }
  0xe4   : > { %976 = vrot.lane.b32.xlu1 %v7000_v7, %s6532_s30  ;;  %679 = vst.msk [vmem:[#allocation3 + $0x1a0] sm:$0xff] %vm652_vm1, %v609_v51 }
  0xe5   : > { %982 = vrot.lane.b32.xlu0 %v7002_v8, %s6532_s30 }
  0xe6   : > { %v607_v37 = vpop.permute.xlu1 %606 }
  0xe7   : > { %678 = vst.msk [vmem:[#allocation3 + $0x190] sm:$0xff] %vm652_vm1, %v607_v37  ;;  %v613_v36 = vpop.permute.xlu0 %612 }
  0xe8   : > { %980 = vrot.lane.b32.xlu1 %v7004_v9, %s6532_s30  ;;  %681 = vst.msk [vmem:[#allocation3 + $0x1c0] sm:$0xff] %vm652_vm1, %v613_v36 }
  0xe9   : > { %986 = vrot.lane.b32.xlu0 %v7014_v10, %s6532_s30 }
  0xea   : > { %v611_v48 = vpop.permute.xlu1 %610 }
  0xeb   : > { %680 = vst.msk [vmem:[#allocation3 + $0x1b0] sm:$0xff] %vm652_vm1, %v611_v48  ;;  %v617_v35 = vpop.permute.xlu0 %616 }
  0xec   : > { %984 = vrot.lane.b32.xlu1 %v7016_v11, %s6532_s30  ;;  %683 = vst.msk [vmem:[#allocation3 + $0x1e0] sm:$0xff] %vm652_vm1, %v617_v35  ;;  %v7321_v35 = vld [vmem:[#allocation2 + $0x267] sm:$0xff] }
  0xed   : > { %990 = vrot.lane.b32.xlu0 %v7024_v13, %s6532_s30 }
  0xee   : > { %v615_v39 = vpop.permute.xlu1 %614 }
  0xef   : > { %682 = vst.msk [vmem:[#allocation3 + $0x1d0] sm:$0xff] %vm652_vm1, %v615_v39  ;;  %v750_v51 = vpop.permute.xlu0 %749 }
  0xf0   : > { %988 = vrot.lane.b32.xlu1 %v7032_v15, %s6532_s30  ;;  %846 = vst.msk [vmem:[#allocation3] sm:$0xff] %vm845_vm2, %v750_v51 }
  0xf1   : > { %994 = vrot.lane.b32.xlu0 %v7040_v17, %s6532_s30 }
  0xf2   : > { %v619_v37 = vpop.permute.xlu1 %618 }
  0xf3   : > { %684 = vst.msk [vmem:[#allocation3 + $0x1f0] sm:$0xff] %vm652_vm1, %v619_v37  ;;  %v754_v36 = vpop.permute.xlu0 %753 }
  0xf4   : > { %992 = vrot.lane.b32.xlu1 %v7048_v19, %s6532_s30  ;;  %848 = vst.msk [vmem:[#allocation3 + $0x20] sm:$0xff] %vm845_vm2, %v754_v36  ;;  %v7332_v36 = vld [vmem:[#allocation2 + $0x26f] sm:$0xff] }
  0xf5   : > { %998 = vrot.lane.b32.xlu0 %v7056_v21, %s6532_s30 }
  0xf6   : > { %v752_v48 = vpop.permute.xlu1 %751 }
  0xf7   : > { %847 = vst.msk [vmem:[#allocation3 + $0x10] sm:$0xff] %vm845_vm2, %v752_v48  ;;  %v758_v39 = vpop.permute.xlu0 %757 }
  0xf8   : > { %996 = vrot.lane.b32.xlu1 %v7064_v23, %s6532_s30  ;;  %850 = vst.msk [vmem:[#allocation3 + $0x40] sm:$0xff] %vm845_vm2, %v758_v39 }
  0xf9   : > { %1002 = vrot.lane.b32.xlu0 %v7321_v35, %s6532_s30 }
  0xfa   : > { %v756_v51 = vpop.permute.xlu1 %755 }
  0xfb   : > { %849 = vst.msk [vmem:[#allocation3 + $0x30] sm:$0xff] %vm845_vm2, %v756_v51  ;;  %v762_v37 = vpop.permute.xlu0 %761 }
  0xfc   : > { %1000 = vrot.lane.b32.xlu1 %v7076_v29, %s6532_s30  ;;  %852 = vst.msk [vmem:[#allocation3 + $0x60] sm:$0xff] %vm845_vm2, %v762_v37 }
  0xfd   : > { %1135 = vrot.lane.b32.xlu0 %v6843_v25, %s6533_s7 }
  0xfe   : > { %v760_v48 = vpop.permute.xlu1 %759 }
  0xff   : > { %851 = vst.msk [vmem:[#allocation3 + $0x50] sm:$0xff] %vm845_vm2, %v760_v48  ;;  %v766_v39 = vpop.permute.xlu0 %765 }
 0x100   : > { %1004 = vrot.lane.b32.xlu1 %v7332_v36, %s6532_s30  ;;  %854 = vst.msk [vmem:[#allocation3 + $0x80] sm:$0xff] %vm845_vm2, %v766_v39  ;;  %v10345_v39 = vld [vmem:[#allocation4_spill] sm:$0xff] }
 0x101   : > { %1139 = vrot.lane.b32.xlu0 %v6845_v26, %s6533_s7 }
 0x102   : > { %v764_v51 = vpop.permute.xlu1 %763 }
 0x103   : > { %853 = vst.msk [vmem:[#allocation3 + $0x70] sm:$0xff] %vm845_vm2, %v764_v51  ;;  %v770_v37 = vpop.permute.xlu0 %769 }
 0x104   : > { %1137 = vrot.lane.b32.xlu1 %v6852_v27, %s6533_s7  ;;  %856 = vst.msk [vmem:[#allocation3 + $0xa0] sm:$0xff] %vm845_vm2, %v770_v37 }
 0x105   : > { %1143 = vrot.lane.b32.xlu0 %v6860_v30, %s6533_s7 }
 0x106   : > { %v768_v25 = vpop.permute.xlu1 %767 }
 0x107   : > { %855 = vst.msk [vmem:[#allocation3 + $0x90] sm:$0xff] %vm845_vm2, %v768_v25  ;;  %v774_v48 = vpop.permute.xlu0 %773 }
 0x108   : > { %1141 = vrot.lane.b32.xlu1 %v6864_v31, %s6533_s7  ;;  %858 = vst.msk [vmem:[#allocation3 + $0xc0] sm:$0xff] %vm845_vm2, %v774_v48 }
 0x109   : > { %1147 = vrot.lane.b32.xlu0 %v6868_v32, %s6533_s7 }
 0x10a   : > { %v772_v26 = vpop.permute.xlu1 %771 }
 0x10b   : > { %857 = vst.msk [vmem:[#allocation3 + $0xb0] sm:$0xff] %vm845_vm2, %v772_v26  ;;  %v778_v27 = vpop.permute.xlu0 %777  ;;  %v10348_v26 = vld [vmem:[#allocation7_spill] sm:$0xff] }
 0x10c   : > { %1145 = vrot.lane.b32.xlu1 %v6880_v38, %s6533_s7  ;;  %860 = vst.msk [vmem:[#allocation3 + $0xe0] sm:$0xff] %vm845_vm2, %v778_v27  ;;  %v7432_v27 = vld [vmem:[#allocation2 + $0x270] sm:$0xff] }
 0x10d   : > { %1151 = vrot.lane.b32.xlu0 %v6888_v40, %s6533_s7 }
 0x10e   : > { %v776_v30 = vpop.permute.xlu1 %775 }
 0x10f   : > { %859 = vst.msk [vmem:[#allocation3 + $0xd0] sm:$0xff] %vm845_vm2, %v776_v30  ;;  %v782_v31 = vpop.permute.xlu0 %781  ;;  %v10349_v30 = vld [vmem:[#allocation8_spill] sm:$0xff] }
 0x110   : > { %1149 = vrot.lane.b32.xlu1 %v6892_v41, %s6533_s7  ;;  %862 = vst.msk [vmem:[#allocation3 + $0x100] sm:$0xff] %vm845_vm2, %v782_v31 }
 0x111   : > { %1155 = vrot.lane.b32.xlu0 %v6896_v42, %s6533_s7 }
 0x112   : > { %v780_v32 = vpop.permute.xlu1 %779 }
 0x113   : > { %861 = vst.msk [vmem:[#allocation3 + $0xf0] sm:$0xff] %vm845_vm2, %v780_v32  ;;  %v786_v38 = vpop.permute.xlu0 %785 }
 0x114   : > { %1153 = vrot.lane.b32.xlu1 %v6900_v43, %s6533_s7  ;;  %864 = vst.msk [vmem:[#allocation3 + $0x120] sm:$0xff] %vm845_vm2, %v786_v38  ;;  %v10350_v38 = vld [vmem:[#allocation9_spill] sm:$0xff] }
 0x115   : > { %1159 = vrot.lane.b32.xlu0 %v6904_v44, %s6533_s7 }
 0x116   : > { %v784_v40 = vpop.permute.xlu1 %783 }
 0x117   : > { %863 = vst.msk [vmem:[#allocation3 + $0x110] sm:$0xff] %vm845_vm2, %v784_v40  ;;  %v790_v41 = vpop.permute.xlu0 %789 }
 0x118   : > { %1157 = vrot.lane.b32.xlu1 %v6909_v47, %s6533_s7  ;;  %866 = vst.msk [vmem:[#allocation3 + $0x140] sm:$0xff] %vm845_vm2, %v790_v41 }
 0x119   : > { %1163 = vrot.lane.b32.xlu0 %v6920_v50, %s6533_s7 }
 0x11a   : > { %v788_v42 = vpop.permute.xlu1 %787 }
 0x11b   : > { %865 = vst.msk [vmem:[#allocation3 + $0x130] sm:$0xff] %vm845_vm2, %v788_v42  ;;  %v794_v43 = vpop.permute.xlu0 %793  ;;  %v10351_v42 = vld [vmem:[#allocation10_spill] sm:$0xff] }
 0x11c   : > { %1161 = vrot.lane.b32.xlu1 %v6930_v53, %s6533_s7  ;;  %868 = vst.msk [vmem:[#allocation3 + $0x160] sm:$0xff] %vm845_vm2, %v794_v43  ;;  %v10352_v43 = vld [vmem:[#allocation11_spill] sm:$0xff] }
 0x11d   : > { %1167 = vrot.lane.b32.xlu0 %v6940_v56, %s6533_s7 }
 0x11e   : > { %v792_v44 = vpop.permute.xlu1 %791 }
 0x11f   : > { %867 = vst.msk [vmem:[#allocation3 + $0x150] sm:$0xff] %vm845_vm2, %v792_v44  ;;  %v798_v47 = vpop.permute.xlu0 %797 }
 0x120   : > { %1165 = vrot.lane.b32.xlu1 %v6966_v63, %s6533_s7  ;;  %870 = vst.msk [vmem:[#allocation3 + $0x180] sm:$0xff] %vm845_vm2, %v798_v47 }
 0x121   : > { %1171 = vrot.lane.b32.xlu0 %v7018_v12, %s6533_s7 }
 0x122   : > { %v796_v50 = vpop.permute.xlu1 %795 }
 0x123   : > { %869 = vst.msk [vmem:[#allocation3 + $0x170] sm:$0xff] %vm845_vm2, %v796_v50  ;;  %v802_v53 = vpop.permute.xlu0 %801  ;;  %v10353_v50 = vld [vmem:[#allocation12_spill] sm:$0xff] }
 0x124   : > { %1169 = vrot.lane.b32.xlu1 %v7030_v14, %s6533_s7  ;;  %872 = vst.msk [vmem:[#allocation3 + $0x1a0] sm:$0xff] %vm845_vm2, %v802_v53  ;;  %v10354_v53 = vld [vmem:[#allocation13_spill] sm:$0xff] }
 0x125   : > { %1175 = vrot.lane.b32.xlu0 %v7038_v16, %s6533_s7 }
 0x126   : > { %v800_v56 = vpop.permute.xlu1 %799 }
 0x127   : > { %871 = vst.msk [vmem:[#allocation3 + $0x190] sm:$0xff] %vm845_vm2, %v800_v56  ;;  %v806_v63 = vpop.permute.xlu0 %805 }
 0x128   : > { %1173 = vrot.lane.b32.xlu1 %v7046_v18, %s6533_s7  ;;  %874 = vst.msk [vmem:[#allocation3 + $0x1c0] sm:$0xff] %vm845_vm2, %v806_v63 }
 0x129   : > { %1179 = vrot.lane.b32.xlu0 %v7054_v20, %s6533_s7 }
 0x12a   : > { %v804_v12 = vpop.permute.xlu1 %803 }
 0x12b   : > { %873 = vst.msk [vmem:[#allocation3 + $0x1b0] sm:$0xff] %vm845_vm2, %v804_v12  ;;  %v810_v14 = vpop.permute.xlu0 %809  ;;  %v10355_v12 = vld [vmem:[#allocation14_spill] sm:$0xff] }
 0x12c   : > { %1177 = vrot.lane.b32.xlu1 %v7062_v22, %s6533_s7  ;;  %876 = vst.msk [vmem:[#allocation3 + $0x1e0] sm:$0xff] %vm845_vm2, %v810_v14  ;;  %v10356_v14 = vld [vmem:[#allocation15_spill] sm:$0xff] }
 0x12d   : > { %1183 = vrot.lane.b32.xlu0 %v7070_v24, %s6533_s7  ;;  %v10346_v24 = vld [vmem:[#allocation5_spill] sm:$0xff] }
 0x12e   : > { %v808_v16 = vpop.permute.xlu1 %807 }
 0x12f   : > { %875 = vst.msk [vmem:[#allocation3 + $0x1d0] sm:$0xff] %vm845_vm2, %v808_v16  ;;  %v943_v18 = vpop.permute.xlu0 %942 }
 0x130   : > { %1181 = vrot.lane.b32.xlu1 %v7074_v28, %s6533_s7  ;;  %1039 = vst.msk [vmem:[#allocation3] sm:$0xff] %vm1038_vm3, %v943_v18  ;;  %v7421_v28 = vld [vmem:[#allocation2 + $0x268] sm:$0xff] }
 0x131   : > { %1187 = vrot.lane.b32.xlu0 %v7084_v34, %s6533_s7  ;;  %v10347_v34 = vld [vmem:[#allocation6_spill] sm:$0xff] }
 0x132   : > { %v812_v20 = vpop.permute.xlu1 %811 }
 0x133   : > { %877 = vst.msk [vmem:[#allocation3 + $0x1f0] sm:$0xff] %vm845_vm2, %v812_v20  ;;  %v947_v22 = vpop.permute.xlu0 %946  ;;  %v10357_v20 = vld [vmem:[#allocation16_spill] sm:$0xff] }
 0x134   : > { %1185 = vrot.lane.b32.xlu1 %v10345_v39, %s6533_s7  ;;  %1041 = vst.msk [vmem:[#allocation3 + $0x20] sm:$0xff] %vm1038_vm3, %v947_v22  ;;  %v10358_v22 = vld [vmem:[#allocation17_spill] sm:$0xff] }
 0x135   : > { %1191 = vrot.lane.b32.xlu0 %v10346_v24, %s6533_s7 }
 0x136   : > { %v945_v51 = vpop.permute.xlu1 %944 }
 0x137   : > { %1040 = vst.msk [vmem:[#allocation3 + $0x10] sm:$0xff] %vm1038_vm3, %v945_v51  ;;  %v951_v37 = vpop.permute.xlu0 %950  ;;  %v10359_v51 = vld [vmem:[#allocation18_spill] sm:$0xff] }
 0x138   : > { %1189 = vrot.lane.b32.xlu1 %v10347_v34, %s6533_s7  ;;  %1043 = vst.msk [vmem:[#allocation3 + $0x40] sm:$0xff] %vm1038_vm3, %v951_v37  ;;  %v10360_v37 = vld [vmem:[#allocation19_spill] sm:$0xff] }
 0x139   : > { %1195 = vrot.lane.b32.xlu0 %v7421_v28, %s6533_s7 }
 0x13a   : > { %v949_v25 = vpop.permute.xlu1 %948 }
 0x13b   : > { %1042 = vst.msk [vmem:[#allocation3 + $0x30] sm:$0xff] %vm1038_vm3, %v949_v25  ;;  %v955_v48 = vpop.permute.xlu0 %954 }
 0x13c   : > { %1193 = vrot.lane.b32.xlu1 %v10348_v26, %s6533_s7  ;;  %1045 = vst.msk [vmem:[#allocation3 + $0x60] sm:$0xff] %vm1038_vm3, %v955_v48  ;;  %v10361_v48 = vld [vmem:[#allocation20_spill] sm:$0xff]  ;;  %v10362_v26 = vld [vmem:[#allocation21_spill] sm:$0xff] }
 0x13d   : > { %1328 = vrot.lane.b32.xlu0 %v10349_v30, %s6534_s8 }
 0x13e   : > { %v953_v31 = vpop.permute.xlu1 %952 }
 0x13f   : > { %1044 = vst.msk [vmem:[#allocation3 + $0x50] sm:$0xff] %vm1038_vm3, %v953_v31  ;;  %v959_v32 = vpop.permute.xlu0 %958 }
 0x140   : > { %1197 = vrot.lane.b32.xlu1 %v7432_v27, %s6533_s7  ;;  %1047 = vst.msk [vmem:[#allocation3 + $0x80] sm:$0xff] %vm1038_vm3, %v959_v32  ;;  %v10363_v32 = vld [vmem:[#allocation22_spill] sm:$0xff] }
 0x141   : > { %1332 = vrot.lane.b32.xlu0 %v10350_v38, %s6534_s8  ;;  %v10364_v38 = vld [vmem:[#allocation23_spill] sm:$0xff] }
 0x142   : > { %v957_v40 = vpop.permute.xlu1 %956 }
 0x143   : > { %1046 = vst.msk [vmem:[#allocation3 + $0x70] sm:$0xff] %vm1038_vm3, %v957_v40  ;;  %v963_v41 = vpop.permute.xlu0 %962 }
 0x144   : > { %1330 = vrot.lane.b32.xlu1 %v10351_v42, %s6534_s8  ;;  %1049 = vst.msk [vmem:[#allocation3 + $0xa0] sm:$0xff] %vm1038_vm3, %v963_v41  ;;  %v10365_v42 = vld [vmem:[#allocation24_spill] sm:$0xff] }
 0x145   : > { %1336 = vrot.lane.b32.xlu0 %v10352_v43, %s6534_s8  ;;  %v10366_v43 = vld [vmem:[#allocation25_spill] sm:$0xff] }
 0x146   : > { %v961_v44 = vpop.permute.xlu1 %960 }
 0x147   : > { %1048 = vst.msk [vmem:[#allocation3 + $0x90] sm:$0xff] %vm1038_vm3, %v961_v44  ;;  %v967_v47 = vpop.permute.xlu0 %966 }
 0x148   : > { %1334 = vrot.lane.b32.xlu1 %v10353_v50, %s6534_s8  ;;  %1051 = vst.msk [vmem:[#allocation3 + $0xc0] sm:$0xff] %vm1038_vm3, %v967_v47  ;;  %v10367_v50 = vld [vmem:[#allocation26_spill] sm:$0xff] }
 0x149   : > { %1340 = vrot.lane.b32.xlu0 %v10354_v53, %s6534_s8  ;;  %v10368_v53 = vld [vmem:[#allocation27_spill] sm:$0xff] }
 0x14a   : > { %v965_v56 = vpop.permute.xlu1 %964 }
 0x14b   : > { %1050 = vst.msk [vmem:[#allocation3 + $0xb0] sm:$0xff] %vm1038_vm3, %v965_v56  ;;  %v971_v63 = vpop.permute.xlu0 %970 }
 0x14c   : > { %1338 = vrot.lane.b32.xlu1 %v10355_v12, %s6534_s8  ;;  %1053 = vst.msk [vmem:[#allocation3 + $0xe0] sm:$0xff] %vm1038_vm3, %v971_v63  ;;  %v10369_v12 = vld [vmem:[#allocation28_spill] sm:$0xff] }
 0x14d   : > { %1344 = vrot.lane.b32.xlu0 %v10356_v14, %s6534_s8  ;;  %v10370_v14 = vld [vmem:[#allocation29_spill] sm:$0xff] }
 0x14e   : > { %v969_v16 = vpop.permute.xlu1 %968 }
 0x14f   : > { %1052 = vst.msk [vmem:[#allocation3 + $0xd0] sm:$0xff] %vm1038_vm3, %v969_v16  ;;  %v975_v18 = vpop.permute.xlu0 %974 }
 0x150   : > { %1342 = vrot.lane.b32.xlu1 %v10357_v20, %s6534_s8  ;;  %1055 = vst.msk [vmem:[#allocation3 + $0x100] sm:$0xff] %vm1038_vm3, %v975_v18  ;;  %v10371_v20 = vld [vmem:[#allocation30_spill] sm:$0xff] }
 0x151   : > { %1348 = vrot.lane.b32.xlu0 %v10358_v22, %s6534_s8  ;;  %v10372_v22 = vld [vmem:[#allocation31_spill] sm:$0xff] }
 0x152   : > { %v973_v39 = vpop.permute.xlu1 %972 }
 0x153   : > { %1054 = vst.msk [vmem:[#allocation3 + $0xf0] sm:$0xff] %vm1038_vm3, %v973_v39  ;;  %v979_v24 = vpop.permute.xlu0 %978 }
 0x154   : > { %1346 = vrot.lane.b32.xlu1 %v10359_v51, %s6534_s8  ;;  %1057 = vst.msk [vmem:[#allocation3 + $0x120] sm:$0xff] %vm1038_vm3, %v979_v24  ;;  %v10373_v51 = vld [vmem:[#allocation32_spill] sm:$0xff] }
 0x155   : > { %1352 = vrot.lane.b32.xlu0 %v10360_v37, %s6534_s8 }
 0x156   : > { %v977_v34 = vpop.permute.xlu1 %976 }
 0x157   : > { %1056 = vst.msk [vmem:[#allocation3 + $0x110] sm:$0xff] %vm1038_vm3, %v977_v34  ;;  %v983_v25 = vpop.permute.xlu0 %982 }
 0x158   : > { %1350 = vrot.lane.b32.xlu1 %v10361_v48, %s6534_s8  ;;  %1059 = vst.msk [vmem:[#allocation3 + $0x140] sm:$0xff] %vm1038_vm3, %v983_v25  ;;  %v10374_v25 = vld [vmem:[#allocation33_spill] sm:$0xff] }
 0x159   : > { %1356 = vrot.lane.b32.xlu0 %v10362_v26, %s6534_s8 }
 0x15a   : > { %v981_v30 = vpop.permute.xlu1 %980 }
 0x15b   : > { %1058 = vst.msk [vmem:[#allocation3 + $0x130] sm:$0xff] %vm1038_vm3, %v981_v30  ;;  %v987_v31 = vpop.permute.xlu0 %986 }
 0x15c   : > { %1354 = vrot.lane.b32.xlu1 %v10363_v32, %s6534_s8  ;;  %1061 = vst.msk [vmem:[#allocation3 + $0x160] sm:$0xff] %vm1038_vm3, %v987_v31 }
 0x15d   : > { %1360 = vrot.lane.b32.xlu0 %v10364_v38, %s6534_s8 }
 0x15e   : > { %v985_v40 = vpop.permute.xlu1 %984 }
 0x15f   : > { %1060 = vst.msk [vmem:[#allocation3 + $0x150] sm:$0xff] %vm1038_vm3, %v985_v40  ;;  %v991_v41 = vpop.permute.xlu0 %990 }
 0x160   : > { %1358 = vrot.lane.b32.xlu1 %v10365_v42, %s6534_s8  ;;  %1063 = vst.msk [vmem:[#allocation3 + $0x180] sm:$0xff] %vm1038_vm3, %v991_v41 }
 0x161   : > { %1364 = vrot.lane.b32.xlu0 %v10366_v43, %s6534_s8  ;;  %v7634_v43 = vld [vmem:[#allocation2 + $0xc8] sm:$0xff] }
 0x162   : > { %v989_v44 = vpop.permute.xlu1 %988 }
 0x163   : > { %1062 = vst.msk [vmem:[#allocation3 + $0x170] sm:$0xff] %vm1038_vm3, %v989_v44  ;;  %v995_v47 = vpop.permute.xlu0 %994 }
 0x164   : > { %1362 = vrot.lane.b32.xlu1 %v10367_v50, %s6534_s8  ;;  %1065 = vst.msk [vmem:[#allocation3 + $0x1a0] sm:$0xff] %vm1038_vm3, %v995_v47  ;;  %v7638_v47 = vld [vmem:[#allocation2 + $0xb0] sm:$0xff]  ;;  %v7643_v50 = vld [vmem:[#allocation2 + $0xe8] sm:$0xff] }
 0x165   : > { %1368 = vrot.lane.b32.xlu0 %v10368_v53, %s6534_s8 }
 0x166   : > { %v993_v56 = vpop.permute.xlu1 %992 }
 0x167   : > { %1064 = vst.msk [vmem:[#allocation3 + $0x190] sm:$0xff] %vm1038_vm3, %v993_v56  ;;  %v999_v63 = vpop.permute.xlu0 %998  ;;  %v7648_v56 = vld [vmem:[#allocation2 + $0xd0] sm:$0xff] }
 0x168   : > { %1366 = vrot.lane.b32.xlu1 %v10369_v12, %s6534_s8  ;;  %1067 = vst.msk [vmem:[#allocation3 + $0x1c0] sm:$0xff] %vm1038_vm3, %v999_v63  ;;  %v7653_v12 = vld [vmem:[#allocation2 + $0x108] sm:$0xff] }
 0x169   : > { %1372 = vrot.lane.b32.xlu0 %v10370_v14, %s6534_s8 }
 0x16a   : > { %v997_v16 = vpop.permute.xlu1 %996 }
 0x16b   : > { %1066 = vst.msk [vmem:[#allocation3 + $0x1b0] sm:$0xff] %vm1038_vm3, %v997_v16  ;;  %v1003_v18 = vpop.permute.xlu0 %1002  ;;  %v7658_v16 = vld [vmem:[#allocation2 + $0xf0] sm:$0xff] }
 0x16c   : > { %1370 = vrot.lane.b32.xlu1 %v10371_v20, %s6534_s8  ;;  %1069 = vst.msk [vmem:[#allocation3 + $0x1e0] sm:$0xff] %vm1038_vm3, %v1003_v18  ;;  %v7663_v20 = vld [vmem:[#allocation2 + $0x128] sm:$0xff] }
 0x16d   : > { %1376 = vrot.lane.b32.xlu0 %v10372_v22, %s6534_s8 }
 0x16e   : > { %v1001_v39 = vpop.permute.xlu1 %1000 }
 0x16f   : > { %1068 = vst.msk [vmem:[#allocation3 + $0x1d0] sm:$0xff] %vm1038_vm3, %v1001_v39  ;;  %v1136_v24 = vpop.permute.xlu0 %1135  ;;  %v7668_v39 = vld [vmem:[#allocation2 + $0x110] sm:$0xff] }
 0x170   : > { %1374 = vrot.lane.b32.xlu1 %v7205_v0, %s6534_s8  ;;  %1232 = vst.msk [vmem:[#allocation3] sm:$0xff] %vm1231_vm4, %v1136_v24  ;;  %v7521_v0 = vld [vmem:[#allocation2 + $0x269] sm:$0xff] }
 0x171   : > { %1380 = vrot.lane.b32.xlu0 %v10373_v51, %s6534_s8  ;;  %v7673_v51 = vld [vmem:[#allocation2 + $0x148] sm:$0xff] }
 0x172   : > { %v1005_v37 = vpop.permute.xlu1 %1004 }
 0x173   : > { %1070 = vst.msk [vmem:[#allocation3 + $0x1f0] sm:$0xff] %vm1038_vm3, %v1005_v37  ;;  %v1140_v34 = vpop.permute.xlu0 %1139 }
 0x174   : > { %1378 = vrot.lane.b32.xlu1 %v10374_v25, %s6534_s8  ;;  %1234 = vst.msk [vmem:[#allocation3 + $0x20] sm:$0xff] %vm1231_vm4, %v1140_v34  ;;  %v7678_v34 = vld [vmem:[#allocation2 + $0x130] sm:$0xff] }
 0x175   : > { %1384 = vrot.lane.b32.xlu0 %v7219_v46, %s6534_s8  ;;  %v7532_v46 = vld [vmem:[#allocation2 + $0x271] sm:$0xff] }
 0x176   : > { %v1138_v48 = vpop.permute.xlu1 %1137 }
 0x177   : > { %1233 = vst.msk [vmem:[#allocation3 + $0x10] sm:$0xff] %vm1231_vm4, %v1138_v48  ;;  %v1144_v26 = vpop.permute.xlu0 %1143  ;;  %v7683_v48 = vld [vmem:[#allocation2 + $0x168] sm:$0xff] }
 0x178   : > { %1382 = vrot.lane.b32.xlu1 %v7224_v33, %s6534_s8  ;;  %1236 = vst.msk [vmem:[#allocation3 + $0x40] sm:$0xff] %vm1231_vm4, %v1144_v26 }
 0x179   : > { %1388 = vrot.lane.b32.xlu0 %v7521_v0, %s6534_s8 }
 0x17a   : > { %v1142_v30 = vpop.permute.xlu1 %1141 }
 0x17b   : > { %1235 = vst.msk [vmem:[#allocation3 + $0x30] sm:$0xff] %vm1231_vm4, %v1142_v30  ;;  %v1148_v31 = vpop.permute.xlu0 %1147  ;;  %v7688_v30 = vld [vmem:[#allocation2 + $0x150] sm:$0xff] }
 0x17c   : > { %1386 = vrot.lane.b32.xlu1 %v7232_v45, %s6534_s8  ;;  %1238 = vst.msk [vmem:[#allocation3 + $0x60] sm:$0xff] %vm1231_vm4, %v1148_v31 }
 0x17d   : > { %1522 = vrot.lane.b32.xlu0 %v6918_v49, %s6535_s9 }
 0x17e   : > { %v1146_v33 = vpop.permute.xlu1 %1145 }
 0x17f   : > { %1237 = vst.msk [vmem:[#allocation3 + $0x50] sm:$0xff] %vm1231_vm4, %v1146_v33  ;;  %v1152_v32 = vpop.permute.xlu0 %1151  ;;  %v7693_v33 = vld [vmem:[#allocation2 + $0x188] sm:$0xff] }
 0x180   : > { %1390 = vrot.lane.b32.xlu1 %v7532_v46, %s6534_s8  ;;  %1240 = vst.msk [vmem:[#allocation3 + $0x80] sm:$0xff] %vm1231_vm4, %v1152_v32 }
 0x181   : > { %1526 = vrot.lane.b32.xlu0 %v6926_v52, %s6535_s9 }
 0x182   : > { %v1150_v45 = vpop.permute.xlu1 %1149 }
 0x183   : > { %1239 = vst.msk [vmem:[#allocation3 + $0x70] sm:$0xff] %vm1231_vm4, %v1150_v45  ;;  %v1156_v38 = vpop.permute.xlu0 %1155  ;;  %v7698_v45 = vld [vmem:[#allocation2 + $0x170] sm:$0xff] }
 0x184   : > { %1524 = vrot.lane.b32.xlu1 %v6936_v54, %s6535_s9  ;;  %1242 = vst.msk [vmem:[#allocation3 + $0xa0] sm:$0xff] %vm1231_vm4, %v1156_v38 }
 0x185   : > { %1530 = vrot.lane.b32.xlu0 %v6938_v55, %s6535_s9 }
 0x186   : > { %v1154_v49 = vpop.permute.xlu1 %1153 }
 0x187   : > { %1241 = vst.msk [vmem:[#allocation3 + $0x90] sm:$0xff] %vm1231_vm4, %v1154_v49  ;;  %v1160_v40 = vpop.permute.xlu0 %1159  ;;  %v7703_v49 = vld [vmem:[#allocation2 + $0x1a8] sm:$0xff] }
 0x188   : > { %1528 = vrot.lane.b32.xlu1 %v6946_v57, %s6535_s9  ;;  %1244 = vst.msk [vmem:[#allocation3 + $0xc0] sm:$0xff] %vm1231_vm4, %v1160_v40 }
 0x189   : > { %1534 = vrot.lane.b32.xlu0 %v6948_v58, %s6535_s9 }
 0x18a   : > { %v1158_v52 = vpop.permute.xlu1 %1157 }
 0x18b   : > { %1243 = vst.msk [vmem:[#allocation3 + $0xb0] sm:$0xff] %vm1231_vm4, %v1158_v52  ;;  %v1164_v54 = vpop.permute.xlu0 %1163  ;;  %v7708_v52 = vld [vmem:[#allocation2 + $0x190] sm:$0xff] }
 0x18c   : > { %1532 = vrot.lane.b32.xlu1 %v6950_v59, %s6535_s9  ;;  %1246 = vst.msk [vmem:[#allocation3 + $0xe0] sm:$0xff] %vm1231_vm4, %v1164_v54 }
 0x18d   : > { %1538 = vrot.lane.b32.xlu0 %v6960_v60, %s6535_s9 }
 0x18e   : > { %v1162_v55 = vpop.permute.xlu1 %1161 }
 0x18f   : > { %1245 = vst.msk [vmem:[#allocation3 + $0xd0] sm:$0xff] %vm1231_vm4, %v1162_v55  ;;  %v1168_v57 = vpop.permute.xlu0 %1167  ;;  %v7713_v55 = vld [vmem:[#allocation2 + $0x1c8] sm:$0xff] }
 0x190   : > { %1536 = vrot.lane.b32.xlu1 %v6962_v61, %s6535_s9  ;;  %1248 = vst.msk [vmem:[#allocation3 + $0x100] sm:$0xff] %vm1231_vm4, %v1168_v57 }
 0x191   : > { %1542 = vrot.lane.b32.xlu0 %v6964_v62, %s6535_s9 }
 0x192   : > { %v1166_v58 = vpop.permute.xlu1 %1165 }
 0x193   : > { %1247 = vst.msk [vmem:[#allocation3 + $0xf0] sm:$0xff] %vm1231_vm4, %v1166_v58  ;;  %v1172_v59 = vpop.permute.xlu0 %1171  ;;  %v7718_v58 = vld [vmem:[#allocation2 + $0x1b0] sm:$0xff] }
 0x194   : > { %1540 = vrot.lane.b32.xlu1 %v6974_v1, %s6535_s9  ;;  %1250 = vst.msk [vmem:[#allocation3 + $0x120] sm:$0xff] %vm1231_vm4, %v1172_v59 }
 0x195   : > { %1546 = vrot.lane.b32.xlu0 %v6976_v2, %s6535_s9 }
 0x196   : > { %v1170_v60 = vpop.permute.xlu1 %1169 }
 0x197   : > { %1249 = vst.msk [vmem:[#allocation3 + $0x110] sm:$0xff] %vm1231_vm4, %v1170_v60  ;;  %v1176_v61 = vpop.permute.xlu0 %1175  ;;  %v7723_v60 = vld [vmem:[#allocation2 + $0x1e8] sm:$0xff] }
 0x198   : > { %1544 = vrot.lane.b32.xlu1 %v6978_v3, %s6535_s9  ;;  %1252 = vst.msk [vmem:[#allocation3 + $0x140] sm:$0xff] %vm1231_vm4, %v1176_v61 }
 0x199   : > { %1550 = vrot.lane.b32.xlu0 %v6988_v4, %s6535_s9 }
 0x19a   : > { %v1174_v62 = vpop.permute.xlu1 %1173 }
 0x19b   : > { %1251 = vst.msk [vmem:[#allocation3 + $0x130] sm:$0xff] %vm1231_vm4, %v1174_v62  ;;  %v1180_v1 = vpop.permute.xlu0 %1179  ;;  %v7728_v62 = vld [vmem:[#allocation2 + $0x1d0] sm:$0xff] }
 0x19c   : > { %1548 = vrot.lane.b32.xlu1 %v6990_v5, %s6535_s9  ;;  %1254 = vst.msk [vmem:[#allocation3 + $0x160] sm:$0xff] %vm1231_vm4, %v1180_v1 }
 0x19d   : > { %1554 = vrot.lane.b32.xlu0 %v6992_v6, %s6535_s9 }
 0x19e   : > { %v1178_v2 = vpop.permute.xlu1 %1177 }
 0x19f   : > { %1253 = vst.msk [vmem:[#allocation3 + $0x150] sm:$0xff] %vm1231_vm4, %v1178_v2  ;;  %v1184_v3 = vpop.permute.xlu0 %1183  ;;  %v7733_v2 = vld [vmem:[#allocation2 + $0x208] sm:$0xff] }
 0x1a0   : > { %1552 = vrot.lane.b32.xlu1 %v7000_v7, %s6535_s9  ;;  %1256 = vst.msk [vmem:[#allocation3 + $0x180] sm:$0xff] %vm1231_vm4, %v1184_v3 }
 0x1a1   : > { %1558 = vrot.lane.b32.xlu0 %v7002_v8, %s6535_s9 }
 0x1a2   : > { %v1182_v4 = vpop.permute.xlu1 %1181 }
 0x1a3   : > { %1255 = vst.msk [vmem:[#allocation3 + $0x170] sm:$0xff] %vm1231_vm4, %v1182_v4  ;;  %v1188_v5 = vpop.permute.xlu0 %1187  ;;  %v7738_v4 = vld [vmem:[#allocation2 + $0x1f0] sm:$0xff] }
 0x1a4   : > { %1556 = vrot.lane.b32.xlu1 %v7004_v9, %s6535_s9  ;;  %1258 = vst.msk [vmem:[#allocation3 + $0x1a0] sm:$0xff] %vm1231_vm4, %v1188_v5 }
 0x1a5   : > { %1562 = vrot.lane.b32.xlu0 %v7014_v10, %s6535_s9 }
 0x1a6   : > { %v1186_v6 = vpop.permute.xlu1 %1185 }
 0x1a7   : > { %1257 = vst.msk [vmem:[#allocation3 + $0x190] sm:$0xff] %vm1231_vm4, %v1186_v6  ;;  %v1192_v7 = vpop.permute.xlu0 %1191  ;;  %v7743_v6 = vld [vmem:[#allocation2 + $0x228] sm:$0xff] }
 0x1a8   : > { %1560 = vrot.lane.b32.xlu1 %v7016_v11, %s6535_s9  ;;  %1260 = vst.msk [vmem:[#allocation3 + $0x1c0] sm:$0xff] %vm1231_vm4, %v1192_v7 }
 0x1a9   : > { %1566 = vrot.lane.b32.xlu0 %v7024_v13, %s6535_s9 }
 0x1aa   : > { %v1190_v8 = vpop.permute.xlu1 %1189 }
 0x1ab   : > { %1259 = vst.msk [vmem:[#allocation3 + $0x1b0] sm:$0xff] %vm1231_vm4, %v1190_v8  ;;  %v1196_v9 = vpop.permute.xlu0 %1195  ;;  %v7748_v8 = vld [vmem:[#allocation2 + $0x210] sm:$0xff] }
 0x1ac   : > { %1564 = vrot.lane.b32.xlu1 %v7032_v15, %s6535_s9  ;;  %1262 = vst.msk [vmem:[#allocation3 + $0x1e0] sm:$0xff] %vm1231_vm4, %v1196_v9 }
 0x1ad   : > { %1570 = vrot.lane.b32.xlu0 %v7040_v17, %s6535_s9 }
 0x1ae   : > { %v1194_v10 = vpop.permute.xlu1 %1193 }
 0x1af   : > { %1261 = vst.msk [vmem:[#allocation3 + $0x1d0] sm:$0xff] %vm1231_vm4, %v1194_v10  ;;  %v1329_v11 = vpop.permute.xlu0 %1328  ;;  %v1677_v10 = vld [vmem:[#allocation2 + $0x248] sm:$0xff] }
 0x1b0   : > { %1568 = vrot.lane.b32.xlu1 %v7048_v19, %s6535_s9  ;;  %1425 = vst.msk [vmem:[#allocation3] sm:$0xff] %vm1424_vm5, %v1329_v11  ;;  %v1488_v19 = vld [vmem:[#allocation2 + $0x287] sm:$0xff] }
 0x1b1   : > { %1574 = vrot.lane.b32.xlu0 %v7056_v21, %s6535_s9 }
 0x1b2   : > { %v1198_v13 = vpop.permute.xlu1 %1197 }
 0x1b3   : > { %1263 = vst.msk [vmem:[#allocation3 + $0x1f0] sm:$0xff] %vm1231_vm4, %v1198_v13  ;;  %v1333_v15 = vpop.permute.xlu0 %1332  ;;  %v7756_v13 = vld [vmem:[#allocation2 + $0x230] sm:$0xff] }
 0x1b4   : > { %1572 = vrot.lane.b32.xlu1 %v7064_v23, %s6535_s9  ;;  %1427 = vst.msk [vmem:[#allocation3 + $0x20] sm:$0xff] %vm1424_vm5, %v1333_v15  ;;  %v7626_v23 = vld [vmem:[#allocation2 + $0xa8] sm:$0xff] }
 0x1b5   : > { %1578 = vrot.lane.b32.xlu0 %v7321_v35, %s6535_s9  ;;  %v1489_v35 = vld [vmem:[#allocation2 + $0x28f] sm:$0xff] }
 0x1b6   : > { %v1331_v17 = vpop.permute.xlu1 %1330 }
 0x1b7   : > { %1426 = vst.msk [vmem:[#allocation3 + $0x10] sm:$0xff] %vm1424_vm5, %v1331_v17  ;;  %v1337_v41 = vpop.permute.xlu0 %1336 }
 0x1b8   : > { %1576 = vrot.lane.b32.xlu1 %v7076_v29, %s6535_s9  ;;  %1429 = vst.msk [vmem:[#allocation3 + $0x40] sm:$0xff] %vm1424_vm5, %v1337_v41 }
 0x1b9   : > { %1582 = vrot.lane.b32.xlu0 %v1488_v19, %s6535_s9  ;;  %v1678_v19 = vld [vmem:[#allocation2 + $0x250] sm:$0xff] }
 0x1ba   : > { %v1335_v21 = vpop.permute.xlu1 %1334 }
 0x1bb   : > { %1428 = vst.msk [vmem:[#allocation3 + $0x30] sm:$0xff] %vm1424_vm5, %v1335_v21  ;;  %v1341_v42 = vpop.permute.xlu0 %1340  ;;  %v1681_v21 = vld [vmem:[#allocation2 + $0x288] sm:$0xff] }
 0x1bc   : > { %1580 = vrot.lane.b32.xlu1 %v7332_v36, %s6535_s9  ;;  %1431 = vst.msk [vmem:[#allocation3 + $0x60] sm:$0xff] %vm1424_vm5, %v1341_v42 }
 0x1bd   : > { %1715 = vrot.lane.b32.xlu0 %v7626_v23, %s6536_s10 }
 0x1be   : > { %v1339_v29 = vpop.permute.xlu1 %1338 }
 0x1bf   : > { %1430 = vst.msk [vmem:[#allocation3 + $0x50] sm:$0xff] %vm1424_vm5, %v1339_v29  ;;  %v1345_v44 = vpop.permute.xlu0 %1344  ;;  %v1844_v29 = vld [vmem:[#allocation2 + $0xa9] sm:$0xff] }
 0x1c0   : > { %1584 = vrot.lane.b32.xlu1 %v1489_v35, %s6535_s9  ;;  %1433 = vst.msk [vmem:[#allocation3 + $0x80] sm:$0xff] %vm1424_vm5, %v1345_v44 }
 0x1c1   : > { %1719 = vrot.lane.b32.xlu0 %v7634_v43, %s6536_s10 }
 0x1c2   : > { %v1343_v36 = vpop.permute.xlu1 %1342 }
 0x1c3   : > { %1432 = vst.msk [vmem:[#allocation3 + $0x70] sm:$0xff] %vm1424_vm5, %v1343_v36  ;;  %v1349_v53 = vpop.permute.xlu0 %1348 }
 0x1c4   : > { %1717 = vrot.lane.b32.xlu1 %v7638_v47, %s6536_s10  ;;  %1435 = vst.msk [vmem:[#allocation3 + $0xa0] sm:$0xff] %vm1424_vm5, %v1349_v53  ;;  %v1846_v53 = vld [vmem:[#allocation2 + $0xc9] sm:$0xff] }
 0x1c5   : > { %1723 = vrot.lane.b32.xlu0 %v7643_v50, %s6536_s10 }
 0x1c6   : > { %v1347_v63 = vpop.permute.xlu1 %1346 }
 0x1c7   : > { %1434 = vst.msk [vmem:[#allocation3 + $0x90] sm:$0xff] %vm1424_vm5, %v1347_v63  ;;  %v1353_v14 = vpop.permute.xlu0 %1352 }
 0x1c8   : > { %1721 = vrot.lane.b32.xlu1 %v7648_v56, %s6536_s10  ;;  %1437 = vst.msk [vmem:[#allocation3 + $0xc0] sm:$0xff] %vm1424_vm5, %v1353_v14  ;;  %v1845_v14 = vld [vmem:[#allocation2 + $0xb1] sm:$0xff] }
 0x1c9   : > { %1727 = vrot.lane.b32.xlu0 %v7653_v12, %s6536_s10 }
 0x1ca   : > { %v1351_v18 = vpop.permute.xlu1 %1350 }
 0x1cb   : > { %1436 = vst.msk [vmem:[#allocation3 + $0xb0] sm:$0xff] %vm1424_vm5, %v1351_v18  ;;  %v1357_v22 = vpop.permute.xlu0 %1356 }
 0x1cc   : > { %1725 = vrot.lane.b32.xlu1 %v7658_v16, %s6536_s10  ;;  %1439 = vst.msk [vmem:[#allocation3 + $0xe0] sm:$0xff] %vm1424_vm5, %v1357_v22 }
 0x1cd   : > { %1731 = vrot.lane.b32.xlu0 %v7663_v20, %s6536_s10 }
 0x1ce   : > { %v1355_v24 = vpop.permute.xlu1 %1354 }
 0x1cf   : > { %1438 = vst.msk [vmem:[#allocation3 + $0xd0] sm:$0xff] %vm1424_vm5, %v1355_v24  ;;  %v1361_v37 = vpop.permute.xlu0 %1360  ;;  %v1847_v24 = vld [vmem:[#allocation2 + $0xd1] sm:$0xff] }
 0x1d0   : > { %1729 = vrot.lane.b32.xlu1 %v7668_v39, %s6536_s10  ;;  %1441 = vst.msk [vmem:[#allocation3 + $0x100] sm:$0xff] %vm1424_vm5, %v1361_v37 }
 0x1d1   : > { %1735 = vrot.lane.b32.xlu0 %v7673_v51, %s6536_s10 }
 0x1d2   : > { %v1359_v25 = vpop.permute.xlu1 %1358 }
 0x1d3   : > { %1440 = vst.msk [vmem:[#allocation3 + $0xf0] sm:$0xff] %vm1424_vm5, %v1359_v25  ;;  %v1365_v26 = vpop.permute.xlu0 %1364  ;;  %v1850_v25 = vld [vmem:[#allocation2 + $0x109] sm:$0xff] }
 0x1d4   : > { %1733 = vrot.lane.b32.xlu1 %v7678_v34, %s6536_s10  ;;  %1443 = vst.msk [vmem:[#allocation3 + $0x120] sm:$0xff] %vm1424_vm5, %v1365_v26 }
 0x1d5   : > { %1739 = vrot.lane.b32.xlu0 %v7683_v48, %s6536_s10 }
 0x1d6   : > { %v1363_v31 = vpop.permute.xlu1 %1362 }
 0x1d7   : > { %1442 = vst.msk [vmem:[#allocation3 + $0x110] sm:$0xff] %vm1424_vm5, %v1363_v31  ;;  %v1369_v32 = vpop.permute.xlu0 %1368  ;;  %v1849_v31 = vld [vmem:[#allocation2 + $0xf1] sm:$0xff] }
 0x1d8   : > { %1737 = vrot.lane.b32.xlu1 %v7688_v30, %s6536_s10  ;;  %1445 = vst.msk [vmem:[#allocation3 + $0x140] sm:$0xff] %vm1424_vm5, %v1369_v32 }
 0x1d9   : > { %1743 = vrot.lane.b32.xlu0 %v7693_v33, %s6536_s10 }
 0x1da   : > { %v1367_v38 = vpop.permute.xlu1 %1366 }
 0x1db   : > { %1444 = vst.msk [vmem:[#allocation3 + $0x130] sm:$0xff] %vm1424_vm5, %v1367_v38  ;;  %v1373_v40 = vpop.permute.xlu0 %1372  ;;  %v1852_v38 = vld [vmem:[#allocation2 + $0x129] sm:$0xff] }
 0x1dc   : > { %1741 = vrot.lane.b32.xlu1 %v7698_v45, %s6536_s10  ;;  %1447 = vst.msk [vmem:[#allocation3 + $0x160] sm:$0xff] %vm1424_vm5, %v1373_v40 }
 0x1dd   : > { %1747 = vrot.lane.b32.xlu0 %v7703_v49, %s6536_s10 }
 0x1de   : > { %v1371_v54 = vpop.permute.xlu1 %1370 }
 0x1df   : > { %1446 = vst.msk [vmem:[#allocation3 + $0x150] sm:$0xff] %vm1424_vm5, %v1371_v54  ;;  %v1377_v57 = vpop.permute.xlu0 %1376  ;;  %v1851_v54 = vld [vmem:[#allocation2 + $0x111] sm:$0xff] }
 0x1e0   : > { %1745 = vrot.lane.b32.xlu1 %v7708_v52, %s6536_s10  ;;  %1449 = vst.msk [vmem:[#allocation3 + $0x180] sm:$0xff] %vm1424_vm5, %v1377_v57 }
 0x1e1   : > { %1751 = vrot.lane.b32.xlu0 %v7713_v55, %s6536_s10 }
 0x1e2   : > { %v1375_v59 = vpop.permute.xlu1 %1374 }
 0x1e3   : > { %1448 = vst.msk [vmem:[#allocation3 + $0x170] sm:$0xff] %vm1424_vm5, %v1375_v59  ;;  %v1381_v61 = vpop.permute.xlu0 %1380  ;;  %v1854_v59 = vld [vmem:[#allocation2 + $0x149] sm:$0xff] }
 0x1e4   : > { %1749 = vrot.lane.b32.xlu1 %v7718_v58, %s6536_s10  ;;  %1451 = vst.msk [vmem:[#allocation3 + $0x1a0] sm:$0xff] %vm1424_vm5, %v1381_v61 }
 0x1e5   : > { %1755 = vrot.lane.b32.xlu0 %v7723_v60, %s6536_s10 }
 0x1e6   : > { %v1379_v1 = vpop.permute.xlu1 %1378 }
 0x1e7   : > { %1450 = vst.msk [vmem:[#allocation3 + $0x190] sm:$0xff] %vm1424_vm5, %v1379_v1  ;;  %v1385_v3 = vpop.permute.xlu0 %1384  ;;  %v1853_v1 = vld [vmem:[#allocation2 + $0x131] sm:$0xff] }
 0x1e8   : > { %1753 = vrot.lane.b32.xlu1 %v7728_v62, %s6536_s10  ;;  %1453 = vst.msk [vmem:[#allocation3 + $0x1c0] sm:$0xff] %vm1424_vm5, %v1385_v3 }
 0x1e9   : > { %1759 = vrot.lane.b32.xlu0 %v7733_v2, %s6536_s10 }
 0x1ea   : > { %v1383_v5 = vpop.permute.xlu1 %1382 }
 0x1eb   : > { %1452 = vst.msk [vmem:[#allocation3 + $0x1b0] sm:$0xff] %vm1424_vm5, %v1383_v5  ;;  %v1389_v7 = vpop.permute.xlu0 %1388  ;;  %v1856_v5 = vld [vmem:[#allocation2 + $0x169] sm:$0xff] }
 0x1ec   : > { %1757 = vrot.lane.b32.xlu1 %v7738_v4, %s6536_s10  ;;  %1455 = vst.msk [vmem:[#allocation3 + $0x1e0] sm:$0xff] %vm1424_vm5, %v1389_v7 }
 0x1ed   : > { %1763 = vrot.lane.b32.xlu0 %v7743_v6, %s6536_s10 }
 0x1ee   : > { %v1387_v9 = vpop.permute.xlu1 %1386 }
 0x1ef   : > { %1454 = vst.msk [vmem:[#allocation3 + $0x1d0] sm:$0xff] %vm1424_vm5, %v1387_v9  ;;  %v1523_v11 = vpop.permute.xlu0 %1522  ;;  %v1855_v9 = vld [vmem:[#allocation2 + $0x151] sm:$0xff] }
 0x1f0   : > { %1761 = vrot.lane.b32.xlu1 %v7748_v8, %s6536_s10  ;;  %1619 = vst.msk [vmem:[#allocation3] sm:$0xff] %vm1618_vm6, %v1523_v11  ;;  %v1858_v11 = vld [vmem:[#allocation2 + $0x189] sm:$0xff] }
 0x1f1   : > { %1767 = vrot.lane.b32.xlu0 %v1677_v10, %s6536_s10 }
 0x1f2   : > { %v1391_v15 = vpop.permute.xlu1 %1390 }
 0x1f3   : > { %1456 = vst.msk [vmem:[#allocation3 + $0x1f0] sm:$0xff] %vm1424_vm5, %v1391_v15  ;;  %v1527_v17 = vpop.permute.xlu0 %1526 }
 0x1f4   : > { %1765 = vrot.lane.b32.xlu1 %v7756_v13, %s6536_s10  ;;  %1621 = vst.msk [vmem:[#allocation3 + $0x20] sm:$0xff] %vm1618_vm6, %v1527_v17  ;;  %v1857_v17 = vld [vmem:[#allocation2 + $0x171] sm:$0xff] }
 0x1f5   : > { %1771 = vrot.lane.b32.xlu0 %v7421_v28, %s6536_s10  ;;  %v1682_v28 = vld [vmem:[#allocation2 + $0x290] sm:$0xff] }
 0x1f6   : > { %v1525_v41 = vpop.permute.xlu1 %1524 }
 0x1f7   : > { %1620 = vst.msk [vmem:[#allocation3 + $0x10] sm:$0xff] %vm1618_vm6, %v1525_v41  ;;  %v1531_v42 = vpop.permute.xlu0 %1530  ;;  %v1860_v41 = vld [vmem:[#allocation2 + $0x1a9] sm:$0xff] }
 0x1f8   : > { %1769 = vrot.lane.b32.xlu1 %v1678_v19, %s6536_s10  ;;  %1623 = vst.msk [vmem:[#allocation3 + $0x40] sm:$0xff] %vm1618_vm6, %v1531_v42  ;;  %v1859_v42 = vld [vmem:[#allocation2 + $0x191] sm:$0xff] }
 0x1f9   : > { %1775 = vrot.lane.b32.xlu0 %v1681_v21, %s6536_s10 }
 0x1fa   : > { %v1529_v35 = vpop.permute.xlu1 %1528 }
 0x1fb   : > { %1622 = vst.msk [vmem:[#allocation3 + $0x30] sm:$0xff] %vm1618_vm6, %v1529_v35  ;;  %v1535_v44 = vpop.permute.xlu0 %1534 }
 0x1fc   : > { %1773 = vrot.lane.b32.xlu1 %v7432_v27, %s6536_s10  ;;  %1625 = vst.msk [vmem:[#allocation3 + $0x60] sm:$0xff] %vm1618_vm6, %v1535_v44  ;;  %v1848_v27 = vld [vmem:[#allocation2 + $0xe9] sm:$0xff] }
 0x1fd   : > { %1908 = vrot.lane.b32.xlu0 %v1844_v29, %s6537_s11  ;;  %v1862_v29 = vld [vmem:[#allocation2 + $0x1c9] sm:$0xff] }
 0x1fe   : > { %v1533_v36 = vpop.permute.xlu1 %1532 }
 0x1ff   : > { %1624 = vst.msk [vmem:[#allocation3 + $0x50] sm:$0xff] %vm1618_vm6, %v1533_v36  ;;  %v1539_v63 = vpop.permute.xlu0 %1538 }
 0x200   : > { %1777 = vrot.lane.b32.xlu1 %v1682_v28, %s6536_s10  ;;  %1627 = vst.msk [vmem:[#allocation3 + $0x80] sm:$0xff] %vm1618_vm6, %v1539_v63  ;;  %v1861_v28 = vld [vmem:[#allocation2 + $0x1b1] sm:$0xff] }
 0x201   : > { %1912 = vrot.lane.b32.xlu0 %v1846_v53, %s6537_s11  ;;  %v1864_v53 = vld [vmem:[#allocation2 + $0x1e9] sm:$0xff] }
 0x202   : > { %v1537_v18 = vpop.permute.xlu1 %1536 }
 0x203   : > { %1626 = vst.msk [vmem:[#allocation3 + $0x70] sm:$0xff] %vm1618_vm6, %v1537_v18  ;;  %v1543_v22 = vpop.permute.xlu0 %1542 }
 0x204   : > { %1910 = vrot.lane.b32.xlu1 %v1845_v14, %s6537_s11  ;;  %1629 = vst.msk [vmem:[#allocation3 + $0xa0] sm:$0xff] %vm1618_vm6, %v1543_v22  ;;  %v1863_v14 = vld [vmem:[#allocation2 + $0x1d1] sm:$0xff] }
 0x205   : > { %1916 = vrot.lane.b32.xlu0 %v1848_v27, %s6537_s11  ;;  %v1866_v27 = vld [vmem:[#allocation2 + $0x209] sm:$0xff] }
 0x206   : > { %v1541_v37 = vpop.permute.xlu1 %1540 }
 0x207   : > { %1628 = vst.msk [vmem:[#allocation3 + $0x90] sm:$0xff] %vm1618_vm6, %v1541_v37  ;;  %v1547_v26 = vpop.permute.xlu0 %1546 }
 0x208   : > { %1914 = vrot.lane.b32.xlu1 %v1847_v24, %s6537_s11  ;;  %1631 = vst.msk [vmem:[#allocation3 + $0xc0] sm:$0xff] %vm1618_vm6, %v1547_v26  ;;  %v1865_v24 = vld [vmem:[#allocation2 + $0x1f1] sm:$0xff] }
 0x209   : > { %1920 = vrot.lane.b32.xlu0 %v1850_v25, %s6537_s11  ;;  %v1868_v25 = vld [vmem:[#allocation2 + $0x229] sm:$0xff] }
 0x20a   : > { %v1545_v32 = vpop.permute.xlu1 %1544 }
 0x20b   : > { %1630 = vst.msk [vmem:[#allocation3 + $0xb0] sm:$0xff] %vm1618_vm6, %v1545_v32  ;;  %v1551_v40 = vpop.permute.xlu0 %1550 }
 0x20c   : > { %1918 = vrot.lane.b32.xlu1 %v1849_v31, %s6537_s11  ;;  %1633 = vst.msk [vmem:[#allocation3 + $0xe0] sm:$0xff] %vm1618_vm6, %v1551_v40  ;;  %v1867_v31 = vld [vmem:[#allocation2 + $0x211] sm:$0xff] }
 0x20d   : > { %1924 = vrot.lane.b32.xlu0 %v1852_v38, %s6537_s11  ;;  %v1870_v38 = vld [vmem:[#allocation2 + $0x249] sm:$0xff] }
 0x20e   : > { %v1549_v57 = vpop.permute.xlu1 %1548 }
 0x20f   : > { %1632 = vst.msk [vmem:[#allocation3 + $0xd0] sm:$0xff] %vm1618_vm6, %v1549_v57  ;;  %v1555_v61 = vpop.permute.xlu0 %1554 }
 0x210   : > { %1922 = vrot.lane.b32.xlu1 %v1851_v54, %s6537_s11  ;;  %1635 = vst.msk [vmem:[#allocation3 + $0x100] sm:$0xff] %vm1618_vm6, %v1555_v61  ;;  %v1869_v54 = vld [vmem:[#allocation2 + $0x231] sm:$0xff] }
 0x211   : > { %1928 = vrot.lane.b32.xlu0 %v1854_v59, %s6537_s11  ;;  %v1871_v61 = vld [vmem:[#allocation2 + $0x251] sm:$0xff] }
 0x212   : > { %v1553_v3 = vpop.permute.xlu1 %1552 }
 0x213   : > { %1634 = vst.msk [vmem:[#allocation3 + $0xf0] sm:$0xff] %vm1618_vm6, %v1553_v3  ;;  %v1559_v7 = vpop.permute.xlu0 %1558  ;;  %v1874_v3 = vld [vmem:[#allocation2 + $0x289] sm:$0xff] }
 0x214   : > { %1926 = vrot.lane.b32.xlu1 %v1853_v1, %s6537_s11  ;;  %1637 = vst.msk [vmem:[#allocation3 + $0x120] sm:$0xff] %vm1618_vm6, %v1559_v7 }
 0x215   : > { %1932 = vrot.lane.b32.xlu0 %v1856_v5, %s6537_s11 }
 0x216   : > { %v1557_v10 = vpop.permute.xlu1 %1556 }
 0x217   : > { %1636 = vst.msk [vmem:[#allocation3 + $0x110] sm:$0xff] %vm1618_vm6, %v1557_v10  ;;  %v1563_v15 = vpop.permute.xlu0 %1562 }
 0x218   : > { %1930 = vrot.lane.b32.xlu1 %v1855_v9, %s6537_s11  ;;  %1639 = vst.msk [vmem:[#allocation3 + $0x140] sm:$0xff] %vm1618_vm6, %v1563_v15  ;;  %v2038_v9 = vld [vmem:[#allocation2 + $0x46] sm:$0xff] }
 0x219   : > { %1936 = vrot.lane.b32.xlu0 %v1858_v11, %s6537_s11  ;;  %v2040_v15 = vld [vmem:[#allocation2 + $0x66] sm:$0xff] }
 0x21a   : > { %v1561_v19 = vpop.permute.xlu1 %1560 }
 0x21b   : > { %1638 = vst.msk [vmem:[#allocation3 + $0x130] sm:$0xff] %vm1618_vm6, %v1561_v19  ;;  %v1567_v21 = vpop.permute.xlu0 %1566  ;;  %v2039_v19 = vld [vmem:[#allocation2 + $0x4e] sm:$0xff] }
 0x21c   : > { %1934 = vrot.lane.b32.xlu1 %v1857_v17, %s6537_s11  ;;  %1641 = vst.msk [vmem:[#allocation3 + $0x160] sm:$0xff] %vm1618_vm6, %v1567_v21 }
 0x21d   : > { %1940 = vrot.lane.b32.xlu0 %v1860_v41, %s6537_s11 }
 0x21e   : > { %v1565_v35 = vpop.permute.xlu1 %1564 }
 0x21f   : > { %1640 = vst.msk [vmem:[#allocation3 + $0x150] sm:$0xff] %vm1618_vm6, %v1565_v35  ;;  %v1571_v44 = vpop.permute.xlu0 %1570 }
 0x220   : > { %1938 = vrot.lane.b32.xlu1 %v1859_v42, %s6537_s11  ;;  %1643 = vst.msk [vmem:[#allocation3 + $0x180] sm:$0xff] %vm1618_vm6, %v1571_v44  ;;  %v2041_v42 = vld [vmem:[#allocation2 + $0x6e] sm:$0xff] }
 0x221   : > { %1944 = vrot.lane.b32.xlu0 %v1862_v29, %s6537_s11  ;;  %v7852_v29 = vld [vmem:[#allocation2 + $0xa6] sm:$0xff] }
 0x222   : > { %v1569_v36 = vpop.permute.xlu1 %1568 }
 0x223   : > { %1642 = vst.msk [vmem:[#allocation3 + $0x170] sm:$0xff] %vm1618_vm6, %v1569_v36  ;;  %v1575_v63 = vpop.permute.xlu0 %1574 }
 0x224   : > { %1942 = vrot.lane.b32.xlu1 %v1861_v28, %s6537_s11  ;;  %1645 = vst.msk [vmem:[#allocation3 + $0x1a0] sm:$0xff] %vm1618_vm6, %v1575_v63  ;;  %v7856_v28 = vld [vmem:[#allocation2 + $0x8e] sm:$0xff] }
 0x225   : > { %1948 = vrot.lane.b32.xlu0 %v1864_v53, %s6537_s11  ;;  %v7861_v53 = vld [vmem:[#allocation2 + $0xc6] sm:$0xff] }
 0x226   : > { %v1573_v18 = vpop.permute.xlu1 %1572 }
 0x227   : > { %1644 = vst.msk [vmem:[#allocation3 + $0x190] sm:$0xff] %vm1618_vm6, %v1573_v18  ;;  %v1579_v22 = vpop.permute.xlu0 %1578 }
 0x228   : > { %1946 = vrot.lane.b32.xlu1 %v1863_v14, %s6537_s11  ;;  %1647 = vst.msk [vmem:[#allocation3 + $0x1c0] sm:$0xff] %vm1618_vm6, %v1579_v22  ;;  %v7866_v14 = vld [vmem:[#allocation2 + $0xae] sm:$0xff] }
 0x229   : > { %1952 = vrot.lane.b32.xlu0 %v1866_v27, %s6537_s11  ;;  %v7871_v27 = vld [vmem:[#allocation2 + $0xe6] sm:$0xff] }
 0x22a   : > { %v1577_v37 = vpop.permute.xlu1 %1576 }
 0x22b   : > { %1646 = vst.msk [vmem:[#allocation3 + $0x1b0] sm:$0xff] %vm1618_vm6, %v1577_v37  ;;  %v1583_v26 = vpop.permute.xlu0 %1582 }
 0x22c   : > { %1950 = vrot.lane.b32.xlu1 %v1865_v24, %s6537_s11  ;;  %1649 = vst.msk [vmem:[#allocation3 + $0x1e0] sm:$0xff] %vm1618_vm6, %v1583_v26  ;;  %v7876_v24 = vld [vmem:[#allocation2 + $0xce] sm:$0xff] }
 0x22d   : > { %1956 = vrot.lane.b32.xlu0 %v1868_v25, %s6537_s11  ;;  %v7881_v25 = vld [vmem:[#allocation2 + $0x106] sm:$0xff] }
 0x22e   : > { %v1581_v32 = vpop.permute.xlu1 %1580 }
 0x22f   : > { %1648 = vst.msk [vmem:[#allocation3 + $0x1d0] sm:$0xff] %vm1618_vm6, %v1581_v32  ;;  %v1716_v40 = vpop.permute.xlu0 %1715 }
 0x230   : > { %1954 = vrot.lane.b32.xlu1 %v1867_v31, %s6537_s11  ;;  %1812 = vst.msk [vmem:[#allocation3] sm:$0xff] %vm1811_vm7, %v1716_v40  ;;  %v7886_v31 = vld [vmem:[#allocation2 + $0xee] sm:$0xff] }
 0x231   : > { %1960 = vrot.lane.b32.xlu0 %v1870_v38, %s6537_s11  ;;  %v7891_v38 = vld [vmem:[#allocation2 + $0x126] sm:$0xff] }
 0x232   : > { %v1585_v57 = vpop.permute.xlu1 %1584 }
 0x233   : > { %1650 = vst.msk [vmem:[#allocation3 + $0x1f0] sm:$0xff] %vm1618_vm6, %v1585_v57  ;;  %v1720_v59 = vpop.permute.xlu0 %1719 }
 0x234   : > { %1958 = vrot.lane.b32.xlu1 %v1869_v54, %s6537_s11  ;;  %1814 = vst.msk [vmem:[#allocation3 + $0x20] sm:$0xff] %vm1811_vm7, %v1720_v59  ;;  %v7896_v54 = vld [vmem:[#allocation2 + $0x10e] sm:$0xff]  ;;  %v7901_v59 = vld [vmem:[#allocation2 + $0x146] sm:$0xff] }
 0x235   : > { %1964 = vrot.lane.b32.xlu0 %v7521_v0, %s6537_s11  ;;  %v1875_v0 = vld [vmem:[#allocation2 + $0x291] sm:$0xff] }
 0x236   : > { %v1718_v1 = vpop.permute.xlu1 %1717 }
 0x237   : > { %1813 = vst.msk [vmem:[#allocation3 + $0x10] sm:$0xff] %vm1811_vm7, %v1718_v1  ;;  %v1724_v5 = vpop.permute.xlu0 %1723  ;;  %v7906_v1 = vld [vmem:[#allocation2 + $0x12e] sm:$0xff] }
 0x238   : > { %1962 = vrot.lane.b32.xlu1 %v1871_v61, %s6537_s11  ;;  %1816 = vst.msk [vmem:[#allocation3 + $0x40] sm:$0xff] %vm1811_vm7, %v1724_v5  ;;  %v7911_v5 = vld [vmem:[#allocation2 + $0x166] sm:$0xff] }
 0x239   : > { %1968 = vrot.lane.b32.xlu0 %v1874_v3, %s6537_s11 }
 0x23a   : > { %v1722_v7 = vpop.permute.xlu1 %1721 }
 0x23b   : > { %1815 = vst.msk [vmem:[#allocation3 + $0x30] sm:$0xff] %vm1811_vm7, %v1722_v7  ;;  %v1728_v10 = vpop.permute.xlu0 %1727 }
 0x23c   : > { %1966 = vrot.lane.b32.xlu1 %v7532_v46, %s6537_s11  ;;  %1818 = vst.msk [vmem:[#allocation3 + $0x60] sm:$0xff] %vm1811_vm7, %v1728_v10  ;;  %v7845_v46 = vld [vmem:[#allocation2 + $0x86] sm:$0xff] }
 0x23d   : > { %2102 = vrot.lane.b32.xlu0 %v2038_v9, %s6538_s12  ;;  %v7916_v9 = vld [vmem:[#allocation2 + $0x14e] sm:$0xff] }
 0x23e   : > { %v1726_v11 = vpop.permute.xlu1 %1725 }
 0x23f   : > { %1817 = vst.msk [vmem:[#allocation3 + $0x50] sm:$0xff] %vm1811_vm7, %v1726_v11  ;;  %v1732_v17 = vpop.permute.xlu0 %1731 }
 0x240   : > { %1970 = vrot.lane.b32.xlu1 %v1875_v0, %s6537_s11  ;;  %1820 = vst.msk [vmem:[#allocation3 + $0x80] sm:$0xff] %vm1811_vm7, %v1732_v17  ;;  %v7921_v0 = vld [vmem:[#allocation2 + $0x186] sm:$0xff] }
 0x241   : > { %2106 = vrot.lane.b32.xlu0 %v2040_v15, %s6538_s12  ;;  %v7926_v15 = vld [vmem:[#allocation2 + $0x16e] sm:$0xff] }
 0x242   : > { %v1730_v41 = vpop.permute.xlu1 %1729 }
 0x243   : > { %1819 = vst.msk [vmem:[#allocation3 + $0x70] sm:$0xff] %vm1811_vm7, %v1730_v41  ;;  %v1736_v21 = vpop.permute.xlu0 %1735 }
 0x244   : > { %2104 = vrot.lane.b32.xlu1 %v2039_v19, %s6538_s12  ;;  %1822 = vst.msk [vmem:[#allocation3 + $0xa0] sm:$0xff] %vm1811_vm7, %v1736_v21  ;;  %v7931_v19 = vld [vmem:[#allocation2 + $0x1a6] sm:$0xff]  ;;  %v7936_v21 = vld [vmem:[#allocation2 + $0x18e] sm:$0xff] }
 0x245   : > { %2110 = vrot.lane.b32.xlu0 %v7845_v46, %s6538_s12 }
 0x246   : > { %v1734_v35 = vpop.permute.xlu1 %1733 }
 0x247   : > { %1821 = vst.msk [vmem:[#allocation3 + $0x90] sm:$0xff] %vm1811_vm7, %v1734_v35  ;;  %v1740_v44 = vpop.permute.xlu0 %1739  ;;  %v7941_v35 = vld [vmem:[#allocation2 + $0x1c6] sm:$0xff] }
 0x248   : > { %2108 = vrot.lane.b32.xlu1 %v2041_v42, %s6538_s12  ;;  %1824 = vst.msk [vmem:[#allocation3 + $0xc0] sm:$0xff] %vm1811_vm7, %v1740_v44 }
 0x249   : > { %2114 = vrot.lane.b32.xlu0 %v7852_v29, %s6538_s12 }
 0x24a   : > { %v1738_v36 = vpop.permute.xlu1 %1737 }
 0x24b   : > { %1823 = vst.msk [vmem:[#allocation3 + $0xb0] sm:$0xff] %vm1811_vm7, %v1738_v36  ;;  %v1744_v63 = vpop.permute.xlu0 %1743  ;;  %v7946_v36 = vld [vmem:[#allocation2 + $0x1ae] sm:$0xff] }
 0x24c   : > { %2112 = vrot.lane.b32.xlu1 %v7856_v28, %s6538_s12  ;;  %1826 = vst.msk [vmem:[#allocation3 + $0xe0] sm:$0xff] %vm1811_vm7, %v1744_v63 }
 0x24d   : > { %2118 = vrot.lane.b32.xlu0 %v7861_v53, %s6538_s12 }
 0x24e   : > { %v1742_v18 = vpop.permute.xlu1 %1741 }
 0x24f   : > { %1825 = vst.msk [vmem:[#allocation3 + $0xd0] sm:$0xff] %vm1811_vm7, %v1742_v18  ;;  %v1748_v22 = vpop.permute.xlu0 %1747  ;;  %v7951_v18 = vld [vmem:[#allocation2 + $0x1e6] sm:$0xff] }
 0x250   : > { %2116 = vrot.lane.b32.xlu1 %v7866_v14, %s6538_s12  ;;  %1828 = vst.msk [vmem:[#allocation3 + $0x100] sm:$0xff] %vm1811_vm7, %v1748_v22 }
 0x251   : > { %2122 = vrot.lane.b32.xlu0 %v7871_v27, %s6538_s12 }
 0x252   : > { %v1746_v37 = vpop.permute.xlu1 %1745 }
 0x253   : > { %1827 = vst.msk [vmem:[#allocation3 + $0xf0] sm:$0xff] %vm1811_vm7, %v1746_v37  ;;  %v1752_v26 = vpop.permute.xlu0 %1751  ;;  %v7956_v37 = vld [vmem:[#allocation2 + $0x1ce] sm:$0xff] }
 0x254   : > { %2120 = vrot.lane.b32.xlu1 %v7876_v24, %s6538_s12  ;;  %1830 = vst.msk [vmem:[#allocation3 + $0x120] sm:$0xff] %vm1811_vm7, %v1752_v26 }
 0x255   : > { %2126 = vrot.lane.b32.xlu0 %v7881_v25, %s6538_s12 }
 0x256   : > { %v1750_v32 = vpop.permute.xlu1 %1749 }
 0x257   : > { %1829 = vst.msk [vmem:[#allocation3 + $0x110] sm:$0xff] %vm1811_vm7, %v1750_v32  ;;  %v1756_v40 = vpop.permute.xlu0 %1755  ;;  %v7961_v32 = vld [vmem:[#allocation2 + $0x206] sm:$0xff] }
 0x258   : > { %2124 = vrot.lane.b32.xlu1 %v7886_v31, %s6538_s12  ;;  %1832 = vst.msk [vmem:[#allocation3 + $0x140] sm:$0xff] %vm1811_vm7, %v1756_v40 }
 0x259   : > { %2130 = vrot.lane.b32.xlu0 %v7891_v38, %s6538_s12 }
 0x25a   : > { %v1754_v57 = vpop.permute.xlu1 %1753 }
 0x25b   : > { %1831 = vst.msk [vmem:[#allocation3 + $0x130] sm:$0xff] %vm1811_vm7, %v1754_v57  ;;  %v1760_v61 = vpop.permute.xlu0 %1759  ;;  %v7966_v57 = vld [vmem:[#allocation2 + $0x1ee] sm:$0xff] }
 0x25c   : > { %2128 = vrot.lane.b32.xlu1 %v7896_v54, %s6538_s12  ;;  %1834 = vst.msk [vmem:[#allocation3 + $0x160] sm:$0xff] %vm1811_vm7, %v1760_v61 }
 0x25d   : > { %2134 = vrot.lane.b32.xlu0 %v7901_v59, %s6538_s12 }
 0x25e   : > { %v1758_v3 = vpop.permute.xlu1 %1757 }
 0x25f   : > { %1833 = vst.msk [vmem:[#allocation3 + $0x150] sm:$0xff] %vm1811_vm7, %v1758_v3  ;;  %v1764_v7 = vpop.permute.xlu0 %1763  ;;  %v7971_v3 = vld [vmem:[#allocation2 + $0x226] sm:$0xff] }
 0x260   : > { %2132 = vrot.lane.b32.xlu1 %v7906_v1, %s6538_s12  ;;  %1836 = vst.msk [vmem:[#allocation3 + $0x180] sm:$0xff] %vm1811_vm7, %v1764_v7 }
 0x261   : > { %2138 = vrot.lane.b32.xlu0 %v7911_v5, %s6538_s12 }
 0x262   : > { %v1762_v10 = vpop.permute.xlu1 %1761 }
 0x263   : > { %1835 = vst.msk [vmem:[#allocation3 + $0x170] sm:$0xff] %vm1811_vm7, %v1762_v10  ;;  %v1768_v11 = vpop.permute.xlu0 %1767  ;;  %v7976_v10 = vld [vmem:[#allocation2 + $0x20e] sm:$0xff] }
 0x264   : > { %2136 = vrot.lane.b32.xlu1 %v7916_v9, %s6538_s12  ;;  %1838 = vst.msk [vmem:[#allocation3 + $0x1a0] sm:$0xff] %vm1811_vm7, %v1768_v11 }
 0x265   : > { %2142 = vrot.lane.b32.xlu0 %v7921_v0, %s6538_s12 }
 0x266   : > { %v1766_v17 = vpop.permute.xlu1 %1765 }
 0x267   : > { %1837 = vst.msk [vmem:[#allocation3 + $0x190] sm:$0xff] %vm1811_vm7, %v1766_v17  ;;  %v1772_v41 = vpop.permute.xlu0 %1771  ;;  %v2231_v17 = vld [vmem:[#allocation2 + $0x48] sm:$0xff] }
 0x268   : > { %2140 = vrot.lane.b32.xlu1 %v7926_v15, %s6538_s12  ;;  %1840 = vst.msk [vmem:[#allocation3 + $0x1c0] sm:$0xff] %vm1811_vm7, %v1772_v41 }
 0x269   : > { %2146 = vrot.lane.b32.xlu0 %v7931_v19, %s6538_s12 }
 0x26a   : > { %v1770_v42 = vpop.permute.xlu1 %1769 }
 0x26b   : > { %1839 = vst.msk [vmem:[#allocation3 + $0x1b0] sm:$0xff] %vm1811_vm7, %v1770_v42  ;;  %v1776_v44 = vpop.permute.xlu0 %1775  ;;  %v7984_v42 = vld [vmem:[#allocation2 + $0x22e] sm:$0xff] }
 0x26c   : > { %2144 = vrot.lane.b32.xlu1 %v7936_v21, %s6538_s12  ;;  %1842 = vst.msk [vmem:[#allocation3 + $0x1e0] sm:$0xff] %vm1811_vm7, %v1776_v44 }
 0x26d   : > { %2150 = vrot.lane.b32.xlu0 %v7941_v35, %s6538_s12 }
 0x26e   : > { %v1774_v63 = vpop.permute.xlu1 %1773 }
 0x26f   : > { %1841 = vst.msk [vmem:[#allocation3 + $0x1d0] sm:$0xff] %vm1811_vm7, %v1774_v63  ;;  %v1909_v22 = vpop.permute.xlu0 %1908  ;;  %v2233_v63 = vld [vmem:[#allocation2 + $0x68] sm:$0xff] }
 0x270   : > { %2148 = vrot.lane.b32.xlu1 %v7946_v36, %s6538_s12  ;;  %2005 = vst.msk [vmem:[#allocation3] sm:$0xff] %vm2004_vm8, %v1909_v22 }
 0x271   : > { %2154 = vrot.lane.b32.xlu0 %v7951_v18, %s6538_s12 }
 0x272   : > { %v1778_v26 = vpop.permute.xlu1 %1777 }
 0x273   : > { %1843 = vst.msk [vmem:[#allocation3 + $0x1f0] sm:$0xff] %vm1811_vm7, %v1778_v26  ;;  %v1913_v40 = vpop.permute.xlu0 %1912  ;;  %v2232_v26 = vld [vmem:[#allocation2 + $0x50] sm:$0xff] }
 0x274   : > { %2152 = vrot.lane.b32.xlu1 %v7956_v37, %s6538_s12  ;;  %2007 = vst.msk [vmem:[#allocation3 + $0x20] sm:$0xff] %vm2004_vm8, %v1913_v40 }
 0x275   : > { %2158 = vrot.lane.b32.xlu0 %v7961_v32, %s6538_s12 }
 0x276   : > { %v1911_v61 = vpop.permute.xlu1 %1910 }
 0x277   : > { %2006 = vst.msk [vmem:[#allocation3 + $0x10] sm:$0xff] %vm2004_vm8, %v1911_v61  ;;  %v1917_v7 = vpop.permute.xlu0 %1916  ;;  %v7993_v61 = vld [vmem:[#allocation2 + $0x88] sm:$0xff] }
 0x278   : > { %2156 = vrot.lane.b32.xlu1 %v7966_v57, %s6538_s12  ;;  %2009 = vst.msk [vmem:[#allocation3 + $0x40] sm:$0xff] %vm2004_vm8, %v1917_v7 }
 0x279   : > { %2162 = vrot.lane.b32.xlu0 %v7971_v3, %s6538_s12 }
 0x27a   : > { %v1915_v11 = vpop.permute.xlu1 %1914 }
 0x27b   : > { %2008 = vst.msk [vmem:[#allocation3 + $0x30] sm:$0xff] %vm2004_vm8, %v1915_v11  ;;  %v1921_v41 = vpop.permute.xlu0 %1920  ;;  %v2234_v11 = vld [vmem:[#allocation2 + $0x70] sm:$0xff] }
 0x27c   : > { %2160 = vrot.lane.b32.xlu1 %v7976_v10, %s6538_s12  ;;  %2011 = vst.msk [vmem:[#allocation3 + $0x60] sm:$0xff] %vm2004_vm8, %v1921_v41 }
 0x27d   : > { %2295 = vrot.lane.b32.xlu0 %v2231_v17, %s6539_s13 }
 0x27e   : > { %v1919_v44 = vpop.permute.xlu1 %1918 }
 0x27f   : > { %2010 = vst.msk [vmem:[#allocation3 + $0x50] sm:$0xff] %vm2004_vm8, %v1919_v44  ;;  %v1925_v22 = vpop.permute.xlu0 %1924  ;;  %v8002_v44 = vld [vmem:[#allocation2 + $0x90] sm:$0xff] }
 0x280   : > { %2164 = vrot.lane.b32.xlu1 %v7984_v42, %s6538_s12  ;;  %2013 = vst.msk [vmem:[#allocation3 + $0x80] sm:$0xff] %vm2004_vm8, %v1925_v22 }
 0x281   : > { %2299 = vrot.lane.b32.xlu0 %v2233_v63, %s6539_s13 }
 0x282   : > { %v1923_v40 = vpop.permute.xlu1 %1922 }
 0x283   : > { %2012 = vst.msk [vmem:[#allocation3 + $0x70] sm:$0xff] %vm2004_vm8, %v1923_v40  ;;  %v1929_v7 = vpop.permute.xlu0 %1928 }
 0x284   : > { %2297 = vrot.lane.b32.xlu1 %v2232_v26, %s6539_s13  ;;  %2015 = vst.msk [vmem:[#allocation3 + $0xa0] sm:$0xff] %vm2004_vm8, %v1929_v7 }
 0x285   : > { %2303 = vrot.lane.b32.xlu0 %v7993_v61, %s6539_s13 }
 0x286   : > { %v1927_v17 = vpop.permute.xlu1 %1926 }
 0x287   : > { %2014 = vst.msk [vmem:[#allocation3 + $0x90] sm:$0xff] %vm2004_vm8, %v1927_v17  ;;  %v1933_v41 = vpop.permute.xlu0 %1932 }
 0x288   : > { %2301 = vrot.lane.b32.xlu1 %v2234_v11, %s6539_s13  ;;  %2017 = vst.msk [vmem:[#allocation3 + $0xc0] sm:$0xff] %vm2004_vm8, %v1933_v41 }
 0x289   : > { %2307 = vrot.lane.b32.xlu0 %v7626_v23, %s6539_s13 }
 0x28a   : > { %v1931_v63 = vpop.permute.xlu1 %1930 }
 0x28b   : > { %2016 = vst.msk [vmem:[#allocation3 + $0xb0] sm:$0xff] %vm2004_vm8, %v1931_v63  ;;  %v1937_v22 = vpop.permute.xlu0 %1936 }
 0x28c   : > { %2305 = vrot.lane.b32.xlu1 %v8002_v44, %s6539_s13  ;;  %2019 = vst.msk [vmem:[#allocation3 + $0xe0] sm:$0xff] %vm2004_vm8, %v1937_v22  ;;  %v2427_v22 = vld [vmem:[#allocation2 + $0x72] sm:$0xff] }
 0x28d   : > { %2311 = vrot.lane.b32.xlu0 %v7634_v43, %s6539_s13 }
 0x28e   : > { %v1935_v26 = vpop.permute.xlu1 %1934 }
 0x28f   : > { %2018 = vst.msk [vmem:[#allocation3 + $0xd0] sm:$0xff] %vm2004_vm8, %v1935_v26  ;;  %v1941_v40 = vpop.permute.xlu0 %1940  ;;  %v8096_v26 = vld [vmem:[#allocation2 + $0xaa] sm:$0xff] }
 0x290   : > { %2309 = vrot.lane.b32.xlu1 %v7638_v47, %s6539_s13  ;;  %2021 = vst.msk [vmem:[#allocation3 + $0x100] sm:$0xff] %vm2004_vm8, %v1941_v40 }
 0x291   : > { %2315 = vrot.lane.b32.xlu0 %v7643_v50, %s6539_s13 }
 0x292   : > { %v1939_v23 = vpop.permute.xlu1 %1938 }
 0x293   : > { %2020 = vst.msk [vmem:[#allocation3 + $0xf0] sm:$0xff] %vm2004_vm8, %v1939_v23  ;;  %v1945_v7 = vpop.permute.xlu0 %1944  ;;  %v8100_v23 = vld [vmem:[#allocation2 + $0x92] sm:$0xff] }
 0x294   : > { %2313 = vrot.lane.b32.xlu1 %v7648_v56, %s6539_s13  ;;  %2023 = vst.msk [vmem:[#allocation3 + $0x120] sm:$0xff] %vm2004_vm8, %v1945_v7 }
 0x295   : > { %2319 = vrot.lane.b32.xlu0 %v7653_v12, %s6539_s13 }
 0x296   : > { %v1943_v43 = vpop.permute.xlu1 %1942 }
 0x297   : > { %2022 = vst.msk [vmem:[#allocation3 + $0x110] sm:$0xff] %vm2004_vm8, %v1943_v43  ;;  %v1949_v47 = vpop.permute.xlu0 %1948  ;;  %v8105_v43 = vld [vmem:[#allocation2 + $0xca] sm:$0xff] }
 0x298   : > { %2317 = vrot.lane.b32.xlu1 %v7658_v16, %s6539_s13  ;;  %2025 = vst.msk [vmem:[#allocation3 + $0x140] sm:$0xff] %vm2004_vm8, %v1949_v47 }
 0x299   : > { %2323 = vrot.lane.b32.xlu0 %v7663_v20, %s6539_s13 }
 0x29a   : > { %v1947_v50 = vpop.permute.xlu1 %1946 }
 0x29b   : > { %2024 = vst.msk [vmem:[#allocation3 + $0x130] sm:$0xff] %vm2004_vm8, %v1947_v50  ;;  %v1953_v56 = vpop.permute.xlu0 %1952  ;;  %v8110_v50 = vld [vmem:[#allocation2 + $0xb2] sm:$0xff] }
 0x29c   : > { %2321 = vrot.lane.b32.xlu1 %v7668_v39, %s6539_s13  ;;  %2027 = vst.msk [vmem:[#allocation3 + $0x160] sm:$0xff] %vm2004_vm8, %v1953_v56 }
 0x29d   : > { %2327 = vrot.lane.b32.xlu0 %v7673_v51, %s6539_s13 }
 0x29e   : > { %v1951_v12 = vpop.permute.xlu1 %1950 }
 0x29f   : > { %2026 = vst.msk [vmem:[#allocation3 + $0x150] sm:$0xff] %vm2004_vm8, %v1951_v12  ;;  %v1957_v16 = vpop.permute.xlu0 %1956  ;;  %v8115_v12 = vld [vmem:[#allocation2 + $0xea] sm:$0xff] }
 0x2a0   : > { %2325 = vrot.lane.b32.xlu1 %v7678_v34, %s6539_s13  ;;  %2029 = vst.msk [vmem:[#allocation3 + $0x180] sm:$0xff] %vm2004_vm8, %v1957_v16 }
 0x2a1   : > { %2331 = vrot.lane.b32.xlu0 %v7683_v48, %s6539_s13 }
 0x2a2   : > { %v1955_v20 = vpop.permute.xlu1 %1954 }
 0x2a3   : > { %2028 = vst.msk [vmem:[#allocation3 + $0x170] sm:$0xff] %vm2004_vm8, %v1955_v20  ;;  %v1961_v39 = vpop.permute.xlu0 %1960  ;;  %v8120_v20 = vld [vmem:[#allocation2 + $0xd2] sm:$0xff] }
 0x2a4   : > { %2329 = vrot.lane.b32.xlu1 %v7688_v30, %s6539_s13  ;;  %2031 = vst.msk [vmem:[#allocation3 + $0x1a0] sm:$0xff] %vm2004_vm8, %v1961_v39 }
 0x2a5   : > { %2335 = vrot.lane.b32.xlu0 %v7693_v33, %s6539_s13 }
 0x2a6   : > { %v1959_v51 = vpop.permute.xlu1 %1958 }
 0x2a7   : > { %2030 = vst.msk [vmem:[#allocation3 + $0x190] sm:$0xff] %vm2004_vm8, %v1959_v51  ;;  %v1965_v34 = vpop.permute.xlu0 %1964  ;;  %v8125_v51 = vld [vmem:[#allocation2 + $0x10a] sm:$0xff] }
 0x2a8   : > { %2333 = vrot.lane.b32.xlu1 %v7698_v45, %s6539_s13  ;;  %2033 = vst.msk [vmem:[#allocation3 + $0x1c0] sm:$0xff] %vm2004_vm8, %v1965_v34 }
 0x2a9   : > { %2339 = vrot.lane.b32.xlu0 %v7703_v49, %s6539_s13 }
 0x2aa   : > { %v1963_v48 = vpop.permute.xlu1 %1962 }
 0x2ab   : > { %2032 = vst.msk [vmem:[#allocation3 + $0x1b0] sm:$0xff] %vm2004_vm8, %v1963_v48  ;;  %v1969_v30 = vpop.permute.xlu0 %1968  ;;  %v8130_v48 = vld [vmem:[#allocation2 + $0xf2] sm:$0xff] }
 0x2ac   : > { %2337 = vrot.lane.b32.xlu1 %v7708_v52, %s6539_s13  ;;  %2035 = vst.msk [vmem:[#allocation3 + $0x1e0] sm:$0xff] %vm2004_vm8, %v1969_v30 }
 0x2ad   : > { %2343 = vrot.lane.b32.xlu0 %v7713_v55, %s6539_s13 }
 0x2ae   : > { %v1967_v33 = vpop.permute.xlu1 %1966 }
 0x2af   : > { %2034 = vst.msk [vmem:[#allocation3 + $0x1d0] sm:$0xff] %vm2004_vm8, %v1967_v33  ;;  %v2103_v45 = vpop.permute.xlu0 %2102  ;;  %v8135_v33 = vld [vmem:[#allocation2 + $0x12a] sm:$0xff] }
 0x2b0   : > { %2341 = vrot.lane.b32.xlu1 %v7718_v58, %s6539_s13  ;;  %2199 = vst.msk [vmem:[#allocation3] sm:$0xff] %vm2198_vm9, %v2103_v45 }
 0x2b1   : > { %2347 = vrot.lane.b32.xlu0 %v7723_v60, %s6539_s13 }
 0x2b2   : > { %v1971_v49 = vpop.permute.xlu1 %1970 }
 0x2b3   : > { %2036 = vst.msk [vmem:[#allocation3 + $0x1f0] sm:$0xff] %vm2004_vm8, %v1971_v49  ;;  %v2107_v52 = vpop.permute.xlu0 %2106  ;;  %v8140_v49 = vld [vmem:[#allocation2 + $0x112] sm:$0xff] }
 0x2b4   : > { %2345 = vrot.lane.b32.xlu1 %v7728_v62, %s6539_s13  ;;  %2201 = vst.msk [vmem:[#allocation3 + $0x20] sm:$0xff] %vm2198_vm9, %v2107_v52  ;;  %v2424_v62 = vld [vmem:[#allocation2 + $0x4a] sm:$0xff] }
 0x2b5   : > { %2351 = vrot.lane.b32.xlu0 %v7733_v2, %s6539_s13 }
 0x2b6   : > { %v2105_v55 = vpop.permute.xlu1 %2104 }
 0x2b7   : > { %2200 = vst.msk [vmem:[#allocation3 + $0x10] sm:$0xff] %vm2198_vm9, %v2105_v55  ;;  %v2111_v58 = vpop.permute.xlu0 %2110  ;;  %v8145_v55 = vld [vmem:[#allocation2 + $0x14a] sm:$0xff] }
 0x2b8   : > { %2349 = vrot.lane.b32.xlu1 %v7738_v4, %s6539_s13  ;;  %2203 = vst.msk [vmem:[#allocation3 + $0x40] sm:$0xff] %vm2198_vm9, %v2111_v58  ;;  %v2426_v4 = vld [vmem:[#allocation2 + $0x6a] sm:$0xff] }
 0x2b9   : > { %2355 = vrot.lane.b32.xlu0 %v7743_v6, %s6539_s13  ;;  %v2425_v6 = vld [vmem:[#allocation2 + $0x52] sm:$0xff] }
 0x2ba   : > { %v2109_v60 = vpop.permute.xlu1 %2108 }
 0x2bb   : > { %2202 = vst.msk [vmem:[#allocation3 + $0x30] sm:$0xff] %vm2198_vm9, %v2109_v60  ;;  %v2115_v11 = vpop.permute.xlu0 %2114  ;;  %v8150_v60 = vld [vmem:[#allocation2 + $0x132] sm:$0xff] }
 0x2bc   : > { %2353 = vrot.lane.b32.xlu1 %v7748_v8, %s6539_s13  ;;  %2205 = vst.msk [vmem:[#allocation3 + $0x60] sm:$0xff] %vm2198_vm9, %v2115_v11  ;;  %v8089_v8 = vld [vmem:[#allocation2 + $0x8a] sm:$0xff] }
 0x2bd   : > { %2488 = vrot.lane.b32.xlu0 %v2424_v62, %s6540_s14  ;;  %v8155_v11 = vld [vmem:[#allocation2 + $0x16a] sm:$0xff] }
 0x2be   : > { %v2113_v2 = vpop.permute.xlu1 %2112 }
 0x2bf   : > { %2204 = vst.msk [vmem:[#allocation3 + $0x50] sm:$0xff] %vm2198_vm9, %v2113_v2  ;;  %v2119_v17 = vpop.permute.xlu0 %2118 }
 0x2c0   : > { %2357 = vrot.lane.b32.xlu1 %v7756_v13, %s6539_s13  ;;  %2207 = vst.msk [vmem:[#allocation3 + $0x80] sm:$0xff] %vm2198_vm9, %v2119_v17 }
 0x2c1   : > { %2492 = vrot.lane.b32.xlu0 %v2426_v4, %s6540_s14  ;;  %v8160_v4 = vld [vmem:[#allocation2 + $0x152] sm:$0xff] }
 0x2c2   : > { %v2117_v41 = vpop.permute.xlu1 %2116 }
 0x2c3   : > { %2206 = vst.msk [vmem:[#allocation3 + $0x70] sm:$0xff] %vm2198_vm9, %v2117_v41  ;;  %v2123_v63 = vpop.permute.xlu0 %2122 }
 0x2c4   : > { %2490 = vrot.lane.b32.xlu1 %v2425_v6, %s6540_s14  ;;  %2209 = vst.msk [vmem:[#allocation3 + $0xa0] sm:$0xff] %vm2198_vm9, %v2123_v63  ;;  %v8165_v6 = vld [vmem:[#allocation2 + $0x18a] sm:$0xff]  ;;  %v8170_v63 = vld [vmem:[#allocation2 + $0x172] sm:$0xff] }
 0x2c5   : > { %2496 = vrot.lane.b32.xlu0 %v8089_v8, %s6540_s14 }
 0x2c6   : > { %v2121_v13 = vpop.permute.xlu1 %2120 }
 0x2c7   : > { %2208 = vst.msk [vmem:[#allocation3 + $0x90] sm:$0xff] %vm2198_vm9, %v2121_v13  ;;  %v2127_v40 = vpop.permute.xlu0 %2126  ;;  %v8175_v13 = vld [vmem:[#allocation2 + $0x1aa] sm:$0xff] }
 0x2c8   : > { %2494 = vrot.lane.b32.xlu1 %v2427_v22, %s6540_s14  ;;  %2211 = vst.msk [vmem:[#allocation3 + $0xc0] sm:$0xff] %vm2198_vm9, %v2127_v40 }
 0x2c9   : > { %2500 = vrot.lane.b32.xlu0 %v8096_v26, %s6540_s14 }
 0x2ca   : > { %v2125_v7 = vpop.permute.xlu1 %2124 }
 0x2cb   : > { %2210 = vst.msk [vmem:[#allocation3 + $0xb0] sm:$0xff] %vm2198_vm9, %v2125_v7  ;;  %v2131_v47 = vpop.permute.xlu0 %2130  ;;  %v8180_v7 = vld [vmem:[#allocation2 + $0x192] sm:$0xff] }
 0x2cc   : > { %2498 = vrot.lane.b32.xlu1 %v8100_v23, %s6540_s14  ;;  %2213 = vst.msk [vmem:[#allocation3 + $0xe0] sm:$0xff] %vm2198_vm9, %v2131_v47 }
 0x2cd   : > { %2504 = vrot.lane.b32.xlu0 %v8105_v43, %s6540_s14 }
 0x2ce   : > { %v2129_v56 = vpop.permute.xlu1 %2128 }
 0x2cf   : > { %2212 = vst.msk [vmem:[#allocation3 + $0xd0] sm:$0xff] %vm2198_vm9, %v2129_v56  ;;  %v2135_v16 = vpop.permute.xlu0 %2134  ;;  %v8185_v56 = vld [vmem:[#allocation2 + $0x1ca] sm:$0xff] }
 0x2d0   : > { %2502 = vrot.lane.b32.xlu1 %v8110_v50, %s6540_s14  ;;  %2215 = vst.msk [vmem:[#allocation3 + $0x100] sm:$0xff] %vm2198_vm9, %v2135_v16 }
 0x2d1   : > { %2508 = vrot.lane.b32.xlu0 %v8115_v12, %s6540_s14 }
 0x2d2   : > { %v2133_v39 = vpop.permute.xlu1 %2132 }
 0x2d3   : > { %2214 = vst.msk [vmem:[#allocation3 + $0xf0] sm:$0xff] %vm2198_vm9, %v2133_v39  ;;  %v2139_v34 = vpop.permute.xlu0 %2138  ;;  %v8190_v39 = vld [vmem:[#allocation2 + $0x1b2] sm:$0xff] }
 0x2d4   : > { %2506 = vrot.lane.b32.xlu1 %v8120_v20, %s6540_s14  ;;  %2217 = vst.msk [vmem:[#allocation3 + $0x120] sm:$0xff] %vm2198_vm9, %v2139_v34 }
 0x2d5   : > { %2512 = vrot.lane.b32.xlu0 %v8125_v51, %s6540_s14 }
 0x2d6   : > { %v2137_v30 = vpop.permute.xlu1 %2136 }
 0x2d7   : > { %2216 = vst.msk [vmem:[#allocation3 + $0x110] sm:$0xff] %vm2198_vm9, %v2137_v30  ;;  %v2143_v45 = vpop.permute.xlu0 %2142  ;;  %v8195_v30 = vld [vmem:[#allocation2 + $0x1ea] sm:$0xff] }
 0x2d8   : > { %2510 = vrot.lane.b32.xlu1 %v8130_v48, %s6540_s14  ;;  %2219 = vst.msk [vmem:[#allocation3 + $0x140] sm:$0xff] %vm2198_vm9, %v2143_v45 }
 0x2d9   : > { %2516 = vrot.lane.b32.xlu0 %v8135_v33, %s6540_s14 }
 0x2da   : > { %v2141_v52 = vpop.permute.xlu1 %2140 }
 0x2db   : > { %2218 = vst.msk [vmem:[#allocation3 + $0x130] sm:$0xff] %vm2198_vm9, %v2141_v52  ;;  %v2147_v58 = vpop.permute.xlu0 %2146  ;;  %v8200_v52 = vld [vmem:[#allocation2 + $0x1d2] sm:$0xff] }
 0x2dc   : > { %2514 = vrot.lane.b32.xlu1 %v8140_v49, %s6540_s14  ;;  %2221 = vst.msk [vmem:[#allocation3 + $0x160] sm:$0xff] %vm2198_vm9, %v2147_v58 }
 0x2dd   : > { %2520 = vrot.lane.b32.xlu0 %v8145_v55, %s6540_s14 }
 0x2de   : > { %v2145_v62 = vpop.permute.xlu1 %2144 }
 0x2df   : > { %2220 = vst.msk [vmem:[#allocation3 + $0x150] sm:$0xff] %vm2198_vm9, %v2145_v62  ;;  %v2151_v2 = vpop.permute.xlu0 %2150  ;;  %v8205_v62 = vld [vmem:[#allocation2 + $0x20a] sm:$0xff] }
 0x2e0   : > { %2518 = vrot.lane.b32.xlu1 %v8150_v60, %s6540_s14  ;;  %2223 = vst.msk [vmem:[#allocation3 + $0x180] sm:$0xff] %vm2198_vm9, %v2151_v2 }
 0x2e1   : > { %2524 = vrot.lane.b32.xlu0 %v8155_v11, %s6540_s14 }
 0x2e2   : > { %v2149_v17 = vpop.permute.xlu1 %2148 }
 0x2e3   : > { %2222 = vst.msk [vmem:[#allocation3 + $0x170] sm:$0xff] %vm2198_vm9, %v2149_v17  ;;  %v2155_v41 = vpop.permute.xlu0 %2154  ;;  %v8210_v17 = vld [vmem:[#allocation2 + $0x1f2] sm:$0xff] }
 0x2e4   : > { %2522 = vrot.lane.b32.xlu1 %v8160_v4, %s6540_s14  ;;  %2225 = vst.msk [vmem:[#allocation3 + $0x1a0] sm:$0xff] %vm2198_vm9, %v2155_v41 }
 0x2e5   : > { %2528 = vrot.lane.b32.xlu0 %v8165_v6, %s6540_s14 }
 0x2e6   : > { %v2153_v22 = vpop.permute.xlu1 %2152 }
 0x2e7   : > { %2224 = vst.msk [vmem:[#allocation3 + $0x190] sm:$0xff] %vm2198_vm9, %v2153_v22  ;;  %v2159_v40 = vpop.permute.xlu0 %2158  ;;  %v8215_v22 = vld [vmem:[#allocation2 + $0x22a] sm:$0xff] }
 0x2e8   : > { %2526 = vrot.lane.b32.xlu1 %v8170_v63, %s6540_s14  ;;  %2227 = vst.msk [vmem:[#allocation3 + $0x1c0] sm:$0xff] %vm2198_vm9, %v2159_v40 }
 0x2e9   : > { %2532 = vrot.lane.b32.xlu0 %v8175_v13, %s6540_s14 }
 0x2ea   : > { %v2157_v47 = vpop.permute.xlu1 %2156 }
 0x2eb   : > { %2226 = vst.msk [vmem:[#allocation3 + $0x1b0] sm:$0xff] %vm2198_vm9, %v2157_v47  ;;  %v2163_v16 = vpop.permute.xlu0 %2162  ;;  %v8220_v47 = vld [vmem:[#allocation2 + $0x212] sm:$0xff] }
 0x2ec   : > { %2530 = vrot.lane.b32.xlu1 %v8180_v7, %s6540_s14  ;;  %2229 = vst.msk [vmem:[#allocation3 + $0x1e0] sm:$0xff] %vm2198_vm9, %v2163_v16 }
 0x2ed   : > { %2536 = vrot.lane.b32.xlu0 %v8185_v56, %s6540_s14 }
 0x2ee   : > { %v2161_v34 = vpop.permute.xlu1 %2160 }
 0x2ef   : > { %2228 = vst.msk [vmem:[#allocation3 + $0x1d0] sm:$0xff] %vm2198_vm9, %v2161_v34  ;;  %v2296_v45 = vpop.permute.xlu0 %2295 }
 0x2f0   : > { %2534 = vrot.lane.b32.xlu1 %v8190_v39, %s6540_s14  ;;  %2392 = vst.msk [vmem:[#allocation3] sm:$0xff] %vm2391_vm10, %v2296_v45  ;;  %v8228_v45 = vld [vmem:[#allocation2 + $0x232] sm:$0xff] }
 0x2f1   : > { %2540 = vrot.lane.b32.xlu0 %v8195_v30, %s6540_s14 }
 0x2f2   : > { %v2165_v58 = vpop.permute.xlu1 %2164 }
 0x2f3   : > { %2230 = vst.msk [vmem:[#allocation3 + $0x1f0] sm:$0xff] %vm2198_vm9, %v2165_v58  ;;  %v2300_v2 = vpop.permute.xlu0 %2299 }
 0x2f4   : > { %2538 = vrot.lane.b32.xlu1 %v8200_v52, %s6540_s14  ;;  %2394 = vst.msk [vmem:[#allocation3 + $0x20] sm:$0xff] %vm2391_vm10, %v2300_v2 }
 0x2f5   : > { %2544 = vrot.lane.b32.xlu0 %v8205_v62, %s6540_s14 }
 0x2f6   : > { %v2298_v41 = vpop.permute.xlu1 %2297 }
 0x2f7   : > { %2393 = vst.msk [vmem:[#allocation3 + $0x10] sm:$0xff] %vm2391_vm10, %v2298_v41  ;;  %v2304_v40 = vpop.permute.xlu0 %2303 }
 0x2f8   : > { %2542 = vrot.lane.b32.xlu1 %v8210_v17, %s6540_s14  ;;  %2396 = vst.msk [vmem:[#allocation3 + $0x40] sm:$0xff] %vm2391_vm10, %v2304_v40 }
 0x2f9   : > { %2548 = vrot.lane.b32.xlu0 %v8215_v22, %s6540_s14 }
 0x2fa   : > { %v2302_v16 = vpop.permute.xlu1 %2301 }
 0x2fb   : > { %2395 = vst.msk [vmem:[#allocation3 + $0x30] sm:$0xff] %vm2391_vm10, %v2302_v16  ;;  %v2308_v34 = vpop.permute.xlu0 %2307 }
 0x2fc   : > { %2546 = vrot.lane.b32.xlu1 %v8220_v47, %s6540_s14  ;;  %2398 = vst.msk [vmem:[#allocation3 + $0x60] sm:$0xff] %vm2391_vm10, %v2308_v34 }
 0x2fd   : > { %2681 = vrot.lane.b32.xlu0 %v7845_v46, %s6541_s15 }
 0x2fe   : > { %v2306_v58 = vpop.permute.xlu1 %2305 }
 0x2ff   : > { %2397 = vst.msk [vmem:[#allocation3 + $0x50] sm:$0xff] %vm2391_vm10, %v2306_v58  ;;  %v2312_v2 = vpop.permute.xlu0 %2311  ;;  %v8324_v58 = vld [vmem:[#allocation2 + $0x24e] sm:$0xff] }
 0x300   : > { %2550 = vrot.lane.b32.xlu1 %v8228_v45, %s6540_s14  ;;  %2400 = vst.msk [vmem:[#allocation3 + $0x80] sm:$0xff] %vm2391_vm10, %v2312_v2 }
 0x301   : > { %2685 = vrot.lane.b32.xlu0 %v7852_v29, %s6541_s15 }
 0x302   : > { %v2310_v41 = vpop.permute.xlu1 %2309 }
 0x303   : > { %2399 = vst.msk [vmem:[#allocation3 + $0x70] sm:$0xff] %vm2391_vm10, %v2310_v41  ;;  %v2316_v40 = vpop.permute.xlu0 %2315  ;;  %v8332_v41 = vld [vmem:[#allocation2 + $0x26e] sm:$0xff] }
 0x304   : > { %2683 = vrot.lane.b32.xlu1 %v7856_v28, %s6541_s15  ;;  %2402 = vst.msk [vmem:[#allocation3 + $0xa0] sm:$0xff] %vm2391_vm10, %v2316_v40  ;;  %v2812_v40 = vld [vmem:[#allocation2 + $0xa8] sm:$0xff] }
 0x305   : > { %2689 = vrot.lane.b32.xlu0 %v7861_v53, %s6541_s15 }
 0x306   : > { %v2314_v46 = vpop.permute.xlu1 %2313 }
 0x307   : > { %2401 = vst.msk [vmem:[#allocation3 + $0x90] sm:$0xff] %vm2391_vm10, %v2314_v46  ;;  %v2320_v16 = vpop.permute.xlu0 %2319 }
 0x308   : > { %2687 = vrot.lane.b32.xlu1 %v7866_v14, %s6541_s15  ;;  %2404 = vst.msk [vmem:[#allocation3 + $0xc0] sm:$0xff] %vm2391_vm10, %v2320_v16 }
 0x309   : > { %2693 = vrot.lane.b32.xlu0 %v7871_v27, %s6541_s15 }
 0x30a   : > { %v2318_v29 = vpop.permute.xlu1 %2317 }
 0x30b   : > { %2403 = vst.msk [vmem:[#allocation3 + $0xb0] sm:$0xff] %vm2391_vm10, %v2318_v29  ;;  %v2324_v28 = vpop.permute.xlu0 %2323  ;;  %v2814_v29 = vld [vmem:[#allocation2 + $0xc8] sm:$0xff] }
 0x30c   : > { %2691 = vrot.lane.b32.xlu1 %v7876_v24, %s6541_s15  ;;  %2406 = vst.msk [vmem:[#allocation3 + $0xe0] sm:$0xff] %vm2391_vm10, %v2324_v28 }
 0x30d   : > { %2697 = vrot.lane.b32.xlu0 %v7881_v25, %s6541_s15 }
 0x30e   : > { %v2322_v53 = vpop.permute.xlu1 %2321 }
 0x30f   : > { %2405 = vst.msk [vmem:[#allocation3 + $0xd0] sm:$0xff] %vm2391_vm10, %v2322_v53  ;;  %v2328_v14 = vpop.permute.xlu0 %2327 }
 0x310   : > { %2695 = vrot.lane.b32.xlu1 %v7886_v31, %s6541_s15  ;;  %2408 = vst.msk [vmem:[#allocation3 + $0x100] sm:$0xff] %vm2391_vm10, %v2328_v14  ;;  %v2816_v14 = vld [vmem:[#allocation2 + $0xe8] sm:$0xff] }
 0x311   : > { %2701 = vrot.lane.b32.xlu0 %v7891_v38, %s6541_s15 }
 0x312   : > { %v2326_v27 = vpop.permute.xlu1 %2325 }
 0x313   : > { %2407 = vst.msk [vmem:[#allocation3 + $0xf0] sm:$0xff] %vm2391_vm10, %v2326_v27  ;;  %v2332_v24 = vpop.permute.xlu0 %2331 }
 0x314   : > { %2699 = vrot.lane.b32.xlu1 %v7896_v54, %s6541_s15  ;;  %2410 = vst.msk [vmem:[#allocation3 + $0x120] sm:$0xff] %vm2391_vm10, %v2332_v24  ;;  %v2815_v24 = vld [vmem:[#allocation2 + $0xd0] sm:$0xff] }
 0x315   : > { %2705 = vrot.lane.b32.xlu0 %v7901_v59, %s6541_s15 }
 0x316   : > { %v2330_v25 = vpop.permute.xlu1 %2329 }
 0x317   : > { %2409 = vst.msk [vmem:[#allocation3 + $0x110] sm:$0xff] %vm2391_vm10, %v2330_v25  ;;  %v2336_v31 = vpop.permute.xlu0 %2335 }
 0x318   : > { %2703 = vrot.lane.b32.xlu1 %v7906_v1, %s6541_s15  ;;  %2412 = vst.msk [vmem:[#allocation3 + $0x140] sm:$0xff] %vm2391_vm10, %v2336_v31 }
 0x319   : > { %2709 = vrot.lane.b32.xlu0 %v7911_v5, %s6541_s15 }
 0x31a   : > { %v2334_v38 = vpop.permute.xlu1 %2333 }
 0x31b   : > { %2411 = vst.msk [vmem:[#allocation3 + $0x130] sm:$0xff] %vm2391_vm10, %v2334_v38  ;;  %v2340_v54 = vpop.permute.xlu0 %2339  ;;  %v2817_v38 = vld [vmem:[#allocation2 + $0xf0] sm:$0xff] }
 0x31c   : > { %2707 = vrot.lane.b32.xlu1 %v7916_v9, %s6541_s15  ;;  %2414 = vst.msk [vmem:[#allocation3 + $0x160] sm:$0xff] %vm2391_vm10, %v2340_v54 }
 0x31d   : > { %2713 = vrot.lane.b32.xlu0 %v7921_v0, %s6541_s15 }
 0x31e   : > { %v2338_v59 = vpop.permute.xlu1 %2337 }
 0x31f   : > { %2413 = vst.msk [vmem:[#allocation3 + $0x150] sm:$0xff] %vm2391_vm10, %v2338_v59  ;;  %v2344_v1 = vpop.permute.xlu0 %2343  ;;  %v2820_v59 = vld [vmem:[#allocation2 + $0x128] sm:$0xff] }
 0x320   : > { %2711 = vrot.lane.b32.xlu1 %v7926_v15, %s6541_s15  ;;  %2416 = vst.msk [vmem:[#allocation3 + $0x180] sm:$0xff] %vm2391_vm10, %v2344_v1 }
 0x321   : > { %2717 = vrot.lane.b32.xlu0 %v7931_v19, %s6541_s15 }
 0x322   : > { %v2342_v5 = vpop.permute.xlu1 %2341 }
 0x323   : > { %2415 = vst.msk [vmem:[#allocation3 + $0x170] sm:$0xff] %vm2391_vm10, %v2342_v5  ;;  %v2348_v9 = vpop.permute.xlu0 %2347  ;;  %v2819_v5 = vld [vmem:[#allocation2 + $0x110] sm:$0xff] }
 0x324   : > { %2715 = vrot.lane.b32.xlu1 %v7936_v21, %s6541_s15  ;;  %2418 = vst.msk [vmem:[#allocation3 + $0x1a0] sm:$0xff] %vm2391_vm10, %v2348_v9 }
 0x325   : > { %2721 = vrot.lane.b32.xlu0 %v7941_v35, %s6541_s15 }
 0x326   : > { %v2346_v0 = vpop.permute.xlu1 %2345 }
 0x327   : > { %2417 = vst.msk [vmem:[#allocation3 + $0x190] sm:$0xff] %vm2391_vm10, %v2346_v0  ;;  %v2352_v15 = vpop.permute.xlu0 %2351  ;;  %v2822_v0 = vld [vmem:[#allocation2 + $0x148] sm:$0xff] }
 0x328   : > { %2719 = vrot.lane.b32.xlu1 %v7946_v36, %s6541_s15  ;;  %2420 = vst.msk [vmem:[#allocation3 + $0x1c0] sm:$0xff] %vm2391_vm10, %v2352_v15 }
 0x329   : > { %2725 = vrot.lane.b32.xlu0 %v7951_v18, %s6541_s15 }
 0x32a   : > { %v2350_v19 = vpop.permute.xlu1 %2349 }
 0x32b   : > { %2419 = vst.msk [vmem:[#allocation3 + $0x1b0] sm:$0xff] %vm2391_vm10, %v2350_v19  ;;  %v2356_v21 = vpop.permute.xlu0 %2355  ;;  %v2821_v19 = vld [vmem:[#allocation2 + $0x130] sm:$0xff] }
 0x32c   : > { %2723 = vrot.lane.b32.xlu1 %v7956_v37, %s6541_s15  ;;  %2422 = vst.msk [vmem:[#allocation3 + $0x1e0] sm:$0xff] %vm2391_vm10, %v2356_v21  ;;  %v8311_v37 = vld [vmem:[#allocation2 + $0x246] sm:$0xff] }
 0x32d   : > { %2729 = vrot.lane.b32.xlu0 %v7961_v32, %s6541_s15 }
 0x32e   : > { %v2354_v35 = vpop.permute.xlu1 %2353 }
 0x32f   : > { %2421 = vst.msk [vmem:[#allocation3 + $0x1d0] sm:$0xff] %vm2391_vm10, %v2354_v35  ;;  %v2489_v36 = vpop.permute.xlu0 %2488  ;;  %v2824_v35 = vld [vmem:[#allocation2 + $0x168] sm:$0xff] }
 0x330   : > { %2727 = vrot.lane.b32.xlu1 %v7966_v57, %s6541_s15  ;;  %2585 = vst.msk [vmem:[#allocation3] sm:$0xff] %vm2584_vm11, %v2489_v36  ;;  %v8319_v57 = vld [vmem:[#allocation2 + $0x266] sm:$0xff] }
 0x331   : > { %2733 = vrot.lane.b32.xlu0 %v7971_v3, %s6541_s15 }
 0x332   : > { %v2358_v18 = vpop.permute.xlu1 %2357 }
 0x333   : > { %2423 = vst.msk [vmem:[#allocation3 + $0x1f0] sm:$0xff] %vm2391_vm10, %v2358_v18  ;;  %v2493_v34 = vpop.permute.xlu0 %2492  ;;  %v2823_v18 = vld [vmem:[#allocation2 + $0x150] sm:$0xff] }
 0x334   : > { %2731 = vrot.lane.b32.xlu1 %v7976_v10, %s6541_s15  ;;  %2587 = vst.msk [vmem:[#allocation3 + $0x20] sm:$0xff] %vm2584_vm11, %v2493_v34 }
 0x335   : > { %2737 = vrot.lane.b32.xlu0 %v8311_v37, %s6541_s15 }
 0x336   : > { %v2491_v32 = vpop.permute.xlu1 %2490 }
 0x337   : > { %2586 = vst.msk [vmem:[#allocation3 + $0x10] sm:$0xff] %vm2584_vm11, %v2491_v32  ;;  %v2497_v3 = vpop.permute.xlu0 %2496  ;;  %v2826_v32 = vld [vmem:[#allocation2 + $0x188] sm:$0xff] }
 0x338   : > { %2735 = vrot.lane.b32.xlu1 %v7984_v42, %s6541_s15  ;;  %2589 = vst.msk [vmem:[#allocation3 + $0x40] sm:$0xff] %vm2584_vm11, %v2497_v3 }
 0x339   : > { %2741 = vrot.lane.b32.xlu0 %v8319_v57, %s6541_s15 }
 0x33a   : > { %v2495_v10 = vpop.permute.xlu1 %2494 }
 0x33b   : > { %2588 = vst.msk [vmem:[#allocation3 + $0x30] sm:$0xff] %vm2584_vm11, %v2495_v10  ;;  %v2501_v2 = vpop.permute.xlu0 %2500  ;;  %v2825_v10 = vld [vmem:[#allocation2 + $0x170] sm:$0xff] }
 0x33c   : > { %2739 = vrot.lane.b32.xlu1 %v8324_v58, %s6541_s15  ;;  %2591 = vst.msk [vmem:[#allocation3 + $0x60] sm:$0xff] %vm2584_vm11, %v2501_v2 }
 0x33d   : > { %2874 = vrot.lane.b32.xlu0 %v7993_v61, %s6542_s16  ;;  %v2813_v61 = vld [vmem:[#allocation2 + $0xb0] sm:$0xff] }
 0x33e   : > { %v2499_v42 = vpop.permute.xlu1 %2498 }
 0x33f   : > { %2590 = vst.msk [vmem:[#allocation3 + $0x50] sm:$0xff] %vm2584_vm11, %v2499_v42  ;;  %v2505_v46 = vpop.permute.xlu0 %2504  ;;  %v2828_v42 = vld [vmem:[#allocation2 + $0x1a8] sm:$0xff] }
 0x340   : > { %2743 = vrot.lane.b32.xlu1 %v8332_v41, %s6541_s15  ;;  %2593 = vst.msk [vmem:[#allocation3 + $0x80] sm:$0xff] %vm2584_vm11, %v2505_v46  ;;  %v2827_v46 = vld [vmem:[#allocation2 + $0x190] sm:$0xff]  ;;  %s9541_s15 = scalar_lea.vmem %s10280_s5, %s6792_s24 }
 0x341   : > { %2878 = vrot.lane.b32.xlu0 %v2812_v40, %s6542_s16 }
 0x342   : > { %v2503_v16 = vpop.permute.xlu1 %2502 }
 0x343   : > { %2592 = vst.msk [vmem:[#allocation3 + $0x70] sm:$0xff] %vm2584_vm11, %v2503_v16  ;;  %v2509_v28 = vpop.permute.xlu0 %2508 }
 0x344   : > { %2876 = vrot.lane.b32.xlu1 %v8002_v44, %s6542_s16  ;;  %2595 = vst.msk [vmem:[#allocation3 + $0xa0] sm:$0xff] %vm2584_vm11, %v2509_v28  ;;  %v2818_v44 = vld [vmem:[#allocation2 + $0x108] sm:$0xff] }
 0x345   : > { %2882 = vrot.lane.b32.xlu0 %v2814_v29, %s6542_s16  ;;  %v2830_v29 = vld [vmem:[#allocation2 + $0x1c8] sm:$0xff] }
 0x346   : > { %v2507_v53 = vpop.permute.xlu1 %2506 }
 0x347   : > { %2594 = vst.msk [vmem:[#allocation3 + $0x90] sm:$0xff] %vm2584_vm11, %v2507_v53  ;;  %v2513_v27 = vpop.permute.xlu0 %2512 }
 0x348   : > { %2880 = vrot.lane.b32.xlu1 %v2813_v61, %s6542_s16  ;;  %2597 = vst.msk [vmem:[#allocation3 + $0xc0] sm:$0xff] %vm2584_vm11, %v2513_v27  ;;  %v2829_v61 = vld [vmem:[#allocation2 + $0x1b0] sm:$0xff] }
 0x349   : > { %2886 = vrot.lane.b32.xlu0 %v2816_v14, %s6542_s16  ;;  %v2832_v14 = vld [vmem:[#allocation2 + $0x1e8] sm:$0xff] }
 0x34a   : > { %v2511_v25 = vpop.permute.xlu1 %2510 }
 0x34b   : > { %2596 = vst.msk [vmem:[#allocation3 + $0xb0] sm:$0xff] %vm2584_vm11, %v2511_v25  ;;  %v2517_v31 = vpop.permute.xlu0 %2516 }
 0x34c   : > { %2884 = vrot.lane.b32.xlu1 %v2815_v24, %s6542_s16  ;;  %2599 = vst.msk [vmem:[#allocation3 + $0xe0] sm:$0xff] %vm2584_vm11, %v2517_v31  ;;  %v2831_v24 = vld [vmem:[#allocation2 + $0x1d0] sm:$0xff] }
 0x34d   : > { %2890 = vrot.lane.b32.xlu0 %v2818_v44, %s6542_s16  ;;  %v2834_v44 = vld [vmem:[#allocation2 + $0x208] sm:$0xff] }
 0x34e   : > { %v2515_v54 = vpop.permute.xlu1 %2514 }
 0x34f   : > { %2598 = vst.msk [vmem:[#allocation3 + $0xd0] sm:$0xff] %vm2584_vm11, %v2515_v54  ;;  %v2521_v1 = vpop.permute.xlu0 %2520 }
 0x350   : > { %2888 = vrot.lane.b32.xlu1 %v2817_v38, %s6542_s16  ;;  %2601 = vst.msk [vmem:[#allocation3 + $0x100] sm:$0xff] %vm2584_vm11, %v2521_v1  ;;  %v2833_v38 = vld [vmem:[#allocation2 + $0x1f0] sm:$0xff] }
 0x351   : > { %2894 = vrot.lane.b32.xlu0 %v2820_v59, %s6542_s16  ;;  %v2836_v59 = vld [vmem:[#allocation2 + $0x228] sm:$0xff] }
 0x352   : > { %v2519_v9 = vpop.permute.xlu1 %2518 }
 0x353   : > { %2600 = vst.msk [vmem:[#allocation3 + $0xf0] sm:$0xff] %vm2584_vm11, %v2519_v9  ;;  %v2525_v15 = vpop.permute.xlu0 %2524 }
 0x354   : > { %2892 = vrot.lane.b32.xlu1 %v2819_v5, %s6542_s16  ;;  %2603 = vst.msk [vmem:[#allocation3 + $0x120] sm:$0xff] %vm2584_vm11, %v2525_v15  ;;  %v2835_v5 = vld [vmem:[#allocation2 + $0x210] sm:$0xff] }
 0x355   : > { %2898 = vrot.lane.b32.xlu0 %v2822_v0, %s6542_s16  ;;  %v2838_v0 = vld [vmem:[#allocation2 + $0x248] sm:$0xff] }
 0x356   : > { %v2523_v21 = vpop.permute.xlu1 %2522 }
 0x357   : > { %2602 = vst.msk [vmem:[#allocation3 + $0x110] sm:$0xff] %vm2584_vm11, %v2523_v21  ;;  %v2529_v36 = vpop.permute.xlu0 %2528 }
 0x358   : > { %2896 = vrot.lane.b32.xlu1 %v2821_v19, %s6542_s16  ;;  %2605 = vst.msk [vmem:[#allocation3 + $0x140] sm:$0xff] %vm2584_vm11, %v2529_v36  ;;  %v2837_v19 = vld [vmem:[#allocation2 + $0x230] sm:$0xff] }
 0x359   : > { %2902 = vrot.lane.b32.xlu0 %v2824_v35, %s6542_s16  ;;  %v2840_v35 = vld [vmem:[#allocation2 + $0x268] sm:$0xff] }
 0x35a   : > { %v2527_v34 = vpop.permute.xlu1 %2526 }
 0x35b   : > { %2604 = vst.msk [vmem:[#allocation3 + $0x130] sm:$0xff] %vm2584_vm11, %v2527_v34  ;;  %v2533_v3 = vpop.permute.xlu0 %2532 }
 0x35c   : > { %2900 = vrot.lane.b32.xlu1 %v2823_v18, %s6542_s16  ;;  %2607 = vst.msk [vmem:[#allocation3 + $0x160] sm:$0xff] %vm2584_vm11, %v2533_v3  ;;  %v2839_v18 = vld [vmem:[#allocation2 + $0x250] sm:$0xff] }
 0x35d   : > { %2906 = vrot.lane.b32.xlu0 %v2826_v32, %s6542_s16  ;;  %v2841_v3 = vld [vmem:[#allocation2 + $0x270] sm:$0xff] }
 0x35e   : > { %v2531_v2 = vpop.permute.xlu1 %2530 }
 0x35f   : > { %2606 = vst.msk [vmem:[#allocation3 + $0x150] sm:$0xff] %vm2584_vm11, %v2531_v2  ;;  %v2537_v40 = vpop.permute.xlu0 %2536 }
 0x360   : > { %2904 = vrot.lane.b32.xlu1 %v2825_v10, %s6542_s16  ;;  %2609 = vst.msk [vmem:[#allocation3 + $0x180] sm:$0xff] %vm2584_vm11, %v2537_v40 }
 0x361   : > { %2910 = vrot.lane.b32.xlu0 %v2828_v42, %s6542_s16 }
 0x362   : > { %v2535_v16 = vpop.permute.xlu1 %2534 }
 0x363   : > { %2608 = vst.msk [vmem:[#allocation3 + $0x170] sm:$0xff] %vm2584_vm11, %v2535_v16  ;;  %v2541_v28 = vpop.permute.xlu0 %2540 }
 0x364   : > { %2908 = vrot.lane.b32.xlu1 %v2827_v46, %s6542_s16  ;;  %2611 = vst.msk [vmem:[#allocation3 + $0x1a0] sm:$0xff] %vm2584_vm11, %v2541_v28  ;;  %v3197_v28 = vld [vmem:[#allocation2 + $0xc6] sm:$0xff] }
 0x365   : > { %2914 = vrot.lane.b32.xlu0 %v2830_v29, %s6542_s16  ;;  %v8494_v29 = vld [vmem:[#allocation2 + $0x252] sm:$0xff] }
 0x366   : > { %v2539_v53 = vpop.permute.xlu1 %2538 }
 0x367   : > { %2610 = vst.msk [vmem:[#allocation3 + $0x190] sm:$0xff] %vm2584_vm11, %v2539_v53  ;;  %v2545_v27 = vpop.permute.xlu0 %2544  ;;  %v8502_v53 = vld [vmem:[#allocation2 + $0x272] sm:$0xff] }
 0x368   : > { %2912 = vrot.lane.b32.xlu1 %v2829_v61, %s6542_s16  ;;  %2613 = vst.msk [vmem:[#allocation3 + $0x1c0] sm:$0xff] %vm2584_vm11, %v2545_v27 }
 0x369   : > { %2918 = vrot.lane.b32.xlu0 %v2832_v14, %s6542_s16  ;;  %v3199_v14 = vld [vmem:[#allocation2 + $0xe6] sm:$0xff] }
 0x36a   : > { %v2543_v25 = vpop.permute.xlu1 %2542 }
 0x36b   : > { %2612 = vst.msk [vmem:[#allocation3 + $0x1b0] sm:$0xff] %vm2584_vm11, %v2543_v25  ;;  %v2549_v31 = vpop.permute.xlu0 %2548 }
 0x36c   : > { %2916 = vrot.lane.b32.xlu1 %v2831_v24, %s6542_s16  ;;  %2615 = vst.msk [vmem:[#allocation3 + $0x1e0] sm:$0xff] %vm2584_vm11, %v2549_v31  ;;  %v3198_v24 = vld [vmem:[#allocation2 + $0xce] sm:$0xff] }
 0x36d   : > { %2922 = vrot.lane.b32.xlu0 %v2834_v44, %s6542_s16  ;;  %v3201_v44 = vld [vmem:[#allocation2 + $0x106] sm:$0xff] }
 0x36e   : > { %v2547_v54 = vpop.permute.xlu1 %2546 }
 0x36f   : > { %2614 = vst.msk [vmem:[#allocation3 + $0x1d0] sm:$0xff] %vm2584_vm11, %v2547_v54  ;;  %v2682_v1 = vpop.permute.xlu0 %2681 }
 0x370   : > { %2920 = vrot.lane.b32.xlu1 %v2833_v38, %s6542_s16  ;;  %2778 = vst.msk [vmem:[#allocation3] sm:$0xff] %vm2777_vm12, %v2682_v1  ;;  %v3200_v38 = vld [vmem:[#allocation2 + $0xee] sm:$0xff] }
 0x371   : > { %2926 = vrot.lane.b32.xlu0 %v2836_v59, %s6542_s16  ;;  %v3203_v59 = vld [vmem:[#allocation2 + $0x126] sm:$0xff] }
 0x372   : > { %v2551_v9 = vpop.permute.xlu1 %2550 }
 0x373   : > { %2616 = vst.msk [vmem:[#allocation3 + $0x1f0] sm:$0xff] %vm2584_vm11, %v2551_v9  ;;  %v2686_v15 = vpop.permute.xlu0 %2685 }
 0x374   : > { %2924 = vrot.lane.b32.xlu1 %v2835_v5, %s6542_s16  ;;  %2780 = vst.msk [vmem:[#allocation3 + $0x20] sm:$0xff] %vm2777_vm12, %v2686_v15  ;;  %v3202_v5 = vld [vmem:[#allocation2 + $0x10e] sm:$0xff] }
 0x375   : > { %2930 = vrot.lane.b32.xlu0 %v2838_v0, %s6542_s16  ;;  %v3205_v0 = vld [vmem:[#allocation2 + $0x146] sm:$0xff] }
 0x376   : > { %v2684_v21 = vpop.permute.xlu1 %2683 }
 0x377   : > { %2779 = vst.msk [vmem:[#allocation3 + $0x10] sm:$0xff] %vm2777_vm12, %v2684_v21  ;;  %v2690_v36 = vpop.permute.xlu0 %2689 }
 0x378   : > { %2928 = vrot.lane.b32.xlu1 %v2837_v19, %s6542_s16  ;;  %2782 = vst.msk [vmem:[#allocation3 + $0x40] sm:$0xff] %vm2777_vm12, %v2690_v36  ;;  %v3204_v19 = vld [vmem:[#allocation2 + $0x12e] sm:$0xff] }
 0x379   : > { %2934 = vrot.lane.b32.xlu0 %v2840_v35, %s6542_s16  ;;  %v3207_v35 = vld [vmem:[#allocation2 + $0x166] sm:$0xff] }
 0x37a   : > { %v2688_v34 = vpop.permute.xlu1 %2687 }
 0x37b   : > { %2781 = vst.msk [vmem:[#allocation3 + $0x30] sm:$0xff] %vm2777_vm12, %v2688_v34  ;;  %v2694_v32 = vpop.permute.xlu0 %2693 }
 0x37c   : > { %2932 = vrot.lane.b32.xlu1 %v2839_v18, %s6542_s16  ;;  %2784 = vst.msk [vmem:[#allocation3 + $0x60] sm:$0xff] %vm2777_vm12, %v2694_v32  ;;  %v3206_v18 = vld [vmem:[#allocation2 + $0x14e] sm:$0xff]  ;;  %v3209_v32 = vld [vmem:[#allocation2 + $0x186] sm:$0xff] }
 0x37d   : > { %3067 = vrot.lane.b32.xlu0 %v8089_v8, %s6543_s17 }
 0x37e   : > { %v2692_v10 = vpop.permute.xlu1 %2691 }
 0x37f   : > { %2783 = vst.msk [vmem:[#allocation3 + $0x50] sm:$0xff] %vm2777_vm12, %v2692_v10  ;;  %v2698_v2 = vpop.permute.xlu0 %2697  ;;  %v3208_v10 = vld [vmem:[#allocation2 + $0x16e] sm:$0xff] }
 0x380   : > { %2936 = vrot.lane.b32.xlu1 %v2841_v3, %s6542_s16  ;;  %2786 = vst.msk [vmem:[#allocation3 + $0x80] sm:$0xff] %vm2777_vm12, %v2698_v2 }
 0x381   : > { %3071 = vrot.lane.b32.xlu0 %v8096_v26, %s6543_s17 }
 0x382   : > { %v2696_v42 = vpop.permute.xlu1 %2695 }
 0x383   : > { %2785 = vst.msk [vmem:[#allocation3 + $0x70] sm:$0xff] %vm2777_vm12, %v2696_v42  ;;  %v2702_v40 = vpop.permute.xlu0 %2701  ;;  %v3211_v42 = vld [vmem:[#allocation2 + $0x1a6] sm:$0xff] }
 0x384   : > { %3069 = vrot.lane.b32.xlu1 %v8100_v23, %s6543_s17  ;;  %2788 = vst.msk [vmem:[#allocation3 + $0xa0] sm:$0xff] %vm2777_vm12, %v2702_v40  ;;  %v8531_v40 = vld [vmem:[#allocation2 + $0x108] sm:$0xff] }
 0x385   : > { %3075 = vrot.lane.b32.xlu0 %v8105_v43, %s6543_s17  ;;  %3426 = vst.msk [vmem:[#allocation3 + $0x48] sm:$0xff] %vm297_vm0, %v8531_v40 }
 0x386   : > { %v2700_v8 = vpop.permute.xlu1 %2699 }
 0x387   : > { %2787 = vst.msk [vmem:[#allocation3 + $0x90] sm:$0xff] %vm2777_vm12, %v2700_v8  ;;  %v2706_v46 = vpop.permute.xlu0 %2705 }
 0x388   : > { %3073 = vrot.lane.b32.xlu1 %v8110_v50, %s6543_s17  ;;  %2790 = vst.msk [vmem:[#allocation3 + $0xc0] sm:$0xff] %vm2777_vm12, %v2706_v46  ;;  %v3210_v46 = vld [vmem:[#allocation2 + $0x18e] sm:$0xff] }
 0x389   : > { %3079 = vrot.lane.b32.xlu0 %v8115_v12, %s6543_s17 }
 0x38a   : > { %v2704_v26 = vpop.permute.xlu1 %2703 }
 0x38b   : > { %2789 = vst.msk [vmem:[#allocation3 + $0xb0] sm:$0xff] %vm2777_vm12, %v2704_v26  ;;  %v2710_v23 = vpop.permute.xlu0 %2709 }
 0x38c   : > { %3077 = vrot.lane.b32.xlu1 %v8120_v20, %s6543_s17  ;;  %2792 = vst.msk [vmem:[#allocation3 + $0xe0] sm:$0xff] %vm2777_vm12, %v2710_v23  ;;  %v3213_v23 = vld [vmem:[#allocation2 + $0x1c6] sm:$0xff] }
 0x38d   : > { %3083 = vrot.lane.b32.xlu0 %v8125_v51, %s6543_s17 }
 0x38e   : > { %v2708_v43 = vpop.permute.xlu1 %2707 }
 0x38f   : > { %2791 = vst.msk [vmem:[#allocation3 + $0xd0] sm:$0xff] %vm2777_vm12, %v2708_v43  ;;  %v2714_v50 = vpop.permute.xlu0 %2713 }
 0x390   : > { %3081 = vrot.lane.b32.xlu1 %v8130_v48, %s6543_s17  ;;  %2794 = vst.msk [vmem:[#allocation3 + $0x100] sm:$0xff] %vm2777_vm12, %v2714_v50  ;;  %v3212_v50 = vld [vmem:[#allocation2 + $0x1ae] sm:$0xff] }
 0x391   : > { %3087 = vrot.lane.b32.xlu0 %v8135_v33, %s6543_s17 }
 0x392   : > { %v2712_v12 = vpop.permute.xlu1 %2711 }
 0x393   : > { %2793 = vst.msk [vmem:[#allocation3 + $0xf0] sm:$0xff] %vm2777_vm12, %v2712_v12  ;;  %v2718_v20 = vpop.permute.xlu0 %2717 }
 0x394   : > { %3085 = vrot.lane.b32.xlu1 %v8140_v49, %s6543_s17  ;;  %2796 = vst.msk [vmem:[#allocation3 + $0x120] sm:$0xff] %vm2777_vm12, %v2718_v20  ;;  %v3215_v20 = vld [vmem:[#allocation2 + $0x1e6] sm:$0xff] }
 0x395   : > { %3091 = vrot.lane.b32.xlu0 %v8145_v55, %s6543_s17 }
 0x396   : > { %v2716_v51 = vpop.permute.xlu1 %2715 }
 0x397   : > { %2795 = vst.msk [vmem:[#allocation3 + $0x110] sm:$0xff] %vm2777_vm12, %v2716_v51  ;;  %v2722_v48 = vpop.permute.xlu0 %2721 }
 0x398   : > { %3089 = vrot.lane.b32.xlu1 %v8150_v60, %s6543_s17  ;;  %2798 = vst.msk [vmem:[#allocation3 + $0x140] sm:$0xff] %vm2777_vm12, %v2722_v48  ;;  %v3214_v48 = vld [vmem:[#allocation2 + $0x1ce] sm:$0xff] }
 0x399   : > { %3095 = vrot.lane.b32.xlu0 %v8155_v11, %s6543_s17 }
 0x39a   : > { %v2720_v33 = vpop.permute.xlu1 %2719 }
 0x39b   : > { %2797 = vst.msk [vmem:[#allocation3 + $0x130] sm:$0xff] %vm2777_vm12, %v2720_v33  ;;  %v2726_v49 = vpop.permute.xlu0 %2725 }
 0x39c   : > { %3093 = vrot.lane.b32.xlu1 %v8160_v4, %s6543_s17  ;;  %2800 = vst.msk [vmem:[#allocation3 + $0x160] sm:$0xff] %vm2777_vm12, %v2726_v49  ;;  %v3217_v49 = vld [vmem:[#allocation2 + $0x206] sm:$0xff] }
 0x39d   : > { %3099 = vrot.lane.b32.xlu0 %v8165_v6, %s6543_s17 }
 0x39e   : > { %v2724_v55 = vpop.permute.xlu1 %2723 }
 0x39f   : > { %2799 = vst.msk [vmem:[#allocation3 + $0x150] sm:$0xff] %vm2777_vm12, %v2724_v55  ;;  %v2730_v60 = vpop.permute.xlu0 %2729 }
 0x3a0   : > { %3097 = vrot.lane.b32.xlu1 %v8170_v63, %s6543_s17  ;;  %2802 = vst.msk [vmem:[#allocation3 + $0x180] sm:$0xff] %vm2777_vm12, %v2730_v60  ;;  %v3216_v60 = vld [vmem:[#allocation2 + $0x1ee] sm:$0xff] }
 0x3a1   : > { %3103 = vrot.lane.b32.xlu0 %v8175_v13, %s6543_s17 }
 0x3a2   : > { %v2728_v11 = vpop.permute.xlu1 %2727 }
 0x3a3   : > { %2801 = vst.msk [vmem:[#allocation3 + $0x170] sm:$0xff] %vm2777_vm12, %v2728_v11  ;;  %v2734_v4 = vpop.permute.xlu0 %2733  ;;  %v8549_v11 = vld [vmem:[#allocation2 + $0x110] sm:$0xff] }
 0x3a4   : > { %3101 = vrot.lane.b32.xlu1 %v8180_v7, %s6543_s17  ;;  %2804 = vst.msk [vmem:[#allocation3 + $0x1a0] sm:$0xff] %vm2777_vm12, %v2734_v4 }
 0x3a5   : > { %3107 = vrot.lane.b32.xlu0 %v8185_v56, %s6543_s17  ;;  %3427 = vst.msk [vmem:[#allocation3 + $0x58] sm:$0xff] %vm297_vm0, %v8549_v11 }
 0x3a6   : > { %v2732_v6 = vpop.permute.xlu1 %2731 }
 0x3a7   : > { %2803 = vst.msk [vmem:[#allocation3 + $0x190] sm:$0xff] %vm2777_vm12, %v2732_v6  ;;  %v2738_v63 = vpop.permute.xlu0 %2737  ;;  %v3219_v6 = vld [vmem:[#allocation2 + $0x226] sm:$0xff] }
 0x3a8   : > { %3105 = vrot.lane.b32.xlu1 %v8190_v39, %s6543_s17  ;;  %2806 = vst.msk [vmem:[#allocation3 + $0x1c0] sm:$0xff] %vm2777_vm12, %v2738_v63 }
 0x3a9   : > { %3111 = vrot.lane.b32.xlu0 %v8195_v30, %s6543_s17 }
 0x3aa   : > { %v2736_v13 = vpop.permute.xlu1 %2735 }
 0x3ab   : > { %2805 = vst.msk [vmem:[#allocation3 + $0x1b0] sm:$0xff] %vm2777_vm12, %v2736_v13  ;;  %v2742_v7 = vpop.permute.xlu0 %2741  ;;  %v3218_v13 = vld [vmem:[#allocation2 + $0x20e] sm:$0xff] }
 0x3ac   : > { %3109 = vrot.lane.b32.xlu1 %v8200_v52, %s6543_s17  ;;  %2808 = vst.msk [vmem:[#allocation3 + $0x1e0] sm:$0xff] %vm2777_vm12, %v2742_v7  ;;  %v8481_v52 = vld [vmem:[#allocation2 + $0x24a] sm:$0xff] }
 0x3ad   : > { %3115 = vrot.lane.b32.xlu0 %v8205_v62, %s6543_s17 }
 0x3ae   : > { %v2740_v56 = vpop.permute.xlu1 %2739 }
 0x3af   : > { %2807 = vst.msk [vmem:[#allocation3 + $0x1d0] sm:$0xff] %vm2777_vm12, %v2740_v56  ;;  %v2875_v39 = vpop.permute.xlu0 %2874 }
 0x3b0   : > { %3113 = vrot.lane.b32.xlu1 %v8210_v17, %s6543_s17  ;;  %2971 = vst.msk [vmem:[#allocation3] sm:$0xff] %vm2970_vm13, %v2875_v39  ;;  %v8489_v17 = vld [vmem:[#allocation2 + $0x26a] sm:$0xff] }
 0x3b1   : > { %3119 = vrot.lane.b32.xlu0 %v8215_v22, %s6543_s17  ;;  %v3220_v39 = vld [vmem:[#allocation2 + $0x22e] sm:$0xff] }
 0x3b2   : > { %v2744_v30 = vpop.permute.xlu1 %2743 }
 0x3b3   : > { %2809 = vst.msk [vmem:[#allocation3 + $0x1f0] sm:$0xff] %vm2777_vm12, %v2744_v30  ;;  %v2879_v16 = vpop.permute.xlu0 %2878 }
 0x3b4   : > { %3117 = vrot.lane.b32.xlu1 %v8220_v47, %s6543_s17  ;;  %2973 = vst.msk [vmem:[#allocation3 + $0x20] sm:$0xff] %vm2970_vm13, %v2879_v16  ;;  %v8564_v16 = vld [vmem:[#allocation2 + $0xc8] sm:$0xff] }
 0x3b5   : > { %3123 = vrot.lane.b32.xlu0 %v8481_v52, %s6543_s17  ;;  %3422 = vst.msk [vmem:[#allocation3 + $0x8] sm:$0xff] %vm297_vm0, %v8564_v16 }
 0x3b6   : > { %v2877_v62 = vpop.permute.xlu1 %2876 }
 0x3b7   : > { %2972 = vst.msk [vmem:[#allocation3 + $0x10] sm:$0xff] %vm2970_vm13, %v2877_v62  ;;  %v2883_v22 = vpop.permute.xlu0 %2882 }
 0x3b8   : > { %3121 = vrot.lane.b32.xlu1 %v8228_v45, %s6543_s17  ;;  %2975 = vst.msk [vmem:[#allocation3 + $0x40] sm:$0xff] %vm2970_vm13, %v2883_v22 }
 0x3b9   : > { %3127 = vrot.lane.b32.xlu0 %v8489_v17, %s6543_s17 }
 0x3ba   : > { %v2881_v47 = vpop.permute.xlu1 %2880 }
 0x3bb   : > { %2974 = vst.msk [vmem:[#allocation3 + $0x30] sm:$0xff] %vm2970_vm13, %v2881_v47  ;;  %v2887_v61 = vpop.permute.xlu0 %2886  ;;  %v8573_v47 = vld [vmem:[#allocation2 + $0xe8] sm:$0xff] }
 0x3bc   : > { %3125 = vrot.lane.b32.xlu1 %v8494_v29, %s6543_s17  ;;  %2977 = vst.msk [vmem:[#allocation3 + $0x60] sm:$0xff] %vm2970_vm13, %v2887_v61  ;;  %v8580_v61 = vld [vmem:[#allocation2 + $0xd0] sm:$0xff] }
 0x3bd   : > { %3261 = vrot.lane.b32.xlu0 %v3197_v28, %s6544_s18  ;;  %3424 = vst.msk [vmem:[#allocation3 + $0x28] sm:$0xff] %vm297_vm0, %v8573_v47  ;;  %3423 = vst.msk [vmem:[#allocation3 + $0x18] sm:$0xff] %vm297_vm0, %v8580_v61 }
 0x3be   : > { %v2885_v45 = vpop.permute.xlu1 %2884 }
 0x3bf   : > { %2976 = vst.msk [vmem:[#allocation3 + $0x50] sm:$0xff] %vm2970_vm13, %v2885_v45  ;;  %v2891_v27 = vpop.permute.xlu0 %2890  ;;  %v3227_v45 = vld [vmem:[#allocation2 + $0x2a6] sm:$0xff] }
 0x3c0   : > { %3129 = vrot.lane.b32.xlu1 %v8502_v53, %s6543_s17  ;;  %2979 = vst.msk [vmem:[#allocation3 + $0x80] sm:$0xff] %vm2970_vm13, %v2891_v27  ;;  %v8589_v27 = vld [vmem:[#allocation2 + $0xf0] sm:$0xff] }
 0x3c1   : > { %3265 = vrot.lane.b32.xlu0 %v3199_v14, %s6544_s18  ;;  %3425 = vst.msk [vmem:[#allocation3 + $0x38] sm:$0xff] %vm297_vm0, %v8589_v27 }
 0x3c2   : > { %v2889_v25 = vpop.permute.xlu1 %2888 }
 0x3c3   : > { %2978 = vst.msk [vmem:[#allocation3 + $0x70] sm:$0xff] %vm2970_vm13, %v2889_v25  ;;  %v2895_v31 = vpop.permute.xlu0 %2894  ;;  %v3454_v25 = vld [vmem:[#allocation2 + $0xca] sm:$0xff] }
 0x3c4   : > { %3263 = vrot.lane.b32.xlu1 %v3198_v24, %s6544_s18  ;;  %2981 = vst.msk [vmem:[#allocation3 + $0xa0] sm:$0xff] %vm2970_vm13, %v2895_v31 }
 0x3c5   : > { %3269 = vrot.lane.b32.xlu0 %v3201_v44, %s6544_s18  ;;  %v8595_v44 = vld [vmem:[#allocation2 + $0x128] sm:$0xff] }
 0x3c6   : > { %v2893_v54 = vpop.permute.xlu1 %2892  ;;  %3428 = vst.msk [vmem:[#allocation3 + $0x68] sm:$0xff] %vm297_vm0, %v8595_v44 }
 0x3c7   : > { %2980 = vst.msk [vmem:[#allocation3 + $0x90] sm:$0xff] %vm2970_vm13, %v2893_v54  ;;  %v2899_v1 = vpop.permute.xlu0 %2898  ;;  %v3456_v54 = vld [vmem:[#allocation2 + $0xea] sm:$0xff] }
 0x3c8   : > { %3267 = vrot.lane.b32.xlu1 %v3200_v38, %s6544_s18  ;;  %2983 = vst.msk [vmem:[#allocation3 + $0xc0] sm:$0xff] %vm2970_vm13, %v2899_v1 }
 0x3c9   : > { %3273 = vrot.lane.b32.xlu0 %v3203_v59, %s6544_s18  ;;  %v8603_v59 = vld [vmem:[#allocation2 + $0x148] sm:$0xff] }
 0x3ca   : > { %v2897_v9 = vpop.permute.xlu1 %2896  ;;  %3430 = vst.msk [vmem:[#allocation3 + $0x88] sm:$0xff] %vm297_vm0, %v8603_v59 }
 0x3cb   : > { %2982 = vst.msk [vmem:[#allocation3 + $0xb0] sm:$0xff] %vm2970_vm13, %v2897_v9  ;;  %v2903_v15 = vpop.permute.xlu0 %2902  ;;  %v8609_v9 = vld [vmem:[#allocation2 + $0x130] sm:$0xff] }
 0x3cc   : > { %3271 = vrot.lane.b32.xlu1 %v3202_v5, %s6544_s18  ;;  %2985 = vst.msk [vmem:[#allocation3 + $0xe0] sm:$0xff] %vm2970_vm13, %v2903_v15  ;;  %v3455_v5 = vld [vmem:[#allocation2 + $0xd2] sm:$0xff]  ;;  %v3458_v15 = vld [vmem:[#allocation2 + $0x10a] sm:$0xff] }
 0x3cd   : > { %3277 = vrot.lane.b32.xlu0 %v3205_v0, %s6544_s18  ;;  %3429 = vst.msk [vmem:[#allocation3 + $0x78] sm:$0xff] %vm297_vm0, %v8609_v9 }
 0x3ce   : > { %v2901_v21 = vpop.permute.xlu1 %2900 }
 0x3cf   : > { %2984 = vst.msk [vmem:[#allocation3 + $0xd0] sm:$0xff] %vm2970_vm13, %v2901_v21  ;;  %v2907_v36 = vpop.permute.xlu0 %2906 }
 0x3d0   : > { %3275 = vrot.lane.b32.xlu1 %v3204_v19, %s6544_s18  ;;  %2987 = vst.msk [vmem:[#allocation3 + $0x100] sm:$0xff] %vm2970_vm13, %v2907_v36  ;;  %v8615_v19 = vld [vmem:[#allocation2 + $0x168] sm:$0xff]  ;;  %v8621_v36 = vld [vmem:[#allocation2 + $0x150] sm:$0xff] }
 0x3d1   : > { %3281 = vrot.lane.b32.xlu0 %v3207_v35, %s6544_s18  ;;  %3432 = vst.msk [vmem:[#allocation3 + $0xa8] sm:$0xff] %vm297_vm0, %v8615_v19  ;;  %v3457_v35 = vld [vmem:[#allocation2 + $0xf2] sm:$0xff]  ;;  %3431 = vst.msk [vmem:[#allocation3 + $0x98] sm:$0xff] %vm297_vm0, %v8621_v36 }
 0x3d2   : > { %v2905_v34 = vpop.permute.xlu1 %2904 }
 0x3d3   : > { %2986 = vst.msk [vmem:[#allocation3 + $0xf0] sm:$0xff] %vm2970_vm13, %v2905_v34  ;;  %v2911_v3 = vpop.permute.xlu0 %2910  ;;  %v3460_v34 = vld [vmem:[#allocation2 + $0x12a] sm:$0xff] }
 0x3d4   : > { %3279 = vrot.lane.b32.xlu1 %v3206_v18, %s6544_s18  ;;  %2989 = vst.msk [vmem:[#allocation3 + $0x120] sm:$0xff] %vm2970_vm13, %v2911_v3 }
 0x3d5   : > { %3285 = vrot.lane.b32.xlu0 %v3209_v32, %s6544_s18  ;;  %v8627_v32 = vld [vmem:[#allocation2 + $0x188] sm:$0xff] }
 0x3d6   : > { %v2909_v2 = vpop.permute.xlu1 %2908  ;;  %3434 = vst.msk [vmem:[#allocation3 + $0xc8] sm:$0xff] %vm297_vm0, %v8627_v32 }
 0x3d7   : > { %2988 = vst.msk [vmem:[#allocation3 + $0x110] sm:$0xff] %vm2970_vm13, %v2909_v2  ;;  %v2915_v8 = vpop.permute.xlu0 %2914  ;;  %v8633_v2 = vld [vmem:[#allocation2 + $0x170] sm:$0xff] }
 0x3d8   : > { %3283 = vrot.lane.b32.xlu1 %v3208_v10, %s6544_s18  ;;  %2991 = vst.msk [vmem:[#allocation3 + $0x140] sm:$0xff] %vm2970_vm13, %v2915_v8  ;;  %v3459_v10 = vld [vmem:[#allocation2 + $0x112] sm:$0xff]  ;;  %v3462_v8 = vld [vmem:[#allocation2 + $0x14a] sm:$0xff] }
 0x3d9   : > { %3289 = vrot.lane.b32.xlu0 %v3211_v42, %s6544_s18  ;;  %3433 = vst.msk [vmem:[#allocation3 + $0xb8] sm:$0xff] %vm297_vm0, %v8633_v2 }
 0x3da   : > { %v2913_v26 = vpop.permute.xlu1 %2912 }
 0x3db   : > { %2990 = vst.msk [vmem:[#allocation3 + $0x130] sm:$0xff] %vm2970_vm13, %v2913_v26  ;;  %v2919_v43 = vpop.permute.xlu0 %2918 }
 0x3dc   : > { %3287 = vrot.lane.b32.xlu1 %v3210_v46, %s6544_s18  ;;  %2993 = vst.msk [vmem:[#allocation3 + $0x160] sm:$0xff] %vm2970_vm13, %v2919_v43  ;;  %v8639_v46 = vld [vmem:[#allocation2 + $0x1a8] sm:$0xff]  ;;  %v8645_v43 = vld [vmem:[#allocation2 + $0x190] sm:$0xff] }
 0x3dd   : > { %3293 = vrot.lane.b32.xlu0 %v3213_v23, %s6544_s18  ;;  %3436 = vst.msk [vmem:[#allocation3 + $0xe8] sm:$0xff] %vm297_vm0, %v8639_v46  ;;  %v3461_v23 = vld [vmem:[#allocation2 + $0x132] sm:$0xff]  ;;  %3435 = vst.msk [vmem:[#allocation3 + $0xd8] sm:$0xff] %vm297_vm0, %v8645_v43 }
 0x3de   : > { %v2917_v12 = vpop.permute.xlu1 %2916 }
 0x3df   : > { %2992 = vst.msk [vmem:[#allocation3 + $0x150] sm:$0xff] %vm2970_vm13, %v2917_v12  ;;  %v2923_v51 = vpop.permute.xlu0 %2922  ;;  %v3464_v12 = vld [vmem:[#allocation2 + $0x16a] sm:$0xff] }
 0x3e0   : > { %3291 = vrot.lane.b32.xlu1 %v3212_v50, %s6544_s18  ;;  %2995 = vst.msk [vmem:[#allocation3 + $0x180] sm:$0xff] %vm2970_vm13, %v2923_v51 }
 0x3e1   : > { %3297 = vrot.lane.b32.xlu0 %v3215_v20, %s6544_s18  ;;  %v8651_v20 = vld [vmem:[#allocation2 + $0x1c8] sm:$0xff] }
 0x3e2   : > { %v2921_v33 = vpop.permute.xlu1 %2920  ;;  %3438 = vst.msk [vmem:[#allocation3 + $0x108] sm:$0xff] %vm297_vm0, %v8651_v20 }
 0x3e3   : > { %2994 = vst.msk [vmem:[#allocation3 + $0x170] sm:$0xff] %vm2970_vm13, %v2921_v33  ;;  %v2927_v55 = vpop.permute.xlu0 %2926  ;;  %v8657_v33 = vld [vmem:[#allocation2 + $0x1b0] sm:$0xff] }
 0x3e4   : > { %3295 = vrot.lane.b32.xlu1 %v3214_v48, %s6544_s18  ;;  %2997 = vst.msk [vmem:[#allocation3 + $0x1a0] sm:$0xff] %vm2970_vm13, %v2927_v55  ;;  %v3463_v48 = vld [vmem:[#allocation2 + $0x152] sm:$0xff]  ;;  %v3466_v55 = vld [vmem:[#allocation2 + $0x18a] sm:$0xff] }
 0x3e5   : > { %3301 = vrot.lane.b32.xlu0 %v3217_v49, %s6544_s18  ;;  %3437 = vst.msk [vmem:[#allocation3 + $0xf8] sm:$0xff] %vm297_vm0, %v8657_v33 }
 0x3e6   : > { %v2925_v4 = vpop.permute.xlu1 %2924 }
 0x3e7   : > { %2996 = vst.msk [vmem:[#allocation3 + $0x190] sm:$0xff] %vm2970_vm13, %v2925_v4  ;;  %v2931_v63 = vpop.permute.xlu0 %2930 }
 0x3e8   : > { %3299 = vrot.lane.b32.xlu1 %v3216_v60, %s6544_s18  ;;  %2999 = vst.msk [vmem:[#allocation3 + $0x1c0] sm:$0xff] %vm2970_vm13, %v2931_v63  ;;  %v3408_v60 = vld [vmem:[#allocation2 + $0x1e8] sm:$0xff]  ;;  %v8666_v63 = vld [vmem:[#allocation2 + $0x1d0] sm:$0xff] }
 0x3e9   : > { %3305 = vrot.lane.b32.xlu0 %v3219_v6, %s6544_s18  ;;  %3440 = vst.msk [vmem:[#allocation3 + $0x128] sm:$0xff] %vm297_vm0, %v3408_v60  ;;  %v3465_v6 = vld [vmem:[#allocation2 + $0x172] sm:$0xff]  ;;  %3439 = vst.msk [vmem:[#allocation3 + $0x118] sm:$0xff] %vm297_vm0, %v8666_v63 }
 0x3ea   : > { %v2929_v7 = vpop.permute.xlu1 %2928 }
 0x3eb   : > { %2998 = vst.msk [vmem:[#allocation3 + $0x1b0] sm:$0xff] %vm2970_vm13, %v2929_v7  ;;  %v2935_v56 = vpop.permute.xlu0 %2934  ;;  %v3468_v7 = vld [vmem:[#allocation2 + $0x1aa] sm:$0xff] }
 0x3ec   : > { %3303 = vrot.lane.b32.xlu1 %v3218_v13, %s6544_s18  ;;  %3001 = vst.msk [vmem:[#allocation3 + $0x1e0] sm:$0xff] %vm2970_vm13, %v2935_v56  ;;  %v3410_v56 = vld [vmem:[#allocation2 + $0x208] sm:$0xff] }
 0x3ed   : > { %3309 = vrot.lane.b32.xlu0 %v8311_v37, %s6544_s18  ;;  %v3225_v37 = vld [vmem:[#allocation2 + $0x286] sm:$0xff]  ;;  %3442 = vst.msk [vmem:[#allocation3 + $0x148] sm:$0xff] %vm297_vm0, %v3410_v56 }
 0x3ee   : > { %v2933_v30 = vpop.permute.xlu1 %2932  ;;  %v5447_v56 = vld [vmem:[%s10276_s1 + $0x40] sm:$0xff] }
 0x3ef   : > { %3000 = vst.msk [vmem:[#allocation3 + $0x1d0] sm:$0xff] %vm2970_vm13, %v2933_v30  ;;  %v3068_v62 = vpop.permute.xlu0 %3067  ;;  %v3467_v30 = vld [vmem:[#allocation2 + $0x192] sm:$0xff] }
 0x3f0   : > { %3307 = vrot.lane.b32.xlu1 %v3220_v39, %s6544_s18  ;;  %3164 = vst.msk [vmem:[#allocation3] sm:$0xff] %vm3163_vm14, %v3068_v62  ;;  %v3409_v62 = vld [vmem:[#allocation2 + $0x1f0] sm:$0xff] }
 0x3f1   : > { %3313 = vrot.lane.b32.xlu0 %v8319_v57, %s6544_s18  ;;  %3441 = vst.msk [vmem:[#allocation3 + $0x138] sm:$0xff] %vm297_vm0, %v3409_v62 }
 0x3f2   : > { %v2937_v22 = vpop.permute.xlu1 %2936 }
 0x3f3   : > { %3002 = vst.msk [vmem:[#allocation3 + $0x1f0] sm:$0xff] %vm2970_vm13, %v2937_v22  ;;  %v3072_v28 = vpop.permute.xlu0 %3071 }
 0x3f4   : > { %3311 = vrot.lane.b32.xlu1 %v8324_v58, %s6544_s18  ;;  %3166 = vst.msk [vmem:[#allocation3 + $0x20] sm:$0xff] %vm3163_vm14, %v3072_v28  ;;  %v3226_v58 = vld [vmem:[#allocation2 + $0x28e] sm:$0xff] }
 0x3f5   : > { %3317 = vrot.lane.b32.xlu0 %v3225_v37, %s6544_s18  ;;  %v3470_v37 = vld [vmem:[#allocation2 + $0x1ca] sm:$0xff] }
 0x3f6   : > { %v3070_v57 = vpop.permute.xlu1 %3069  ;;  %v3412_v28 = vld [vmem:[#allocation2 + $0x228] sm:$0xff] }
 0x3f7   : > { %3165 = vst.msk [vmem:[#allocation3 + $0x10] sm:$0xff] %vm3163_vm14, %v3070_v57  ;;  %v3076_v14 = vpop.permute.xlu0 %3075 }
 0x3f8   : > { %3315 = vrot.lane.b32.xlu1 %v8332_v41, %s6544_s18  ;;  %3168 = vst.msk [vmem:[#allocation3 + $0x40] sm:$0xff] %vm3163_vm14, %v3076_v14  ;;  %v3228_v41 = vld [vmem:[#allocation2 + $0x2ae] sm:$0xff] }
 0x3f9   : > { %3321 = vrot.lane.b32.xlu0 %v3227_v45, %s6544_s18  ;;  %3444 = vst.msk [vmem:[#allocation3 + $0x168] sm:$0xff] %vm297_vm0, %v3412_v28  ;;  %v3469_v45 = vld [vmem:[#allocation2 + $0x1b2] sm:$0xff] }
 0x3fa   : > { %v3074_v24 = vpop.permute.xlu1 %3073  ;;  %v3411_v14 = vld [vmem:[#allocation2 + $0x210] sm:$0xff] }
 0x3fb   : > { %3167 = vst.msk [vmem:[#allocation3 + $0x30] sm:$0xff] %vm3163_vm14, %v3074_v24  ;;  %v3080_v31 = vpop.permute.xlu0 %3079  ;;  %v3472_v24 = vld [vmem:[#allocation2 + $0x1ea] sm:$0xff] }
 0x3fc   : > { %3319 = vrot.lane.b32.xlu1 %v3226_v58, %s6544_s18  ;;  %3170 = vst.msk [vmem:[#allocation3 + $0x60] sm:$0xff] %vm3163_vm14, %v3080_v31 }
 0x3fd   : > { %3518 = vrot.lane.b32.xlu0 %v3454_v25, %s6530_s28  ;;  %3443 = vst.msk [vmem:[#allocation3 + $0x158] sm:$0xff] %vm297_vm0, %v3411_v14  ;;  %v3414_v25 = vld [vmem:[#allocation2 + $0x248] sm:$0xff] }
 0x3fe   : > { %v3078_v38 = vpop.permute.xlu1 %3077  ;;  %3446 = vst.msk [vmem:[#allocation3 + $0x188] sm:$0xff] %vm297_vm0, %v3414_v25 }
 0x3ff   : > { %3169 = vst.msk [vmem:[#allocation3 + $0x50] sm:$0xff] %vm3163_vm14, %v3078_v38  ;;  %v3084_v1 = vpop.permute.xlu0 %3083  ;;  %v3471_v38 = vld [vmem:[#allocation2 + $0x1d2] sm:$0xff] }
 0x400   : > { %3323 = vrot.lane.b32.xlu1 %v3228_v41, %s6544_s18  ;;  %3172 = vst.msk [vmem:[#allocation3 + $0x80] sm:$0xff] %vm3163_vm14, %v3084_v1  ;;  %v5454_v41 = vld [vmem:[%s10276_s1 + $0x78] sm:$0xff] }
 0x401   : > { %3522 = vrot.lane.b32.xlu0 %v3456_v54, %s6530_s28  ;;  %5571 = vmatpush1.msra.mxu0 %v5454_v41  ;;  %v3413_v54 = vld [vmem:[#allocation2 + $0x230] sm:$0xff] }
 0x402   : > { %v3082_v0 = vpop.permute.xlu1 %3081  ;;  %6469 = vmatpush1.msra.mxu1 %v5454_v41  ;;  %3445 = vst.msk [vmem:[#allocation3 + $0x178] sm:$0xff] %vm297_vm0, %v3413_v54  ;;  %v3485_v54 = vld [vmem:[#allocation2 + $0x2b2] sm:$0xff] }
 0x403   : > { %3171 = vst.msk [vmem:[#allocation3 + $0x70] sm:$0xff] %vm3163_vm14, %v3082_v0  ;;  %v3088_v21 = vpop.permute.xlu0 %3087  ;;  %v5453_v0 = vld [vmem:[%s10276_s1 + $0x70] sm:$0xff] }
 0x404   : > { %3520 = vrot.lane.b32.xlu1 %v3455_v5, %s6530_s28  ;;  %3174 = vst.msk [vmem:[#allocation3 + $0xa0] sm:$0xff] %vm3163_vm14, %v3088_v21  ;;  %v10375_v5 = vmov 0.0   ;;  %v3416_v21 = vld [vmem:[#allocation2 + $0x268] sm:$0xff] }
 0x405   : > { %3526 = vrot.lane.b32.xlu0 %v3458_v15, %s6530_s28  ;;  %5572 = vmatprep.subr.mxu0 %v10375_v5  ;;  %v3474_v15 = vld [vmem:[#allocation2 + $0x20a] sm:$0xff]  ;;  %3448 = vst.msk [vmem:[#allocation3 + $0x1a8] sm:$0xff] %vm297_vm0, %v3416_v21 }
 0x406   : > { %v3086_v18 = vpop.permute.xlu1 %3085  ;;  %5573 = vmatpush1.msra.mxu0 %v5453_v0  ;;  %6443 = vmatprep.subr.mxu1 %v10375_v5 }
 0x407   : > { %3173 = vst.msk [vmem:[#allocation3 + $0x90] sm:$0xff] %vm3163_vm14, %v3086_v18  ;;  %v3092_v3 = vpop.permute.xlu0 %3091  ;;  %5574 = vmatprep.subr.mxu0 %v10375_v5  ;;  %v5452_v18 = vld [vmem:[%s10276_s1 + $0x68] sm:$0xff]  ;;  %6470 = vmatpush1.msra.mxu1 %v5453_v0  ;;  %v8819_v0 = vld [vmem:[%s10276_s1] sm:$0xff] }
 0x408   : > { %3524 = vrot.lane.b32.xlu1 %v3457_v35, %s6530_s28  ;;  %3176 = vst.msk [vmem:[#allocation3 + $0xc0] sm:$0xff] %vm3163_vm14, %v3092_v3  ;;  %5575 = vmatpush1.msra.mxu0 %v5452_v18  ;;  %v3415_v3 = vld [vmem:[#allocation2 + $0x250] sm:$0xff] }
 0x409   : > { %3530 = vrot.lane.b32.xlu0 %v3460_v34, %s6530_s28  ;;  %v3473_v34 = vld [vmem:[#allocation2 + $0x1f2] sm:$0xff]  ;;  %5576 = vmatprep.subr.mxu0 %v10375_v5  ;;  %3447 = vst.msk [vmem:[#allocation3 + $0x198] sm:$0xff] %vm297_vm0, %v3415_v3  ;;  %v8839_v3 = vld [vmem:[%s10276_s1 + $0xc8] sm:$0xff] }
 0x40a   : > { %v3090_v42 = vpop.permute.xlu1 %3089  ;;  %6444 = vmatprep.subr.mxu1 %v10375_v5 }
 0x40b   : > { %3175 = vst.msk [vmem:[#allocation3 + $0xb0] sm:$0xff] %vm3163_vm14, %v3090_v42  ;;  %v3096_v26 = vpop.permute.xlu0 %3095  ;;  %v5451_v42 = vld [vmem:[%s10276_s1 + $0x60] sm:$0xff]  ;;  %6471 = vmatpush1.msra.mxu1 %v5452_v18  ;;  %v3838_v18 = vld [vmem:[#allocation2 + $0x8] sm:$0xff] }
 0x40c   : > { %3528 = vrot.lane.b32.xlu1 %v3459_v10, %s6530_s28  ;;  %3178 = vst.msk [vmem:[#allocation3 + $0xe0] sm:$0xff] %vm3163_vm14, %v3096_v26  ;;  %5577 = vmatpush1.msra.mxu0 %v5451_v42  ;;  %v3418_v26 = vld [vmem:[#allocation2 + $0x288] sm:$0xff] }
 0x40d   : > { %3534 = vrot.lane.b32.xlu0 %v3462_v8, %s6530_s28  ;;  %v3476_v8 = vld [vmem:[#allocation2 + $0x22a] sm:$0xff]  ;;  %5578 = vmatprep.subr.mxu0 %v10375_v5  ;;  %3450 = vst.msk [vmem:[#allocation3 + $0x1c8] sm:$0xff] %vm297_vm0, %v3418_v26 }
 0x40e   : > { %v3094_v50 = vpop.permute.xlu1 %3093  ;;  %6445 = vmatprep.subr.mxu1 %v10375_v5 }
 0x40f   : > { %3177 = vst.msk [vmem:[#allocation3 + $0xd0] sm:$0xff] %vm3163_vm14, %v3094_v50  ;;  %v3100_v51 = vpop.permute.xlu0 %3099  ;;  %v5450_v50 = vld [vmem:[%s10276_s1 + $0x58] sm:$0xff]  ;;  %6472 = vmatpush1.msra.mxu1 %v5451_v42  ;;  %v8849_v42 = vld [vmem:[%s10276_s1 + $0xc0] sm:$0xff] }
 0x410   : > { %3532 = vrot.lane.b32.xlu1 %v3461_v23, %s6530_s28  ;;  %3180 = vst.msk [vmem:[#allocation3 + $0x100] sm:$0xff] %vm3163_vm14, %v3100_v51  ;;  %5579 = vmatpush1.msra.mxu0 %v5450_v50  ;;  %v3417_v51 = vld [vmem:[#allocation2 + $0x270] sm:$0xff] }
 0x411   : > { %3538 = vrot.lane.b32.xlu0 %v3464_v12, %s6530_s28  ;;  %v3475_v12 = vld [vmem:[#allocation2 + $0x212] sm:$0xff]  ;;  %5580 = vmatprep.subr.mxu0 %v10375_v5  ;;  %3449 = vst.msk [vmem:[#allocation3 + $0x1b8] sm:$0xff] %vm297_vm0, %v3417_v51 }
 0x412   : > { %v3098_v49 = vpop.permute.xlu1 %3097  ;;  %6446 = vmatprep.subr.mxu1 %v10375_v5  ;;  %v8872_v51 = vld [vmem:[%s10276_s1 + $0xb0] sm:$0xff] }
 0x413   : > { %3179 = vst.msk [vmem:[#allocation3 + $0xf0] sm:$0xff] %vm3163_vm14, %v3098_v49  ;;  %v3104_v4 = vpop.permute.xlu0 %3103  ;;  %v5449_v49 = vld [vmem:[%s10276_s1 + $0x50] sm:$0xff]  ;;  %6473 = vmatpush1.msra.mxu1 %v5450_v50 }
 0x414   : > { %3536 = vrot.lane.b32.xlu1 %v3463_v48, %s6530_s28  ;;  %3182 = vst.msk [vmem:[#allocation3 + $0x120] sm:$0xff] %vm3163_vm14, %v3104_v4  ;;  %5581 = vmatpush1.msra.mxu0 %v5449_v49  ;;  %v5448_v4 = vld [vmem:[%s10276_s1 + $0x48] sm:$0xff]  ;;  %v3839_v50 = vld [vmem:[#allocation2 + $0x10] sm:$0xff] }
 0x415   : > { %3542 = vrot.lane.b32.xlu0 %v3466_v55, %s6530_s28  ;;  %v3420_v55 = vld [vmem:[#allocation2 + $0x2a8] sm:$0xff]  ;;  %5582 = vmatprep.subr.mxu0 %v10375_v5 }
 0x416   : > { %v3102_v13 = vpop.permute.xlu1 %3101  ;;  %3452 = vst.msk [vmem:[#allocation3 + $0x1e8] sm:$0xff] %vm297_vm0, %v3420_v55  ;;  %5583 = vmatpush1.msra.mxu0 %v5448_v4  ;;  %6447 = vmatprep.subr.mxu1 %v10375_v5  ;;  %v8884_v55 = vld [vmem:[%s10276_s1 + $0xa8] sm:$0xff] }
 0x417   : > { %3181 = vst.msk [vmem:[#allocation3 + $0x110] sm:$0xff] %vm3163_vm14, %v3102_v13  ;;  %v3108_v39 = vpop.permute.xlu0 %3107  ;;  %v3419_v13 = vld [vmem:[#allocation2 + $0x290] sm:$0xff]  ;;  %5584 = vmatprep.subr.mxu0 %v10375_v5  ;;  %6474 = vmatpush1.msra.mxu1 %v5449_v49 }
 0x418   : > { %3540 = vrot.lane.b32.xlu1 %v3465_v6, %s6530_s28  ;;  %3184 = vst.msk [vmem:[#allocation3 + $0x140] sm:$0xff] %vm3163_vm14, %v3108_v39  ;;  %v3477_v6 = vld [vmem:[#allocation2 + $0x232] sm:$0xff]  ;;  %5585 = vmatpush1.msra.mxu0 %v5447_v56 }
 0x419   : > { %3546 = vrot.lane.b32.xlu0 %v3468_v7, %s6530_s28  ;;  %3451 = vst.msk [vmem:[#allocation3 + $0x1d8] sm:$0xff] %vm297_vm0, %v3419_v13  ;;  %5586 = vmatprep.subr.mxu0 %v10375_v5  ;;  %v8898_v13 = vld [vmem:[#allocation2 + $0x8c] sm:$0xff] }
 0x41a   : > { %v3106_v22 = vpop.permute.xlu1 %3105  ;;  %6448 = vmatprep.subr.mxu1 %v10375_v5 }
 0x41b   : > { %3183 = vst.msk [vmem:[#allocation3 + $0x130] sm:$0xff] %vm3163_vm14, %v3106_v22  ;;  %v3112_v57 = vpop.permute.xlu0 %3111  ;;  %v8760_v22 = vld [vmem:[%s10276_s1 + $0x30] sm:$0xff]  ;;  %6475 = vmatpush1.msra.mxu1 %v5448_v4 }
 0x41c   : > { %3544 = vrot.lane.b32.xlu1 %v3467_v30, %s6530_s28  ;;  %3186 = vst.msk [vmem:[#allocation3 + $0x160] sm:$0xff] %vm3163_vm14, %v3112_v57  ;;  %v3421_v30 = vld [vmem:[#allocation2 + $0x2b0] sm:$0xff]  ;;  %6449 = vmatprep.subr.mxu1 %v10375_v5 }
 0x41d   : > { %3550 = vrot.lane.b32.xlu0 %v3470_v37, %s6530_s28  ;;  %3453 = vst.msk [vmem:[#allocation3 + $0x1f8] sm:$0xff] %vm297_vm0, %v3421_v30  ;;  %v3482_v37 = vld [vmem:[#allocation2 + $0x28a] sm:$0xff]  ;;  %6476 = vmatpush1.msra.mxu1 %v5447_v56  ;;  %v8907_v56 = vld [vmem:[%s10276_s1 + $0x98] sm:$0xff] }
 0x41e   : > { %v3110_v58 = vpop.permute.xlu1 %3109  ;;  %6450 = vmatprep.subr.mxu1 %v10375_v5  ;;  %v8921_v30 = vld [vmem:[#allocation2 + $0x104] sm:$0xff] }
 0x41f   : > { %3185 = vst.msk [vmem:[#allocation3 + $0x150] sm:$0xff] %vm3163_vm14, %v3110_v58  ;;  %v3116_v31 = vpop.permute.xlu0 %3115  ;;  %v8791_v58 = vld [vmem:[%s10276_s1 + $0x18] sm:$0xff] }
 0x420   : > { %3548 = vrot.lane.b32.xlu1 %v3469_v45, %s6530_s28  ;;  %3188 = vst.msk [vmem:[#allocation3 + $0x180] sm:$0xff] %vm3163_vm14, %v3116_v31  ;;  %v3484_v45 = vld [vmem:[#allocation2 + $0x2aa] sm:$0xff] }
 0x421   : > { %3554 = vrot.lane.b32.xlu0 %v3472_v24, %s6530_s28  ;;  %v3483_v24 = vld [vmem:[#allocation2 + $0x292] sm:$0xff]  ;;  %v3646_v31 = vld [vmem:[#allocation2 + $0x4] sm:$0xff] }
 0x422   : > { %v3114_v1 = vpop.permute.xlu1 %3113 }
 0x423   : > { %3187 = vst.msk [vmem:[#allocation3 + $0x170] sm:$0xff] %vm3163_vm14, %v3114_v1  ;;  %v3120_v35 = vpop.permute.xlu0 %3119 }
 0x424   : > { %3552 = vrot.lane.b32.xlu1 %v3471_v38, %s6530_s28  ;;  %3190 = vst.msk [vmem:[#allocation3 + $0x1a0] sm:$0xff] %vm3163_vm14, %v3120_v35  ;;  %v8810_v38 = vld [vmem:[%s10276_s1 + $0x8] sm:$0xff]  ;;  %v8829_v35 = vld [vmem:[%s10276_s1 + $0xd0] sm:$0xff] }
 0x425   : > { %3558 = vrot.lane.b32.xlu0 %v3474_v15, %s6530_s28  ;;  %v4030_v15 = vld [vmem:[#allocation2 + $0xc] sm:$0xff] }
 0x426   : > { %v3118_v10 = vpop.permute.xlu1 %3117 }
 0x427   : > { %3189 = vst.msk [vmem:[#allocation3 + $0x190] sm:$0xff] %vm3163_vm14, %v3118_v10  ;;  %v3124_v23 = vpop.permute.xlu0 %3123 }
 0x428   : > { %3556 = vrot.lane.b32.xlu1 %v3473_v34, %s6530_s28  ;;  %3192 = vst.msk [vmem:[#allocation3 + $0x1c0] sm:$0xff] %vm3163_vm14, %v3124_v23  ;;  %v8861_v23 = vld [vmem:[%s10276_s1 + $0xb8] sm:$0xff] }
 0x429   : > { %3562 = vrot.lane.b32.xlu0 %v3476_v8, %s6530_s28  ;;  %v8852_v8 = vld [vmem:[#allocation2 + $0x84] sm:$0xff] }
 0x42a   : > { %v3122_v48 = vpop.permute.xlu1 %3121 }
 0x42b   : > { %3191 = vst.msk [vmem:[#allocation3 + $0x1b0] sm:$0xff] %vm3163_vm14, %v3122_v48  ;;  %v3128_v60 = vpop.permute.xlu0 %3127  ;;  %v8875_v48 = vld [vmem:[#allocation2 + $0x88] sm:$0xff] }
 0x42c   : > { %3560 = vrot.lane.b32.xlu1 %v3475_v12, %s6530_s28  ;;  %3194 = vst.msk [vmem:[#allocation3 + $0x1e0] sm:$0xff] %vm3163_vm14, %v3128_v60  ;;  %v4031_v60 = vld [vmem:[#allocation2 + $0x14] sm:$0xff] }
 0x42d   : > { %3566 = vrot.lane.b32.xlu0 %v8481_v52, %s6530_s28  ;;  %v8749_v52 = vld [vmem:[%s10276_s1 + $0x38] sm:$0xff] }
 0x42e   : > { %v3126_v7 = vpop.permute.xlu1 %3125  ;;  %5587 = vmatpush1.msra.mxu0 %v8749_v52  ;;  %6477 = vmatpush1.msra.mxu1 %v8749_v52  ;;  %v8918_v52 = vld [vmem:[%s10276_s1 + $0x90] sm:$0xff] }
 0x42f   : > { %3193 = vst.msk [vmem:[#allocation3 + $0x1d0] sm:$0xff] %vm3163_vm14, %v3126_v7  ;;  %v3262_v39 = vpop.permute.xlu0 %3261  ;;  %5588 = vmatprep.subr.mxu0 %v10375_v5  ;;  %6451 = vmatprep.subr.mxu1 %v10375_v5 }
 0x430   : > { %3564 = vrot.lane.b32.xlu1 %v3477_v6, %s6530_s28  ;;  %3358 = vst.msk [vmem:[#allocation3] sm:$0xff] %vm3357_vm15, %v3262_v39  ;;  %5589 = vmatpush1.msra.mxu0 %v8760_v22  ;;  %v8895_v6 = vld [vmem:[%s10276_s1 + $0xa0] sm:$0xff] }
 0x431   : > { %3570 = vrot.lane.b32.xlu0 %v8489_v17, %s6530_s28  ;;  %5590 = vmatprep.subr.mxu0 %v10375_v5  ;;  %v8771_v17 = vld [vmem:[%s10276_s1 + $0x28] sm:$0xff] }
 0x432   : > { %v3130_v62 = vpop.permute.xlu1 %3129  ;;  %5591 = vmatpush1.msra.mxu0 %v8771_v17  ;;  %6478 = vmatpush1.msra.mxu1 %v8760_v22  ;;  %v8931_v22 = vld [vmem:[%s10276_s1 + $0x88] sm:$0xff] }
 0x433   : > { %3195 = vst.msk [vmem:[#allocation3 + $0x1f0] sm:$0xff] %vm3163_vm14, %v3130_v62  ;;  %v3266_v28 = vpop.permute.xlu0 %3265  ;;  %5592 = vmatprep.subr.mxu0 %v10375_v5  ;;  %6452 = vmatprep.subr.mxu1 %v10375_v5 }
 0x434   : > { %3568 = vrot.lane.b32.xlu1 %v8494_v29, %s6530_s28  ;;  %3360 = vst.msk [vmem:[#allocation3 + $0x20] sm:$0xff] %vm3357_vm15, %v3266_v28  ;;  %v8780_v29 = vld [vmem:[%s10276_s1 + $0x20] sm:$0xff]  ;;  %6479 = vmatpush1.msra.mxu1 %v8771_v17 }
 0x435   : > { %3574 = vrot.lane.b32.xlu0 %v3482_v37, %s6530_s28  ;;  %5593 = vmatpush1.msra.mxu0 %v8780_v29  ;;  %v3648_v37 = vld [vmem:[#allocation2 + $0x24] sm:$0xff] }
 0x436   : > { %v3264_v57 = vpop.permute.xlu1 %3263  ;;  %5594 = vmatprep.subr.mxu0 %v10375_v5  ;;  %6453 = vmatprep.subr.mxu1 %v10375_v5  ;;  %v8942_v17 = vld [vmem:[%s10276_s1 + $0x80] sm:$0xff] }
 0x437   : > { %3359 = vst.msk [vmem:[#allocation3 + $0x10] sm:$0xff] %vm3357_vm15, %v3264_v57  ;;  %v3270_v14 = vpop.permute.xlu0 %3269  ;;  %5595 = vmatpush1.msra.mxu0 %v8791_v58  ;;  %6480 = vmatpush1.msra.mxu1 %v8780_v29  ;;  %v8950_v29 = vld [vmem:[#allocation2 + $0x10c] sm:$0xff] }
 0x438   : > { %3572 = vrot.lane.b32.xlu1 %v8502_v53, %s6530_s28  ;;  %3362 = vst.msk [vmem:[#allocation3 + $0x40] sm:$0xff] %vm3357_vm15, %v3270_v14  ;;  %5596 = vmatprep.subr.mxu0 %v10375_v5  ;;  %v8800_v53 = vld [vmem:[%s10276_s1 + $0x10] sm:$0xff] }
 0x439   : > { %3578 = vrot.lane.b32.xlu0 %v3484_v45, %s6530_s28  ;;  %5597 = vmatpush1.msra.mxu0 %v8800_v53  ;;  %v8957_v14 = vld [vmem:[#allocation2 + $0x90] sm:$0xff] }
 0x43a   : > { %v3268_v25 = vpop.permute.xlu1 %3267  ;;  %5598 = vmatprep.subr.mxu0 %v10375_v5  ;;  %6454 = vmatprep.subr.mxu1 %v10375_v5 }
 0x43b   : > { %3361 = vst.msk [vmem:[#allocation3 + $0x30] sm:$0xff] %vm3357_vm15, %v3268_v25  ;;  %v3274_v41 = vpop.permute.xlu0 %3273  ;;  %5599 = vmatpush1.msra.mxu0 %v8810_v38  ;;  %6481 = vmatpush1.msra.mxu1 %v8791_v58 }
 0x43c   : > { %3576 = vrot.lane.b32.xlu1 %v3483_v24, %s6530_s28  ;;  %3364 = vst.msk [vmem:[#allocation3 + $0x60] sm:$0xff] %vm3357_vm15, %v3274_v41  ;;  %5600 = vmatprep.subr.mxu0 %v10375_v5  ;;  %v8964_v24 = vld [vmem:[#allocation2 + $0x94] sm:$0xff] }
 0x43d   : > { %3710 = vrot.lane.b32.xlu0 %v3646_v31, %s6531_s29  ;;  %5601 = vmatpush1.msra.mxu0 %v8819_v0 }
 0x43e   : > { %v3272_v1 = vpop.permute.xlu1 %3271  ;;  %5612 = vmatprep.subr.mxu0 %v10375_v5  ;;  %6455 = vmatprep.subr.mxu1 %v10375_v5 }
 0x43f   : > { %3363 = vst.msk [vmem:[#allocation3 + $0x50] sm:$0xff] %vm3357_vm15, %v3272_v1  ;;  %v3278_v21 = vpop.permute.xlu0 %3277  ;;  %5613 = vmatpush2.msra.mxu0 %v8829_v35  ;;  %6482 = vmatpush1.msra.mxu1 %v8800_v53  ;;  %v3840_v53 = vld [vmem:[#allocation2 + $0x28] sm:$0xff] }
 0x440   : > { %3580 = vrot.lane.b32.xlu1 %v3485_v54, %s6530_s28  ;;  %3366 = vst.msk [vmem:[#allocation3 + $0x80] sm:$0xff] %vm3357_vm15, %v3278_v21  ;;  %5614 = vmatprep.subr.mxu0 %v10375_v5  ;;  %v8996_v21 = vld [vmem:[#allocation2 + $0xa8] sm:$0xff] }
 0x441   : > { %4094 = vrot.lane.b32.xlu0 %v4030_v15, %s6533_s7  ;;  %5615 = vmatpush2.msra.mxu0 %v8839_v3 }
 0x442   : > { %v3276_v34 = vpop.permute.xlu1 %3275  ;;  %5616 = vmatprep.subr.mxu0 %v10375_v5  ;;  %6456 = vmatprep.subr.mxu1 %v10375_v5 }
 0x443   : > { %3365 = vst.msk [vmem:[#allocation3 + $0x70] sm:$0xff] %vm3357_vm15, %v3276_v34  ;;  %v3282_v10 = vpop.permute.xlu0 %3281  ;;  %5617 = vmatpush2.msra.mxu0 %v8849_v42  ;;  %6483 = vmatpush1.msra.mxu1 %v8810_v38  ;;  %v4032_v38 = vld [vmem:[#allocation2 + $0x2c] sm:$0xff] }
 0x444   : > { %3902 = vrot.lane.b32.xlu1 %v3838_v18, %s6532_s30  ;;  %3368 = vst.msk [vmem:[#allocation3 + $0xa0] sm:$0xff] %vm3357_vm15, %v3282_v10  ;;  %5618 = vmatprep.subr.mxu0 %v10375_v5  ;;  %v3841_v34 = vld [vmem:[#allocation2 + $0x30] sm:$0xff] }
 0x445   : > { %3712 = vrot.lane.b32.xlu0 %v4030_v15, %s6531_s29  ;;  %5619 = vmatpush2.msra.mxu0 %v8861_v23  ;;  %v9012_v10 = vld [vmem:[#allocation2 + $0x114] sm:$0xff] }
 0x446   : > { %v3280_v26 = vpop.permute.xlu1 %3279  ;;  %5620 = vmatprep.subr.mxu0 %v10375_v5  ;;  %6457 = vmatprep.subr.mxu1 %v10375_v5 }
 0x447   : > { %3367 = vst.msk [vmem:[#allocation3 + $0x90] sm:$0xff] %vm3357_vm15, %v3280_v26  ;;  %v3286_v12 = vpop.permute.xlu0 %3285  ;;  %5621 = vmatpush2.msra.mxu0 %v8872_v51  ;;  %6484 = vmatpush1.msra.mxu1 %v8819_v0  ;;  %v8989_v0 = vld [vmem:[#allocation2 + $0xa4] sm:$0xff]  ;;  %v4033_v26 = vld [vmem:[#allocation2 + $0x34] sm:$0xff] }
 0x448   : > { %4286 = vrot.lane.b32.xlu1 %v8852_v8, %s6534_s8  ;;  %3370 = vst.msk [vmem:[#allocation3 + $0xc0] sm:$0xff] %vm3357_vm15, %v3286_v12  ;;  %5622 = vmatprep.subr.mxu0 %v10375_v5 }
 0x449   : > { %3904 = vrot.lane.b32.xlu0 %v3839_v50, %s6532_s30  ;;  %5623 = vmatpush2.msra.mxu0 %v8884_v55  ;;  %v9022_v50 = vld [vmem:[#allocation2 + $0xac] sm:$0xff] }
 0x44a   : > { %v3284_v49 = vpop.permute.xlu1 %3283  ;;  %5624 = vmatprep.subr.mxu0 %v10375_v5  ;;  %6458 = vmatprep.subr.mxu1 %v10375_v5 }
 0x44b   : > { %3369 = vst.msk [vmem:[#allocation3 + $0xb0] sm:$0xff] %vm3357_vm15, %v3284_v49  ;;  %v3290_v4 = vpop.permute.xlu0 %3289  ;;  %5625 = vmatpush2.msra.mxu0 %v8895_v6  ;;  %6485 = vmatpush2.msra.mxu1 %v8829_v35 }
 0x44c   : > { %4478 = vrot.lane.b32.xlu1 %v8875_v48, %s6535_s9  ;;  %3372 = vst.msk [vmem:[#allocation3 + $0xe0] sm:$0xff] %vm3357_vm15, %v3290_v4  ;;  %5626 = vmatprep.subr.mxu0 %v10375_v5 }
 0x44d   : > { %4096 = vrot.lane.b32.xlu0 %v4031_v60, %s6533_s7  ;;  %5627 = vmatpush2.msra.mxu0 %v8907_v56 }
 0x44e   : > { %v3288_v7 = vpop.permute.xlu1 %3287  ;;  %5628 = vmatprep.subr.mxu0 %v10375_v5  ;;  %6459 = vmatprep.subr.mxu1 %v10375_v5 }
 0x44f   : > { %3371 = vst.msk [vmem:[#allocation3 + $0xd0] sm:$0xff] %vm3357_vm15, %v3288_v7  ;;  %v3294_v39 = vpop.permute.xlu0 %3293  ;;  %5629 = vmatpush2.msra.mxu0 %v8918_v52  ;;  %6486 = vmatpush2.msra.mxu1 %v8839_v3 }
 0x450   : > { %4670 = vrot.lane.b32.xlu1 %v8898_v13, %s6536_s10  ;;  %3374 = vst.msk [vmem:[#allocation3 + $0x100] sm:$0xff] %vm3357_vm15, %v3294_v39  ;;  %5630 = vmatprep.subr.mxu0 %v10375_v5 }
 0x451   : > { %4288 = vrot.lane.b32.xlu0 %v8898_v13, %s6534_s8  ;;  %5631 = vmatpush2.msra.mxu0 %v8931_v22 }
 0x452   : > { %v3292_v62 = vpop.permute.xlu1 %3291  ;;  %5632 = vmatprep.subr.mxu0 %v10375_v5  ;;  %6460 = vmatprep.subr.mxu1 %v10375_v5 }
 0x453   : > { %3373 = vst.msk [vmem:[#allocation3 + $0xf0] sm:$0xff] %vm3357_vm15, %v3292_v62  ;;  %v3298_v28 = vpop.permute.xlu0 %3297  ;;  %5633 = vmatpush2.msra.mxu0 %v8942_v17  ;;  %6487 = vmatpush2.msra.mxu1 %v8849_v42 }
 0x454   : > { %4863 = vrot.lane.b32.xlu1 %v8921_v30, %s6537_s11  ;;  %3376 = vst.msk [vmem:[#allocation3 + $0x120] sm:$0xff] %vm3357_vm15, %v3298_v28  ;;  %6461 = vmatprep.subr.mxu1 %v10375_v5 }
 0x455   : > { %3714 = vrot.lane.b32.xlu0 %v3648_v37, %s6531_s29  ;;  %6488 = vmatpush2.msra.mxu1 %v8861_v23 }
 0x456   : > { %v3296_v57 = vpop.permute.xlu1 %3295  ;;  %6462 = vmatprep.subr.mxu1 %v10375_v5 }
 0x457   : > { %3375 = vst.msk [vmem:[#allocation3 + $0x110] sm:$0xff] %vm3357_vm15, %v3296_v57  ;;  %v3302_v45 = vpop.permute.xlu0 %3301  ;;  %6489 = vmatpush2.msra.mxu1 %v8872_v51 }
 0x458   : > { %5055 = vrot.lane.b32.xlu1 %v8531_v40, %s6538_s12  ;;  %3378 = vst.msk [vmem:[#allocation3 + $0x140] sm:$0xff] %vm3357_vm15, %v3302_v45  ;;  %6463 = vmatprep.subr.mxu1 %v10375_v5 }
 0x459   : > { %5247 = vrot.lane.b32.xlu0 %v8950_v29, %s6539_s13  ;;  %6490 = vmatpush2.msra.mxu1 %v8884_v55  ;;  %v3650_v55 = vld [vmem:[#allocation2 + $0x44] sm:$0xff] }
 0x45a   : > { %v3300_v58 = vpop.permute.xlu1 %3299  ;;  %6464 = vmatprep.subr.mxu1 %v10375_v5 }
 0x45b   : > { %3377 = vst.msk [vmem:[#allocation3 + $0x130] sm:$0xff] %vm3357_vm15, %v3300_v58  ;;  %v3306_v25 = vpop.permute.xlu0 %3305  ;;  %6491 = vmatpush2.msra.mxu1 %v8895_v6  ;;  %v9039_v6 = vld [vmem:[#allocation2 + $0x12c] sm:$0xff]  ;;  %v9064_v58 = vld [vmem:[#allocation2 + $0xc4] sm:$0xff] }
 0x45c   : > { %4480 = vrot.lane.b32.xlu1 %v8957_v14, %s6535_s9  ;;  %3380 = vst.msk [vmem:[#allocation3 + $0x160] sm:$0xff] %vm3357_vm15, %v3306_v25  ;;  %6465 = vmatprep.subr.mxu1 %v10375_v5 }
 0x45d   : > { %4672 = vrot.lane.b32.xlu0 %v8964_v24, %s6536_s10  ;;  %6492 = vmatpush2.msra.mxu1 %v8907_v56  ;;  %v9044_v56 = vld [vmem:[#allocation2 + $0xb0] sm:$0xff] }
 0x45e   : > { %v3304_v31 = vpop.permute.xlu1 %3303  ;;  %6466 = vmatprep.subr.mxu1 %v10375_v5 }
 0x45f   : > { %3379 = vst.msk [vmem:[#allocation3 + $0x150] sm:$0xff] %vm3357_vm15, %v3304_v31  ;;  %v3310_v41 = vpop.permute.xlu0 %3309  ;;  %6493 = vmatpush2.msra.mxu1 %v8918_v52  ;;  %v9049_v52 = vld [vmem:[#allocation2 + $0xb4] sm:$0xff] }
 0x460   : > { %3906 = vrot.lane.b32.xlu1 %v3840_v53, %s6532_s30  ;;  %3382 = vst.msk [vmem:[#allocation3 + $0x180] sm:$0xff] %vm3357_vm15, %v3310_v41  ;;  %6467 = vmatprep.subr.mxu1 %v10375_v5  ;;  %v3843_v41 = vld [vmem:[#allocation2 + $0x50] sm:$0xff] }
 0x461   : > { %4865 = vrot.lane.b32.xlu0 %v8950_v29, %s6537_s11  ;;  %6494 = vmatpush2.msra.mxu1 %v8931_v22  ;;  %v3842_v22 = vld [vmem:[#allocation2 + $0x48] sm:$0xff] }
 0x462   : > { %v3308_v54 = vpop.permute.xlu1 %3307  ;;  %6468 = vmatprep.subr.mxu1 %v10375_v5  ;;  %v9029_v5 = vld [vmem:[#allocation2 + $0x124] sm:$0xff] }
 0x463   : > { %3381 = vst.msk [vmem:[#allocation3 + $0x170] sm:$0xff] %vm3357_vm15, %v3308_v54  ;;  %v3314_v1 = vpop.permute.xlu0 %3313  ;;  %6495 = vmatpush2.msra.mxu1 %v8942_v17  ;;  %v4034_v17 = vld [vmem:[#allocation2 + $0x4c] sm:$0xff]  ;;  %v9077_v54 = vld [vmem:[#allocation2 + $0x134] sm:$0xff] }
 0x464   : > { %4098 = vrot.lane.b32.xlu1 %v4032_v38, %s6533_s7  ;;  %3384 = vst.msk [vmem:[#allocation3 + $0x1a0] sm:$0xff] %vm3357_vm15, %v3314_v1 }
 0x465   : > { %5057 = vrot.lane.b32.xlu0 %v8549_v11, %s6538_s12 }
 0x466   : > { %v3312_v15 = vpop.permute.xlu1 %3311 }
 0x467   : > { %3383 = vst.msk [vmem:[#allocation3 + $0x190] sm:$0xff] %vm3357_vm15, %v3312_v15  ;;  %v3318_v35 = vpop.permute.xlu0 %3317  ;;  %v4035_v15 = vld [vmem:[#allocation2 + $0x54] sm:$0xff] }
 0x468   : > { %4290 = vrot.lane.b32.xlu1 %v8989_v0, %s6534_s8  ;;  %3386 = vst.msk [vmem:[#allocation3 + $0x1c0] sm:$0xff] %vm3357_vm15, %v3318_v35 }
 0x469   : > { %4482 = vrot.lane.b32.xlu0 %v8996_v21, %s6535_s9 }
 0x46a   : > { %v3316_v18 = vpop.permute.xlu1 %3315 }
 0x46b   : > { %3385 = vst.msk [vmem:[#allocation3 + $0x1b0] sm:$0xff] %vm3357_vm15, %v3316_v18  ;;  %v3322_v3 = vpop.permute.xlu0 %3321  ;;  %v9084_v18 = vld [vmem:[#allocation2 + $0xcc] sm:$0xff] }
 0x46c   : > { %3716 = vrot.lane.b32.xlu1 %v4032_v38, %s6531_s29  ;;  %3388 = vst.msk [vmem:[#allocation3 + $0x1e0] sm:$0xff] %vm3357_vm15, %v3322_v3 }
 0x46d   : > { %3908 = vrot.lane.b32.xlu0 %v3841_v34, %s6532_s30 }
 0x46e   : > { %v3320_v42 = vpop.permute.xlu1 %3319 }
 0x46f   : > { %3387 = vst.msk [vmem:[#allocation3 + $0x1d0] sm:$0xff] %vm3357_vm15, %v3320_v42  ;;  %v3519_v23 = vpop.permute.xlu0 %3518  ;;  %v9091_v42 = vld [vmem:[#allocation2 + $0x144] sm:$0xff] }
 0x470   : > { %5249 = vrot.lane.b32.xlu1 %v9012_v10, %s6539_s13  ;;  %3614 = vst.msk [vmem:[#allocation3 + $0x8] sm:$0xff] %vm652_vm1, %v3519_v23  ;;  %v3652_v23 = vld [vmem:[#allocation2 + $0x64] sm:$0xff] }
 0x471   : > { %4100 = vrot.lane.b32.xlu0 %v4033_v26, %s6533_s7 }
 0x472   : > { %v3324_v12 = vpop.permute.xlu1 %3323 }
 0x473   : > { %3389 = vst.msk [vmem:[#allocation3 + $0x1f0] sm:$0xff] %vm3357_vm15, %v3324_v12  ;;  %v3523_v51 = vpop.permute.xlu0 %3522 }
 0x474   : > { %4674 = vrot.lane.b32.xlu1 %v9022_v50, %s6536_s10  ;;  %3616 = vst.msk [vmem:[#allocation3 + $0x28] sm:$0xff] %vm652_vm1, %v3523_v51 }
 0x475   : > { %4292 = vrot.lane.b32.xlu0 %v9022_v50, %s6534_s8 }
 0x476   : > { %v3521_v49 = vpop.permute.xlu1 %3520 }
 0x477   : > { %3615 = vst.msk [vmem:[#allocation3 + $0x18] sm:$0xff] %vm652_vm1, %v3521_v49  ;;  %v3527_v60 = vpop.permute.xlu0 %3526  ;;  %v9101_v49 = vld [vmem:[#allocation2 + $0x14c] sm:$0xff] }
 0x478   : > { %4867 = vrot.lane.b32.xlu1 %v9029_v5, %s6537_s11  ;;  %3618 = vst.msk [vmem:[#allocation3 + $0x48] sm:$0xff] %vm652_vm1, %v3527_v60 }
 0x479   : > { %3718 = vrot.lane.b32.xlu0 %v3650_v55, %s6531_s29 }
 0x47a   : > { %v3525_v4 = vpop.permute.xlu1 %3524 }
 0x47b   : > { %3617 = vst.msk [vmem:[#allocation3 + $0x38] sm:$0xff] %vm652_vm1, %v3525_v4  ;;  %v3531_v7 = vpop.permute.xlu0 %3530  ;;  %v9109_v4 = vld [vmem:[#allocation2 + $0xd4] sm:$0xff] }
 0x47c   : > { %5059 = vrot.lane.b32.xlu1 %v8595_v44, %s6538_s12  ;;  %3620 = vst.msk [vmem:[#allocation3 + $0x68] sm:$0xff] %vm652_vm1, %v3531_v7 }
 0x47d   : > { %5251 = vrot.lane.b32.xlu0 %v9039_v6, %s6539_s13 }
 0x47e   : > { %v3529_v39 = vpop.permute.xlu1 %3528 }
 0x47f   : > { %3619 = vst.msk [vmem:[#allocation3 + $0x58] sm:$0xff] %vm652_vm1, %v3529_v39  ;;  %v3535_v62 = vpop.permute.xlu0 %3534  ;;  %v3844_v39 = vld [vmem:[#allocation2 + $0x68] sm:$0xff] }
 0x480   : > { %4484 = vrot.lane.b32.xlu1 %v9044_v56, %s6535_s9  ;;  %3622 = vst.msk [vmem:[#allocation3 + $0x88] sm:$0xff] %vm652_vm1, %v3535_v62 }
 0x481   : > { %4676 = vrot.lane.b32.xlu0 %v9049_v52, %s6536_s10 }
 0x482   : > { %v3533_v37 = vpop.permute.xlu1 %3532 }
 0x483   : > { %3621 = vst.msk [vmem:[#allocation3 + $0x78] sm:$0xff] %vm652_vm1, %v3533_v37  ;;  %v3539_v28 = vpop.permute.xlu0 %3538  ;;  %v4036_v37 = vld [vmem:[#allocation2 + $0x6c] sm:$0xff] }
 0x484   : > { %3910 = vrot.lane.b32.xlu1 %v3842_v22, %s6532_s30  ;;  %3624 = vst.msk [vmem:[#allocation3 + $0xa8] sm:$0xff] %vm652_vm1, %v3539_v28 }
 0x485   : > { %4869 = vrot.lane.b32.xlu0 %v9039_v6, %s6537_s11 }
 0x486   : > { %v3537_v57 = vpop.permute.xlu1 %3536 }
 0x487   : > { %3623 = vst.msk [vmem:[#allocation3 + $0x98] sm:$0xff] %vm652_vm1, %v3537_v57  ;;  %v3543_v45 = vpop.permute.xlu0 %3542  ;;  %v9124_v57 = vld [vmem:[#allocation2 + $0xe4] sm:$0xff] }
 0x488   : > { %4102 = vrot.lane.b32.xlu1 %v4034_v17, %s6533_s7  ;;  %3626 = vst.msk [vmem:[#allocation3 + $0xc8] sm:$0xff] %vm652_vm1, %v3543_v45 }
 0x489   : > { %5061 = vrot.lane.b32.xlu0 %v8609_v9, %s6538_s12 }
 0x48a   : > { %v3541_v25 = vpop.permute.xlu1 %3540 }
 0x48b   : > { %3625 = vst.msk [vmem:[#allocation3 + $0xb8] sm:$0xff] %vm652_vm1, %v3541_v25  ;;  %v3547_v53 = vpop.permute.xlu0 %3546 }
 0x48c   : > { %4294 = vrot.lane.b32.xlu1 %v9064_v58, %s6534_s8  ;;  %3628 = vst.msk [vmem:[#allocation3 + $0xe8] sm:$0xff] %vm652_vm1, %v3547_v53 }
 0x48d   : > { %4486 = vrot.lane.b32.xlu0 %v8564_v16, %s6535_s9 }
 0x48e   : > { %v3545_v31 = vpop.permute.xlu1 %3544 }
 0x48f   : > { %3627 = vst.msk [vmem:[#allocation3 + $0xd8] sm:$0xff] %vm652_vm1, %v3545_v31  ;;  %v3551_v38 = vpop.permute.xlu0 %3550  ;;  %v3845_v31 = vld [vmem:[#allocation2 + $0x70] sm:$0xff] }
 0x490   : > { %3720 = vrot.lane.b32.xlu1 %v4034_v17, %s6531_s29  ;;  %3630 = vst.msk [vmem:[#allocation3 + $0x108] sm:$0xff] %vm652_vm1, %v3551_v38  ;;  %v9136_v38 = vld [vmem:[#allocation2 + $0x154] sm:$0xff] }
 0x491   : > { %3912 = vrot.lane.b32.xlu0 %v3843_v41, %s6532_s30 }
 0x492   : > { %v3549_v1 = vpop.permute.xlu1 %3548 }
 0x493   : > { %3629 = vst.msk [vmem:[#allocation3 + $0xf8] sm:$0xff] %vm652_vm1, %v3549_v1  ;;  %v3555_v35 = vpop.permute.xlu0 %3554 }
 0x494   : > { %5253 = vrot.lane.b32.xlu1 %v9077_v54, %s6539_s13  ;;  %3632 = vst.msk [vmem:[#allocation3 + $0x128] sm:$0xff] %vm652_vm1, %v3555_v35 }
 0x495   : > { %4104 = vrot.lane.b32.xlu0 %v4035_v15, %s6533_s7  ;;  %v4037_v15 = vld [vmem:[#allocation2 + $0x74] sm:$0xff] }
 0x496   : > { %v3553_v34 = vpop.permute.xlu1 %3552 }
 0x497   : > { %3631 = vst.msk [vmem:[#allocation3 + $0x118] sm:$0xff] %vm652_vm1, %v3553_v34  ;;  %v3559_v3 = vpop.permute.xlu0 %3558 }
 0x498   : > { %4678 = vrot.lane.b32.xlu1 %v9084_v18, %s6536_s10  ;;  %3634 = vst.msk [vmem:[#allocation3 + $0x148] sm:$0xff] %vm652_vm1, %v3559_v3 }
 0x499   : > { %4296 = vrot.lane.b32.xlu0 %v9084_v18, %s6534_s8 }
 0x49a   : > { %v3557_v26 = vpop.permute.xlu1 %3556 }
 0x49b   : > { %3633 = vst.msk [vmem:[#allocation3 + $0x138] sm:$0xff] %vm652_vm1, %v3557_v26  ;;  %v3563_v12 = vpop.permute.xlu0 %3562  ;;  %v9151_v26 = vld [vmem:[#allocation2 + $0x164] sm:$0xff] }
 0x49c   : > { %4871 = vrot.lane.b32.xlu1 %v9091_v42, %s6537_s11  ;;  %3636 = vst.msk [vmem:[#allocation3 + $0x168] sm:$0xff] %vm652_vm1, %v3563_v12 }
 0x49d   : > { %3722 = vrot.lane.b32.xlu0 %v3652_v23, %s6531_s29 }
 0x49e   : > { %v3561_v51 = vpop.permute.xlu1 %3560 }
 0x49f   : > { %3635 = vst.msk [vmem:[#allocation3 + $0x158] sm:$0xff] %vm652_vm1, %v3561_v51  ;;  %v3567_v55 = vpop.permute.xlu0 %3566 }
 0x4a0   : > { %5063 = vrot.lane.b32.xlu1 %v8603_v59, %s6538_s12  ;;  %3638 = vst.msk [vmem:[#allocation3 + $0x188] sm:$0xff] %vm652_vm1, %v3567_v55  ;;  %v9162_v55 = vld [vmem:[#allocation2 + $0x16c] sm:$0xff] }
 0x4a1   : > { %5255 = vrot.lane.b32.xlu0 %v9101_v49, %s6539_s13 }
 0x4a2   : > { %v3565_v60 = vpop.permute.xlu1 %3564 }
 0x4a3   : > { %3637 = vst.msk [vmem:[#allocation3 + $0x178] sm:$0xff] %vm652_vm1, %v3565_v60  ;;  %v3571_v7 = vpop.permute.xlu0 %3570 }
 0x4a4   : > { %4488 = vrot.lane.b32.xlu1 %v8580_v61, %s6535_s9  ;;  %3640 = vst.msk [vmem:[#allocation3 + $0x1a8] sm:$0xff] %vm652_vm1, %v3571_v7 }
 0x4a5   : > { %4680 = vrot.lane.b32.xlu0 %v9109_v4, %s6536_s10 }
 0x4a6   : > { %v3569_v62 = vpop.permute.xlu1 %3568 }
 0x4a7   : > { %3639 = vst.msk [vmem:[#allocation3 + $0x198] sm:$0xff] %vm652_vm1, %v3569_v62  ;;  %v3575_v22 = vpop.permute.xlu0 %3574 }
 0x4a8   : > { %3914 = vrot.lane.b32.xlu1 %v3844_v39, %s6532_s30  ;;  %3642 = vst.msk [vmem:[#allocation3 + $0x1c8] sm:$0xff] %vm652_vm1, %v3575_v22  ;;  %v9170_v39 = vld [vmem:[#allocation2 + $0xf4] sm:$0xff] }
 0x4a9   : > { %4873 = vrot.lane.b32.xlu0 %v9101_v49, %s6537_s11 }
 0x4aa   : > { %v3573_v28 = vpop.permute.xlu1 %3572 }
 0x4ab   : > { %3641 = vst.msk [vmem:[#allocation3 + $0x1b8] sm:$0xff] %vm652_vm1, %v3573_v28  ;;  %v3579_v17 = vpop.permute.xlu0 %3578 }
 0x4ac   : > { %4106 = vrot.lane.b32.xlu1 %v4036_v37, %s6533_s7  ;;  %3644 = vst.msk [vmem:[#allocation3 + $0x1e8] sm:$0xff] %vm652_vm1, %v3579_v17  ;;  %v5375_v17 = vld [vmem:[#allocation3] sm:$0xff] }
 0x4ad   : > { %5065 = vrot.lane.b32.xlu0 %v8621_v36, %s6538_s12 }
 0x4ae   : > { %v3577_v45 = vpop.permute.xlu1 %3576 }
 0x4af   : > { %3643 = vst.msk [vmem:[#allocation3 + $0x1d8] sm:$0xff] %vm652_vm1, %v3577_v45  ;;  %v3711_v25 = vpop.permute.xlu0 %3710 }
 0x4b0   : > { %4298 = vrot.lane.b32.xlu1 %v9124_v57, %s6534_s8  ;;  %3806 = vst.msk [vmem:[#allocation3 + $0x8] sm:$0xff] %vm845_vm2, %v3711_v25 }
 0x4b1   : > { %4490 = vrot.lane.b32.xlu0 %v8573_v47, %s6535_s9  ;;  %v9144_v47 = vld [vmem:[#allocation2 + $0xec] sm:$0xff] }
 0x4b2   : > { %v3581_v53 = vpop.permute.xlu1 %3580 }
 0x4b3   : > { %3645 = vst.msk [vmem:[#allocation3 + $0x1f8] sm:$0xff] %vm652_vm1, %v3581_v53  ;;  %v4095_v41 = vpop.permute.xlu0 %4094  ;;  %vm5473_vm1 = vcmask 719872  }
 0x4b4   : > { %3724 = vrot.lane.b32.xlu1 %v4036_v37, %s6531_s29 }
 0x4b5   : > { %3916 = vrot.lane.b32.xlu0 %v3845_v31, %s6532_s30 }
 0x4b6   : > { %v3903_v1 = vpop.permute.xlu1 %3902 }
 0x4b7   : > { %3998 = vst.msk [vmem:[#allocation3 + $0x8] sm:$0xff] %vm1038_vm3, %v3903_v1  ;;  %v3713_v35 = vpop.permute.xlu0 %3712  ;;  %v9225_v1 = vld [vmem:[#allocation2 + $0x18c] sm:$0xff] }
 0x4b8   : > { %4190 = vst.msk [vmem:[#allocation3 + $0x8] sm:$0xff] %vm1231_vm4, %v4095_v41  ;;  %5257 = vrot.lane.b32.xlu1 %v9136_v38, %s6539_s13 }
 0x4b9   : > { %3807 = vst.msk [vmem:[#allocation3 + $0x18] sm:$0xff] %vm845_vm2, %v3713_v35  ;;  %4108 = vrot.lane.b32.xlu0 %v4037_v15, %s6533_s7 }
 0x4ba   : > { %v4287_v34 = vpop.permute.xlu1 %4286 }
 0x4bb   : > { %4382 = vst.msk [vmem:[#allocation3 + $0x8] sm:$0xff] %vm1424_vm5, %v4287_v34  ;;  %v3905_v3 = vpop.permute.xlu0 %3904 }
 0x4bc   : > { %4682 = vrot.lane.b32.xlu1 %v9144_v47, %s6536_s10  ;;  %3999 = vst.msk [vmem:[#allocation3 + $0x18] sm:$0xff] %vm1038_vm3, %v3905_v3 }
 0x4bd   : > { %4300 = vrot.lane.b32.xlu0 %v9144_v47, %s6534_s8 }
 0x4be   : > { %v4479_v23 = vpop.permute.xlu1 %4478 }
 0x4bf   : > { %4574 = vst.msk [vmem:[#allocation3 + $0x8] sm:$0xff] %vm1618_vm6, %v4479_v23  ;;  %v4097_v12 = vpop.permute.xlu0 %4096 }
 0x4c0   : > { %4875 = vrot.lane.b32.xlu1 %v9151_v26, %s6537_s11  ;;  %4191 = vst.msk [vmem:[#allocation3 + $0x18] sm:$0xff] %vm1231_vm4, %v4097_v12 }
 0x4c1   : > { %3726 = vrot.lane.b32.xlu0 %v8852_v8, %s6531_s29 }
 0x4c2   : > { %v4671_v51 = vpop.permute.xlu1 %4670 }
 0x4c3   : > { %4766 = vst.msk [vmem:[#allocation3 + $0x8] sm:$0xff] %vm1811_vm7, %v4671_v51  ;;  %v4289_v60 = vpop.permute.xlu0 %4288  ;;  %v5379_v51 = vld [vmem:[#allocation3 + $0x20] sm:$0xff] }
 0x4c4   : > { %5067 = vrot.lane.b32.xlu1 %v8615_v19, %s6538_s12  ;;  %4383 = vst.msk [vmem:[#allocation3 + $0x18] sm:$0xff] %vm1424_vm5, %v4289_v60 }
 0x4c5   : > { %5259 = vrot.lane.b32.xlu0 %v9162_v55, %s6539_s13 }
 0x4c6   : > { %v4864_v7 = vpop.permute.xlu1 %4863 }
 0x4c7   : > { %4959 = vst.msk [vmem:[#allocation3 + $0x8] sm:$0xff] %vm2004_vm8, %v4864_v7  ;;  %v3715_v8 = vpop.permute.xlu0 %3714 }
 0x4c8   : > { %4492 = vrot.lane.b32.xlu1 %v8589_v27, %s6535_s9  ;;  %3808 = vst.msk [vmem:[#allocation3 + $0x28] sm:$0xff] %vm845_vm2, %v3715_v8 }
 0x4c9   : > { %4684 = vrot.lane.b32.xlu0 %v9170_v39, %s6536_s10 }
 0x4ca   : > { %v5056_v19 = vpop.permute.xlu1 %5055 }
 0x4cb   : > { %5151 = vst.msk [vmem:[#allocation3 + $0x8] sm:$0xff] %vm2198_vm9, %v5056_v19  ;;  %v5248_v62 = vpop.permute.xlu0 %5247 }
 0x4cc   : > { %3918 = vrot.lane.b32.xlu1 %v8875_v48, %s6532_s30  ;;  %5343 = vst.msk [vmem:[#allocation3 + $0x8] sm:$0xff] %vm2391_vm10, %v5248_v62 }
 0x4cd   : > { %4877 = vrot.lane.b32.xlu0 %v9162_v55, %s6537_s11 }
 0x4ce   : > { %v4481_v22 = vpop.permute.xlu1 %4480 }
 0x4cf   : > { %4575 = vst.msk [vmem:[#allocation3 + $0x18] sm:$0xff] %vm1618_vm6, %v4481_v22  ;;  %v4673_v27 = vpop.permute.xlu0 %4672  ;;  %v9287_v22 = vld [vmem:[#allocation2 + $0x1ac] sm:$0xff] }
 0x4d0   : > { %4110 = vrot.lane.b32.xlu1 %v8898_v13, %s6533_s7  ;;  %4767 = vst.msk [vmem:[#allocation3 + $0x18] sm:$0xff] %vm1811_vm7, %v4673_v27 }
 0x4d1   : > { %5069 = vrot.lane.b32.xlu0 %v8633_v2, %s6538_s12 }
 0x4d2   : > { %v3907_v37 = vpop.permute.xlu1 %3906 }
 0x4d3   : > { %4000 = vst.msk [vmem:[#allocation3 + $0x28] sm:$0xff] %vm1038_vm3, %v3907_v37  ;;  %v4866_v48 = vpop.permute.xlu0 %4865  ;;  %v5376_v28 = vld [vmem:[#allocation3 + $0x8] sm:$0xff] }
 0x4d4   : > { %4302 = vrot.lane.b32.xlu1 %v8921_v30, %s6534_s8  ;;  %4960 = vst.msk [vmem:[#allocation3 + $0x18] sm:$0xff] %vm2004_vm8, %v4866_v48  ;;  %6289 = vmatprep.mubr.msk.f32.mxu0 %vm5473_vm1, %v5376_v28  ;;  %v9200_v30 = vld [vmem:[#allocation2 + $0x174] sm:$0xff] }
 0x4d5   : > { %4494 = vrot.lane.b32.xlu0 %v8531_v40, %s6535_s9  ;;  %5635 = vmatmul.mubr.f32.vlgmr.msra.gmra.mxu0 %v5375_v17 }
 0x4d6   : > { %v4099_v45 = vpop.permute.xlu1 %4098 }
 0x4d7   : > { %4192 = vst.msk [vmem:[#allocation3 + $0x28] sm:$0xff] %vm1231_vm4, %v4099_v45  ;;  %v5058_v2 = vpop.permute.xlu0 %5057 }
 0x4d8   : > { %3728 = vrot.lane.b32.xlu1 %v8898_v13, %s6531_s29  ;;  %5152 = vst.msk [vmem:[#allocation3 + $0x18] sm:$0xff] %vm2198_vm9, %v5058_v2  ;;  %v5383_v2 = vld [vmem:[#allocation3 + $0x40] sm:$0xff] }
 0x4d9   : > { %3920 = vrot.lane.b32.xlu0 %v8957_v14, %s6532_s30  ;;  %v9214_v14 = vld [vmem:[#allocation2 + $0x184] sm:$0xff] }
 0x4da   : > { %v4291_v25 = vpop.permute.xlu1 %4290 }
 0x4db   : > { %4384 = vst.msk [vmem:[#allocation3 + $0x28] sm:$0xff] %vm1424_vm5, %v4291_v25  ;;  %v4483_v53 = vpop.permute.xlu0 %4482 }
 0x4dc   : > { %5261 = vrot.lane.b32.xlu1 %v9200_v30, %s6539_s13  ;;  %4576 = vst.msk [vmem:[#allocation3 + $0x28] sm:$0xff] %vm1618_vm6, %v4483_v53 }
 0x4dd   : > { %4112 = vrot.lane.b32.xlu0 %v8964_v24, %s6533_s7 }
 0x4de   : > { %v3717_v40 = vpop.permute.xlu1 %3716 }
 0x4df   : > { %3809 = vst.msk [vmem:[#allocation3 + $0x38] sm:$0xff] %vm845_vm2, %v3717_v40  ;;  %v3909_v13 = vpop.permute.xlu0 %3908 }
 0x4e0   : > { %4686 = vrot.lane.b32.xlu1 %v8950_v29, %s6536_s10  ;;  %4001 = vst.msk [vmem:[#allocation3 + $0x38] sm:$0xff] %vm1038_vm3, %v3909_v13 }
 0x4e1   : > { %4304 = vrot.lane.b32.xlu0 %v8950_v29, %s6534_s8 }
 0x4e2   : > { %v5250_v31 = vpop.permute.xlu1 %5249 }
 0x4e3   : > { %5344 = vst.msk [vmem:[#allocation3 + $0x18] sm:$0xff] %vm2391_vm10, %v5250_v31  ;;  %v4101_v41 = vpop.permute.xlu0 %4100 }
 0x4e4   : > { %4879 = vrot.lane.b32.xlu1 %v9214_v14, %s6537_s11  ;;  %4193 = vst.msk [vmem:[#allocation3 + $0x38] sm:$0xff] %vm1231_vm4, %v4101_v41  ;;  %v9349_v41 = vld [vmem:[#allocation2 + $0x1cc] sm:$0xff] }
 0x4e5   : > { %3730 = vrot.lane.b32.xlu0 %v8989_v0, %s6531_s29  ;;  %v5377_v0 = vld [vmem:[#allocation3 + $0x10] sm:$0xff] }
 0x4e6   : > { %v4675_v24 = vpop.permute.xlu1 %4674 }
 0x4e7   : > { %4768 = vst.msk [vmem:[#allocation3 + $0x28] sm:$0xff] %vm1811_vm7, %v4675_v24  ;;  %v4293_v15 = vpop.permute.xlu0 %4292 }
 0x4e8   : > { %5071 = vrot.lane.b32.xlu1 %v8627_v32, %s6538_s12  ;;  %4385 = vst.msk [vmem:[#allocation3 + $0x38] sm:$0xff] %vm1424_vm5, %v4293_v15 }
 0x4e9   : > { %5263 = vrot.lane.b32.xlu0 %v9225_v1, %s6539_s13 }
 0x4ea   : > { %v4868_v29 = vpop.permute.xlu1 %4867  ;;  %v5378_v35 = vld [vmem:[#allocation3 + $0x18] sm:$0xff] }
 0x4eb   : > { %4961 = vst.msk [vmem:[#allocation3 + $0x28] sm:$0xff] %vm2004_vm8, %v4868_v29  ;;  %6290 = vmatprep.mubr.msk.f32.mxu0 %vm5473_vm1, %v5378_v35  ;;  %v3719_v34 = vpop.permute.xlu0 %3718 }
 0x4ec   : > { %4496 = vrot.lane.b32.xlu1 %v8549_v11, %s6535_s9  ;;  %5640 = vmatmul.mubr.f32.gmra.mxu0 %v5377_v0  ;;  %3810 = vst.msk [vmem:[#allocation3 + $0x48] sm:$0xff] %vm845_vm2, %v3719_v34 }
 0x4ed   : > { %4688 = vrot.lane.b32.xlu0 %v9012_v10, %s6536_s10 }
 0x4ee   : > { %v5060_v32 = vpop.permute.xlu1 %5059 }
 0x4ef   : > { %5153 = vst.msk [vmem:[#allocation3 + $0x28] sm:$0xff] %vm2198_vm9, %v5060_v32  ;;  %v5252_v3 = vpop.permute.xlu0 %5251  ;;  %v9375_v32 = vld [vmem:[#allocation2 + $0x168] sm:$0xff] }
 0x4f0   : > { %3922 = vrot.lane.b32.xlu1 %v8996_v21, %s6532_s30  ;;  %5345 = vst.msk [vmem:[#allocation3 + $0x28] sm:$0xff] %vm2391_vm10, %v5252_v3 }
 0x4f1   : > { %4881 = vrot.lane.b32.xlu0 %v9225_v1, %s6537_s11 }
 0x4f2   : > { %v4485_v23 = vpop.permute.xlu1 %4484 }
 0x4f3   : > { %4577 = vst.msk [vmem:[#allocation3 + $0x38] sm:$0xff] %vm1618_vm6, %v4485_v23  ;;  %v4677_v11 = vpop.permute.xlu0 %4676 }
 0x4f4   : > { %4114 = vrot.lane.b32.xlu1 %v9022_v50, %s6533_s7  ;;  %4769 = vst.msk [vmem:[#allocation3 + $0x38] sm:$0xff] %vm1811_vm7, %v4677_v11  ;;  %v5387_v11 = vld [vmem:[#allocation3 + $0x60] sm:$0xff] }
 0x4f5   : > { %5073 = vrot.lane.b32.xlu0 %v8645_v43, %s6538_s12 }
 0x4f6   : > { %v3911_v10 = vpop.permute.xlu1 %3910 }
 0x4f7   : > { %4002 = vst.msk [vmem:[#allocation3 + $0x48] sm:$0xff] %vm1038_vm3, %v3911_v10  ;;  %v4870_v21 = vpop.permute.xlu0 %4869  ;;  %v5380_v12 = vld [vmem:[#allocation3 + $0x28] sm:$0xff] }
 0x4f8   : > { %4306 = vrot.lane.b32.xlu1 %v9029_v5, %s6534_s8  ;;  %4962 = vst.msk [vmem:[#allocation3 + $0x38] sm:$0xff] %vm2004_vm8, %v4870_v21  ;;  %6291 = vmatprep.mubr.msk.f32.mxu0 %vm5473_vm1, %v5380_v12  ;;  %v9262_v5 = vld [vmem:[#allocation2 + $0x194] sm:$0xff] }
 0x4f9   : > { %4498 = vrot.lane.b32.xlu0 %v8595_v44, %s6535_s9  ;;  %5645 = vmatmul.mubr.f32.gmra.mxu0 %v5379_v51 }
 0x4fa   : > { %v4103_v60 = vpop.permute.xlu1 %4102 }
 0x4fb   : > { %4194 = vst.msk [vmem:[#allocation3 + $0x48] sm:$0xff] %vm1231_vm4, %v4103_v60  ;;  %v5062_v43 = vpop.permute.xlu0 %5061 }
 0x4fc   : > { %3732 = vrot.lane.b32.xlu1 %v9022_v50, %s6531_s29  ;;  %5154 = vst.msk [vmem:[#allocation3 + $0x38] sm:$0xff] %vm2198_vm9, %v5062_v43  ;;  %v9400_v43 = vld [vmem:[#allocation2 + $0x1e4] sm:$0xff] }
 0x4fd   : > { %3924 = vrot.lane.b32.xlu0 %v9044_v56, %s6532_s30  ;;  %v9276_v56 = vld [vmem:[#allocation2 + $0x1a4] sm:$0xff] }
 0x4fe   : > { %v4295_v7 = vpop.permute.xlu1 %4294 }
 0x4ff   : > { %4386 = vst.msk [vmem:[#allocation3 + $0x48] sm:$0xff] %vm1424_vm5, %v4295_v7  ;;  %v4487_v8 = vpop.permute.xlu0 %4486 }
 0x500   : > { %5265 = vrot.lane.b32.xlu1 %v9262_v5, %s6539_s13  ;;  %4578 = vst.msk [vmem:[#allocation3 + $0x48] sm:$0xff] %vm1618_vm6, %v4487_v8  ;;  %v3662_v8 = vld [vmem:[#allocation2 + $0x104] sm:$0xff] }
 0x501   : > { %4116 = vrot.lane.b32.xlu0 %v9049_v52, %s6533_s7 }
 0x502   : > { %v3721_v44 = vpop.permute.xlu1 %3720 }
 0x503   : > { %3811 = vst.msk [vmem:[#allocation3 + $0x58] sm:$0xff] %vm845_vm2, %v3721_v44  ;;  %v3913_v50 = vpop.permute.xlu0 %3912 }
 0x504   : > { %4690 = vrot.lane.b32.xlu1 %v9039_v6, %s6536_s10  ;;  %4003 = vst.msk [vmem:[#allocation3 + $0x58] sm:$0xff] %vm1038_vm3, %v3913_v50 }
 0x505   : > { %4308 = vrot.lane.b32.xlu0 %v9039_v6, %s6534_s8 }
 0x506   : > { %v5254_v19 = vpop.permute.xlu1 %5253 }
 0x507   : > { %5346 = vst.msk [vmem:[#allocation3 + $0x38] sm:$0xff] %vm2391_vm10, %v5254_v19  ;;  %v4105_v62 = vpop.permute.xlu0 %4104  ;;  %v9412_v19 = vld [vmem:[#allocation2 + $0x1ec] sm:$0xff] }
 0x508   : > { %4883 = vrot.lane.b32.xlu1 %v9276_v56, %s6537_s11  ;;  %4195 = vst.msk [vmem:[#allocation3 + $0x58] sm:$0xff] %vm1231_vm4, %v4105_v62  ;;  %v9417_v62 = vld [vmem:[#allocation2 + $0x170] sm:$0xff] }
 0x509   : > { %3734 = vrot.lane.b32.xlu0 %v9064_v58, %s6531_s29  ;;  %v5381_v58 = vld [vmem:[#allocation3 + $0x30] sm:$0xff] }
 0x50a   : > { %v4679_v52 = vpop.permute.xlu1 %4678 }
 0x50b   : > { %4770 = vst.msk [vmem:[#allocation3 + $0x48] sm:$0xff] %vm1811_vm7, %v4679_v52  ;;  %v4297_v27 = vpop.permute.xlu0 %4296 }
 0x50c   : > { %5075 = vrot.lane.b32.xlu1 %v8639_v46, %s6538_s12  ;;  %4387 = vst.msk [vmem:[#allocation3 + $0x58] sm:$0xff] %vm1424_vm5, %v4297_v27 }
 0x50d   : > { %5267 = vrot.lane.b32.xlu0 %v9287_v22, %s6539_s13 }
 0x50e   : > { %v4872_v6 = vpop.permute.xlu1 %4871  ;;  %v5382_v37 = vld [vmem:[#allocation3 + $0x38] sm:$0xff] }
 0x50f   : > { %4963 = vst.msk [vmem:[#allocation3 + $0x48] sm:$0xff] %vm2004_vm8, %v4872_v6  ;;  %6292 = vmatprep.mubr.msk.f32.mxu0 %vm5473_vm1, %v5382_v37  ;;  %v3723_v48 = vpop.permute.xlu0 %3722  ;;  %v5389_v6 = vld [vmem:[#allocation3 + $0x70] sm:$0xff] }
 0x510   : > { %4500 = vrot.lane.b32.xlu1 %v8609_v9, %s6535_s9  ;;  %5650 = vmatmul.mubr.f32.gmra.mxu0 %v5381_v58  ;;  %3812 = vst.msk [vmem:[#allocation3 + $0x68] sm:$0xff] %vm845_vm2, %v3723_v48  ;;  %v3854_v58 = vld [vmem:[#allocation2 + $0x108] sm:$0xff] }
 0x511   : > { %4692 = vrot.lane.b32.xlu0 %v9077_v54, %s6536_s10 }
 0x512   : > { %v5064_v46 = vpop.permute.xlu1 %5063 }
 0x513   : > { %5155 = vst.msk [vmem:[#allocation3 + $0x48] sm:$0xff] %vm2198_vm9, %v5064_v46  ;;  %v5256_v28 = vpop.permute.xlu0 %5255 }
 0x514   : > { %3926 = vrot.lane.b32.xlu1 %v8564_v16, %s6532_s30  ;;  %5347 = vst.msk [vmem:[#allocation3 + $0x48] sm:$0xff] %vm2391_vm10, %v5256_v28  ;;  %v4046_v28 = vld [vmem:[#allocation2 + $0x10c] sm:$0xff] }
 0x515   : > { %4885 = vrot.lane.b32.xlu0 %v9287_v22, %s6537_s11 }
 0x516   : > { %v4489_v17 = vpop.permute.xlu1 %4488 }
 0x517   : > { %4579 = vst.msk [vmem:[#allocation3 + $0x58] sm:$0xff] %vm1618_vm6, %v4489_v17  ;;  %v4681_v9 = vpop.permute.xlu0 %4680 }
 0x518   : > { %4118 = vrot.lane.b32.xlu1 %v9084_v18, %s6533_s7  ;;  %4771 = vst.msk [vmem:[#allocation3 + $0x58] sm:$0xff] %vm1811_vm7, %v4681_v9  ;;  %v9434_v9 = vld [vmem:[#allocation2 + $0x1f0] sm:$0xff] }
 0x519   : > { %5077 = vrot.lane.b32.xlu0 %v8657_v33, %s6538_s12 }
 0x51a   : > { %v3915_v54 = vpop.permute.xlu1 %3914 }
 0x51b   : > { %4004 = vst.msk [vmem:[#allocation3 + $0x68] sm:$0xff] %vm1038_vm3, %v3915_v54  ;;  %v4874_v16 = vpop.permute.xlu0 %4873  ;;  %v5384_v45 = vld [vmem:[#allocation3 + $0x48] sm:$0xff] }
 0x51c   : > { %4310 = vrot.lane.b32.xlu1 %v9091_v42, %s6534_s8  ;;  %4964 = vst.msk [vmem:[#allocation3 + $0x58] sm:$0xff] %vm2004_vm8, %v4874_v16  ;;  %6293 = vmatprep.mubr.msk.f32.mxu0 %vm5473_vm1, %v5384_v45  ;;  %v9324_v42 = vld [vmem:[#allocation2 + $0x1b4] sm:$0xff]  ;;  %v9441_v16 = vld [vmem:[#allocation2 + $0x188] sm:$0xff] }
 0x51d   : > { %4502 = vrot.lane.b32.xlu0 %v8603_v59, %s6535_s9  ;;  %5655 = vmatmul.mubr.f32.gmra.mxu0 %v5383_v2 }
 0x51e   : > { %v4107_v25 = vpop.permute.xlu1 %4106 }
 0x51f   : > { %4196 = vst.msk [vmem:[#allocation3 + $0x68] sm:$0xff] %vm1231_vm4, %v4107_v25  ;;  %v5066_v33 = vpop.permute.xlu0 %5065  ;;  %v5391_v25 = vld [vmem:[#allocation3 + $0x80] sm:$0xff] }
 0x520   : > { %3736 = vrot.lane.b32.xlu1 %v9084_v18, %s6531_s29  ;;  %5156 = vst.msk [vmem:[#allocation3 + $0x58] sm:$0xff] %vm2198_vm9, %v5066_v33 }
 0x521   : > { %3928 = vrot.lane.b32.xlu0 %v8580_v61, %s6532_s30  ;;  %v9338_v61 = vld [vmem:[#allocation2 + $0x1c4] sm:$0xff] }
 0x522   : > { %v4299_v53 = vpop.permute.xlu1 %4298 }
 0x523   : > { %4388 = vst.msk [vmem:[#allocation3 + $0x68] sm:$0xff] %vm1424_vm5, %v4299_v53  ;;  %v4491_v40 = vpop.permute.xlu0 %4490  ;;  %v3855_v53 = vld [vmem:[#allocation2 + $0x110] sm:$0xff] }
 0x524   : > { %5269 = vrot.lane.b32.xlu1 %v9324_v42, %s6539_s13  ;;  %4580 = vst.msk [vmem:[#allocation3 + $0x68] sm:$0xff] %vm1618_vm6, %v4491_v40 }
 0x525   : > { %4120 = vrot.lane.b32.xlu0 %v9109_v4, %s6533_s7 }
 0x526   : > { %v3725_v59 = vpop.permute.xlu1 %3724 }
 0x527   : > { %3813 = vst.msk [vmem:[#allocation3 + $0x78] sm:$0xff] %vm845_vm2, %v3725_v59  ;;  %v3917_v18 = vpop.permute.xlu0 %3916  ;;  %v9452_v59 = vld [vmem:[#allocation2 + $0x1f4] sm:$0xff] }
 0x528   : > { %4694 = vrot.lane.b32.xlu1 %v9101_v49, %s6536_s10  ;;  %4005 = vst.msk [vmem:[#allocation3 + $0x78] sm:$0xff] %vm1038_vm3, %v3917_v18 }
 0x529   : > { %4312 = vrot.lane.b32.xlu0 %v9101_v49, %s6534_s8 }
 0x52a   : > { %v5258_v13 = vpop.permute.xlu1 %5257 }
 0x52b   : > { %5348 = vst.msk [vmem:[#allocation3 + $0x58] sm:$0xff] %vm2391_vm10, %v5258_v13  ;;  %v4109_v31 = vpop.permute.xlu0 %4108  ;;  %v4047_v13 = vld [vmem:[#allocation2 + $0x114] sm:$0xff] }
 0x52c   : > { %4887 = vrot.lane.b32.xlu1 %v9338_v61, %s6537_s11  ;;  %4197 = vst.msk [vmem:[#allocation3 + $0x78] sm:$0xff] %vm1231_vm4, %v4109_v31 }
 0x52d   : > { %3738 = vrot.lane.b32.xlu0 %v9124_v57, %s6531_s29  ;;  %v5385_v57 = vld [vmem:[#allocation3 + $0x50] sm:$0xff] }
 0x52e   : > { %v4683_v4 = vpop.permute.xlu1 %4682 }
 0x52f   : > { %4772 = vst.msk [vmem:[#allocation3 + $0x68] sm:$0xff] %vm1811_vm7, %v4683_v4  ;;  %v4301_v24 = vpop.permute.xlu0 %4300 }
 0x530   : > { %5079 = vrot.lane.b32.xlu1 %v8651_v20, %s6538_s12  ;;  %4389 = vst.msk [vmem:[#allocation3 + $0x78] sm:$0xff] %vm1424_vm5, %v4301_v24  ;;  %v3852_v20 = vld [vmem:[#allocation2 + $0xe8] sm:$0xff] }
 0x531   : > { %5271 = vrot.lane.b32.xlu0 %v9349_v41, %s6539_s13 }
 0x532   : > { %v4876_v49 = vpop.permute.xlu1 %4875  ;;  %v5386_v15 = vld [vmem:[#allocation3 + $0x58] sm:$0xff] }
 0x533   : > { %4965 = vst.msk [vmem:[#allocation3 + $0x68] sm:$0xff] %vm2004_vm8, %v4876_v49  ;;  %6294 = vmatprep.mubr.msk.f32.mxu0 %vm5473_vm1, %v5386_v15  ;;  %v3727_v29 = vpop.permute.xlu0 %3726  ;;  %v9464_v49 = vld [vmem:[#allocation2 + $0x204] sm:$0xff] }
 0x534   : > { %4504 = vrot.lane.b32.xlu1 %v8621_v36, %s6535_s9  ;;  %5660 = vmatmul.mubr.f32.gmra.mxu0 %v5385_v57  ;;  %3814 = vst.msk [vmem:[#allocation3 + $0x88] sm:$0xff] %vm845_vm2, %v3727_v29  ;;  %v3664_v57 = vld [vmem:[#allocation2 + $0x124] sm:$0xff] }
 0x535   : > { %4696 = vrot.lane.b32.xlu0 %v9136_v38, %s6536_s10 }
 0x536   : > { %v5068_v35 = vpop.permute.xlu1 %5067 }
 0x537   : > { %5157 = vst.msk [vmem:[#allocation3 + $0x68] sm:$0xff] %vm2198_vm9, %v5068_v35  ;;  %v5260_v0 = vpop.permute.xlu0 %5259 }
 0x538   : > { %3930 = vrot.lane.b32.xlu1 %v3852_v20, %s6532_s30  ;;  %5349 = vst.msk [vmem:[#allocation3 + $0x68] sm:$0xff] %vm2391_vm10, %v5260_v0  ;;  %v9472_v20 = vld [vmem:[#allocation2 + $0x208] sm:$0xff] }
 0x539   : > { %4889 = vrot.lane.b32.xlu0 %v9349_v41, %s6537_s11  ;;  %v9476_v0 = vld [vmem:[#allocation2 + $0x20c] sm:$0xff] }
 0x53a   : > { %v4493_v34 = vpop.permute.xlu1 %4492 }
 0x53b   : > { %4581 = vst.msk [vmem:[#allocation3 + $0x78] sm:$0xff] %vm1618_vm6, %v4493_v34  ;;  %v4685_v36 = vpop.permute.xlu0 %4684 }
 0x53c   : > { %4122 = vrot.lane.b32.xlu1 %v9144_v47, %s6533_s7  ;;  %4773 = vst.msk [vmem:[#allocation3 + $0x78] sm:$0xff] %vm1811_vm7, %v4685_v36  ;;  %v9481_v36 = vld [vmem:[#allocation2 + $0x190] sm:$0xff] }
 0x53d   : > { %5081 = vrot.lane.b32.xlu0 %v8666_v63, %s6538_s12  ;;  %v3853_v63 = vld [vmem:[#allocation2 + $0xf0] sm:$0xff] }
 0x53e   : > { %v3919_v38 = vpop.permute.xlu1 %3918 }
 0x53f   : > { %4006 = vst.msk [vmem:[#allocation3 + $0x88] sm:$0xff] %vm1038_vm3, %v3919_v38  ;;  %v4878_v3 = vpop.permute.xlu0 %4877  ;;  %v5388_v23 = vld [vmem:[#allocation3 + $0x68] sm:$0xff] }
 0x540   : > { %4314 = vrot.lane.b32.xlu1 %v9151_v26, %s6534_s8  ;;  %4966 = vst.msk [vmem:[#allocation3 + $0x78] sm:$0xff] %vm2004_vm8, %v4878_v3  ;;  %6295 = vmatprep.mubr.msk.f32.mxu0 %vm5473_vm1, %v5388_v23  ;;  %v9387_v26 = vld [vmem:[#allocation2 + $0x1d4] sm:$0xff] }
 0x541   : > { %4506 = vrot.lane.b32.xlu0 %v9375_v32, %s6535_s9  ;;  %5665 = vmatmul.mubr.f32.gmra.mxu0 %v5387_v11  ;;  %v5393_v23 = vld [vmem:[#allocation3 + $0x90] sm:$0xff] }
 0x542   : > { %v4111_v10 = vpop.permute.xlu1 %4110 }
 0x543   : > { %4198 = vst.msk [vmem:[#allocation3 + $0x88] sm:$0xff] %vm1231_vm4, %v4111_v10  ;;  %v5070_v21 = vpop.permute.xlu0 %5069  ;;  %v3856_v10 = vld [vmem:[#allocation2 + $0x128] sm:$0xff] }
 0x544   : > { %3740 = vrot.lane.b32.xlu1 %v9144_v47, %s6531_s29  ;;  %5158 = vst.msk [vmem:[#allocation3 + $0x78] sm:$0xff] %vm2198_vm9, %v5070_v21 }
 0x545   : > { %3932 = vrot.lane.b32.xlu0 %v3853_v63, %s6532_s30 }
 0x546   : > { %v4303_v12 = vpop.permute.xlu1 %4302 }
 0x547   : > { %4390 = vst.msk [vmem:[#allocation3 + $0x88] sm:$0xff] %vm1424_vm5, %v4303_v12  ;;  %v4495_v51 = vpop.permute.xlu0 %4494  ;;  %v4048_v12 = vld [vmem:[#allocation2 + $0x12c] sm:$0xff] }
 0x548   : > { %5273 = vrot.lane.b32.xlu1 %v9387_v26, %s6539_s13  ;;  %4582 = vst.msk [vmem:[#allocation3 + $0x88] sm:$0xff] %vm1618_vm6, %v4495_v51 }
 0x549   : > { %4124 = vrot.lane.b32.xlu0 %v9170_v39, %s6533_s7  ;;  %v9408_v39 = vld [vmem:[#allocation2 + $0x1e8] sm:$0xff] }
 0x54a   : > { %v3729_v60 = vpop.permute.xlu1 %3728 }
 0x54b   : > { %3815 = vst.msk [vmem:[#allocation3 + $0x98] sm:$0xff] %vm845_vm2, %v3729_v60  ;;  %v3921_v47 = vpop.permute.xlu0 %3920  ;;  %v9498_v60 = vld [vmem:[#allocation2 + $0x210] sm:$0xff] }
 0x54c   : > { %4698 = vrot.lane.b32.xlu1 %v9162_v55, %s6536_s10  ;;  %4007 = vst.msk [vmem:[#allocation3 + $0x98] sm:$0xff] %vm1038_vm3, %v3921_v47 }
 0x54d   : > { %4316 = vrot.lane.b32.xlu0 %v9162_v55, %s6534_s8 }
 0x54e   : > { %v5262_v7 = vpop.permute.xlu1 %5261 }
 0x54f   : > { %5350 = vst.msk [vmem:[#allocation3 + $0x78] sm:$0xff] %vm2391_vm10, %v5262_v7  ;;  %v4113_v44 = vpop.permute.xlu0 %4112 }
 0x550   : > { %4891 = vrot.lane.b32.xlu1 %v9400_v43, %s6537_s11  ;;  %4199 = vst.msk [vmem:[#allocation3 + $0x98] sm:$0xff] %vm1231_vm4, %v4113_v44 }
 0x551   : > { %3742 = vrot.lane.b32.xlu0 %v3662_v8, %s6531_s29  ;;  %v9505_v8 = vld [vmem:[#allocation2 + $0x1a8] sm:$0xff] }
 0x552   : > { %v4687_v50 = vpop.permute.xlu1 %4686 }
 0x553   : > { %4774 = vst.msk [vmem:[#allocation3 + $0x88] sm:$0xff] %vm1811_vm7, %v4687_v50  ;;  %v4305_v55 = vpop.permute.xlu0 %4304 }
 0x554   : > { %5083 = vrot.lane.b32.xlu1 %v9408_v39, %s6538_s12  ;;  %4391 = vst.msk [vmem:[#allocation3 + $0x98] sm:$0xff] %vm1424_vm5, %v4305_v55  ;;  %v5395_v55 = vld [vmem:[#allocation3 + $0xa0] sm:$0xff] }
 0x555   : > { %5275 = vrot.lane.b32.xlu0 %v9412_v19, %s6539_s13 }
 0x556   : > { %v4880_v52 = vpop.permute.xlu1 %4879  ;;  %v5390_v27 = vld [vmem:[#allocation3 + $0x78] sm:$0xff] }
 0x557   : > { %4967 = vst.msk [vmem:[#allocation3 + $0x88] sm:$0xff] %vm2004_vm8, %v4880_v52  ;;  %6296 = vmatprep.mubr.msk.f32.mxu0 %vm5473_vm1, %v5390_v27  ;;  %v3731_v37 = vpop.permute.xlu0 %3730  ;;  %v3857_v27 = vld [vmem:[#allocation2 + $0x130] sm:$0xff] }
 0x558   : > { %4508 = vrot.lane.b32.xlu1 %v9417_v62, %s6535_s9  ;;  %5670 = vmatmul.mubr.f32.gmra.mxu0 %v5389_v6  ;;  %3816 = vst.msk [vmem:[#allocation3 + $0xa8] sm:$0xff] %vm845_vm2, %v3731_v37  ;;  %v9516_v37 = vld [vmem:[#allocation2 + $0x214] sm:$0xff] }
 0x559   : > { %4700 = vrot.lane.b32.xlu0 %v9200_v30, %s6536_s10 }
 0x55a   : > { %v5072_v48 = vpop.permute.xlu1 %5071 }
 0x55b   : > { %5159 = vst.msk [vmem:[#allocation3 + $0x88] sm:$0xff] %vm2198_vm9, %v5072_v48  ;;  %v5264_v46 = vpop.permute.xlu0 %5263  ;;  %v4049_v48 = vld [vmem:[#allocation2 + $0x134] sm:$0xff] }
 0x55c   : > { %3934 = vrot.lane.b32.xlu1 %v3854_v58, %s6532_s30  ;;  %5351 = vst.msk [vmem:[#allocation3 + $0x88] sm:$0xff] %vm2391_vm10, %v5264_v46 }
 0x55d   : > { %4893 = vrot.lane.b32.xlu0 %v9412_v19, %s6537_s11 }
 0x55e   : > { %v4497_v17 = vpop.permute.xlu1 %4496 }
 0x55f   : > { %4583 = vst.msk [vmem:[#allocation3 + $0x98] sm:$0xff] %vm1618_vm6, %v4497_v17  ;;  %v4689_v54 = vpop.permute.xlu0 %4688 }
 0x560   : > { %4126 = vrot.lane.b32.xlu1 %v4046_v28, %s6533_s7  ;;  %4775 = vst.msk [vmem:[#allocation3 + $0x98] sm:$0xff] %vm1811_vm7, %v4689_v54  ;;  %v9530_v54 = vld [vmem:[%s10277_s2] ss:$0 sm:$0xff] }
 0x561   : > { %5085 = vrot.lane.b32.xlu0 %v9434_v9, %s6538_s12 }
 0x562   : > { %v3923_v30 = vpop.permute.xlu1 %3922 }
 0x563   : > { %4008 = vst.msk [vmem:[#allocation3 + $0xa8] sm:$0xff] %vm1038_vm3, %v3923_v30  ;;  %v4882_v45 = vpop.permute.xlu0 %4881  ;;  %v5392_v2 = vld [vmem:[#allocation3 + $0x88] sm:$0xff] }
 0x564   : > { %4318 = vrot.lane.b32.xlu1 %v9214_v14, %s6534_s8  ;;  %4968 = vst.msk [vmem:[#allocation3 + $0x98] sm:$0xff] %vm2004_vm8, %v4882_v45  ;;  %6297 = vmatprep.mubr.msk.f32.mxu0 %vm5473_vm1, %v5392_v2  ;;  %v9533_v30 = vld [vmem:[#allocation2 + $0x224] sm:$0xff] }
 0x565   : > { %4510 = vrot.lane.b32.xlu0 %v9441_v16, %s6535_s9  ;;  %5675 = vmatmul.mubr.f32.gmra.mxu0 %v5391_v25 }
 0x566   : > { %v4115_v33 = vpop.permute.xlu1 %4114 }
 0x567   : > { %4200 = vst.msk [vmem:[#allocation3 + $0xa8] sm:$0xff] %vm1231_vm4, %v4115_v33  ;;  %v5074_v40 = vpop.permute.xlu0 %5073  ;;  %v3666_v33 = vld [vmem:[#allocation2 + $0x144] sm:$0xff] }
 0x568   : > { %3744 = vrot.lane.b32.xlu1 %v4046_v28, %s6531_s29  ;;  %5160 = vst.msk [vmem:[#allocation3 + $0x98] sm:$0xff] %vm2198_vm9, %v5074_v40 }
 0x569   : > { %3936 = vrot.lane.b32.xlu0 %v3855_v53, %s6532_s30 }
 0x56a   : > { %v4307_v18 = vpop.permute.xlu1 %4306 }
 0x56b   : > { %4392 = vst.msk [vmem:[#allocation3 + $0xa8] sm:$0xff] %vm1424_vm5, %v4307_v18  ;;  %v4499_v31 = vpop.permute.xlu0 %4498 }
 0x56c   : > { %5277 = vrot.lane.b32.xlu1 %v9452_v59, %s6539_s13  ;;  %4584 = vst.msk [vmem:[#allocation3 + $0xa8] sm:$0xff] %vm1618_vm6, %v4499_v31 }
 0x56d   : > { %4128 = vrot.lane.b32.xlu0 %v4047_v13, %s6533_s7  ;;  %v9557_v13 = vld [vmem:[#allocation2 + $0x1b0] sm:$0xff] }
 0x56e   : > { %v3733_v4 = vpop.permute.xlu1 %3732 }
 0x56f   : > { %3817 = vst.msk [vmem:[#allocation3 + $0xb8] sm:$0xff] %vm845_vm2, %v3733_v4  ;;  %v3925_v24 = vpop.permute.xlu0 %3924 }
 0x570   : > { %4702 = vrot.lane.b32.xlu1 %v9225_v1, %s6536_s10  ;;  %4009 = vst.msk [vmem:[#allocation3 + $0xb8] sm:$0xff] %vm1038_vm3, %v3925_v24 }
 0x571   : > { %4320 = vrot.lane.b32.xlu0 %v9225_v1, %s6534_s8 }
 0x572   : > { %v5266_v15 = vpop.permute.xlu1 %5265 }
 0x573   : > { %5352 = vst.msk [vmem:[#allocation3 + $0x98] sm:$0xff] %vm2391_vm10, %v5266_v15  ;;  %v4117_v29 = vpop.permute.xlu0 %4116  ;;  %v5397_v15 = vld [vmem:[#allocation3 + $0xb0] sm:$0xff] }
 0x574   : > { %4895 = vrot.lane.b32.xlu1 %v9464_v49, %s6537_s11  ;;  %4201 = vst.msk [vmem:[#allocation3 + $0xb8] sm:$0xff] %vm1231_vm4, %v4117_v29 }
 0x575   : > { %3746 = vrot.lane.b32.xlu0 %v3664_v57, %s6531_s29  ;;  %v3858_v57 = vld [vmem:[#allocation2 + $0x148] sm:$0xff] }
 0x576   : > { %v4691_v35 = vpop.permute.xlu1 %4690 }
 0x577   : > { %4776 = vst.msk [vmem:[#allocation3 + $0xa8] sm:$0xff] %vm1811_vm7, %v4691_v35  ;;  %v4309_v34 = vpop.permute.xlu0 %4308  ;;  %v9569_v35 = vld [vmem:[#allocation2 + $0x22c] sm:$0xff] }
 0x578   : > { %5087 = vrot.lane.b32.xlu1 %v9472_v20, %s6538_s12  ;;  %4393 = vst.msk [vmem:[#allocation3 + $0xb8] sm:$0xff] %vm1424_vm5, %v4309_v34 }
 0x579   : > { %5279 = vrot.lane.b32.xlu0 %v9476_v0, %s6539_s13 }
 0x57a   : > { %v4884_v38 = vpop.permute.xlu1 %4883  ;;  %v5394_v3 = vld [vmem:[#allocation3 + $0x98] sm:$0xff] }
 0x57b   : > { %4969 = vst.msk [vmem:[#allocation3 + $0xa8] sm:$0xff] %vm2004_vm8, %v4884_v38  ;;  %6298 = vmatprep.mubr.msk.f32.mxu0 %vm5473_vm1, %v5394_v3  ;;  %v3735_v11 = vpop.permute.xlu0 %3734 }
 0x57c   : > { %4512 = vrot.lane.b32.xlu1 %v9481_v36, %s6535_s9  ;;  %5680 = vmatmul.mubr.f32.gmra.mxu0 %v5393_v23  ;;  %3818 = vst.msk [vmem:[#allocation3 + $0xc8] sm:$0xff] %vm845_vm2, %v3735_v11  ;;  %v4050_v23 = vld [vmem:[#allocation2 + $0x14c] sm:$0xff] }
 0x57d   : > { %4704 = vrot.lane.b32.xlu0 %v9262_v5, %s6536_s10 }
 0x57e   : > { %v5076_v63 = vpop.permute.xlu1 %5075 }
 0x57f   : > { %5161 = vst.msk [vmem:[#allocation3 + $0xa8] sm:$0xff] %vm2198_vm9, %v5076_v63  ;;  %v5268_v21 = vpop.permute.xlu0 %5267 }
 0x580   : > { %3938 = vrot.lane.b32.xlu1 %v3856_v10, %s6532_s30  ;;  %5353 = vst.msk [vmem:[#allocation3 + $0xa8] sm:$0xff] %vm2391_vm10, %v5268_v21 }
 0x581   : > { %4897 = vrot.lane.b32.xlu0 %v9476_v0, %s6537_s11 }
 0x582   : > { %v4501_v51 = vpop.permute.xlu1 %4500 }
 0x583   : > { %4585 = vst.msk [vmem:[#allocation3 + $0xb8] sm:$0xff] %vm1618_vm6, %v4501_v51  ;;  %v4693_v47 = vpop.permute.xlu0 %4692 }
 0x584   : > { %4130 = vrot.lane.b32.xlu1 %v4048_v12, %s6533_s7  ;;  %4777 = vst.msk [vmem:[#allocation3 + $0xb8] sm:$0xff] %vm1811_vm7, %v4693_v47  ;;  %v9597_v47 = vld [vmem:[#allocation2 + $0x230] sm:$0xff] }
 0x585   : > { %5089 = vrot.lane.b32.xlu0 %v9498_v60, %s6538_s12 }
 0x586   : > { %v3927_v7 = vpop.permute.xlu1 %3926 }
 0x587   : > { %4010 = vst.msk [vmem:[#allocation3 + $0xc8] sm:$0xff] %vm1038_vm3, %v3927_v7  ;;  %v4886_v44 = vpop.permute.xlu0 %4885  ;;  %v5396_v50 = vld [vmem:[#allocation3 + $0xa8] sm:$0xff] }
 0x588   : > { %4322 = vrot.lane.b32.xlu1 %v9276_v56, %s6534_s8  ;;  %4970 = vst.msk [vmem:[#allocation3 + $0xb8] sm:$0xff] %vm2004_vm8, %v4886_v44  ;;  %6299 = vmatprep.mubr.msk.f32.mxu0 %vm5473_vm1, %v5396_v50 }
 0x589   : > { %4514 = vrot.lane.b32.xlu0 %v9505_v8, %s6535_s9  ;;  %5685 = vmatmul.mubr.f32.gmra.mxu0 %v5395_v55 }
 0x58a   : > { %v4119_v52 = vpop.permute.xlu1 %4118 }
 0x58b   : > { %4202 = vst.msk [vmem:[#allocation3 + $0xc8] sm:$0xff] %vm1231_vm4, %v4119_v52  ;;  %v5078_v6 = vpop.permute.xlu0 %5077  ;;  %v9613_v52 = vld [vmem:[#allocation2 + $0x1c8] sm:$0xff] }
 0x58c   : > { %3748 = vrot.lane.b32.xlu1 %v4048_v12, %s6531_s29  ;;  %5162 = vst.msk [vmem:[#allocation3 + $0xb8] sm:$0xff] %vm2198_vm9, %v5078_v6  ;;  %v3859_v6 = vld [vmem:[#allocation2 + $0x150] sm:$0xff] }
 0x58d   : > { %3940 = vrot.lane.b32.xlu0 %v3857_v27, %s6532_s30 }
 0x58e   : > { %v4311_v58 = vpop.permute.xlu1 %4310 }
 0x58f   : > { %4394 = vst.msk [vmem:[#allocation3 + $0xc8] sm:$0xff] %vm1424_vm5, %v4311_v58  ;;  %v4503_v46 = vpop.permute.xlu0 %4502 }
 0x590   : > { %5281 = vrot.lane.b32.xlu1 %v9516_v37, %s6539_s13  ;;  %4586 = vst.msk [vmem:[#allocation3 + $0xc8] sm:$0xff] %vm1618_vm6, %v4503_v46  ;;  %v9627_v46 = vld [vmem:[#allocation2 + $0x234] sm:$0xff] }
 0x591   : > { %4132 = vrot.lane.b32.xlu0 %v4049_v48, %s6533_s7 }
 0x592   : > { %v3737_v28 = vpop.permute.xlu1 %3736 }
 0x593   : > { %3819 = vst.msk [vmem:[#allocation3 + $0xd8] sm:$0xff] %vm845_vm2, %v3737_v28  ;;  %v3929_v17 = vpop.permute.xlu0 %3928 }
 0x594   : > { %4706 = vrot.lane.b32.xlu1 %v9287_v22, %s6536_s10  ;;  %4011 = vst.msk [vmem:[#allocation3 + $0xd8] sm:$0xff] %vm1038_vm3, %v3929_v17 }
 0x595   : > { %4324 = vrot.lane.b32.xlu0 %v9287_v22, %s6534_s8  ;;  %v5636_v45 = vpop.f32.mrf.mxu0  ;;  %v9553_v22 = vld [vmem:[#allocation2 + $0x228] sm:$0xff] }
 0x596   : > { %v5270_v2 = vpop.permute.xlu1 %5269  ;;  %v9544_v25 = vadd.f32 %v9530_v54, %v5636_v45 }
 0x597   : > { %5354 = vst.msk [vmem:[#allocation3 + $0xb8] sm:$0xff] %vm2391_vm10, %v5270_v2  ;;  %v4121_v53 = vpop.permute.xlu0 %4120  ;;  %v5638_v40 = vpop.f32.mrf.mxu0  ;;  %v5401_v2 = vld [vmem:[#allocation3 + $0xd0] sm:$0xff] }
 0x598   : > { %4899 = vrot.lane.b32.xlu1 %v9533_v30, %s6537_s11  ;;  %5795 = vst.msk [vmem:[%s9541_s15] sm:$0xff] %vm297_vm0, %v9544_v25 }
 0x599   : > { %4203 = vst.msk [vmem:[#allocation3 + $0xd8] sm:$0xff] %vm1231_vm4, %v4121_v53  ;;  %3750 = vrot.lane.b32.xlu0 %v3666_v33, %s6531_s29  ;;  %v4051_v33 = vld [vmem:[#allocation2 + $0x154] sm:$0xff] }
 0x59a   : > { %v4695_v18 = vpop.permute.xlu1 %4694 }
 0x59b   : > { %4778 = vst.msk [vmem:[#allocation3 + $0xc8] sm:$0xff] %vm1811_vm7, %v4695_v18  ;;  %v4313_v31 = vpop.permute.xlu0 %4312  ;;  %v9643_v18 = vld [vmem:[#allocation2 + $0x244] sm:$0xff] }
 0x59c   : > { %5091 = vrot.lane.b32.xlu1 %v9553_v22, %s6538_s12  ;;  %4395 = vst.msk [vmem:[#allocation3 + $0xd8] sm:$0xff] %vm1424_vm5, %v4313_v31 }
 0x59d   : > { %4516 = vrot.lane.b32.xlu0 %v9557_v13, %s6535_s9 }
 0x59e   : > { %v4888_v4 = vpop.permute.xlu1 %4887  ;;  %v5398_v24 = vld [vmem:[#allocation3 + $0xb8] sm:$0xff] }
 0x59f   : > { %4971 = vst.msk [vmem:[#allocation3 + $0xc8] sm:$0xff] %vm2004_vm8, %v4888_v4  ;;  %6300 = vmatprep.mubr.msk.f32.mxu0 %vm5473_vm1, %v5398_v24  ;;  %v3739_v29 = vpop.permute.xlu0 %3738  ;;  %v4823_v24 = vld [vmem:[#allocation2 + $0x284] sm:$0xff] }
 0x5a0   : > { %3758 = vrot.lane.b32.xlu1 %v9214_v14, %s6531_s29  ;;  %5690 = vmatmul.mubr.f32.gmra.mxu0 %v5397_v15  ;;  %3820 = vst.msk [vmem:[#allocation3 + $0xe8] sm:$0xff] %vm845_vm2, %v3739_v29 }
 0x5a1   : > { %3942 = vrot.lane.b32.xlu0 %v3858_v57, %s6532_s30  ;;  %v9657_v57 = vld [vmem:[#allocation2 + $0x248] sm:$0xff] }
 0x5a2   : > { %v5080_v34 = vpop.permute.xlu1 %5079 }
 0x5a3   : > { %5163 = vst.msk [vmem:[#allocation3 + $0xc8] sm:$0xff] %vm2198_vm9, %v5080_v34  ;;  %v5272_v38 = vpop.permute.xlu0 %5271 }
 0x5a4   : > { %5283 = vrot.lane.b32.xlu1 %v9569_v35, %s6539_s13  ;;  %5355 = vst.msk [vmem:[#allocation3 + $0xc8] sm:$0xff] %vm2391_vm10, %v5272_v38 }
 0x5a5   : > { %4708 = vrot.lane.b32.xlu0 %v9324_v42, %s6536_s10 }
 0x5a6   : > { %v4505_v14 = vpop.permute.xlu1 %4504 }
 0x5a7   : > { %4587 = vst.msk [vmem:[#allocation3 + $0xd8] sm:$0xff] %vm1618_vm6, %v4505_v14  ;;  %v4697_v3 = vpop.permute.xlu0 %4696  ;;  %v5403_v14 = vld [vmem:[#allocation3 + $0xe0] sm:$0xff] }
 0x5a8   : > { %3950 = vrot.lane.b32.xlu1 %v9441_v16, %s6532_s30  ;;  %4779 = vst.msk [vmem:[#allocation3 + $0xd8] sm:$0xff] %vm1811_vm7, %v4697_v3  ;;  %v5399_v16 = vld [vmem:[#allocation3 + $0xc0] sm:$0xff] }
 0x5a9   : > { %4142 = vrot.lane.b32.xlu0 %v9225_v1, %s6533_s7 }
 0x5aa   : > { %v3931_v11 = vpop.permute.xlu1 %3930 }
 0x5ab   : > { %4012 = vst.msk [vmem:[#allocation3 + $0xe8] sm:$0xff] %vm1038_vm3, %v3931_v11  ;;  %v4890_v10 = vpop.permute.xlu0 %4889  ;;  %v5400_v42 = vld [vmem:[#allocation3 + $0xc8] sm:$0xff] }
 0x5ac   : > { %v5641_v63 = vpop.f32.mrf.mxu0  ;;  %4134 = vrot.lane.b32.xlu1 %v4050_v23, %s6533_s7  ;;  %4972 = vst.msk [vmem:[#allocation3 + $0xd8] sm:$0xff] %vm2004_vm8, %v4890_v10  ;;  %6301 = vmatprep.mubr.msk.f32.mxu0 %vm5473_vm1, %v5400_v42  ;;  %v5015_v10 = vld [vmem:[#allocation2 + $0x288] sm:$0xff]  ;;  %v9676_v42 = vld [vmem:[#allocation2 + $0x1d0] sm:$0xff] }
 0x5ad   : > { %v9588_v21 = vadd.f32 %v9530_v54, %v5641_v63  ;;  %4326 = vrot.lane.b32.xlu0 %v9338_v61, %s6534_s8  ;;  %5695 = vmatmul.mubr.f32.gmra.mxu0 %v5399_v16 }
 0x5ae   : > { %v5643_v12 = vpop.f32.mrf.mxu0  ;;  %v4123_v51 = vpop.permute.xlu1 %4122 }
 0x5af   : > { %5796 = vst.msk [vmem:[%s9541_s15 + $0x8] sm:$0xff] %vm297_vm0, %v9588_v21  ;;  %v5082_v7 = vpop.permute.xlu0 %5081  ;;  %v9683_v12 = vld [vmem:[#allocation2 + $0x24c] sm:$0xff] }
 0x5b0   : > { %4204 = vst.msk [vmem:[#allocation3 + $0xe8] sm:$0xff] %vm1231_vm4, %v4123_v51  ;;  %4901 = vrot.lane.b32.xlu1 %v9569_v35, %s6537_s11 }
 0x5b1   : > { %5164 = vst.msk [vmem:[#allocation3 + $0xd8] sm:$0xff] %vm2198_vm9, %v5082_v7  ;;  %5093 = vrot.lane.b32.xlu0 %v9597_v47, %s6538_s12 }
 0x5b2   : > { %v4315_v61 = vpop.permute.xlu1 %4314 }
 0x5b3   : > { %4396 = vst.msk [vmem:[#allocation3 + $0xe8] sm:$0xff] %vm1424_vm5, %v4315_v61  ;;  %v4507_v44 = vpop.permute.xlu0 %4506 }
 0x5b4   : > { %4334 = vrot.lane.b32.xlu1 %v9464_v49, %s6534_s8  ;;  %4588 = vst.msk [vmem:[#allocation3 + $0xe8] sm:$0xff] %vm1618_vm6, %v4507_v44 }
 0x5b5   : > { %3760 = vrot.lane.b32.xlu0 %v9225_v1, %s6531_s29 }
 0x5b6   : > { %v3741_v50 = vpop.permute.xlu1 %3740 }
 0x5b7   : > { %3821 = vst.msk [vmem:[#allocation3 + $0xf8] sm:$0xff] %vm845_vm2, %v3741_v50  ;;  %v3933_v55 = vpop.permute.xlu0 %3932 }
 0x5b8   : > { %3752 = vrot.lane.b32.xlu1 %v4050_v23, %s6531_s29  ;;  %4013 = vst.msk [vmem:[#allocation3 + $0xf8] sm:$0xff] %vm1038_vm3, %v3933_v55  ;;  %v3668_v23 = vld [vmem:[#allocation2 + $0x164] sm:$0xff] }
 0x5b9   : > { %4526 = vrot.lane.b32.xlu0 %v9472_v20, %s6535_s9  ;;  %v5646_v27 = vpop.f32.mrf.mxu0 }
 0x5ba   : > { %v5274_v49 = vpop.permute.xlu1 %5273  ;;  %v9619_v1 = vadd.f32 %v9530_v54, %v5646_v27 }
 0x5bb   : > { %5356 = vst.msk [vmem:[#allocation3 + $0xd8] sm:$0xff] %vm2391_vm10, %v5274_v49  ;;  %v4125_v58 = vpop.permute.xlu0 %4124  ;;  %v5648_v48 = vpop.f32.mrf.mxu0 }
 0x5bc   : > { %4518 = vrot.lane.b32.xlu1 %v9613_v52, %s6535_s9  ;;  %5797 = vst.msk [vmem:[%s9541_s15 + $0x10] sm:$0xff] %vm297_vm0, %v9619_v1  ;;  %v4052_v48 = vld [vmem:[#allocation2 + $0x16c] sm:$0xff] }
 0x5bd   : > { %4205 = vst.msk [vmem:[#allocation3 + $0xf8] sm:$0xff] %vm1231_vm4, %v4125_v58  ;;  %3944 = vrot.lane.b32.xlu0 %v3859_v6, %s6532_s30  ;;  %v5405_v58 = vld [vmem:[#allocation3 + $0xf0] sm:$0xff] }
 0x5be   : > { %v4699_v20 = vpop.permute.xlu1 %4698 }
 0x5bf   : > { %4780 = vst.msk [vmem:[#allocation3 + $0xe8] sm:$0xff] %vm1811_vm7, %v4699_v20  ;;  %v4317_v28 = vpop.permute.xlu0 %4316 }
 0x5c0   : > { %5285 = vrot.lane.b32.xlu1 %v9627_v46, %s6539_s13  ;;  %4397 = vst.msk [vmem:[#allocation3 + $0xf8] sm:$0xff] %vm1424_vm5, %v4317_v28  ;;  %v4056_v28 = vld [vmem:[#allocation2 + $0x1ac] sm:$0xff] }
 0x5c1   : > { %4710 = vrot.lane.b32.xlu0 %v9349_v41, %s6536_s10 }
 0x5c2   : > { %v4892_v17 = vpop.permute.xlu1 %4891  ;;  %v5402_v45 = vld [vmem:[#allocation3 + $0xd8] sm:$0xff] }
 0x5c3   : > { %4973 = vst.msk [vmem:[#allocation3 + $0xe8] sm:$0xff] %vm2004_vm8, %v4892_v17  ;;  %6302 = vmatprep.mubr.msk.f32.mxu0 %vm5473_vm1, %v5402_v45  ;;  %v3743_v53 = vpop.permute.xlu0 %3742 }
 0x5c4   : > { %3952 = vrot.lane.b32.xlu1 %v9481_v36, %s6532_s30  ;;  %5700 = vmatmul.mubr.f32.gmra.mxu0 %v5401_v2  ;;  %3822 = vst.msk [vmem:[#allocation3 + $0x108] sm:$0xff] %vm845_vm2, %v3743_v53 }
 0x5c5   : > { %4136 = vrot.lane.b32.xlu0 %v4051_v33, %s6533_s7 }
 0x5c6   : > { %v5084_v40 = vpop.permute.xlu1 %5083 }
 0x5c7   : > { %5165 = vst.msk [vmem:[#allocation3 + $0xe8] sm:$0xff] %vm2198_vm9, %v5084_v40  ;;  %v5276_v31 = vpop.permute.xlu0 %5275 }
 0x5c8   : > { %4718 = vrot.lane.b32.xlu1 %v9476_v0, %s6536_s10  ;;  %5357 = vst.msk [vmem:[#allocation3 + $0xe8] sm:$0xff] %vm2391_vm10, %v5276_v31  ;;  %v5407_v31 = vld [vmem:[#allocation3 + $0x100] sm:$0xff] }
 0x5c9   : > { %4903 = vrot.lane.b32.xlu0 %v9643_v18, %s6537_s11 }
 0x5ca   : > { %v4509_v36 = vpop.permute.xlu1 %4508 }
 0x5cb   : > { %4589 = vst.msk [vmem:[#allocation3 + $0xf8] sm:$0xff] %vm1618_vm6, %v4509_v36  ;;  %v4701_v4 = vpop.permute.xlu0 %4700 }
 0x5cc   : > { %4144 = vrot.lane.b32.xlu1 %v9262_v5, %s6533_s7  ;;  %4781 = vst.msk [vmem:[#allocation3 + $0xf8] sm:$0xff] %vm1811_vm7, %v4701_v4 }
 0x5cd   : > { %4328 = vrot.lane.b32.xlu0 %v9349_v41, %s6534_s8 }
 0x5ce   : > { %v3935_v15 = vpop.permute.xlu1 %3934 }
 0x5cf   : > { %4014 = vst.msk [vmem:[#allocation3 + $0x108] sm:$0xff] %vm1038_vm3, %v3935_v15  ;;  %v4894_v29 = vpop.permute.xlu0 %4893  ;;  %v5404_v38 = vld [vmem:[#allocation3 + $0xe8] sm:$0xff] }
 0x5d0   : > { %4911 = vrot.lane.b32.xlu1 %v4823_v24, %s6537_s11  ;;  %v5651_v34 = vpop.f32.mrf.mxu0  ;;  %4974 = vst.msk [vmem:[#allocation3 + $0xf8] sm:$0xff] %vm2004_vm8, %v4894_v29  ;;  %6303 = vmatprep.mubr.msk.f32.mxu0 %vm5473_vm1, %v5404_v38  ;;  %v5016_v24 = vld [vmem:[#allocation2 + $0x290] sm:$0xff] }
 0x5d1   : > { %v9662_v5 = vadd.f32 %v9530_v54, %v5651_v34  ;;  %5095 = vrot.lane.b32.xlu0 %v9657_v57, %s6538_s12  ;;  %5705 = vmatmul.mubr.f32.gmra.mxu0 %v5403_v14 }
 0x5d2   : > { %v4127_v41 = vpop.permute.xlu1 %4126  ;;  %v5653_v3 = vpop.f32.mrf.mxu0 }
 0x5d3   : > { %5798 = vst.msk [vmem:[%s9541_s15 + $0x18] sm:$0xff] %vm297_vm0, %v9662_v5  ;;  %v5086_v11 = vpop.permute.xlu0 %5085 }
 0x5d4   : > { %4206 = vst.msk [vmem:[#allocation3 + $0x108] sm:$0xff] %vm1231_vm4, %v4127_v41  ;;  %4336 = vrot.lane.b32.xlu1 %v9476_v0, %s6534_s8 }
 0x5d5   : > { %5166 = vst.msk [vmem:[#allocation3 + $0xf8] sm:$0xff] %vm2198_vm9, %v5086_v11  ;;  %3754 = vrot.lane.b32.xlu0 %v3668_v23, %s6531_s29  ;;  %v5208_v11 = vld [vmem:[#allocation2 + $0x294] sm:$0xff] }
 0x5d6   : > { %v4319_v63 = vpop.permute.xlu1 %4318 }
 0x5d7   : > { %4398 = vst.msk [vmem:[#allocation3 + $0x108] sm:$0xff] %vm1424_vm5, %v4319_v63  ;;  %v4511_v16 = vpop.permute.xlu0 %4510 }
 0x5d8   : > { %5103 = vrot.lane.b32.xlu1 %v5015_v10, %s6538_s12  ;;  %4590 = vst.msk [vmem:[#allocation3 + $0x108] sm:$0xff] %vm1618_vm6, %v4511_v16 }
 0x5d9   : > { %4520 = vrot.lane.b32.xlu0 %v9676_v42, %s6535_s9 }
 0x5da   : > { %v3745_v0 = vpop.permute.xlu1 %3744 }
 0x5db   : > { %3823 = vst.msk [vmem:[#allocation3 + $0x118] sm:$0xff] %vm845_vm2, %v3745_v0  ;;  %v3937_v51 = vpop.permute.xlu0 %3936  ;;  %v5409_v0 = vld [vmem:[#allocation3 + $0x110] sm:$0xff] }
 0x5dc   : > { %3762 = vrot.lane.b32.xlu1 %v9276_v56, %s6531_s29  ;;  %4015 = vst.msk [vmem:[#allocation3 + $0x118] sm:$0xff] %vm1038_vm3, %v3937_v51  ;;  %v5207_v56 = vld [vmem:[#allocation2 + $0x28c] sm:$0xff]  ;;  %v4053_v51 = vld [vmem:[#allocation2 + $0x174] sm:$0xff] }
 0x5dd   : > { %5287 = vrot.lane.b32.xlu0 %v9683_v12, %s6539_s13  ;;  %v5656_v61 = vpop.f32.mrf.mxu0 }
 0x5de   : > { %v5278_v7 = vpop.permute.xlu1 %5277  ;;  %v9692_v44 = vadd.f32 %v9530_v54, %v5656_v61  ;;  %v9779_v61 = vld [vmem:[#allocation2 + $0x264] sm:$0xff] }
 0x5df   : > { %5358 = vst.msk [vmem:[#allocation3 + $0xf8] sm:$0xff] %vm2391_vm10, %v5278_v7  ;;  %v4129_v50 = vpop.permute.xlu0 %4128  ;;  %v5658_v55 = vpop.f32.mrf.mxu0 }
 0x5e0   : > { %4528 = vrot.lane.b32.xlu1 %v9498_v60, %s6535_s9  ;;  %5799 = vst.msk [vmem:[%s9541_s15 + $0x20] sm:$0xff] %vm297_vm0, %v9692_v44  ;;  %v4057_v55 = vld [vmem:[#allocation2 + $0x1b4] sm:$0xff] }
 0x5e1   : > { %4207 = vst.msk [vmem:[#allocation3 + $0x118] sm:$0xff] %vm1231_vm4, %v4129_v50  ;;  %3946 = vrot.lane.b32.xlu0 %v9375_v32, %s6532_s30 }
 0x5e2   : > { %v4703_v49 = vpop.permute.xlu1 %4702 }
 0x5e3   : > { %4782 = vst.msk [vmem:[#allocation3 + $0x108] sm:$0xff] %vm1811_vm7, %v4703_v49  ;;  %v4321_v27 = vpop.permute.xlu0 %4320  ;;  %v4825_v49 = vld [vmem:[#allocation2 + $0x2a4] sm:$0xff] }
 0x5e4   : > { %5295 = vrot.lane.b32.xlu1 %v5207_v56, %s6539_s13  ;;  %4399 = vst.msk [vmem:[#allocation3 + $0x118] sm:$0xff] %vm1424_vm5, %v4321_v27 }
 0x5e5   : > { %4712 = vrot.lane.b32.xlu0 %v9387_v26, %s6536_s10 }
 0x5e6   : > { %v4896_v60 = vpop.permute.xlu1 %4895  ;;  %v5406_v6 = vld [vmem:[#allocation3 + $0xf8] sm:$0xff] }
 0x5e7   : > { %4975 = vst.msk [vmem:[#allocation3 + $0x108] sm:$0xff] %vm2004_vm8, %v4896_v60  ;;  %6304 = vmatprep.mubr.msk.f32.mxu0 %vm5473_vm1, %v5406_v6  ;;  %v3747_v32 = vpop.permute.xlu0 %3746  ;;  %v9792_v60 = vld [vmem:[#allocation2 + $0x268] sm:$0xff] }
 0x5e8   : > { %3954 = vrot.lane.b32.xlu1 %v9505_v8, %s6532_s30  ;;  %5710 = vmatmul.mubr.f32.gmra.mxu0 %v5405_v58  ;;  %3824 = vst.msk [vmem:[#allocation3 + $0x128] sm:$0xff] %vm845_vm2, %v3747_v32 }
 0x5e9   : > { %4138 = vrot.lane.b32.xlu0 %v4052_v48, %s6533_s7 }
 0x5ea   : > { %v5088_v20 = vpop.permute.xlu1 %5087 }
 0x5eb   : > { %5167 = vst.msk [vmem:[#allocation3 + $0x108] sm:$0xff] %vm2198_vm9, %v5088_v20  ;;  %v5280_v26 = vpop.permute.xlu0 %5279 }
 0x5ec   : > { %4720 = vrot.lane.b32.xlu1 %v9516_v37, %s6536_s10  ;;  %5359 = vst.msk [vmem:[#allocation3 + $0x108] sm:$0xff] %vm2391_vm10, %v5280_v26  ;;  %v9725_v37 = vld [vmem:[#allocation2 + $0x250] sm:$0xff] }
 0x5ed   : > { %4905 = vrot.lane.b32.xlu0 %v9683_v12, %s6537_s11 }
 0x5ee   : > { %v4513_v17 = vpop.permute.xlu1 %4512 }
 0x5ef   : > { %4591 = vst.msk [vmem:[#allocation3 + $0x118] sm:$0xff] %vm1618_vm6, %v4513_v17  ;;  %v4705_v8 = vpop.permute.xlu0 %4704 }
 0x5f0   : > { %4146 = vrot.lane.b32.xlu1 %v4056_v28, %s6533_s7  ;;  %4783 = vst.msk [vmem:[#allocation3 + $0x118] sm:$0xff] %vm1811_vm7, %v4705_v8 }
 0x5f1   : > { %4330 = vrot.lane.b32.xlu0 %v9400_v43, %s6534_s8 }
 0x5f2   : > { %v3939_v45 = vpop.permute.xlu1 %3938 }
 0x5f3   : > { %4016 = vst.msk [vmem:[#allocation3 + $0x128] sm:$0xff] %vm1038_vm3, %v3939_v45  ;;  %v4898_v2 = vpop.permute.xlu0 %4897  ;;  %v5408_v53 = vld [vmem:[#allocation3 + $0x108] sm:$0xff]  ;;  %v5411_v45 = vld [vmem:[#allocation3 + $0x120] sm:$0xff] }
 0x5f4   : > { %4913 = vrot.lane.b32.xlu1 %v5207_v56, %s6537_s11  ;;  %v5661_v33 = vpop.f32.mrf.mxu0  ;;  %4976 = vst.msk [vmem:[#allocation3 + $0x118] sm:$0xff] %vm2004_vm8, %v4898_v2  ;;  %6305 = vmatprep.mubr.msk.f32.mxu0 %vm5473_vm1, %v5408_v53 }
 0x5f5   : > { %v9730_v40 = vadd.f32 %v9530_v54, %v5661_v33  ;;  %5097 = vrot.lane.b32.xlu0 %v9725_v37, %s6538_s12  ;;  %5715 = vmatmul.mubr.f32.gmra.mxu0 %v5407_v31  ;;  %v5209_v33 = vld [vmem:[#allocation2 + $0x2ac] sm:$0xff] }
 0x5f6   : > { %v4131_v43 = vpop.permute.xlu1 %4130  ;;  %v5663_v36 = vpop.f32.mrf.mxu0  ;;  %v9819_v31 = vld [vmem:[#allocation2 + $0x26c] sm:$0xff] }
 0x5f7   : > { %5800 = vst.msk [vmem:[%s9541_s15 + $0x28] sm:$0xff] %vm297_vm0, %v9730_v40  ;;  %v5090_v4 = vpop.permute.xlu0 %5089 }
 0x5f8   : > { %4208 = vst.msk [vmem:[#allocation3 + $0x128] sm:$0xff] %vm1231_vm4, %v4131_v43  ;;  %4338 = vrot.lane.b32.xlu1 %v9533_v30, %s6534_s8  ;;  %v9749_v30 = vld [vmem:[#allocation2 + $0x254] sm:$0xff] }
 0x5f9   : > { %5168 = vst.msk [vmem:[#allocation3 + $0x118] sm:$0xff] %vm2198_vm9, %v5090_v4  ;;  %3756 = vrot.lane.b32.xlu0 %v4052_v48, %s6531_s29 }
 0x5fa   : > { %v4323_v15 = vpop.permute.xlu1 %4322 }
 0x5fb   : > { %4400 = vst.msk [vmem:[#allocation3 + $0x128] sm:$0xff] %vm1424_vm5, %v4323_v15  ;;  %v4515_v29 = vpop.permute.xlu0 %4514  ;;  %v4058_v15 = vld [vmem:[#allocation2 + $0x1cc] sm:$0xff] }
 0x5fc   : > { %5105 = vrot.lane.b32.xlu1 %v5016_v24, %s6538_s12  ;;  %4592 = vst.msk [vmem:[#allocation3 + $0x128] sm:$0xff] %vm1618_vm6, %v4515_v29 }
 0x5fd   : > { %4522 = vrot.lane.b32.xlu0 %v9408_v39, %s6535_s9 }
 0x5fe   : > { %v3749_v34 = vpop.permute.xlu1 %3748 }
 0x5ff   : > { %3825 = vst.msk [vmem:[#allocation3 + $0x138] sm:$0xff] %vm845_vm2, %v3749_v34  ;;  %v3941_v38 = vpop.permute.xlu0 %3940 }
 0x600   : > { %3764 = vrot.lane.b32.xlu1 %v4056_v28, %s6531_s29  ;;  %4017 = vst.msk [vmem:[#allocation3 + $0x138] sm:$0xff] %vm1038_vm3, %v3941_v38  ;;  %v5017_v28 = vld [vmem:[#allocation2 + $0x2a8] sm:$0xff] }
 0x601   : > { %5289 = vrot.lane.b32.xlu0 %v9749_v30, %s6539_s13  ;;  %v5666_v41 = vpop.f32.mrf.mxu0 }
 0x602   : > { %v5282_v14 = vpop.permute.xlu1 %5281  ;;  %v9757_v3 = vadd.f32 %v9530_v54, %v5666_v41 }
 0x603   : > { %5360 = vst.msk [vmem:[#allocation3 + $0x118] sm:$0xff] %vm2391_vm10, %v5282_v14  ;;  %v4133_v39 = vpop.permute.xlu0 %4132  ;;  %v5668_v23 = vpop.f32.mrf.mxu0  ;;  %v9845_v14 = vld [vmem:[#allocation2 + $0x270] sm:$0xff] }
 0x604   : > { %4530 = vrot.lane.b32.xlu1 %v9553_v22, %s6535_s9  ;;  %5801 = vst.msk [vmem:[%s9541_s15 + $0x30] sm:$0xff] %vm297_vm0, %v9757_v3 }
 0x605   : > { %4209 = vst.msk [vmem:[#allocation3 + $0x138] sm:$0xff] %vm1231_vm4, %v4133_v39  ;;  %3948 = vrot.lane.b32.xlu0 %v9417_v62, %s6532_s30  ;;  %v5018_v39 = vld [vmem:[#allocation2 + $0x2b0] sm:$0xff] }
 0x606   : > { %v4707_v10 = vpop.permute.xlu1 %4706 }
 0x607   : > { %4784 = vst.msk [vmem:[#allocation3 + $0x128] sm:$0xff] %vm1811_vm7, %v4707_v10  ;;  %v4325_v63 = vpop.permute.xlu0 %4324  ;;  %v5413_v10 = vld [vmem:[#allocation3 + $0x130] sm:$0xff] }
 0x608   : > { %5297 = vrot.lane.b32.xlu1 %v5208_v11, %s6539_s13  ;;  %4401 = vst.msk [vmem:[#allocation3 + $0x138] sm:$0xff] %vm1424_vm5, %v4325_v63  ;;  %v9859_v63 = vld [vmem:[#allocation2 + $0x274] sm:$0xff] }
 0x609   : > { %4714 = vrot.lane.b32.xlu0 %v9412_v19, %s6536_s10 }
 0x60a   : > { %v4900_v22 = vpop.permute.xlu1 %4899  ;;  %v5410_v16 = vld [vmem:[#allocation3 + $0x118] sm:$0xff] }
 0x60b   : > { %4977 = vst.msk [vmem:[#allocation3 + $0x128] sm:$0xff] %vm2004_vm8, %v4900_v22  ;;  %6306 = vmatprep.mubr.msk.f32.mxu0 %vm5473_vm1, %v5410_v16  ;;  %v3751_v62 = vpop.permute.xlu0 %3750 }
 0x60c   : > { %3956 = vrot.lane.b32.xlu1 %v9557_v13, %s6532_s30  ;;  %5720 = vmatmul.mubr.f32.gmra.mxu0 %v5409_v0  ;;  %3826 = vst.msk [vmem:[#allocation3 + $0x148] sm:$0xff] %vm845_vm2, %v3751_v62 }
 0x60d   : > { %4140 = vrot.lane.b32.xlu0 %v4053_v51, %s6533_s7 }
 0x60e   : > { %v5092_v7 = vpop.permute.xlu1 %5091 }
 0x60f   : > { %5169 = vst.msk [vmem:[#allocation3 + $0x128] sm:$0xff] %vm2198_vm9, %v5092_v7  ;;  %v4517_v50 = vpop.permute.xlu0 %4516  ;;  %v5210_v7 = vld [vmem:[#allocation2 + $0x2b4] sm:$0xff] }
 0x610   : > { %4722 = vrot.lane.b32.xlu1 %v9569_v35, %s6536_s10  ;;  %4593 = vst.msk [vmem:[#allocation3 + $0x138] sm:$0xff] %vm1618_vm6, %v4517_v50 }
 0x611   : > { %4907 = vrot.lane.b32.xlu0 %v9779_v61, %s6537_s11 }
 0x612   : > { %v3759_v13 = vpop.permute.xlu1 %3758 }
 0x613   : > { %3830 = vst.msk [vmem:[#allocation3 + $0x188] sm:$0xff] %vm845_vm2, %v3759_v13  ;;  %v3943_v56 = vpop.permute.xlu0 %3942 }
 0x614   : > { %4148 = vrot.lane.b32.xlu1 %v4057_v55, %s6533_s7  ;;  %4018 = vst.msk [vmem:[#allocation3 + $0x148] sm:$0xff] %vm1038_vm3, %v3943_v56  ;;  %v4059_v55 = vld [vmem:[#allocation2 + $0x1d4] sm:$0xff] }
 0x615   : > { %4332 = vrot.lane.b32.xlu0 %v9412_v19, %s6534_s8  ;;  %v3674_v19 = vld [vmem:[#allocation2 + $0x1c4] sm:$0xff] }
 0x616   : > { %v5284_v27 = vpop.permute.xlu1 %5283 }
 0x617   : > { %5361 = vst.msk [vmem:[#allocation3 + $0x128] sm:$0xff] %vm2391_vm10, %v5284_v27  ;;  %v4709_v6 = vpop.permute.xlu0 %4708 }
 0x618   : > { %4915 = vrot.lane.b32.xlu1 %v4825_v49, %s6537_s11  ;;  %v5671_v58 = vpop.f32.mrf.mxu0  ;;  %4785 = vst.msk [vmem:[#allocation3 + $0x138] sm:$0xff] %vm1811_vm7, %v4709_v6 }
 0x619   : > { %v9797_v48 = vadd.f32 %v9530_v54, %v5671_v58  ;;  %5099 = vrot.lane.b32.xlu0 %v9792_v60, %s6538_s12  ;;  %v3676_v58 = vld [vmem:[#allocation2 + $0x1e4] sm:$0xff] }
 0x61a   : > { %v3951_v32 = vpop.permute.xlu1 %3950  ;;  %v5673_v20 = vpop.f32.mrf.mxu0 }
 0x61b   : > { %5802 = vst.msk [vmem:[%s9541_s15 + $0x38] sm:$0xff] %vm297_vm0, %v9797_v48  ;;  %v4143_v26 = vpop.permute.xlu0 %4142 }
 0x61c   : > { %4022 = vst.msk [vmem:[#allocation3 + $0x188] sm:$0xff] %vm1038_vm3, %v3951_v32  ;;  %4340 = vrot.lane.b32.xlu1 %v9569_v35, %s6534_s8 }
 0x61d   : > { %4214 = vst.msk [vmem:[#allocation3 + $0x188] sm:$0xff] %vm1231_vm4, %v4143_v26  ;;  %3766 = vrot.lane.b32.xlu0 %v3674_v19, %s6531_s29  ;;  %v5019_v19 = vld [vmem:[#allocation2 + $0x2c8] sm:$0xff] }
 0x61e   : > { %v4135_v17 = vpop.permute.xlu1 %4134  ;;  %v5412_v8 = vld [vmem:[#allocation3 + $0x128] sm:$0xff] }
 0x61f   : > { %4210 = vst.msk [vmem:[#allocation3 + $0x148] sm:$0xff] %vm1231_vm4, %v4135_v17  ;;  %6307 = vmatprep.mubr.msk.f32.mxu0 %vm5473_vm1, %v5412_v8  ;;  %v4327_v2 = vpop.permute.xlu0 %4326  ;;  %v5211_v26 = vld [vmem:[#allocation2 + $0x2cc] sm:$0xff] }
 0x620   : > { %5107 = vrot.lane.b32.xlu1 %v5017_v28, %s6538_s12  ;;  %5725 = vmatmul.mubr.f32.gmra.mxu0 %v5411_v45  ;;  %4402 = vst.msk [vmem:[#allocation3 + $0x148] sm:$0xff] %vm1424_vm5, %v4327_v2  ;;  %v3868_v45 = vld [vmem:[#allocation2 + $0x1e8] sm:$0xff] }
 0x621   : > { %4532 = vrot.lane.b32.xlu0 %v9597_v47, %s6535_s9 }
 0x622   : > { %v4902_v35 = vpop.permute.xlu1 %4901 }
 0x623   : > { %4978 = vst.msk [vmem:[#allocation3 + $0x138] sm:$0xff] %vm2004_vm8, %v4902_v35  ;;  %v5094_v53 = vpop.permute.xlu0 %5093 }
 0x624   : > { %4524 = vrot.lane.b32.xlu1 %v9434_v9, %s6535_s9  ;;  %5170 = vst.msk [vmem:[#allocation3 + $0x138] sm:$0xff] %vm2198_vm9, %v5094_v53  ;;  %v5415_v53 = vld [vmem:[#allocation3 + $0x140] sm:$0xff] }
 0x625   : > { %5299 = vrot.lane.b32.xlu0 %v5209_v33, %s6539_s13  ;;  %v5676_v36 = vpop.f32.mrf.mxu0 }
 0x626   : > { %v4335_v43 = vpop.permute.xlu1 %4334  ;;  %v9824_v47 = vadd.f32 %v9530_v54, %v5676_v36  ;;  %v5020_v36 = vld [vmem:[#allocation2 + $0x2d0] sm:$0xff] }
 0x627   : > { %4406 = vst.msk [vmem:[#allocation3 + $0x188] sm:$0xff] %vm1424_vm5, %v4335_v43  ;;  %v3761_v4 = vpop.permute.xlu0 %3760  ;;  %v5678_v24 = vpop.f32.mrf.mxu0  ;;  %v4060_v43 = vld [vmem:[#allocation2 + $0x1ec] sm:$0xff] }
 0x628   : > { %5291 = vrot.lane.b32.xlu1 %v9819_v31, %s6539_s13  ;;  %5803 = vst.msk [vmem:[%s9541_s15 + $0x40] sm:$0xff] %vm297_vm0, %v9824_v47 }
 0x629   : > { %3831 = vst.msk [vmem:[#allocation3 + $0x198] sm:$0xff] %vm845_vm2, %v3761_v4  ;;  %4716 = vrot.lane.b32.xlu0 %v9452_v59, %s6536_s10 }
 0x62a   : > { %v3753_v9 = vpop.permute.xlu1 %3752 }
 0x62b   : > { %3827 = vst.msk [vmem:[#allocation3 + $0x158] sm:$0xff] %vm845_vm2, %v3753_v9  ;;  %v4527_v29 = vpop.permute.xlu0 %4526  ;;  %v5423_v9 = vld [vmem:[#allocation3 + $0x180] sm:$0xff] }
 0x62c   : > { %3958 = vrot.lane.b32.xlu1 %v9613_v52, %s6532_s30  ;;  %4598 = vst.msk [vmem:[#allocation3 + $0x188] sm:$0xff] %vm1618_vm6, %v4527_v29 }
 0x62d   : > { %4150 = vrot.lane.b32.xlu0 %v4058_v15, %s6533_s7 }
 0x62e   : > { %v4519_v34 = vpop.permute.xlu1 %4518 }
 0x62f   : > { %4594 = vst.msk [vmem:[#allocation3 + $0x148] sm:$0xff] %vm1618_vm6, %v4519_v34  ;;  %v3945_v38 = vpop.permute.xlu0 %3944 }
 0x630   : > { %4724 = vrot.lane.b32.xlu1 %v9627_v46, %s6536_s10  ;;  %4019 = vst.msk [vmem:[#allocation3 + $0x158] sm:$0xff] %vm1038_vm3, %v3945_v38 }
 0x631   : > { %4917 = vrot.lane.b32.xlu0 %v5209_v33, %s6537_s11 }
 0x632   : > { %v5286_v59 = vpop.permute.xlu1 %5285 }
 0x633   : > { %5362 = vst.msk [vmem:[#allocation3 + $0x138] sm:$0xff] %vm2391_vm10, %v5286_v59  ;;  %v4711_v52 = vpop.permute.xlu0 %4710 }
 0x634   : > { %4909 = vrot.lane.b32.xlu1 %v9819_v31, %s6537_s11  ;;  %4786 = vst.msk [vmem:[#allocation3 + $0x148] sm:$0xff] %vm1811_vm7, %v4711_v52  ;;  %v3869_v52 = vld [vmem:[#allocation2 + $0x1f0] sm:$0xff] }
 0x635   : > { %5101 = vrot.lane.b32.xlu0 %v9845_v14, %s6538_s12 }
 0x636   : > { %v3953_v41 = vpop.permute.xlu1 %3952 }
 0x637   : > { %4023 = vst.msk [vmem:[#allocation3 + $0x198] sm:$0xff] %vm1038_vm3, %v3953_v41  ;;  %v4137_v46 = vpop.permute.xlu0 %4136 }
 0x638   : > { %4342 = vrot.lane.b32.xlu1 %v9643_v18, %s6534_s8  ;;  %4211 = vst.msk [vmem:[#allocation3 + $0x158] sm:$0xff] %vm1231_vm4, %v4137_v46 }
 0x639   : > { %3768 = vrot.lane.b32.xlu0 %v4058_v15, %s6531_s29 }
 0x63a   : > { %v4719_v23 = vpop.permute.xlu1 %4718  ;;  %v5414_v11 = vld [vmem:[#allocation3 + $0x138] sm:$0xff] }
 0x63b   : > { %4790 = vst.msk [vmem:[#allocation3 + $0x188] sm:$0xff] %vm1811_vm7, %v4719_v23  ;;  %6308 = vmatprep.mubr.msk.f32.mxu0 %vm5473_vm1, %v5414_v11  ;;  %v4904_v22 = vpop.permute.xlu0 %4903 }
 0x63c   : > { %5109 = vrot.lane.b32.xlu1 %v5018_v39, %s6538_s12  ;;  %v5681_v16 = vpop.f32.mrf.mxu0  ;;  %5730 = vmatmul.mubr.f32.gmra.mxu0 %v5413_v10  ;;  %4979 = vst.msk [vmem:[#allocation3 + $0x148] sm:$0xff] %vm2004_vm8, %v4904_v22  ;;  %v4061_v39 = vld [vmem:[#allocation2 + $0x1f4] sm:$0xff]  ;;  %v4829_v10 = vld [vmem:[#allocation2 + $0x2e4] sm:$0xff] }
 0x63d   : > { %v9864_v18 = vadd.f32 %v9530_v54, %v5681_v16  ;;  %5293 = vrot.lane.b32.xlu0 %v9859_v63, %s6539_s13 }
 0x63e   : > { %v4145_v0 = vpop.permute.xlu1 %4144  ;;  %v5683_v51 = vpop.f32.mrf.mxu0 }
 0x63f   : > { %5804 = vst.msk [vmem:[%s9541_s15 + $0x48] sm:$0xff] %vm297_vm0, %v9864_v18  ;;  %v4329_v62 = vpop.permute.xlu0 %4328 }
 0x640   : > { %4215 = vst.msk [vmem:[#allocation3 + $0x198] sm:$0xff] %vm1231_vm4, %v4145_v0  ;;  %4534 = vrot.lane.b32.xlu1 %v9657_v57, %s6535_s9 }
 0x641   : > { %4403 = vst.msk [vmem:[#allocation3 + $0x158] sm:$0xff] %vm1424_vm5, %v4329_v62  ;;  %3960 = vrot.lane.b32.xlu0 %v9676_v42, %s6532_s30  ;;  %v4827_v42 = vld [vmem:[#allocation2 + $0x2c4] sm:$0xff] }
 0x642   : > { %v4912_v50 = vpop.permute.xlu1 %4911 }
 0x643   : > { %4983 = vst.msk [vmem:[#allocation3 + $0x188] sm:$0xff] %vm2004_vm8, %v4912_v50  ;;  %v5096_v13 = vpop.permute.xlu0 %5095 }
 0x644   : > { %5301 = vrot.lane.b32.xlu1 %v5210_v7, %s6539_s13  ;;  %5171 = vst.msk [vmem:[#allocation3 + $0x148] sm:$0xff] %vm2198_vm9, %v5096_v13  ;;  %v5021_v7 = vld [vmem:[#allocation2 + $0x2e8] sm:$0xff]  ;;  %v5022_v13 = vld [vmem:[#allocation2 + $0x2f0] sm:$0xff] }
 0x645   : > { %4152 = vrot.lane.b32.xlu0 %v4059_v55, %s6533_s7 }
 0x646   : > { %v4337_v56 = vpop.permute.xlu1 %4336 }
 0x647   : > { %4407 = vst.msk [vmem:[#allocation3 + $0x198] sm:$0xff] %vm1424_vm5, %v4337_v56  ;;  %v3755_v57 = vpop.permute.xlu0 %3754 }
 0x648   : > { %4726 = vrot.lane.b32.xlu1 %v9683_v12, %s6536_s10  ;;  %3828 = vst.msk [vmem:[#allocation3 + $0x168] sm:$0xff] %vm845_vm2, %v3755_v57 }
 0x649   : > { %4344 = vrot.lane.b32.xlu0 %v9683_v12, %s6534_s8  ;;  %v5686_v27 = vpop.f32.mrf.mxu0 }
 0x64a   : > { %v5104_v49 = vpop.permute.xlu1 %5103  ;;  %v9889_v6 = vadd.f32 %v9530_v54, %v5686_v27  ;;  %v5827_v27 = vld [vmem:[%s10278_s3] sm:$0xff] }
 0x64b   : > { %5175 = vst.msk [vmem:[#allocation3 + $0x188] sm:$0xff] %vm2198_vm9, %v5104_v49  ;;  %v4521_v32 = vpop.permute.xlu0 %4520  ;;  %v5688_v20 = vpop.f32.mrf.mxu0  ;;  %v5214_v49 = vld [vmem:[#allocation2 + $0x2f4] sm:$0xff]  ;;  %6392 = vmatprep.subr.mxu1 %v5827_v27 }
 0x64c   : > { %4919 = vrot.lane.b32.xlu1 %v4827_v42, %s6537_s11  ;;  %5805 = vst.msk [vmem:[%s9541_s15 + $0x50] sm:$0xff] %vm297_vm0, %v9889_v6 }
 0x64d   : > { %4595 = vst.msk [vmem:[#allocation3 + $0x158] sm:$0xff] %vm1618_vm6, %v4521_v32  ;;  %3770 = vrot.lane.b32.xlu0 %v3676_v58, %s6531_s29 }
 0x64e   : > { %v3763_v12 = vpop.permute.xlu1 %3762 }
 0x64f   : > { %3832 = vst.msk [vmem:[#allocation3 + $0x1a8] sm:$0xff] %vm845_vm2, %v3763_v12  ;;  %v5288_v28 = vpop.permute.xlu0 %5287  ;;  %v5425_v12 = vld [vmem:[#allocation3 + $0x190] sm:$0xff] }
 0x650   : > { %5111 = vrot.lane.b32.xlu1 %v5019_v19, %s6538_s12  ;;  %5363 = vst.msk [vmem:[#allocation3 + $0x148] sm:$0xff] %vm2391_vm10, %v5288_v28 }
 0x651   : > { %5303 = vrot.lane.b32.xlu0 %v5211_v26, %s6539_s13 }
 0x652   : > { %v4529_v17 = vpop.permute.xlu1 %4528 }
 0x653   : > { %4599 = vst.msk [vmem:[#allocation3 + $0x198] sm:$0xff] %vm1618_vm6, %v4529_v17  ;;  %v3947_v8 = vpop.permute.xlu0 %3946  ;;  %v9979_v17 = vld [vmem:[%s10277_s2] ss:$0 sm:$0xff] }
 0x654   : > { %4536 = vrot.lane.b32.xlu1 %v9725_v37, %s6535_s9  ;;  %4020 = vst.msk [vmem:[#allocation3 + $0x168] sm:$0xff] %vm1038_vm3, %v3947_v8 }
 0x655   : > { %4728 = vrot.lane.b32.xlu0 %v9749_v30, %s6536_s10 }
 0x656   : > { %v5296_v2 = vpop.permute.xlu1 %5295 }
 0x657   : > { %5367 = vst.msk [vmem:[#allocation3 + $0x188] sm:$0xff] %vm2391_vm10, %v5296_v2  ;;  %v4713_v35 = vpop.permute.xlu0 %4712  ;;  %v5416_v33 = vld [vmem:[#allocation3 + $0x148] sm:$0xff] }
 0x658   : > { %3962 = vrot.lane.b32.xlu1 %v3868_v45, %s6532_s30  ;;  %4787 = vst.msk [vmem:[#allocation3 + $0x158] sm:$0xff] %vm1811_vm7, %v4713_v35  ;;  %6309 = vmatprep.mubr.msk.f32.mxu0 %vm5473_vm1, %v5416_v33 }
 0x659   : > { %5735 = vmatmul.mubr.f32.gmra.mxu0 %v5415_v53  ;;  %4921 = vrot.lane.b32.xlu0 %v5211_v26, %s6537_s11 }
 0x65a   : > { %v3955_v37 = vpop.permute.xlu1 %3954 }
 0x65b   : > { %4024 = vst.msk [vmem:[#allocation3 + $0x1a8] sm:$0xff] %vm1038_vm3, %v3955_v37  ;;  %v4139_v30 = vpop.permute.xlu0 %4138 }
 0x65c   : > { %4154 = vrot.lane.b32.xlu1 %v4060_v43, %s6533_s7  ;;  %4212 = vst.msk [vmem:[#allocation3 + $0x168] sm:$0xff] %vm1231_vm4, %v4139_v30 }
 0x65d   : > { %5113 = vrot.lane.b32.xlu0 %v5020_v36, %s6538_s12 }
 0x65e   : > { %v4721_v4 = vpop.permute.xlu1 %4720  ;;  %v5424_v24 = vld [vmem:[#allocation3 + $0x188] sm:$0xff] }
 0x65f   : > { %4791 = vst.msk [vmem:[#allocation3 + $0x198] sm:$0xff] %vm1811_vm7, %v4721_v4  ;;  %6313 = vmatprep.mubr.msk.f32.mxu1 %vm5473_vm1, %v5424_v24  ;;  %v4906_v15 = vpop.permute.xlu0 %4905 }
 0x660   : > { %4346 = vrot.lane.b32.xlu1 %v9779_v61, %s6534_s8  ;;  %v5691_v29 = vpop.f32.mrf.mxu0  ;;  %5755 = vmatmul.mubr.f32.vlgmr.msra.gmra.mxu1 %v5423_v9  ;;  %4980 = vst.msk [vmem:[#allocation3 + $0x158] sm:$0xff] %vm2004_vm8, %v4906_v15  ;;  %v5212_v61 = vld [vmem:[#allocation2 + $0x2d4] sm:$0xff] }
 0x661   : > { %v9922_v34 = vadd.f32 %v9530_v54, %v5691_v29  ;;  %4538 = vrot.lane.b32.xlu0 %v9792_v60, %s6535_s9  ;;  %6393 = vmatpush3.msra.mxu1 %v5827_v27  ;;  %v5421_v27 = vld [vmem:[#allocation3 + $0x170] sm:$0xff] }
 0x662   : > { %v4147_v38 = vpop.permute.xlu1 %4146  ;;  %v5693_v59 = vpop.f32.mrf.mxu0 }
 0x663   : > { %5806 = vst.msk [vmem:[%s9541_s15 + $0x58] sm:$0xff] %vm297_vm0, %v9922_v34  ;;  %v4331_v41 = vpop.permute.xlu0 %4330 }
 0x664   : > { %4216 = vst.msk [vmem:[#allocation3 + $0x1a8] sm:$0xff] %vm1231_vm4, %v4147_v38  ;;  %3772 = vrot.lane.b32.xlu1 %v4060_v43, %s6531_s29 }
 0x665   : > { %4404 = vst.msk [vmem:[#allocation3 + $0x168] sm:$0xff] %vm1424_vm5, %v4331_v41  ;;  %3964 = vrot.lane.b32.xlu0 %v3869_v52, %s6532_s30 }
 0x666   : > { %v4914_v46 = vpop.permute.xlu1 %4913 }
 0x667   : > { %4984 = vst.msk [vmem:[#allocation3 + $0x198] sm:$0xff] %vm2004_vm8, %v4914_v46  ;;  %v5098_v23 = vpop.permute.xlu0 %5097  ;;  %v5427_v46 = vld [vmem:[#allocation3 + $0x1a0] sm:$0xff] }
 0x668   : > { %5305 = vrot.lane.b32.xlu1 %v5212_v61, %s6539_s13  ;;  %5172 = vst.msk [vmem:[#allocation3 + $0x158] sm:$0xff] %vm2198_vm9, %v5098_v23 }
 0x669   : > { %4156 = vrot.lane.b32.xlu0 %v4061_v39, %s6533_s7 }
 0x66a   : > { %v4339_v60 = vpop.permute.xlu1 %4338 }
 0x66b   : > { %4408 = vst.msk [vmem:[#allocation3 + $0x1a8] sm:$0xff] %vm1424_vm5, %v4339_v60  ;;  %v3757_v11 = vpop.permute.xlu0 %3756  ;;  %v5419_v60 = vld [vmem:[#allocation3 + $0x160] sm:$0xff] }
 0x66c   : > { %4730 = vrot.lane.b32.xlu1 %v9819_v31, %s6536_s10  ;;  %3829 = vst.msk [vmem:[#allocation3 + $0x178] sm:$0xff] %vm845_vm2, %v3757_v11 }
 0x66d   : > { %v5696_v16 = vpop.f32.mrf.mxu0  ;;  %4348 = vrot.lane.b32.xlu0 %v9819_v31, %s6534_s8 }
 0x66e   : > { %v5106_v22 = vpop.permute.xlu1 %5105  ;;  %v9945_v0 = vadd.f32 %v9530_v54, %v5696_v16  ;;  %v5213_v54 = vld [vmem:[#allocation2 + $0x2ec] sm:$0xff] }
 0x66f   : > { %5176 = vst.msk [vmem:[#allocation3 + $0x198] sm:$0xff] %vm2198_vm9, %v5106_v22  ;;  %v4523_v51 = vpop.permute.xlu0 %4522  ;;  %v5698_v62 = vpop.f32.mrf.mxu0 }
 0x670   : > { %4923 = vrot.lane.b32.xlu1 %v4829_v10, %s6537_s11  ;;  %5807 = vst.msk [vmem:[%s9541_s15 + $0x60] sm:$0xff] %vm297_vm0, %v9945_v0 }
 0x671   : > { %4596 = vst.msk [vmem:[#allocation3 + $0x168] sm:$0xff] %vm1618_vm6, %v4523_v51  ;;  %4540 = vrot.lane.b32.xlu0 %v9845_v14, %s6535_s9 }
 0x672   : > { %v3765_v50 = vpop.permute.xlu1 %3764 }
 0x673   : > { %3833 = vst.msk [vmem:[#allocation3 + $0x1b8] sm:$0xff] %vm845_vm2, %v3765_v50  ;;  %v5290_v31 = vpop.permute.xlu0 %5289 }
 0x674   : > { %5115 = vrot.lane.b32.xlu1 %v5021_v7, %s6538_s12  ;;  %5364 = vst.msk [vmem:[#allocation3 + $0x158] sm:$0xff] %vm2391_vm10, %v5290_v31 }
 0x675   : > { %4732 = vrot.lane.b32.xlu0 %v9859_v63, %s6536_s10  ;;  %v5417_v63 = vld [vmem:[#allocation3 + $0x150] sm:$0xff] }
 0x676   : > { %v4531_v55 = vpop.permute.xlu1 %4530 }
 0x677   : > { %4600 = vst.msk [vmem:[#allocation3 + $0x1a8] sm:$0xff] %vm1618_vm6, %v4531_v55  ;;  %v3949_v56 = vpop.permute.xlu0 %3948 }
 0x678   : > { %5307 = vrot.lane.b32.xlu1 %v5213_v54, %s6539_s13  ;;  %4021 = vst.msk [vmem:[#allocation3 + $0x178] sm:$0xff] %vm1038_vm3, %v3949_v56 }
 0x679   : > { %5117 = vrot.lane.b32.xlu0 %v5022_v13, %s6538_s12 }
 0x67a   : > { %v5298_v14 = vpop.permute.xlu1 %5297 }
 0x67b   : > { %5368 = vst.msk [vmem:[#allocation3 + $0x198] sm:$0xff] %vm2391_vm10, %v5298_v14  ;;  %v4715_v57 = vpop.permute.xlu0 %4714  ;;  %v5418_v42 = vld [vmem:[#allocation3 + $0x158] sm:$0xff] }
 0x67c   : > { %4925 = vrot.lane.b32.xlu1 %v5213_v54, %s6537_s11  ;;  %4788 = vst.msk [vmem:[#allocation3 + $0x168] sm:$0xff] %vm1811_vm7, %v4715_v57  ;;  %6310 = vmatprep.mubr.msk.f32.mxu0 %vm5473_vm1, %v5418_v42 }
 0x67d   : > { %5740 = vmatmul.mubr.f32.gmra.mxu0 %v5417_v63 }
 0x67e   : > { %v3957_v58 = vpop.permute.xlu1 %3956 }
 0x67f   : > { %4025 = vst.msk [vmem:[#allocation3 + $0x1b8] sm:$0xff] %vm1038_vm3, %v3957_v58  ;;  %v4141_v32 = vpop.permute.xlu0 %4140 }
 0x680   : > { %5309 = vrot.lane.b32.xlu1 %v5214_v49, %s6539_s13  ;;  %4213 = vst.msk [vmem:[#allocation3 + $0x178] sm:$0xff] %vm1231_vm4, %v4141_v32  ;;  %s10174_s13 = scalar_lea.vmem %s10281_s6, %s6792_s24 }
 0x682   : > { %v4723_v20 = vpop.permute.xlu1 %4722  ;;  %v5426_v19 = vld [vmem:[#allocation3 + $0x198] sm:$0xff] }
 0x683   : > { %4792 = vst.msk [vmem:[#allocation3 + $0x1a8] sm:$0xff] %vm1811_vm7, %v4723_v20  ;;  %6314 = vmatprep.mubr.msk.f32.mxu1 %vm5473_vm1, %v5426_v19  ;;  %v4908_v26 = vpop.permute.xlu0 %4907 }
 0x684   : > { %v5701_v28 = vpop.f32.mrf.mxu0  ;;  %5760 = vmatmul.mubr.f32.gmra.mxu1 %v5425_v12  ;;  %4981 = vst.msk [vmem:[#allocation3 + $0x168] sm:$0xff] %vm2004_vm8, %v4908_v26  ;;  %v5429_v12 = vld [vmem:[#allocation3 + $0x1b0] sm:$0xff] }
 0x685   : > { %v9982_v8 = vadd.f32 %v9979_v17, %v5701_v28 }
 0x686   : > { %v4149_v45 = vpop.permute.xlu1 %4148  ;;  %v5703_v2 = vpop.f32.mrf.mxu0 }
 0x687   : > { %5808 = vst.msk [vmem:[%s9541_s15 + $0x68] sm:$0xff] %vm297_vm0, %v9982_v8  ;;  %v4333_v35 = vpop.permute.xlu0 %4332 }
 0x688   : > { %4217 = vst.msk [vmem:[#allocation3 + $0x1b8] sm:$0xff] %vm1231_vm4, %v4149_v45 }
 0x689   : > { %4405 = vst.msk [vmem:[#allocation3 + $0x178] sm:$0xff] %vm1424_vm5, %v4333_v35 }
 0x68a   : > { %v4916_v33 = vpop.permute.xlu1 %4915 }
 0x68b   : > { %4985 = vst.msk [vmem:[#allocation3 + $0x1a8] sm:$0xff] %vm2004_vm8, %v4916_v33  ;;  %v5100_v53 = vpop.permute.xlu0 %5099 }
 0x68c   : > { %5173 = vst.msk [vmem:[#allocation3 + $0x168] sm:$0xff] %vm2198_vm9, %v5100_v53 }
 0x68e   : > { %v4341_v43 = vpop.permute.xlu1 %4340 }
 0x68f   : > { %4409 = vst.msk [vmem:[#allocation3 + $0x1b8] sm:$0xff] %vm1424_vm5, %v4341_v43  ;;  %v3767_v37 = vpop.permute.xlu0 %3766 }
 0x690   : > { %3834 = vst.msk [vmem:[#allocation3 + $0x1c8] sm:$0xff] %vm845_vm2, %v3767_v37 }
 0x691   : > { %v5706_v30 = vpop.f32.mrf.mxu0 }
 0x692   : > { %v5108_v36 = vpop.permute.xlu1 %5107  ;;  %v9995_v4 = vadd.f32 %v9979_v17, %v5706_v30  ;;  %v5431_v30 = vld [vmem:[#allocation3 + $0x1c0] sm:$0xff] }
 0x693   : > { %5177 = vst.msk [vmem:[#allocation3 + $0x1a8] sm:$0xff] %vm2198_vm9, %v5108_v36  ;;  %v4533_v24 = vpop.permute.xlu0 %4532  ;;  %v5708_v9 = vpop.f32.mrf.mxu0 }
 0x694   : > { %5809 = vst.msk [vmem:[%s9541_s15 + $0x70] sm:$0xff] %vm297_vm0, %v9995_v4 }
 0x695   : > { %4601 = vst.msk [vmem:[#allocation3 + $0x1b8] sm:$0xff] %vm1618_vm6, %v4533_v24 }
 0x696   : > { %v4525_v15 = vpop.permute.xlu1 %4524 }
 0x697   : > { %4597 = vst.msk [vmem:[#allocation3 + $0x178] sm:$0xff] %vm1618_vm6, %v4525_v15  ;;  %v5300_v29 = vpop.permute.xlu0 %5299 }
 0x698   : > { %5369 = vst.msk [vmem:[#allocation3 + $0x1a8] sm:$0xff] %vm2391_vm10, %v5300_v29 }
 0x69a   : > { %v5292_v38 = vpop.permute.xlu1 %5291 }
 0x69b   : > { %5365 = vst.msk [vmem:[#allocation3 + $0x168] sm:$0xff] %vm2391_vm10, %v5292_v38  ;;  %v4717_v59 = vpop.permute.xlu0 %4716 }
 0x69c   : > { %4789 = vst.msk [vmem:[#allocation3 + $0x178] sm:$0xff] %vm1811_vm7, %v4717_v59 }
 0x69e   : > { %v3959_v52 = vpop.permute.xlu1 %3958 }
 0x69f   : > { %4026 = vst.msk [vmem:[#allocation3 + $0x1c8] sm:$0xff] %vm1038_vm3, %v3959_v52  ;;  %v4151_v41 = vpop.permute.xlu0 %4150  ;;  %v5428_v61 = vld [vmem:[#allocation3 + $0x1a8] sm:$0xff] }
 0x6a0   : > { %4218 = vst.msk [vmem:[#allocation3 + $0x1c8] sm:$0xff] %vm1231_vm4, %v4151_v41  ;;  %6315 = vmatprep.mubr.msk.f32.mxu1 %vm5473_vm1, %v5428_v61 }
 0x6a1   : > { %5765 = vmatmul.mubr.f32.gmra.mxu1 %v5427_v46 }
 0x6a2   : > { %v4725_v39 = vpop.permute.xlu1 %4724  ;;  %v5420_v23 = vld [vmem:[#allocation3 + $0x168] sm:$0xff] }
 0x6a3   : > { %4793 = vst.msk [vmem:[#allocation3 + $0x1b8] sm:$0xff] %vm1811_vm7, %v4725_v39  ;;  %6311 = vmatprep.mubr.msk.f32.mxu0 %vm5473_vm1, %v5420_v23  ;;  %v4918_v11 = vpop.permute.xlu0 %4917 }
 0x6a4   : > { %5745 = vmatmul.mubr.f32.gmra.mxu0 %v5419_v60  ;;  %4986 = vst.msk [vmem:[#allocation3 + $0x1b8] sm:$0xff] %vm2004_vm8, %v4918_v11 }
 0x6a6   : > { %v4910_v10 = vpop.permute.xlu1 %4909 }
 0x6a7   : > { %4982 = vst.msk [vmem:[#allocation3 + $0x178] sm:$0xff] %vm2004_vm8, %v4910_v10  ;;  %v5102_v22 = vpop.permute.xlu0 %5101 }
 0x6a8   : > { %v5711_v16 = vpop.f32.mrf.mxu0  ;;  %5174 = vst.msk [vmem:[#allocation3 + $0x178] sm:$0xff] %vm2198_vm9, %v5102_v22 }
 0x6a9   : > { %v10014_v51 = vadd.f32 %v9979_v17, %v5711_v16  ;;  %v5433_v16 = vld [vmem:[#allocation3 + $0x1d0] sm:$0xff] }
 0x6aa   : > { %v4343_v62 = vpop.permute.xlu1 %4342  ;;  %v5713_v7 = vpop.f32.mrf.mxu0 }
 0x6ab   : > { %5810 = vst.msk [vmem:[%s9541_s15 + $0x78] sm:$0xff] %vm297_vm0, %v10014_v51  ;;  %v3769_v50 = vpop.permute.xlu0 %3768 }
 0x6ac   : > { %4410 = vst.msk [vmem:[#allocation3 + $0x1c8] sm:$0xff] %vm1424_vm5, %v4343_v62 }
 0x6ad   : > { %3835 = vst.msk [vmem:[#allocation3 + $0x1d8] sm:$0xff] %vm845_vm2, %v3769_v50 }
 0x6ae   : > { %v5110_v31 = vpop.permute.xlu1 %5109 }
 0x6af   : > { %5178 = vst.msk [vmem:[#allocation3 + $0x1b8] sm:$0xff] %vm2198_vm9, %v5110_v31  ;;  %v5294_v54 = vpop.permute.xlu0 %5293 }
 0x6b0   : > { %5366 = vst.msk [vmem:[#allocation3 + $0x178] sm:$0xff] %vm2391_vm10, %v5294_v54 }
 0x6b2   : > { %v4535_v55 = vpop.permute.xlu1 %4534 }
 0x6b3   : > { %4602 = vst.msk [vmem:[#allocation3 + $0x1c8] sm:$0xff] %vm1618_vm6, %v4535_v55  ;;  %v3961_v13 = vpop.permute.xlu0 %3960 }
 0x6b4   : > { %4027 = vst.msk [vmem:[#allocation3 + $0x1d8] sm:$0xff] %vm1038_vm3, %v3961_v13 }
 0x6b5   : > { %v5716_v14 = vpop.f32.mrf.mxu0 }
 0x6b6   : > { %v5302_v56 = vpop.permute.xlu1 %5301  ;;  %v10027_v57 = vadd.f32 %v9979_v17, %v5716_v14  ;;  %v5435_v14 = vld [vmem:[#allocation3 + $0x1e0] sm:$0xff] }
 0x6b7   : > { %5370 = vst.msk [vmem:[#allocation3 + $0x1b8] sm:$0xff] %vm2391_vm10, %v5302_v56  ;;  %v4153_v42 = vpop.permute.xlu0 %4152  ;;  %v5718_v63 = vpop.f32.mrf.mxu0  ;;  %v5422_v49 = vld [vmem:[#allocation3 + $0x178] sm:$0xff] }
 0x6b8   : > { %5811 = vst.msk [vmem:[%s9541_s15 + $0x80] sm:$0xff] %vm297_vm0, %v10027_v57  ;;  %6312 = vmatprep.mubr.msk.f32.mxu0 %vm5473_vm1, %v5422_v49  ;;  %v5437_v63 = vld [vmem:[#allocation3 + $0x1f0] sm:$0xff] }
 0x6b9   : > { %4219 = vst.msk [vmem:[#allocation3 + $0x1d8] sm:$0xff] %vm1231_vm4, %v4153_v42  ;;  %5750 = vmatmul.mubr.f32.gmra.mxu0 %v5421_v27 }
 0x6ba   : > { %v4727_v58 = vpop.permute.xlu1 %4726 }
 0x6bb   : > { %4794 = vst.msk [vmem:[#allocation3 + $0x1c8] sm:$0xff] %vm1811_vm7, %v4727_v58  ;;  %v4345_v32 = vpop.permute.xlu0 %4344 }
 0x6bc   : > { %4411 = vst.msk [vmem:[#allocation3 + $0x1d8] sm:$0xff] %vm1424_vm5, %v4345_v32 }
 0x6be   : > { %v4920_v20 = vpop.permute.xlu1 %4919  ;;  %v5430_v19 = vld [vmem:[#allocation3 + $0x1b8] sm:$0xff] }
 0x6bf   : > { %4987 = vst.msk [vmem:[#allocation3 + $0x1c8] sm:$0xff] %vm2004_vm8, %v4920_v20  ;;  %6316 = vmatprep.mubr.msk.f32.mxu1 %vm5473_vm1, %v5430_v19  ;;  %v3771_v26 = vpop.permute.xlu0 %3770 }
 0x6c0   : > { %5770 = vmatmul.mubr.f32.gmra.mxu1 %v5429_v12  ;;  %3836 = vst.msk [vmem:[#allocation3 + $0x1e8] sm:$0xff] %vm845_vm2, %v3771_v26 }
 0x6c2   : > { %v5112_v28 = vpop.permute.xlu1 %5111 }
 0x6c3   : > { %5179 = vst.msk [vmem:[#allocation3 + $0x1c8] sm:$0xff] %vm2198_vm9, %v5112_v28  ;;  %v5304_v45 = vpop.permute.xlu0 %5303 }
 0x6c4   : > { %5371 = vst.msk [vmem:[#allocation3 + $0x1c8] sm:$0xff] %vm2391_vm10, %v5304_v45 }
 0x6c6   : > { %v4537_v2 = vpop.permute.xlu1 %4536 }
 0x6c7   : > { %4603 = vst.msk [vmem:[#allocation3 + $0x1d8] sm:$0xff] %vm1618_vm6, %v4537_v2  ;;  %v4729_v35 = vpop.permute.xlu0 %4728 }
 0x6c8   : > { %4795 = vst.msk [vmem:[#allocation3 + $0x1d8] sm:$0xff] %vm1811_vm7, %v4729_v35 }
 0x6ca   : > { %v3963_v33 = vpop.permute.xlu1 %3962 }
 0x6cb   : > { %4028 = vst.msk [vmem:[#allocation3 + $0x1e8] sm:$0xff] %vm1038_vm3, %v3963_v33  ;;  %v5432_v43 = vld [vmem:[#allocation3 + $0x1c8] sm:$0xff]  ;;  %v4922_v37 = vpop.permute.xlu0 %4921 }
 0x6cc   : > { %v5721_v53 = vpop.f32.mrf.mxu0  ;;  %6317 = vmatprep.mubr.msk.f32.mxu1 %vm5473_vm1, %v5432_v43  ;;  %4988 = vst.msk [vmem:[#allocation3 + $0x1d8] sm:$0xff] %vm2004_vm8, %v4922_v37 }
 0x6cd   : > { %v10045_v36 = vadd.f32 %v9979_v17, %v5721_v53  ;;  %5775 = vmatmul.mubr.f32.gmra.mxu1 %v5431_v30 }
 0x6ce   : > { %v4155_v24 = vpop.permute.xlu1 %4154  ;;  %v5723_v9 = vpop.f32.mrf.mxu0 }
 0x6cf   : > { %5812 = vst.msk [vmem:[%s9541_s15 + $0x88] sm:$0xff] %vm297_vm0, %v10045_v36  ;;  %v5114_v15 = vpop.permute.xlu0 %5113 }
 0x6d0   : > { %4220 = vst.msk [vmem:[#allocation3 + $0x1e8] sm:$0xff] %vm1231_vm4, %v4155_v24 }
 0x6d1   : > { %5180 = vst.msk [vmem:[#allocation3 + $0x1d8] sm:$0xff] %vm2198_vm9, %v5114_v15 }
 0x6d2   : > { %v4347_v29 = vpop.permute.xlu1 %4346 }
 0x6d3   : > { %4412 = vst.msk [vmem:[#allocation3 + $0x1e8] sm:$0xff] %vm1424_vm5, %v4347_v29  ;;  %v4539_v38 = vpop.permute.xlu0 %4538 }
 0x6d4   : > { %4604 = vst.msk [vmem:[#allocation3 + $0x1e8] sm:$0xff] %vm1618_vm6, %v4539_v38  ;;  %v10165_v38 = vld [vmem:[%s10279_s4] ss:$0 sm:$0xff] }
 0x6d6   : > { %v3773_v59 = vpop.permute.xlu1 %3772 }
 0x6d7   : > { %3837 = vst.msk [vmem:[#allocation3 + $0x1f8] sm:$0xff] %vm845_vm2, %v3773_v59  ;;  %v3965_v52 = vpop.permute.xlu0 %3964  ;;  %vm6156_vm2 = vcmask 80896  }
 0x6d8   : > { %4029 = vst.msk [vmem:[#allocation3 + $0x1f8] sm:$0xff] %vm1038_vm3, %v3965_v52 }
 0x6da   : > { %v5306_v41 = vpop.permute.xlu1 %5305 }
 0x6db   : > { %5372 = vst.msk [vmem:[#allocation3 + $0x1d8] sm:$0xff] %vm2391_vm10, %v5306_v41  ;;  %v4157_v61 = vpop.permute.xlu0 %4156 }
 0x6dc   : > { %4221 = vst.msk [vmem:[#allocation3 + $0x1f8] sm:$0xff] %vm1231_vm4, %v4157_v61 }
 0x6de   : > { %v4731_v46 = vpop.permute.xlu1 %4730 }
 0x6df   : > { %4796 = vst.msk [vmem:[#allocation3 + $0x1e8] sm:$0xff] %vm1811_vm7, %v4731_v46  ;;  %v4349_v23 = vpop.permute.xlu0 %4348 }
 0x6e0   : > { %v5726_v39 = vpop.f32.mrf.mxu0  ;;  %4413 = vst.msk [vmem:[#allocation3 + $0x1f8] sm:$0xff] %vm1424_vm5, %v4349_v23 }
 0x6e1   : > { %v5727_v60 = vadd.f32 %v9979_v17, %v5726_v39 }
 0x6e2   : > { %v4924_v11 = vpop.permute.xlu1 %4923  ;;  %v5728_v10 = vpop.f32.mrf.mxu0  ;;  %v5434_v22 = vld [vmem:[#allocation3 + $0x1d8] sm:$0xff] }
 0x6e3   : > { %5813 = vst.msk [vmem:[%s9541_s15 + $0x90] sm:$0xff] %vm297_vm0, %v5727_v60  ;;  %6318 = vmatprep.mubr.msk.f32.mxu1 %vm5473_vm1, %v5434_v22  ;;  %v4541_v62 = vpop.permute.xlu0 %4540 }
 0x6e4   : > { %4989 = vst.msk [vmem:[#allocation3 + $0x1e8] sm:$0xff] %vm2004_vm8, %v4924_v11  ;;  %5780 = vmatmul.mubr.f32.gmra.mxu1 %v5433_v16 }
 0x6e5   : > { %4605 = vst.msk [vmem:[#allocation3 + $0x1f8] sm:$0xff] %vm1618_vm6, %v4541_v62 }
 0x6e6   : > { %v5116_v7 = vpop.permute.xlu1 %5115 }
 0x6e7   : > { %5181 = vst.msk [vmem:[#allocation3 + $0x1e8] sm:$0xff] %vm2198_vm9, %v5116_v7  ;;  %v4733_v50 = vpop.permute.xlu0 %4732 }
 0x6e8   : > { %4797 = vst.msk [vmem:[#allocation3 + $0x1f8] sm:$0xff] %vm1811_vm7, %v4733_v50 }
 0x6ea   : > { %v5308_v31 = vpop.permute.xlu1 %5307 }
 0x6eb   : > { %5373 = vst.msk [vmem:[#allocation3 + $0x1e8] sm:$0xff] %vm2391_vm10, %v5308_v31  ;;  %v5118_v54 = vpop.permute.xlu0 %5117 }
 0x6ee   : > { %v4926_v55 = vpop.permute.xlu1 %4925 }
 0x6ef   : > { %4990 = vst.msk [vmem:[#allocation3 + $0x1f8] sm:$0xff] %vm2004_vm8, %v4926_v55 }
 0x6f0   : > { %5182 = vst.msk [vmem:[#allocation3 + $0x1f8] sm:$0xff] %vm2198_vm9, %v5118_v54 }
 0x6f2   : > { %v5310_v13 = vpop.permute.xlu1 %5309  ;;  %v5436_v56 = vld [vmem:[#allocation3 + $0x1e8] sm:$0xff] }
 0x6f3   : > { %5374 = vst.msk [vmem:[#allocation3 + $0x1f8] sm:$0xff] %vm2391_vm10, %v5310_v13  ;;  %6319 = vmatprep.mubr.msk.f32.mxu1 %vm5473_vm1, %v5436_v56 }
 0x6f4   : > { %5785 = vmatmul.mubr.f32.gmra.mxu1 %v5435_v14 }
 0x6fa   : > { %v5438_v42 = vld [vmem:[#allocation3 + $0x1f8] sm:$0xff] }
 0x6fb   : > { %6320 = vmatprep.mubr.msk.f32.mxu1 %vm5473_vm1, %v5438_v42 }
 0x6fc   : > { %v5731_v49 = vpop.f32.mrf.mxu0  ;;  %5790 = vmatmul.mubr.f32.gmra.mxu1 %v5437_v63 }
 0x6fd   : > { %v5732_v27 = vadd.f32 %v9979_v17, %v5731_v49  ;;  %6394 = vmatprep.mubr.msk.f32.mxu1 %vm297_vm0, %v9544_v25 }
 0x6fe   : > { %v5733_v58 = vpop.f32.mrf.mxu0 }
 0x6ff   : > { %5814 = vst.msk [vmem:[%s9541_s15 + $0x98] sm:$0xff] %vm297_vm0, %v5732_v27 }
 0x700   : > { %6395 = vmatmul.mubr.msk.f32.vlgmr.msra.gmra.mxu1 %vm297_vm0, %v9588_v21 }
 0x701   : > { %6397 = vmatprep.mubr.msk.f32.mxu1 %vm297_vm0, %v9619_v1 }
 0x704   : > { %6398 = vmatmul.mubr.msk.f32.gmra.mxu1 %vm297_vm0, %v9662_v5 }
 0x705   : > { %6400 = vmatprep.mubr.msk.f32.mxu1 %vm297_vm0, %v9692_v44 }
 0x708   : > { %6401 = vmatmul.mubr.msk.f32.gmra.mxu1 %vm297_vm0, %v9730_v40 }
 0x709   : > { %6403 = vmatprep.mubr.msk.f32.mxu1 %vm297_vm0, %v9757_v3 }
 0x70c   : > { %6404 = vmatmul.mubr.msk.f32.gmra.mxu1 %vm297_vm0, %v9797_v48 }
 0x70d   : > { %6406 = vmatprep.mubr.msk.f32.mxu1 %vm297_vm0, %v9824_v47 }
 0x710   : > { %6407 = vmatmul.mubr.msk.f32.gmra.mxu1 %vm297_vm0, %v9864_v18 }
 0x711   : > { %6409 = vmatprep.mubr.msk.f32.mxu1 %vm297_vm0, %v9889_v6 }
 0x714   : > { %6410 = vmatmul.mubr.msk.f32.gmra.mxu1 %vm297_vm0, %v9922_v34 }
 0x715   : > { %6412 = vmatprep.mubr.msk.f32.mxu1 %vm297_vm0, %v9945_v0 }
 0x718   : > { %6413 = vmatmul.mubr.msk.f32.gmra.mxu1 %vm297_vm0, %v9982_v8 }
 0x719   : > { %6415 = vmatprep.mubr.msk.f32.mxu1 %vm297_vm0, %v9995_v4  ;;  %v5736_v25 = vpop.f32.mrf.mxu0 }
 0x71a   : > { %v5737_v21 = vadd.f32 %v9979_v17, %v5736_v25 }
 0x71b   : > { %v5738_v1 = vpop.f32.mrf.mxu0 }
 0x71c   : > { %6416 = vmatmul.mubr.msk.f32.gmra.mxu1 %vm297_vm0, %v10014_v51  ;;  %5815 = vst.msk [vmem:[%s9541_s15 + $0xa0] sm:$0xff] %vm297_vm0, %v5737_v21 }
 0x71d   : > { %6418 = vmatprep.mubr.msk.f32.mxu1 %vm297_vm0, %v10027_v57 }
 0x720   : > { %v5756_v5 = vpop.f32.mrf.mxu1  ;;  %6419 = vmatmul.mubr.msk.f32.gmra.mxu1 %vm297_vm0, %v10045_v36 }
 0x721   : > { %v5757_v44 = vadd.f32 %v9979_v17, %v5756_v5  ;;  %6421 = vmatprep.mubr.msk.f32.mxu1 %vm297_vm0, %v5727_v60 }
 0x722   : > { %v5758_v40 = vpop.f32.mrf.mxu1 }
 0x723   : > { %5819 = vst.msk [vmem:[%s9541_s15 + $0xc0] sm:$0xff] %vm297_vm0, %v5757_v44 }
 0x724   : > { %6422 = vmatmul.mubr.msk.f32.gmra.mxu1 %vm297_vm0, %v5732_v27 }
 0x725   : > { %6424 = vmatprep.mubr.msk.f32.mxu1 %vm297_vm0, %v5737_v21 }
 0x73d   : > { %v5741_v3 = vpop.f32.mrf.mxu0 }
 0x73e   : > { %v5742_v48 = vadd.f32 %v9979_v17, %v5741_v3 }
 0x73f   : > { %v5743_v47 = vpop.f32.mrf.mxu0 }
 0x740   : > { %5816 = vst.msk [vmem:[%s9541_s15 + $0xa8] sm:$0xff] %vm297_vm0, %v5742_v48  ;;  %6425 = vmatmul.mubr.msk.f32.gmra.mxu1 %vm297_vm0, %v5742_v48 }
 0x744   : > { %v5761_v18 = vpop.f32.mrf.mxu1 }
 0x745   : > { %v5762_v6 = vadd.f32 %v9979_v17, %v5761_v18 }
 0x746   : > { %v5763_v34 = vpop.f32.mrf.mxu1 }
 0x747   : > { %5820 = vst.msk [vmem:[%s9541_s15 + $0xc8] sm:$0xff] %vm297_vm0, %v5762_v6 }
 0x761   : > { %v5766_v0 = vpop.f32.mrf.mxu1 }
 0x762   : > { %v5767_v8 = vadd.f32 %v9979_v17, %v5766_v0 }
 0x763   : > { %v5768_v51 = vpop.f32.mrf.mxu1 }
 0x764   : > { %v5746_v4 = vpop.f32.mrf.mxu0  ;;  %5821 = vst.msk [vmem:[%s9541_s15 + $0xd0] sm:$0xff] %vm297_vm0, %v5767_v8 }
 0x765   : > { %v5747_v57 = vadd.f32 %v9979_v17, %v5746_v4 }
 0x766   : > { %v5748_v32 = vpop.f32.mrf.mxu0 }
 0x767   : > { %5817 = vst.msk [vmem:[%s9541_s15 + $0xb0] sm:$0xff] %vm297_vm0, %v5747_v57  ;;  %6427 = vmatprep.mubr.msk.f32.mxu1 %vm297_vm0, %v5747_v57 }
 0x779   : > { %v5751_v20 = vpop.f32.mrf.mxu0 }
 0x77a   : > { %v5752_v19 = vadd.f32 %v9979_v17, %v5751_v20 }
 0x77b   : > { %v5753_v12 = vpop.f32.mrf.mxu0 }
 0x77c   : > { %5818 = vst.msk [vmem:[%s9541_s15 + $0xb8] sm:$0xff] %vm297_vm0, %v5752_v19  ;;  %6428 = vmatmul.mubr.msk.f32.gmra.mxu1 %vm297_vm0, %v5752_v19 }
 0x77d   : > { %6430 = vmatprep.mubr.msk.f32.mxu1 %vm297_vm0, %v5757_v44 }
 0x780   : > { %v5771_v26 = vpop.f32.mrf.mxu1  ;;  %6431 = vmatmul.mubr.msk.f32.gmra.mxu1 %vm297_vm0, %v5762_v6 }
 0x781   : > { %v5772_v28 = vadd.f32 %v9979_v17, %v5771_v26  ;;  %6433 = vmatprep.mubr.msk.f32.mxu1 %vm297_vm0, %v5767_v8 }
 0x782   : > { %v5773_v45 = vpop.f32.mrf.mxu1 }
 0x783   : > { %5822 = vst.msk [vmem:[%s9541_s15 + $0xd8] sm:$0xff] %vm297_vm0, %v5772_v28 }
 0x784   : > { %6434 = vmatmul.mubr.msk.f32.gmra.mxu1 %vm297_vm0, %v5772_v28 }
 0x78d   : > { %v5776_v2 = vpop.f32.mrf.mxu1 }
 0x78e   : > { %v5777_v35 = vadd.f32 %v9979_v17, %v5776_v2 }
 0x78f   : > { %v5778_v33 = vpop.f32.mrf.mxu1 }
 0x790   : > { %5823 = vst.msk [vmem:[%s9541_s15 + $0xe0] sm:$0xff] %vm297_vm0, %v5777_v35  ;;  %6436 = vmatprep.mubr.msk.f32.mxu1 %vm297_vm0, %v5777_v35 }
 0x7a4   : > { %v5781_v53 = vpop.f32.mrf.mxu1 }
 0x7a5   : > { %v5782_v43 = vadd.f32 %v9979_v17, %v5781_v53 }
 0x7a6   : > { %v5783_v37 = vpop.f32.mrf.mxu1 }
 0x7a7   : > { %5824 = vst.msk [vmem:[%s9541_s15 + $0xe8] sm:$0xff] %vm297_vm0, %v5782_v43  ;;  %6437 = vmatmul.mubr.msk.f32.gmra.mxu1 %vm297_vm0, %v5782_v43 }
 0x7b4   : > { %v5786_v36 = vpop.f32.mrf.mxu1 }
 0x7b5   : > { %v5787_v30 = vadd.f32 %v9979_v17, %v5786_v36 }
 0x7b6   : > { %v5788_v24 = vpop.f32.mrf.mxu1 }
 0x7b7   : > { %5825 = vst.msk [vmem:[%s9541_s15 + $0xf0] sm:$0xff] %vm297_vm0, %v5787_v30  ;;  %6439 = vmatprep.mubr.msk.f32.mxu1 %vm297_vm0, %v5787_v30 }
 0x7bc   : > { %v5791_v9 = vpop.f32.mrf.mxu1 }
 0x7bd   : > { %v5792_v15 = vadd.f32 %v9979_v17, %v5791_v9 }
 0x7be   : > { %v5793_v29 = vpop.f32.mrf.mxu1 }
 0x7bf   : > { %5826 = vst.msk [vmem:[%s9541_s15 + $0xf8] sm:$0xff] %vm297_vm0, %v5792_v15  ;;  %6440 = vmatmul.mubr.msk.f32.gmra.mxu1 %vm297_vm0, %v5792_v15 }
 0x7c0   : > { %v6396_v17 = vpop.f32.mrf.mxu1 }
 0x7c1   : > { %v6003_v59 = vadd.f32 %v6396_v17, %v10165_v38 }
 0x7c2   : > { %v5997_v52 = vpop.f32.mrf.mxu1 }
 0x7c3   : > { %6158 = vst.msk [vmem:[%s10174_s13 + $0x8] sm:$0xff] %vm6156_vm2, %v6003_v59  ;;  %v5998_v41 = vadd.f32 %v10165_v38, %v5997_v52 }
 0x7c4   : > { %v6399_v61 = vpop.f32.mrf.mxu1 }
 0x7c5   : > { %6157 = vst.msk [vmem:[%s10174_s13] sm:$0xff] %vm6156_vm2, %v5998_v41  ;;  %v6013_v46 = vadd.f32 %v6399_v61, %v10165_v38 }
 0x7c6   : > { %v6007_v39 = vpop.f32.mrf.mxu1 }
 0x7c7   : > { %6160 = vst.msk [vmem:[%s10174_s13 + $0x18] sm:$0xff] %vm6156_vm2, %v6013_v46  ;;  %v6008_v23 = vadd.f32 %v10165_v38, %v6007_v39 }
 0x7c8   : > { %v6402_v60 = vpop.f32.mrf.mxu1 }
 0x7c9   : > { %6159 = vst.msk [vmem:[%s10174_s13 + $0x10] sm:$0xff] %vm6156_vm2, %v6008_v23  ;;  %v6023_v11 = vadd.f32 %v6402_v60, %v10165_v38 }
 0x7ca   : > { %v6017_v10 = vpop.f32.mrf.mxu1 }
 0x7cb   : > { %6162 = vst.msk [vmem:[%s10174_s13 + $0x28] sm:$0xff] %vm6156_vm2, %v6023_v11  ;;  %v6018_v22 = vadd.f32 %v10165_v38, %v6017_v10 }
 0x7cc   : > { %v6405_v16 = vpop.f32.mrf.mxu1 }
 0x7cd   : > { %6161 = vst.msk [vmem:[%s10174_s13 + $0x20] sm:$0xff] %vm6156_vm2, %v6018_v22  ;;  %v6033_v62 = vadd.f32 %v6405_v16, %v10165_v38 }
 0x7ce   : > { %v6027_v7 = vpop.f32.mrf.mxu1 }
 0x7cf   : > { %6164 = vst.msk [vmem:[%s10174_s13 + $0x38] sm:$0xff] %vm6156_vm2, %v6033_v62  ;;  %v6028_v50 = vadd.f32 %v10165_v38, %v6027_v7 }
 0x7d0   : > { %v6408_v31 = vpop.f32.mrf.mxu1 }
 0x7d1   : > { %6163 = vst.msk [vmem:[%s10174_s13 + $0x30] sm:$0xff] %vm6156_vm2, %v6028_v50  ;;  %v6043_v54 = vadd.f32 %v6408_v31, %v10165_v38 }
 0x7d2   : > { %v6037_v55 = vpop.f32.mrf.mxu1 }
 0x7d3   : > { %6166 = vst.msk [vmem:[%s10174_s13 + $0x48] sm:$0xff] %vm6156_vm2, %v6043_v54  ;;  %v6038_v13 = vadd.f32 %v10165_v38, %v6037_v55 }
 0x7d4   : > { %v6411_v56 = vpop.f32.mrf.mxu1 }
 0x7d5   : > { %6165 = vst.msk [vmem:[%s10174_s13 + $0x40] sm:$0xff] %vm6156_vm2, %v6038_v13  ;;  %v6053_v14 = vadd.f32 %v6411_v56, %v10165_v38 }
 0x7d6   : > { %v6047_v42 = vpop.f32.mrf.mxu1 }
 0x7d7   : > { %6168 = vst.msk [vmem:[%s10174_s13 + $0x58] sm:$0xff] %vm6156_vm2, %v6053_v14  ;;  %v6048_v63 = vadd.f32 %v10165_v38, %v6047_v42 }
 0x7d8   : > { %v6414_v49 = vpop.f32.mrf.mxu1 }
 0x7d9   : > { %6167 = vst.msk [vmem:[%s10174_s13 + $0x50] sm:$0xff] %vm6156_vm2, %v6048_v63  ;;  %v6063_v27 = vadd.f32 %v6414_v49, %v10165_v38 }
 0x7da   : > { %v6057_v58 = vpop.f32.mrf.mxu1 }
 0x7db   : > { %6170 = vst.msk [vmem:[%s10174_s13 + $0x68] sm:$0xff] %vm6156_vm2, %v6063_v27  ;;  %v6058_v25 = vadd.f32 %v10165_v38, %v6057_v58 }
 0x7dc   : > { %v6417_v21 = vpop.f32.mrf.mxu1 }
 0x7dd   : > { %6169 = vst.msk [vmem:[%s10174_s13 + $0x60] sm:$0xff] %vm6156_vm2, %v6058_v25  ;;  %v6073_v1 = vadd.f32 %v6417_v21, %v10165_v38 }
 0x7de   : > { %v6067_v5 = vpop.f32.mrf.mxu1 }
 0x7df   : > { %6172 = vst.msk [vmem:[%s10174_s13 + $0x78] sm:$0xff] %vm6156_vm2, %v6073_v1  ;;  %v6068_v44 = vadd.f32 %v10165_v38, %v6067_v5 }
 0x7e0   : > { %v6420_v40 = vpop.f32.mrf.mxu1 }
 0x7e1   : > { %6171 = vst.msk [vmem:[%s10174_s13 + $0x70] sm:$0xff] %vm6156_vm2, %v6068_v44  ;;  %v6083_v3 = vadd.f32 %v6420_v40, %v10165_v38 }
 0x7e2   : > { %v6077_v48 = vpop.f32.mrf.mxu1 }
 0x7e3   : > { %6174 = vst.msk [vmem:[%s10174_s13 + $0x88] sm:$0xff] %vm6156_vm2, %v6083_v3  ;;  %v6078_v47 = vadd.f32 %v10165_v38, %v6077_v48 }
 0x7e4   : > { %v6423_v18 = vpop.f32.mrf.mxu1 }
 0x7e5   : > { %6173 = vst.msk [vmem:[%s10174_s13 + $0x80] sm:$0xff] %vm6156_vm2, %v6078_v47  ;;  %v6093_v6 = vadd.f32 %v6423_v18, %v10165_v38 }
 0x7e6   : > { %v6087_v34 = vpop.f32.mrf.mxu1 }
 0x7e7   : > { %6176 = vst.msk [vmem:[%s10174_s13 + $0x98] sm:$0xff] %vm6156_vm2, %v6093_v6  ;;  %v6088_v0 = vadd.f32 %v10165_v38, %v6087_v34 }
 0x7e9   : > { %6175 = vst.msk [vmem:[%s10174_s13 + $0x90] sm:$0xff] %vm6156_vm2, %v6088_v0 }
 0x800   : > { %v6426_v8 = vpop.f32.mrf.mxu1 }
 0x801   : > { %v6103_v4 = vadd.f32 %v6426_v8, %v10165_v38 }
 0x802   : > { %v6097_v51 = vpop.f32.mrf.mxu1 }
 0x803   : > { %6178 = vst.msk [vmem:[%s10174_s13 + $0xa8] sm:$0xff] %vm6156_vm2, %v6103_v4  ;;  %v6098_v57 = vadd.f32 %v10165_v38, %v6097_v51 }
 0x805   : > { %6177 = vst.msk [vmem:[%s10174_s13 + $0xa0] sm:$0xff] %vm6156_vm2, %v6098_v57 }
 0x83c   : > { %v6429_v32 = vpop.f32.mrf.mxu1 }
 0x83d   : > { %v6113_v20 = vadd.f32 %v6429_v32, %v10165_v38 }
 0x83e   : > { %v6107_v19 = vpop.f32.mrf.mxu1 }
 0x83f   : > { %6180 = vst.msk [vmem:[%s10174_s13 + $0xb8] sm:$0xff] %vm6156_vm2, %v6113_v20  ;;  %v6108_v12 = vadd.f32 %v10165_v38, %v6107_v19 }
 0x840   : > { %v6432_v26 = vpop.f32.mrf.mxu1 }
 0x841   : > { %6179 = vst.msk [vmem:[%s10174_s13 + $0xb0] sm:$0xff] %vm6156_vm2, %v6108_v12  ;;  %v6123_v28 = vadd.f32 %v6432_v26, %v10165_v38 }
 0x842   : > { %v6117_v45 = vpop.f32.mrf.mxu1 }
 0x843   : > { %6182 = vst.msk [vmem:[%s10174_s13 + $0xc8] sm:$0xff] %vm6156_vm2, %v6123_v28  ;;  %v6118_v2 = vadd.f32 %v10165_v38, %v6117_v45 }
 0x844   : > { %v6435_v35 = vpop.f32.mrf.mxu1 }
 0x845   : > { %6181 = vst.msk [vmem:[%s10174_s13 + $0xc0] sm:$0xff] %vm6156_vm2, %v6118_v2  ;;  %v6133_v33 = vadd.f32 %v6435_v35, %v10165_v38 }
 0x846   : > { %v6127_v53 = vpop.f32.mrf.mxu1 }
 0x847   : > { %6184 = vst.msk [vmem:[%s10174_s13 + $0xd8] sm:$0xff] %vm6156_vm2, %v6133_v33  ;;  %v6128_v43 = vadd.f32 %v10165_v38, %v6127_v53 }
 0x849   : > { %6183 = vst.msk [vmem:[%s10174_s13 + $0xd0] sm:$0xff] %vm6156_vm2, %v6128_v43 }
 0x867   : > { %v6438_v37 = vpop.f32.mrf.mxu1 }
 0x868   : > { %v6143_v36 = vadd.f32 %v6438_v37, %v10165_v38 }
 0x869   : > { %v6137_v30 = vpop.f32.mrf.mxu1 }
 0x86a   : > { %6186 = vst.msk [vmem:[%s10174_s13 + $0xe8] sm:$0xff] %vm6156_vm2, %v6143_v36  ;;  %v6138_v24 = vadd.f32 %v10165_v38, %v6137_v30 }
 0x86c   : > { %6185 = vst.msk [vmem:[%s10174_s13 + $0xe0] sm:$0xff] %vm6156_vm2, %v6138_v24 }
 0x87f   : > { %v6441_v9 = vpop.f32.mrf.mxu1 }
 0x880   : > { %v6153_v15 = vadd.f32 %v6441_v9, %v10165_v38 }
 0x881   : > { %v6147_v29 = vpop.f32.mrf.mxu1 }
 0x882   : > { %6188 = vst.msk [vmem:[%s10174_s13 + $0xf8] sm:$0xff] %vm6156_vm2, %v6153_v15  ;;  %v6148_v17 = vadd.f32 %v10165_v38, %v6147_v29 }
 0x884   : > { %6187 = vst.msk [vmem:[%s10174_s13 + $0xf0] sm:$0xff] %vm6156_vm2, %v6148_v17 }
 0x885 PF: > { %s17_s21 = sadd.s32 1, %s6527_s21  }
 0x886   : > { %p14_p4 = scmp.ge.s32.totalorder %s17_s21, 4  }
 0x888   :  { %16 = sbr.rel (!%p14_p4) target bundleno = 1 (0x1), region = 88 }

</bundles_post_ra>
